<compile_context>
chip_gen: v7x
topology: tpu7x:2x2x1
jax: 0.10.0
libtpu: 0.0.40
codegen_flags: <defaults>
</compile_context>

<pallas_src>
import jax
import jax.numpy as jnp
from jax.experimental import pallas as pl
from jax.experimental.pallas import tpu as pltpu

# ---- problem sizes (consistent with the module's forward) --------------------
N_NODES = 16                      # nodes per graph
IN_FEATS = 8
H_FEATS = 32
OUT_FEATS = 16
GRAPHS_PER_GROUP = 8                          # 8 graphs * 16 nodes = 128 lanes
M = GRAPHS_PER_GROUP * N_NODES                # packed nodes per group = 128
GROUPS_PER_BLOCK = 16                         # groups per grid step
GRAPHS_PER_BLOCK = GROUPS_PER_BLOCK * GRAPHS_PER_GROUP   # 128 graphs / step


def gcn_kernel(a_ref, x_ref, w1_ref, b1_ref, w2_ref, b2_ref,
               v_ref, pool_ref, c_ref, out_ref):
    """GCN forward for GRAPHS_PER_BLOCK graphs (GROUPS_PER_BLOCK groups of 8)."""
    w1_t = w1_ref[...]            # (H, IN)   bf16
    w2_t = w2_ref[...]            # (H, H)    bf16
    b1_c = b1_ref[...]            # (H, 1)    f32
    b2_c = b2_ref[...]            # (H, 1)    f32
    v_row = v_ref[...]            # (1, H)    bf16   (= wl @ W3^T, folded)
    pool = pool_ref[...]          # (M, 8)    bf16   per-graph mean pooling
    c = c_ref[0]                  # scalar f32 (SMEM): wl.b3 + bl, folded

    def leaky(h):                 # nn.LeakyReLU(0.1), f32 on the VPU
        return jnp.where(h > 0, h, 0.1 * h)

    # Static unroll over the 16 groups in this block (small bodies, live ranges
    # die each iteration; avoids dynamic-offset lane stores).
    for g in range(GROUPS_PER_BLOCK):
        a_t = a_ref[g]            # (M, M) block-diag A_hat^T for this group's 8 graphs
        x_g = x_ref[g]            # (IN, M) transposed node features

        # conv1: adjacency first (LHS is only IN=8 rows), then W1^T; + b1; act.
        t = jnp.dot(x_g, a_t, preferred_element_type=jnp.float32)            # (IN, M)
        h = jnp.dot(w1_t, t.astype(w1_t.dtype),
                    preferred_element_type=jnp.float32) + b1_c               # (H, M)
        h = leaky(h)

        # conv2 applied twice (module forward: conv1, conv2, conv2, conv3).
        for _ in range(2):
            t = jnp.dot(w2_t, h.astype(w2_t.dtype),
                        preferred_element_type=jnp.float32)                  # (H, M)
            h = leaky(jnp.dot(t.astype(a_t.dtype), a_t,
                              preferred_element_type=jnp.float32) + b2_c)

        # conv3 + Linear(out_feats, 1) + per-graph mean, all folded (exact).
        r = jnp.dot(v_row, h.astype(v_row.dtype),
                    preferred_element_type=jnp.float32)                      # (1, M)
        r = jnp.dot(r.astype(a_t.dtype), a_t,
                    preferred_element_type=jnp.float32)                      # (1, M)
        pooled = jnp.dot(r.astype(pool.dtype), pool,
                         preferred_element_type=jnp.float32)                 # (1, 8)

        lo = g * GRAPHS_PER_GROUP
        # Writes land in the out block's VMEM buffer; one lane-dense (1,1,128)
        # HBM writeback happens per grid step.
        out_ref[:, :, lo:lo + GRAPHS_PER_GROUP] = (pooled + c)[None]


def gcn_forward(a_norm, x, params, matmul_dtype=jnp.bfloat16):
    """Batched GCN forward.

    a_norm: (B, N, N) per-graph 'both'-normalized adjacency (A_hat).
    x:      (B, N, IN_FEATS) node features.
    params: (w1, b1, w2, b2, w3, b3, wl, bl) in PyTorch orientation.
    Returns (B, 1) per-graph readout (== dgl.mean_nodes of the final Linear).
    """
    w1, b1, w2, b2, w3, b3, wl, bl = params
    B, N, _ = a_norm.shape
    assert N == N_NODES

    # Pad the batch to a multiple of GRAPHS_PER_BLOCK with empty graphs.
    pad = (-B) % GRAPHS_PER_BLOCK
    if pad:
        a_norm = jnp.concatenate(
            [a_norm, jnp.zeros((pad, N, N), a_norm.dtype)], axis=0)
        x = jnp.concatenate(
            [x, jnp.zeros((pad, N, IN_FEATS), x.dtype)], axis=0)
    Bp = B + pad
    n_groups = Bp // GRAPHS_PER_GROUP
    n_blocks = n_groups // GROUPS_PER_BLOCK

    # ---- layout plumbing (plain JAX glue, outside the kernel) ---------------
    # Block-diagonal transposed adjacency per 8-graph group: (n_groups, M, M).
    a_grp = a_norm.reshape(n_groups, GRAPHS_PER_GROUP, N, N)
    eye = jnp.eye(GRAPHS_PER_GROUP, dtype=a_norm.dtype)
    a_bdT = jnp.einsum('ts,gtcr->gtrsc', eye, a_grp).reshape(n_groups, M, M)
    a_bdT = a_bdT.astype(matmul_dtype)

    # Node features per group, transposed: (n_groups, IN, M); lanes = packed nodes.
    xT = x.reshape(n_groups, M, IN_FEATS).transpose(0, 2, 1).astype(matmul_dtype)

    # Per-graph mean pooling over each graph's 16 node lanes: (M, 8).
    pool = jnp.kron(jnp.eye(GRAPHS_PER_GROUP, dtype=jnp.float32),
                    jnp.ones((N, 1), jnp.float32) / N).astype(matmul_dtype)

    # Weights for the (features, nodes) layout; conv3 + Linear folded.
    w1T = w1.T.astype(matmul_dtype)                          # (H, IN)
    w2T = w2.T.astype(matmul_dtype)                          # (H, H)
    b1c = b1.reshape(H_FEATS, 1).astype(jnp.float32)
    b2c = b2.reshape(H_FEATS, 1).astype(jnp.float32)
    v_row = jnp.dot(wl, w3.T).astype(matmul_dtype)           # (1, H) = wl @ W3^T
    c = (jnp.dot(wl[0], b3) + bl[0]).reshape(1).astype(jnp.float32)  # scalar bias

    operands = (a_bdT, xT, w1T, b1c, w2T, b2c, v_row, pool, c)

    # ---- advisory cost estimate for the XLA scheduler ------------------------
    flops_per_group = 2 * (
        IN_FEATS * M * M + H_FEATS * IN_FEATS * M                 # conv1
        + 2 * (H_FEATS * H_FEATS * M + H_FEATS * M * M)           # conv2 (x2)
        + H_FEATS * M + M * M + M * GRAPHS_PER_GROUP              # folded conv3+Linear+mean
    )
    bytes_accessed = sum(int(a.size) * a.dtype.itemsize for a in operands) \
        + n_blocks * GRAPHS_PER_BLOCK * 4
    cost = pl.CostEstimate(flops=n_groups * flops_per_group,
                           transcendentals=0,
                           bytes_accessed=bytes_accessed)

    out = pl.pallas_call(
        gcn_kernel,
        out_shape=jax.ShapeDtypeStruct((n_blocks, 1, GRAPHS_PER_BLOCK), jnp.float32),
        grid=(n_blocks,),
        in_specs=[
            pl.BlockSpec((GROUPS_PER_BLOCK, M, M), lambda i: (i, 0, 0)),        # a_bdT
            pl.BlockSpec((GROUPS_PER_BLOCK, IN_FEATS, M), lambda i: (i, 0, 0)), # xT
            pl.BlockSpec((H_FEATS, IN_FEATS), lambda i: (0, 0)),                # w1T
            pl.BlockSpec((H_FEATS, 1), lambda i: (0, 0)),                       # b1
            pl.BlockSpec((H_FEATS, H_FEATS), lambda i: (0, 0)),                 # w2T
            pl.BlockSpec((H_FEATS, 1), lambda i: (0, 0)),                       # b2
            pl.BlockSpec((1, H_FEATS), lambda i: (0, 0)),                       # v_row
            pl.BlockSpec((M, GRAPHS_PER_GROUP), lambda i: (0, 0)),              # pool
            pl.BlockSpec(memory_space=pltpu.MemorySpace.SMEM),                  # c (scalar)
        ],
        out_specs=pl.BlockSpec((1, 1, GRAPHS_PER_BLOCK), lambda i: (i, 0, 0)),
        compiler_params=pltpu.CompilerParams(
            dimension_semantics=("parallel",)),
        cost_estimate=cost,
    )(*operands)

    return out.reshape(Bp, 1)[:B]


# ---- independent pure-f32 reference (mirrors the MODULE structure) -----------
def gcn_reference(a_norm, x, params):
    w1, b1, w2, b2, w3, b3, wl, bl = params

    def conv(a, h, w, b):                     # GraphConv: A_hat @ (H @ W) + b
        return jnp.dot(a, jnp.dot(h, w)) + b[None, :]

    def leaky(h):
        return jnp.where(h > 0, h, 0.1 * h)

    def one_graph(a, xg):
        h = leaky(conv(a, xg, w1, b1))
        h = leaky(conv(a, h, w2, b2))
        h = leaky(conv(a, h, w2, b2))
        h = conv(a, h, w3, b3)
        y = jnp.dot(h, wl[0]) + bl[0]         # Linear(out_feats, 1) per node
        return jnp.mean(y)                    # dgl.mean_nodes

    return jax.vmap(one_graph)(a_norm, x).reshape(-1, 1)


# ---- deterministic synthetic inputs ------------------------------------------
def make_params(key):
    ks = jax.random.split(key, 8)
    scale = 0.1
    w1 = scale * jax.random.normal(ks[0], (IN_FEATS, H_FEATS), jnp.float32)
    b1 = scale * jax.random.normal(ks[1], (H_FEATS,), jnp.float32)
    w2 = scale * jax.random.normal(ks[2], (H_FEATS, H_FEATS), jnp.float32)
    b2 = scale * jax.random.normal(ks[3], (H_FEATS,), jnp.float32)
    w3 = scale * jax.random.normal(ks[4], (H_FEATS, OUT_FEATS), jnp.float32)
    b3 = scale * jax.random.normal(ks[5], (OUT_FEATS,), jnp.float32)
    wl = scale * jax.random.normal(ks[6], (1, OUT_FEATS), jnp.float32)  # nn.Linear(out,1).weight
    bl = scale * jax.random.normal(ks[7], (1,), jnp.float32)
    return (w1, b1, w2, b2, w3, b3, wl, bl)


def make_graphs(key, batch, n):
    """Random directed graphs -> dense GraphConv 'both'-normalized adjacency."""
    adj = (jax.random.uniform(key, (batch, n, n)) < 0.3).astype(jnp.float32)
    in_deg = jnp.maximum(adj.sum(axis=2), 1.0)     # clamp(min=1), as DGL does
    out_deg = jnp.maximum(adj.sum(axis=1), 1.0)
    return adj * (1.0 / jnp.sqrt(in_deg))[:, :, None] \
               * (1.0 / jnp.sqrt(out_deg))[:, None, :]


if __name__ == "__main__":
    key = jax.random.PRNGKey(0)
    k_graph, k_feat, k_param = jax.random.split(key, 3)

    BATCH = 256                                              # 2 grid steps of 128 graphs
    a_norm = make_graphs(k_graph, BATCH, N_NODES)            # (256, 16, 16)
    x = jax.random.normal(k_feat, (BATCH, N_NODES, IN_FEATS), jnp.float32)
    params = make_params(k_param)

    out = jax.block_until_ready(gcn_forward(a_norm, x, params))
    assert out.shape == (BATCH, 1)

    ref = gcn_reference(a_norm, x, params)
    max_err = float(jnp.max(jnp.abs(out - ref)))
    assert max_err < 1e-2, f"mismatch vs f32 reference: {max_err}"

    print("KERNEL_OK")
</pallas_src>

<mosaic_0001>
module attributes {stable_mosaic.version = 11 : i64} {
  func.func @gcn_kernel(%arg0: i32, %arg1: memref<16x128x128xbf16, #tpu.memory_space<vmem>>, %arg2: memref<16x8x128xbf16, #tpu.memory_space<vmem>>, %arg3: memref<32x8xbf16, #tpu.memory_space<vmem>>, %arg4: memref<32x1xf32, #tpu.memory_space<vmem>>, %arg5: memref<32x32xbf16, #tpu.memory_space<vmem>>, %arg6: memref<32x1xf32, #tpu.memory_space<vmem>>, %arg7: memref<1x32xbf16, #tpu.memory_space<vmem>>, %arg8: memref<128x8xbf16, #tpu.memory_space<vmem>>, %arg9: memref<1xf32, #tpu.memory_space<smem>>, %arg10: memref<1x1x128xf32, #tpu.memory_space<vmem>>) attributes {dimension_semantics = [#tpu.dimension_semantics<parallel>], iteration_bounds = array<i64: 2>, scalar_prefetch = 0 : i64, scratch_operands = 0 : i64, tpu.core_type = #tpu.core_type<tc>, window_params = [{transform_indices = @transform_0, window_bounds = array<i64: 16, 128, 128>}, {transform_indices = @transform_1, window_bounds = array<i64: 16, 8, 128>}, {pipeline_mode = #tpu.pipeline_mode<synchronous>, transform_indices = @transform_2, window_bounds = array<i64: 32, 8>}, {pipeline_mode = #tpu.pipeline_mode<synchronous>, transform_indices = @transform_3, window_bounds = array<i64: 32, 1>}, {pipeline_mode = #tpu.pipeline_mode<synchronous>, transform_indices = @transform_4, window_bounds = array<i64: 32, 32>}, {pipeline_mode = #tpu.pipeline_mode<synchronous>, transform_indices = @transform_5, window_bounds = array<i64: 32, 1>}, {pipeline_mode = #tpu.pipeline_mode<synchronous>, transform_indices = @transform_6, window_bounds = array<i64: 1, 32>}, {pipeline_mode = #tpu.pipeline_mode<synchronous>, transform_indices = @transform_7, window_bounds = array<i64: 128, 8>}, {transform_indices = @transform_8, window_bounds = array<i64: 1>}, {transform_indices = @transform_9, window_bounds = array<i64: 1, 1, 128>}]} {
    %c0 = arith.constant 0 : index
    %c0_0 = arith.constant 0 : index
    %0 = vector.load %arg3[%c0, %c0_0] : memref<32x8xbf16, #tpu.memory_space<vmem>>, vector<32x8xbf16>
    %c0_1 = arith.constant 0 : index
    %c0_2 = arith.constant 0 : index
    %1 = vector.load %arg5[%c0_1, %c0_2] : memref<32x32xbf16, #tpu.memory_space<vmem>>, vector<32x32xbf16>
    %c0_3 = arith.constant 0 : index
    %c0_4 = arith.constant 0 : index
    %2 = vector.load %arg4[%c0_3, %c0_4] : memref<32x1xf32, #tpu.memory_space<vmem>>, vector<32x1xf32>
    %c0_5 = arith.constant 0 : index
    %c0_6 = arith.constant 0 : index
    %3 = vector.load %arg6[%c0_5, %c0_6] : memref<32x1xf32, #tpu.memory_space<vmem>>, vector<32x1xf32>
    %c0_7 = arith.constant 0 : index
    %c0_8 = arith.constant 0 : index
    %4 = vector.load %arg7[%c0_7, %c0_8] : memref<1x32xbf16, #tpu.memory_space<vmem>>, vector<1x32xbf16>
    %c0_9 = arith.constant 0 : index
    %c0_10 = arith.constant 0 : index
    %5 = vector.load %arg8[%c0_9, %c0_10] : memref<128x8xbf16, #tpu.memory_space<vmem>>, vector<128x8xbf16>
    %c0_11 = arith.constant 0 : index
    %6 = memref.load %arg9[%c0_11] : memref<1xf32, #tpu.memory_space<smem>>
    %c0_12 = arith.constant 0 : index
    %c0_13 = arith.constant 0 : index
    %c0_14 = arith.constant 0 : index
    %7 = vector.load %arg1[%c0_12, %c0_13, %c0_14] : memref<16x128x128xbf16, #tpu.memory_space<vmem>>, vector<1x128x128xbf16>
    %8 = vector.shape_cast %7 : vector<1x128x128xbf16> to vector<128x128xbf16>
    %c0_15 = arith.constant 0 : index
    %c0_16 = arith.constant 0 : index
    %c0_17 = arith.constant 0 : index
    %9 = vector.load %arg2[%c0_15, %c0_16, %c0_17] : memref<16x8x128xbf16, #tpu.memory_space<vmem>>, vector<1x8x128xbf16>
    %10 = vector.shape_cast %9 : vector<1x8x128xbf16> to vector<8x128xbf16>
    %cst = arith.constant dense<0.000000e+00> : vector<8x128xf32>
    %11 = tpu.matmul %10, %8, %cst {dimension_numbers = #tpu.dot_dimension_numbers<[1], [0], [0], [1], [0, 0, 1, 1], [], []>} : vector<8x128xbf16>, vector<128x128xbf16>, vector<8x128xf32> -> vector<8x128xf32>
    %12 = arith.truncf %11 : vector<8x128xf32> to vector<8x128xbf16>
    %cst_18 = arith.constant dense<0.000000e+00> : vector<32x128xf32>
    %13 = tpu.matmul %0, %12, %cst_18 {dimension_numbers = #tpu.dot_dimension_numbers<[1], [0], [0], [1], [0, 0, 1, 1], [], []>} : vector<32x8xbf16>, vector<8x128xbf16>, vector<32x128xf32> -> vector<32x128xf32>
    %14 = vector.broadcast %2 : vector<32x1xf32> to vector<32x128xf32>
    %15 = arith.addf %13, %14 : vector<32x128xf32>
    %cst_19 = arith.constant 0.000000e+00 : f32
    %16 = vector.broadcast %cst_19 : f32 to vector<32x128xf32>
    %17 = arith.cmpf ogt, %15, %16 : vector<32x128xf32>
    %cst_20 = arith.constant 1.000000e-01 : f32
    %18 = vector.broadcast %cst_20 : f32 to vector<32x128xf32>
    %19 = arith.mulf %18, %15 : vector<32x128xf32>
    %20 = arith.select %17, %15, %19 : vector<32x128xi1>, vector<32x128xf32>
    %21 = arith.truncf %20 : vector<32x128xf32> to vector<32x128xbf16>
    %cst_21 = arith.constant dense<0.000000e+00> : vector<32x128xf32>
    %22 = tpu.matmul %1, %21, %cst_21 {dimension_numbers = #tpu.dot_dimension_numbers<[1], [0], [0], [1], [0, 0, 1, 1], [], []>} : vector<32x32xbf16>, vector<32x128xbf16>, vector<32x128xf32> -> vector<32x128xf32>
    %23 = arith.truncf %22 : vector<32x128xf32> to vector<32x128xbf16>
    %cst_22 = arith.constant dense<0.000000e+00> : vector<32x128xf32>
    %24 = tpu.matmul %23, %8, %cst_22 {dimension_numbers = #tpu.dot_dimension_numbers<[1], [0], [0], [1], [0, 0, 1, 1], [], []>} : vector<32x128xbf16>, vector<128x128xbf16>, vector<32x128xf32> -> vector<32x128xf32>
    %25 = vector.broadcast %3 : vector<32x1xf32> to vector<32x128xf32>
    %26 = arith.addf %24, %25 : vector<32x128xf32>
    %cst_23 = arith.constant 0.000000e+00 : f32
    %27 = vector.broadcast %cst_23 : f32 to vector<32x128xf32>
    %28 = arith.cmpf ogt, %26, %27 : vector<32x128xf32>
    %cst_24 = arith.constant 1.000000e-01 : f32
    %29 = vector.broadcast %cst_24 : f32 to vector<32x128xf32>
    %30 = arith.mulf %29, %26 : vector<32x128xf32>
    %31 = arith.select %28, %26, %30 : vector<32x128xi1>, vector<32x128xf32>
    %32 = arith.truncf %31 : vector<32x128xf32> to vector<32x128xbf16>
    %cst_25 = arith.constant dense<0.000000e+00> : vector<32x128xf32>
    %33 = tpu.matmul %1, %32, %cst_25 {dimension_numbers = #tpu.dot_dimension_numbers<[1], [0], [0], [1], [0, 0, 1, 1], [], []>} : vector<32x32xbf16>, vector<32x128xbf16>, vector<32x128xf32> -> vector<32x128xf32>
    %34 = arith.truncf %33 : vector<32x128xf32> to vector<32x128xbf16>
    %cst_26 = arith.constant dense<0.000000e+00> : vector<32x128xf32>
    %35 = tpu.matmul %34, %8, %cst_26 {dimension_numbers = #tpu.dot_dimension_numbers<[1], [0], [0], [1], [0, 0, 1, 1], [], []>} : vector<32x128xbf16>, vector<128x128xbf16>, vector<32x128xf32> -> vector<32x128xf32>
    %36 = vector.broadcast %3 : vector<32x1xf32> to vector<32x128xf32>
    %37 = arith.addf %35, %36 : vector<32x128xf32>
    %cst_27 = arith.constant 0.000000e+00 : f32
    %38 = vector.broadcast %cst_27 : f32 to vector<32x128xf32>
    %39 = arith.cmpf ogt, %37, %38 : vector<32x128xf32>
    %cst_28 = arith.constant 1.000000e-01 : f32
    %40 = vector.broadcast %cst_28 : f32 to vector<32x128xf32>
    %41 = arith.mulf %40, %37 : vector<32x128xf32>
    %42 = arith.select %39, %37, %41 : vector<32x128xi1>, vector<32x128xf32>
    %43 = arith.truncf %42 : vector<32x128xf32> to vector<32x128xbf16>
    %cst_29 = arith.constant dense<0.000000e+00> : vector<1x128xf32>
    %44 = tpu.matmul %4, %43, %cst_29 {dimension_numbers = #tpu.dot_dimension_numbers<[1], [0], [0], [1], [0, 0, 1, 1], [], []>} : vector<1x32xbf16>, vector<32x128xbf16>, vector<1x128xf32> -> vector<1x128xf32>
    %45 = arith.truncf %44 : vector<1x128xf32> to vector<1x128xbf16>
    %cst_30 = arith.constant dense<0.000000e+00> : vector<1x128xf32>
    %46 = tpu.matmul %45, %8, %cst_30 {dimension_numbers = #tpu.dot_dimension_numbers<[1], [0], [0], [1], [0, 0, 1, 1], [], []>} : vector<1x128xbf16>, vector<128x128xbf16>, vector<1x128xf32> -> vector<1x128xf32>
    %47 = arith.truncf %46 : vector<1x128xf32> to vector<1x128xbf16>
    %cst_31 = arith.constant dense<0.000000e+00> : vector<1x8xf32>
    %48 = tpu.matmul %47, %5, %cst_31 {dimension_numbers = #tpu.dot_dimension_numbers<[1], [0], [0], [1], [0, 0, 1, 1], [], []>} : vector<1x128xbf16>, vector<128x8xbf16>, vector<1x8xf32> -> vector<1x8xf32>
    %49 = vector.broadcast %6 : f32 to vector<1x8xf32>
    %50 = arith.addf %48, %49 : vector<1x8xf32>
    %51 = vector.shape_cast %50 : vector<1x8xf32> to vector<1x1x8xf32>
    %c0_32 = arith.constant 0 : index
    %c0_33 = arith.constant 0 : index
    %c0_34 = arith.constant 0 : index
    %52 = vector.load %arg10[%c0_32, %c0_33, %c0_34] : memref<1x1x128xf32, #tpu.memory_space<vmem>>, vector<1x1x8xf32>
    tpu.vector_store %arg10[%c0_32, %c0_33, %c0_34], %51 {strides = array<i32>} : memref<1x1x128xf32, #tpu.memory_space<vmem>>, vector<1x1x8xf32>,
    %c1 = arith.constant 1 : index
    %c0_35 = arith.constant 0 : index
    %c0_36 = arith.constant 0 : index
    %53 = vector.load %arg1[%c1, %c0_35, %c0_36] : memref<16x128x128xbf16, #tpu.memory_space<vmem>>, vector<1x128x128xbf16>
    %54 = vector.shape_cast %53 : vector<1x128x128xbf16> to vector<128x128xbf16>
    %c1_37 = arith.constant 1 : index
    %c0_38 = arith.constant 0 : index
    %c0_39 = arith.constant 0 : index
    %55 = vector.load %arg2[%c1_37, %c0_38, %c0_39] : memref<16x8x128xbf16, #tpu.memory_space<vmem>>, vector<1x8x128xbf16>
    %56 = vector.shape_cast %55 : vector<1x8x128xbf16> to vector<8x128xbf16>
    %cst_40 = arith.constant dense<0.000000e+00> : vector<8x128xf32>
    %57 = tpu.matmul %56, %54, %cst_40 {dimension_numbers = #tpu.dot_dimension_numbers<[1], [0], [0], [1], [0, 0, 1, 1], [], []>} : vector<8x128xbf16>, vector<128x128xbf16>, vector<8x128xf32> -> vector<8x128xf32>
    %58 = arith.truncf %57 : vector<8x128xf32> to vector<8x128xbf16>
    %cst_41 = arith.constant dense<0.000000e+00> : vector<32x128xf32>
    %59 = tpu.matmul %0, %58, %cst_41 {dimension_numbers = #tpu.dot_dimension_numbers<[1], [0], [0], [1], [0, 0, 1, 1], [], []>} : vector<32x8xbf16>, vector<8x128xbf16>, vector<32x128xf32> -> vector<32x128xf32>
    %60 = vector.broadcast %2 : vector<32x1xf32> to vector<32x128xf32>
    %61 = arith.addf %59, %60 : vector<32x128xf32>
    %cst_42 = arith.constant 0.000000e+00 : f32
    %62 = vector.broadcast %cst_42 : f32 to vector<32x128xf32>
    %63 = arith.cmpf ogt, %61, %62 : vector<32x128xf32>
    %cst_43 = arith.constant 1.000000e-01 : f32
    %64 = vector.broadcast %cst_43 : f32 to vector<32x128xf32>
    %65 = arith.mulf %64, %61 : vector<32x128xf32>
    %66 = arith.select %63, %61, %65 : vector<32x128xi1>, vector<32x128xf32>
    %67 = arith.truncf %66 : vector<32x128xf32> to vector<32x128xbf16>
    %cst_44 = arith.constant dense<0.000000e+00> : vector<32x128xf32>
    %68 = tpu.matmul %1, %67, %cst_44 {dimension_numbers = #tpu.dot_dimension_numbers<[1], [0], [0], [1], [0, 0, 1, 1], [], []>} : vector<32x32xbf16>, vector<32x128xbf16>, vector<32x128xf32> -> vector<32x128xf32>
    %69 = arith.truncf %68 : vector<32x128xf32> to vector<32x128xbf16>
    %cst_45 = arith.constant dense<0.000000e+00> : vector<32x128xf32>
    %70 = tpu.matmul %69, %54, %cst_45 {dimension_numbers = #tpu.dot_dimension_numbers<[1], [0], [0], [1], [0, 0, 1, 1], [], []>} : vector<32x128xbf16>, vector<128x128xbf16>, vector<32x128xf32> -> vector<32x128xf32>
    %71 = vector.broadcast %3 : vector<32x1xf32> to vector<32x128xf32>
    %72 = arith.addf %70, %71 : vector<32x128xf32>
    %cst_46 = arith.constant 0.000000e+00 : f32
    %73 = vector.broadcast %cst_46 : f32 to vector<32x128xf32>
    %74 = arith.cmpf ogt, %72, %73 : vector<32x128xf32>
    %cst_47 = arith.constant 1.000000e-01 : f32
    %75 = vector.broadcast %cst_47 : f32 to vector<32x128xf32>
    %76 = arith.mulf %75, %72 : vector<32x128xf32>
    %77 = arith.select %74, %72, %76 : vector<32x128xi1>, vector<32x128xf32>
    %78 = arith.truncf %77 : vector<32x128xf32> to vector<32x128xbf16>
    %cst_48 = arith.constant dense<0.000000e+00> : vector<32x128xf32>
    %79 = tpu.matmul %1, %78, %cst_48 {dimension_numbers = #tpu.dot_dimension_numbers<[1], [0], [0], [1], [0, 0, 1, 1], [], []>} : vector<32x32xbf16>, vector<32x128xbf16>, vector<32x128xf32> -> vector<32x128xf32>
    %80 = arith.truncf %79 : vector<32x128xf32> to vector<32x128xbf16>
    %cst_49 = arith.constant dense<0.000000e+00> : vector<32x128xf32>
    %81 = tpu.matmul %80, %54, %cst_49 {dimension_numbers = #tpu.dot_dimension_numbers<[1], [0], [0], [1], [0, 0, 1, 1], [], []>} : vector<32x128xbf16>, vector<128x128xbf16>, vector<32x128xf32> -> vector<32x128xf32>
    %82 = vector.broadcast %3 : vector<32x1xf32> to vector<32x128xf32>
    %83 = arith.addf %81, %82 : vector<32x128xf32>
    %cst_50 = arith.constant 0.000000e+00 : f32
    %84 = vector.broadcast %cst_50 : f32 to vector<32x128xf32>
    %85 = arith.cmpf ogt, %83, %84 : vector<32x128xf32>
    %cst_51 = arith.constant 1.000000e-01 : f32
    %86 = vector.broadcast %cst_51 : f32 to vector<32x128xf32>
    %87 = arith.mulf %86, %83 : vector<32x128xf32>
    %88 = arith.select %85, %83, %87 : vector<32x128xi1>, vector<32x128xf32>
    %89 = arith.truncf %88 : vector<32x128xf32> to vector<32x128xbf16>
    %cst_52 = arith.constant dense<0.000000e+00> : vector<1x128xf32>
    %90 = tpu.matmul %4, %89, %cst_52 {dimension_numbers = #tpu.dot_dimension_numbers<[1], [0], [0], [1], [0, 0, 1, 1], [], []>} : vector<1x32xbf16>, vector<32x128xbf16>, vector<1x128xf32> -> vector<1x128xf32>
    %91 = arith.truncf %90 : vector<1x128xf32> to vector<1x128xbf16>
    %cst_53 = arith.constant dense<0.000000e+00> : vector<1x128xf32>
    %92 = tpu.matmul %91, %54, %cst_53 {dimension_numbers = #tpu.dot_dimension_numbers<[1], [0], [0], [1], [0, 0, 1, 1], [], []>} : vector<1x128xbf16>, vector<128x128xbf16>, vector<1x128xf32> -> vector<1x128xf32>
    %93 = arith.truncf %92 : vector<1x128xf32> to vector<1x128xbf16>
    %cst_54 = arith.constant dense<0.000000e+00> : vector<1x8xf32>
    %94 = tpu.matmul %93, %5, %cst_54 {dimension_numbers = #tpu.dot_dimension_numbers<[1], [0], [0], [1], [0, 0, 1, 1], [], []>} : vector<1x128xbf16>, vector<128x8xbf16>, vector<1x8xf32> -> vector<1x8xf32>
    %95 = vector.broadcast %6 : f32 to vector<1x8xf32>
    %96 = arith.addf %94, %95 : vector<1x8xf32>
    %97 = vector.shape_cast %96 : vector<1x8xf32> to vector<1x1x8xf32>
    %c0_55 = arith.constant 0 : index
    %c0_56 = arith.constant 0 : index
    %c8 = arith.constant 8 : index
    %98 = vector.load %arg10[%c0_55, %c0_56, %c8] : memref<1x1x128xf32, #tpu.memory_space<vmem>>, vector<1x1x8xf32>
    tpu.vector_store %arg10[%c0_55, %c0_56, %c8], %97 {strides = array<i32>} : memref<1x1x128xf32, #tpu.memory_space<vmem>>, vector<1x1x8xf32>,
    %c2 = arith.constant 2 : index
    %c0_57 = arith.constant 0 : index
    %c0_58 = arith.constant 0 : index
    %99 = vector.load %arg1[%c2, %c0_57, %c0_58] : memref<16x128x128xbf16, #tpu.memory_space<vmem>>, vector<1x128x128xbf16>
    %100 = vector.shape_cast %99 : vector<1x128x128xbf16> to vector<128x128xbf16>
    %c2_59 = arith.constant 2 : index
    %c0_60 = arith.constant 0 : index
    %c0_61 = arith.constant 0 : index
    %101 = vector.load %arg2[%c2_59, %c0_60, %c0_61] : memref<16x8x128xbf16, #tpu.memory_space<vmem>>, vector<1x8x128xbf16>
    %102 = vector.shape_cast %101 : vector<1x8x128xbf16> to vector<8x128xbf16>
    %cst_62 = arith.constant dense<0.000000e+00> : vector<8x128xf32>
    %103 = tpu.matmul %102, %100, %cst_62 {dimension_numbers = #tpu.dot_dimension_numbers<[1], [0], [0], [1], [0, 0, 1, 1], [], []>} : vector<8x128xbf16>, vector<128x128xbf16>, vector<8x128xf32> -> vector<8x128xf32>
    %104 = arith.truncf %103 : vector<8x128xf32> to vector<8x128xbf16>
    %cst_63 = arith.constant dense<0.000000e+00> : vector<32x128xf32>
    %105 = tpu.matmul %0, %104, %cst_63 {dimension_numbers = #tpu.dot_dimension_numbers<[1], [0], [0], [1], [0, 0, 1, 1], [], []>} : vector<32x8xbf16>, vector<8x128xbf16>, vector<32x128xf32> -> vector<32x128xf32>
    %106 = vector.broadcast %2 : vector<32x1xf32> to vector<32x128xf32>
    %107 = arith.addf %105, %106 : vector<32x128xf32>
    %cst_64 = arith.constant 0.000000e+00 : f32
    %108 = vector.broadcast %cst_64 : f32 to vector<32x128xf32>
    %109 = arith.cmpf ogt, %107, %108 : vector<32x128xf32>
    %cst_65 = arith.constant 1.000000e-01 : f32
    %110 = vector.broadcast %cst_65 : f32 to vector<32x128xf32>
    %111 = arith.mulf %110, %107 : vector<32x128xf32>
    %112 = arith.select %109, %107, %111 : vector<32x128xi1>, vector<32x128xf32>
    %113 = arith.truncf %112 : vector<32x128xf32> to vector<32x128xbf16>
    %cst_66 = arith.constant dense<0.000000e+00> : vector<32x128xf32>
    %114 = tpu.matmul %1, %113, %cst_66 {dimension_numbers = #tpu.dot_dimension_numbers<[1], [0], [0], [1], [0, 0, 1, 1], [], []>} : vector<32x32xbf16>, vector<32x128xbf16>, vector<32x128xf32> -> vector<32x128xf32>
    %115 = arith.truncf %114 : vector<32x128xf32> to vector<32x128xbf16>
    %cst_67 = arith.constant dense<0.000000e+00> : vector<32x128xf32>
    %116 = tpu.matmul %115, %100, %cst_67 {dimension_numbers = #tpu.dot_dimension_numbers<[1], [0], [0], [1], [0, 0, 1, 1], [], []>} : vector<32x128xbf16>, vector<128x128xbf16>, vector<32x128xf32> -> vector<32x128xf32>
    %117 = vector.broadcast %3 : vector<32x1xf32> to vector<32x128xf32>
    %118 = arith.addf %116, %117 : vector<32x128xf32>
    %cst_68 = arith.constant 0.000000e+00 : f32
    %119 = vector.broadcast %cst_68 : f32 to vector<32x128xf32>
    %120 = arith.cmpf ogt, %118, %119 : vector<32x128xf32>
    %cst_69 = arith.constant 1.000000e-01 : f32
    %121 = vector.broadcast %cst_69 : f32 to vector<32x128xf32>
    %122 = arith.mulf %121, %118 : vector<32x128xf32>
    %123 = arith.select %120, %118, %122 : vector<32x128xi1>, vector<32x128xf32>
    %124 = arith.truncf %123 : vector<32x128xf32> to vector<32x128xbf16>
    %cst_70 = arith.constant dense<0.000000e+00> : vector<32x128xf32>
    %125 = tpu.matmul %1, %124, %cst_70 {dimension_numbers = #tpu.dot_dimension_numbers<[1], [0], [0], [1], [0, 0, 1, 1], [], []>} : vector<32x32xbf16>, vector<32x128xbf16>, vector<32x128xf32> -> vector<32x128xf32>
    %126 = arith.truncf %125 : vector<32x128xf32> to vector<32x128xbf16>
    %cst_71 = arith.constant dense<0.000000e+00> : vector<32x128xf32>
    %127 = tpu.matmul %126, %100, %cst_71 {dimension_numbers = #tpu.dot_dimension_numbers<[1], [0], [0], [1], [0, 0, 1, 1], [], []>} : vector<32x128xbf16>, vector<128x128xbf16>, vector<32x128xf32> -> vector<32x128xf32>
    %128 = vector.broadcast %3 : vector<32x1xf32> to vector<32x128xf32>
    %129 = arith.addf %127, %128 : vector<32x128xf32>
    %cst_72 = arith.constant 0.000000e+00 : f32
    %130 = vector.broadcast %cst_72 : f32 to vector<32x128xf32>
    %131 = arith.cmpf ogt, %129, %130 : vector<32x128xf32>
    %cst_73 = arith.constant 1.000000e-01 : f32
    %132 = vector.broadcast %cst_73 : f32 to vector<32x128xf32>
    %133 = arith.mulf %132, %129 : vector<32x128xf32>
    %134 = arith.select %131, %129, %133 : vector<32x128xi1>, vector<32x128xf32>
    %135 = arith.truncf %134 : vector<32x128xf32> to vector<32x128xbf16>
    %cst_74 = arith.constant dense<0.000000e+00> : vector<1x128xf32>
    %136 = tpu.matmul %4, %135, %cst_74 {dimension_numbers = #tpu.dot_dimension_numbers<[1], [0], [0], [1], [0, 0, 1, 1], [], []>} : vector<1x32xbf16>, vector<32x128xbf16>, vector<1x128xf32> -> vector<1x128xf32>
    %137 = arith.truncf %136 : vector<1x128xf32> to vector<1x128xbf16>
    %cst_75 = arith.constant dense<0.000000e+00> : vector<1x128xf32>
    %138 = tpu.matmul %137, %100, %cst_75 {dimension_numbers = #tpu.dot_dimension_numbers<[1], [0], [0], [1], [0, 0, 1, 1], [], []>} : vector<1x128xbf16>, vector<128x128xbf16>, vector<1x128xf32> -> vector<1x128xf32>
    %139 = arith.truncf %138 : vector<1x128xf32> to vector<1x128xbf16>
    %cst_76 = arith.constant dense<0.000000e+00> : vector<1x8xf32>
    %140 = tpu.matmul %139, %5, %cst_76 {dimension_numbers = #tpu.dot_dimension_numbers<[1], [0], [0], [1], [0, 0, 1, 1], [], []>} : vector<1x128xbf16>, vector<128x8xbf16>, vector<1x8xf32> -> vector<1x8xf32>
    %141 = vector.broadcast %6 : f32 to vector<1x8xf32>
    %142 = arith.addf %140, %141 : vector<1x8xf32>
    %143 = vector.shape_cast %142 : vector<1x8xf32> to vector<1x1x8xf32>
    %c0_77 = arith.constant 0 : index
    %c0_78 = arith.constant 0 : index
    %c16 = arith.constant 16 : index
    %144 = vector.load %arg10[%c0_77, %c0_78, %c16] : memref<1x1x128xf32, #tpu.memory_space<vmem>>, vector<1x1x8xf32>
    tpu.vector_store %arg10[%c0_77, %c0_78, %c16], %143 {strides = array<i32>} : memref<1x1x128xf32, #tpu.memory_space<vmem>>, vector<1x1x8xf32>,
    %c3 = arith.constant 3 : index
    %c0_79 = arith.constant 0 : index
    %c0_80 = arith.constant 0 : index
    %145 = vector.load %arg1[%c3, %c0_79, %c0_80] : memref<16x128x128xbf16, #tpu.memory_space<vmem>>, vector<1x128x128xbf16>
    %146 = vector.shape_cast %145 : vector<1x128x128xbf16> to vector<128x128xbf16>
    %c3_81 = arith.constant 3 : index
    %c0_82 = arith.constant 0 : index
    %c0_83 = arith.constant 0 : index
    %147 = vector.load %arg2[%c3_81, %c0_82, %c0_83] : memref<16x8x128xbf16, #tpu.memory_space<vmem>>, vector<1x8x128xbf16>
    %148 = vector.shape_cast %147 : vector<1x8x128xbf16> to vector<8x128xbf16>
    %cst_84 = arith.constant dense<0.000000e+00> : vector<8x128xf32>
    %149 = tpu.matmul %148, %146, %cst_84 {dimension_numbers = #tpu.dot_dimension_numbers<[1], [0], [0], [1], [0, 0, 1, 1], [], []>} : vector<8x128xbf16>, vector<128x128xbf16>, vector<8x128xf32> -> vector<8x128xf32>
    %150 = arith.truncf %149 : vector<8x128xf32> to vector<8x128xbf16>
    %cst_85 = arith.constant dense<0.000000e+00> : vector<32x128xf32>
    %151 = tpu.matmul %0, %150, %cst_85 {dimension_numbers = #tpu.dot_dimension_numbers<[1], [0], [0], [1], [0, 0, 1, 1], [], []>} : vector<32x8xbf16>, vector<8x128xbf16>, vector<32x128xf32> -> vector<32x128xf32>
    %152 = vector.broadcast %2 : vector<32x1xf32> to vector<32x128xf32>
    %153 = arith.addf %151, %152 : vector<32x128xf32>
    %cst_86 = arith.constant 0.000000e+00 : f32
    %154 = vector.broadcast %cst_86 : f32 to vector<32x128xf32>
    %155 = arith.cmpf ogt, %153, %154 : vector<32x128xf32>
    %cst_87 = arith.constant 1.000000e-01 : f32
    %156 = vector.broadcast %cst_87 : f32 to vector<32x128xf32>
    %157 = arith.mulf %156, %153 : vector<32x128xf32>
    %158 = arith.select %155, %153, %157 : vector<32x128xi1>, vector<32x128xf32>
    %159 = arith.truncf %158 : vector<32x128xf32> to vector<32x128xbf16>
    %cst_88 = arith.constant dense<0.000000e+00> : vector<32x128xf32>
    %160 = tpu.matmul %1, %159, %cst_88 {dimension_numbers = #tpu.dot_dimension_numbers<[1], [0], [0], [1], [0, 0, 1, 1], [], []>} : vector<32x32xbf16>, vector<32x128xbf16>, vector<32x128xf32> -> vector<32x128xf32>
    %161 = arith.truncf %160 : vector<32x128xf32> to vector<32x128xbf16>
    %cst_89 = arith.constant dense<0.000000e+00> : vector<32x128xf32>
    %162 = tpu.matmul %161, %146, %cst_89 {dimension_numbers = #tpu.dot_dimension_numbers<[1], [0], [0], [1], [0, 0, 1, 1], [], []>} : vector<32x128xbf16>, vector<128x128xbf16>, vector<32x128xf32> -> vector<32x128xf32>
    %163 = vector.broadcast %3 : vector<32x1xf32> to vector<32x128xf32>
    %164 = arith.addf %162, %163 : vector<32x128xf32>
    %cst_90 = arith.constant 0.000000e+00 : f32
    %165 = vector.broadcast %cst_90 : f32 to vector<32x128xf32>
    %166 = arith.cmpf ogt, %164, %165 : vector<32x128xf32>
    %cst_91 = arith.constant 1.000000e-01 : f32
    %167 = vector.broadcast %cst_91 : f32 to vector<32x128xf32>
    %168 = arith.mulf %167, %164 : vector<32x128xf32>
    %169 = arith.select %166, %164, %168 : vector<32x128xi1>, vector<32x128xf32>
    %170 = arith.truncf %169 : vector<32x128xf32> to vector<32x128xbf16>
    %cst_92 = arith.constant dense<0.000000e+00> : vector<32x128xf32>
    %171 = tpu.matmul %1, %170, %cst_92 {dimension_numbers = #tpu.dot_dimension_numbers<[1], [0], [0], [1], [0, 0, 1, 1], [], []>} : vector<32x32xbf16>, vector<32x128xbf16>, vector<32x128xf32> -> vector<32x128xf32>
    %172 = arith.truncf %171 : vector<32x128xf32> to vector<32x128xbf16>
    %cst_93 = arith.constant dense<0.000000e+00> : vector<32x128xf32>
    %173 = tpu.matmul %172, %146, %cst_93 {dimension_numbers = #tpu.dot_dimension_numbers<[1], [0], [0], [1], [0, 0, 1, 1], [], []>} : vector<32x128xbf16>, vector<128x128xbf16>, vector<32x128xf32> -> vector<32x128xf32>
    %174 = vector.broadcast %3 : vector<32x1xf32> to vector<32x128xf32>
    %175 = arith.addf %173, %174 : vector<32x128xf32>
    %cst_94 = arith.constant 0.000000e+00 : f32
    %176 = vector.broadcast %cst_94 : f32 to vector<32x128xf32>
    %177 = arith.cmpf ogt, %175, %176 : vector<32x128xf32>
    %cst_95 = arith.constant 1.000000e-01 : f32
    %178 = vector.broadcast %cst_95 : f32 to vector<32x128xf32>
    %179 = arith.mulf %178, %175 : vector<32x128xf32>
    %180 = arith.select %177, %175, %179 : vector<32x128xi1>, vector<32x128xf32>
    %181 = arith.truncf %180 : vector<32x128xf32> to vector<32x128xbf16>
    %cst_96 = arith.constant dense<0.000000e+00> : vector<1x128xf32>
    %182 = tpu.matmul %4, %181, %cst_96 {dimension_numbers = #tpu.dot_dimension_numbers<[1], [0], [0], [1], [0, 0, 1, 1], [], []>} : vector<1x32xbf16>, vector<32x128xbf16>, vector<1x128xf32> -> vector<1x128xf32>
    %183 = arith.truncf %182 : vector<1x128xf32> to vector<1x128xbf16>
    %cst_97 = arith.constant dense<0.000000e+00> : vector<1x128xf32>
    %184 = tpu.matmul %183, %146, %cst_97 {dimension_numbers = #tpu.dot_dimension_numbers<[1], [0], [0], [1], [0, 0, 1, 1], [], []>} : vector<1x128xbf16>, vector<128x128xbf16>, vector<1x128xf32> -> vector<1x128xf32>
    %185 = arith.truncf %184 : vector<1x128xf32> to vector<1x128xbf16>
    %cst_98 = arith.constant dense<0.000000e+00> : vector<1x8xf32>
    %186 = tpu.matmul %185, %5, %cst_98 {dimension_numbers = #tpu.dot_dimension_numbers<[1], [0], [0], [1], [0, 0, 1, 1], [], []>} : vector<1x128xbf16>, vector<128x8xbf16>, vector<1x8xf32> -> vector<1x8xf32>
    %187 = vector.broadcast %6 : f32 to vector<1x8xf32>
    %188 = arith.addf %186, %187 : vector<1x8xf32>
    %189 = vector.shape_cast %188 : vector<1x8xf32> to vector<1x1x8xf32>
    %c0_99 = arith.constant 0 : index
    %c0_100 = arith.constant 0 : index
    %c24 = arith.constant 24 : index
    %190 = vector.load %arg10[%c0_99, %c0_100, %c24] : memref<1x1x128xf32, #tpu.memory_space<vmem>>, vector<1x1x8xf32>
    tpu.vector_store %arg10[%c0_99, %c0_100, %c24], %189 {strides = array<i32>} : memref<1x1x128xf32, #tpu.memory_space<vmem>>, vector<1x1x8xf32>,
    %c4 = arith.constant 4 : index
    %c0_101 = arith.constant 0 : index
    %c0_102 = arith.constant 0 : index
    %191 = vector.load %arg1[%c4, %c0_101, %c0_102] : memref<16x128x128xbf16, #tpu.memory_space<vmem>>, vector<1x128x128xbf16>
    %192 = vector.shape_cast %191 : vector<1x128x128xbf16> to vector<128x128xbf16>
    %c4_103 = arith.constant 4 : index
    %c0_104 = arith.constant 0 : index
    %c0_105 = arith.constant 0 : index
    %193 = vector.load %arg2[%c4_103, %c0_104, %c0_105] : memref<16x8x128xbf16, #tpu.memory_space<vmem>>, vector<1x8x128xbf16>
    %194 = vector.shape_cast %193 : vector<1x8x128xbf16> to vector<8x128xbf16>
    %cst_106 = arith.constant dense<0.000000e+00> : vector<8x128xf32>
    %195 = tpu.matmul %194, %192, %cst_106 {dimension_numbers = #tpu.dot_dimension_numbers<[1], [0], [0], [1], [0, 0, 1, 1], [], []>} : vector<8x128xbf16>, vector<128x128xbf16>, vector<8x128xf32> -> vector<8x128xf32>
    %196 = arith.truncf %195 : vector<8x128xf32> to vector<8x128xbf16>
    %cst_107 = arith.constant dense<0.000000e+00> : vector<32x128xf32>
    %197 = tpu.matmul %0, %196, %cst_107 {dimension_numbers = #tpu.dot_dimension_numbers<[1], [0], [0], [1], [0, 0, 1, 1], [], []>} : vector<32x8xbf16>, vector<8x128xbf16>, vector<32x128xf32> -> vector<32x128xf32>
    %198 = vector.broadcast %2 : vector<32x1xf32> to vector<32x128xf32>
    %199 = arith.addf %197, %198 : vector<32x128xf32>
    %cst_108 = arith.constant 0.000000e+00 : f32
    %200 = vector.broadcast %cst_108 : f32 to vector<32x128xf32>
    %201 = arith.cmpf ogt, %199, %200 : vector<32x128xf32>
    %cst_109 = arith.constant 1.000000e-01 : f32
    %202 = vector.broadcast %cst_109 : f32 to vector<32x128xf32>
    %203 = arith.mulf %202, %199 : vector<32x128xf32>
    %204 = arith.select %201, %199, %203 : vector<32x128xi1>, vector<32x128xf32>
    %205 = arith.truncf %204 : vector<32x128xf32> to vector<32x128xbf16>
    %cst_110 = arith.constant dense<0.000000e+00> : vector<32x128xf32>
    %206 = tpu.matmul %1, %205, %cst_110 {dimension_numbers = #tpu.dot_dimension_numbers<[1], [0], [0], [1], [0, 0, 1, 1], [], []>} : vector<32x32xbf16>, vector<32x128xbf16>, vector<32x128xf32> -> vector<32x128xf32>
    %207 = arith.truncf %206 : vector<32x128xf32> to vector<32x128xbf16>
    %cst_111 = arith.constant dense<0.000000e+00> : vector<32x128xf32>
    %208 = tpu.matmul %207, %192, %cst_111 {dimension_numbers = #tpu.dot_dimension_numbers<[1], [0], [0], [1], [0, 0, 1, 1], [], []>} : vector<32x128xbf16>, vector<128x128xbf16>, vector<32x128xf32> -> vector<32x128xf32>
    %209 = vector.broadcast %3 : vector<32x1xf32> to vector<32x128xf32>
    %210 = arith.addf %208, %209 : vector<32x128xf32>
    %cst_112 = arith.constant 0.000000e+00 : f32
    %211 = vector.broadcast %cst_112 : f32 to vector<32x128xf32>
    %212 = arith.cmpf ogt, %210, %211 : vector<32x128xf32>
    %cst_113 = arith.constant 1.000000e-01 : f32
    %213 = vector.broadcast %cst_113 : f32 to vector<32x128xf32>
    %214 = arith.mulf %213, %210 : vector<32x128xf32>
    %215 = arith.select %212, %210, %214 : vector<32x128xi1>, vector<32x128xf32>
    %216 = arith.truncf %215 : vector<32x128xf32> to vector<32x128xbf16>
    %cst_114 = arith.constant dense<0.000000e+00> : vector<32x128xf32>
    %217 = tpu.matmul %1, %216, %cst_114 {dimension_numbers = #tpu.dot_dimension_numbers<[1], [0], [0], [1], [0, 0, 1, 1], [], []>} : vector<32x32xbf16>, vector<32x128xbf16>, vector<32x128xf32> -> vector<32x128xf32>
    %218 = arith.truncf %217 : vector<32x128xf32> to vector<32x128xbf16>
    %cst_115 = arith.constant dense<0.000000e+00> : vector<32x128xf32>
    %219 = tpu.matmul %218, %192, %cst_115 {dimension_numbers = #tpu.dot_dimension_numbers<[1], [0], [0], [1], [0, 0, 1, 1], [], []>} : vector<32x128xbf16>, vector<128x128xbf16>, vector<32x128xf32> -> vector<32x128xf32>
    %220 = vector.broadcast %3 : vector<32x1xf32> to vector<32x128xf32>
    %221 = arith.addf %219, %220 : vector<32x128xf32>
    %cst_116 = arith.constant 0.000000e+00 : f32
    %222 = vector.broadcast %cst_116 : f32 to vector<32x128xf32>
    %223 = arith.cmpf ogt, %221, %222 : vector<32x128xf32>
    %cst_117 = arith.constant 1.000000e-01 : f32
    %224 = vector.broadcast %cst_117 : f32 to vector<32x128xf32>
    %225 = arith.mulf %224, %221 : vector<32x128xf32>
    %226 = arith.select %223, %221, %225 : vector<32x128xi1>, vector<32x128xf32>
    %227 = arith.truncf %226 : vector<32x128xf32> to vector<32x128xbf16>
    %cst_118 = arith.constant dense<0.000000e+00> : vector<1x128xf32>
    %228 = tpu.matmul %4, %227, %cst_118 {dimension_numbers = #tpu.dot_dimension_numbers<[1], [0], [0], [1], [0, 0, 1, 1], [], []>} : vector<1x32xbf16>, vector<32x128xbf16>, vector<1x128xf32> -> vector<1x128xf32>
    %229 = arith.truncf %228 : vector<1x128xf32> to vector<1x128xbf16>
    %cst_119 = arith.constant dense<0.000000e+00> : vector<1x128xf32>
    %230 = tpu.matmul %229, %192, %cst_119 {dimension_numbers = #tpu.dot_dimension_numbers<[1], [0], [0], [1], [0, 0, 1, 1], [], []>} : vector<1x128xbf16>, vector<128x128xbf16>, vector<1x128xf32> -> vector<1x128xf32>
    %231 = arith.truncf %230 : vector<1x128xf32> to vector<1x128xbf16>
    %cst_120 = arith.constant dense<0.000000e+00> : vector<1x8xf32>
    %232 = tpu.matmul %231, %5, %cst_120 {dimension_numbers = #tpu.dot_dimension_numbers<[1], [0], [0], [1], [0, 0, 1, 1], [], []>} : vector<1x128xbf16>, vector<128x8xbf16>, vector<1x8xf32> -> vector<1x8xf32>
    %233 = vector.broadcast %6 : f32 to vector<1x8xf32>
    %234 = arith.addf %232, %233 : vector<1x8xf32>
    %235 = vector.shape_cast %234 : vector<1x8xf32> to vector<1x1x8xf32>
    %c0_121 = arith.constant 0 : index
    %c0_122 = arith.constant 0 : index
    %c32 = arith.constant 32 : index
    %236 = vector.load %arg10[%c0_121, %c0_122, %c32] : memref<1x1x128xf32, #tpu.memory_space<vmem>>, vector<1x1x8xf32>
    tpu.vector_store %arg10[%c0_121, %c0_122, %c32], %235 {strides = array<i32>} : memref<1x1x128xf32, #tpu.memory_space<vmem>>, vector<1x1x8xf32>,
    %c5 = arith.constant 5 : index
    %c0_123 = arith.constant 0 : index
    %c0_124 = arith.constant 0 : index
    %237 = vector.load %arg1[%c5, %c0_123, %c0_124] : memref<16x128x128xbf16, #tpu.memory_space<vmem>>, vector<1x128x128xbf16>
    %238 = vector.shape_cast %237 : vector<1x128x128xbf16> to vector<128x128xbf16>
    %c5_125 = arith.constant 5 : index
    %c0_126 = arith.constant 0 : index
    %c0_127 = arith.constant 0 : index
    %239 = vector.load %arg2[%c5_125, %c0_126, %c0_127] : memref<16x8x128xbf16, #tpu.memory_space<vmem>>, vector<1x8x128xbf16>
    %240 = vector.shape_cast %239 : vector<1x8x128xbf16> to vector<8x128xbf16>
    %cst_128 = arith.constant dense<0.000000e+00> : vector<8x128xf32>
    %241 = tpu.matmul %240, %238, %cst_128 {dimension_numbers = #tpu.dot_dimension_numbers<[1], [0], [0], [1], [0, 0, 1, 1], [], []>} : vector<8x128xbf16>, vector<128x128xbf16>, vector<8x128xf32> -> vector<8x128xf32>
    %242 = arith.truncf %241 : vector<8x128xf32> to vector<8x128xbf16>
    %cst_129 = arith.constant dense<0.000000e+00> : vector<32x128xf32>
    %243 = tpu.matmul %0, %242, %cst_129 {dimension_numbers = #tpu.dot_dimension_numbers<[1], [0], [0], [1], [0, 0, 1, 1], [], []>} : vector<32x8xbf16>, vector<8x128xbf16>, vector<32x128xf32> -> vector<32x128xf32>
    %244 = vector.broadcast %2 : vector<32x1xf32> to vector<32x128xf32>
    %245 = arith.addf %243, %244 : vector<32x128xf32>
    %cst_130 = arith.constant 0.000000e+00 : f32
    %246 = vector.broadcast %cst_130 : f32 to vector<32x128xf32>
    %247 = arith.cmpf ogt, %245, %246 : vector<32x128xf32>
    %cst_131 = arith.constant 1.000000e-01 : f32
    %248 = vector.broadcast %cst_131 : f32 to vector<32x128xf32>
    %249 = arith.mulf %248, %245 : vector<32x128xf32>
    %250 = arith.select %247, %245, %249 : vector<32x128xi1>, vector<32x128xf32>
    %251 = arith.truncf %250 : vector<32x128xf32> to vector<32x128xbf16>
    %cst_132 = arith.constant dense<0.000000e+00> : vector<32x128xf32>
    %252 = tpu.matmul %1, %251, %cst_132 {dimension_numbers = #tpu.dot_dimension_numbers<[1], [0], [0], [1], [0, 0, 1, 1], [], []>} : vector<32x32xbf16>, vector<32x128xbf16>, vector<32x128xf32> -> vector<32x128xf32>
    %253 = arith.truncf %252 : vector<32x128xf32> to vector<32x128xbf16>
    %cst_133 = arith.constant dense<0.000000e+00> : vector<32x128xf32>
    %254 = tpu.matmul %253, %238, %cst_133 {dimension_numbers = #tpu.dot_dimension_numbers<[1], [0], [0], [1], [0, 0, 1, 1], [], []>} : vector<32x128xbf16>, vector<128x128xbf16>, vector<32x128xf32> -> vector<32x128xf32>
    %255 = vector.broadcast %3 : vector<32x1xf32> to vector<32x128xf32>
    %256 = arith.addf %254, %255 : vector<32x128xf32>
    %cst_134 = arith.constant 0.000000e+00 : f32
    %257 = vector.broadcast %cst_134 : f32 to vector<32x128xf32>
    %258 = arith.cmpf ogt, %256, %257 : vector<32x128xf32>
    %cst_135 = arith.constant 1.000000e-01 : f32
    %259 = vector.broadcast %cst_135 : f32 to vector<32x128xf32>
    %260 = arith.mulf %259, %256 : vector<32x128xf32>
    %261 = arith.select %258, %256, %260 : vector<32x128xi1>, vector<32x128xf32>
    %262 = arith.truncf %261 : vector<32x128xf32> to vector<32x128xbf16>
    %cst_136 = arith.constant dense<0.000000e+00> : vector<32x128xf32>
    %263 = tpu.matmul %1, %262, %cst_136 {dimension_numbers = #tpu.dot_dimension_numbers<[1], [0], [0], [1], [0, 0, 1, 1], [], []>} : vector<32x32xbf16>, vector<32x128xbf16>, vector<32x128xf32> -> vector<32x128xf32>
    %264 = arith.truncf %263 : vector<32x128xf32> to vector<32x128xbf16>
    %cst_137 = arith.constant dense<0.000000e+00> : vector<32x128xf32>
    %265 = tpu.matmul %264, %238, %cst_137 {dimension_numbers = #tpu.dot_dimension_numbers<[1], [0], [0], [1], [0, 0, 1, 1], [], []>} : vector<32x128xbf16>, vector<128x128xbf16>, vector<32x128xf32> -> vector<32x128xf32>
    %266 = vector.broadcast %3 : vector<32x1xf32> to vector<32x128xf32>
    %267 = arith.addf %265, %266 : vector<32x128xf32>
    %cst_138 = arith.constant 0.000000e+00 : f32
    %268 = vector.broadcast %cst_138 : f32 to vector<32x128xf32>
    %269 = arith.cmpf ogt, %267, %268 : vector<32x128xf32>
    %cst_139 = arith.constant 1.000000e-01 : f32
    %270 = vector.broadcast %cst_139 : f32 to vector<32x128xf32>
    %271 = arith.mulf %270, %267 : vector<32x128xf32>
    %272 = arith.select %269, %267, %271 : vector<32x128xi1>, vector<32x128xf32>
    %273 = arith.truncf %272 : vector<32x128xf32> to vector<32x128xbf16>
    %cst_140 = arith.constant dense<0.000000e+00> : vector<1x128xf32>
    %274 = tpu.matmul %4, %273, %cst_140 {dimension_numbers = #tpu.dot_dimension_numbers<[1], [0], [0], [1], [0, 0, 1, 1], [], []>} : vector<1x32xbf16>, vector<32x128xbf16>, vector<1x128xf32> -> vector<1x128xf32>
    %275 = arith.truncf %274 : vector<1x128xf32> to vector<1x128xbf16>
    %cst_141 = arith.constant dense<0.000000e+00> : vector<1x128xf32>
    %276 = tpu.matmul %275, %238, %cst_141 {dimension_numbers = #tpu.dot_dimension_numbers<[1], [0], [0], [1], [0, 0, 1, 1], [], []>} : vector<1x128xbf16>, vector<128x128xbf16>, vector<1x128xf32> -> vector<1x128xf32>
    %277 = arith.truncf %276 : vector<1x128xf32> to vector<1x128xbf16>
    %cst_142 = arith.constant dense<0.000000e+00> : vector<1x8xf32>
    %278 = tpu.matmul %277, %5, %cst_142 {dimension_numbers = #tpu.dot_dimension_numbers<[1], [0], [0], [1], [0, 0, 1, 1], [], []>} : vector<1x128xbf16>, vector<128x8xbf16>, vector<1x8xf32> -> vector<1x8xf32>
    %279 = vector.broadcast %6 : f32 to vector<1x8xf32>
    %280 = arith.addf %278, %279 : vector<1x8xf32>
    %281 = vector.shape_cast %280 : vector<1x8xf32> to vector<1x1x8xf32>
    %c0_143 = arith.constant 0 : index
    %c0_144 = arith.constant 0 : index
    %c40 = arith.constant 40 : index
    %282 = vector.load %arg10[%c0_143, %c0_144, %c40] : memref<1x1x128xf32, #tpu.memory_space<vmem>>, vector<1x1x8xf32>
    tpu.vector_store %arg10[%c0_143, %c0_144, %c40], %281 {strides = array<i32>} : memref<1x1x128xf32, #tpu.memory_space<vmem>>, vector<1x1x8xf32>,
    %c6 = arith.constant 6 : index
    %c0_145 = arith.constant 0 : index
    %c0_146 = arith.constant 0 : index
    %283 = vector.load %arg1[%c6, %c0_145, %c0_146] : memref<16x128x128xbf16, #tpu.memory_space<vmem>>, vector<1x128x128xbf16>
    %284 = vector.shape_cast %283 : vector<1x128x128xbf16> to vector<128x128xbf16>
    %c6_147 = arith.constant 6 : index
    %c0_148 = arith.constant 0 : index
    %c0_149 = arith.constant 0 : index
    %285 = vector.load %arg2[%c6_147, %c0_148, %c0_149] : memref<16x8x128xbf16, #tpu.memory_space<vmem>>, vector<1x8x128xbf16>
    %286 = vector.shape_cast %285 : vector<1x8x128xbf16> to vector<8x128xbf16>
    %cst_150 = arith.constant dense<0.000000e+00> : vector<8x128xf32>
    %287 = tpu.matmul %286, %284, %cst_150 {dimension_numbers = #tpu.dot_dimension_numbers<[1], [0], [0], [1], [0, 0, 1, 1], [], []>} : vector<8x128xbf16>, vector<128x128xbf16>, vector<8x128xf32> -> vector<8x128xf32>
    %288 = arith.truncf %287 : vector<8x128xf32> to vector<8x128xbf16>
    %cst_151 = arith.constant dense<0.000000e+00> : vector<32x128xf32>
    %289 = tpu.matmul %0, %288, %cst_151 {dimension_numbers = #tpu.dot_dimension_numbers<[1], [0], [0], [1], [0, 0, 1, 1], [], []>} : vector<32x8xbf16>, vector<8x128xbf16>, vector<32x128xf32> -> vector<32x128xf32>
    %290 = vector.broadcast %2 : vector<32x1xf32> to vector<32x128xf32>
    %291 = arith.addf %289, %290 : vector<32x128xf32>
    %cst_152 = arith.constant 0.000000e+00 : f32
    %292 = vector.broadcast %cst_152 : f32 to vector<32x128xf32>
    %293 = arith.cmpf ogt, %291, %292 : vector<32x128xf32>
    %cst_153 = arith.constant 1.000000e-01 : f32
    %294 = vector.broadcast %cst_153 : f32 to vector<32x128xf32>
    %295 = arith.mulf %294, %291 : vector<32x128xf32>
    %296 = arith.select %293, %291, %295 : vector<32x128xi1>, vector<32x128xf32>
    %297 = arith.truncf %296 : vector<32x128xf32> to vector<32x128xbf16>
    %cst_154 = arith.constant dense<0.000000e+00> : vector<32x128xf32>
    %298 = tpu.matmul %1, %297, %cst_154 {dimension_numbers = #tpu.dot_dimension_numbers<[1], [0], [0], [1], [0, 0, 1, 1], [], []>} : vector<32x32xbf16>, vector<32x128xbf16>, vector<32x128xf32> -> vector<32x128xf32>
    %299 = arith.truncf %298 : vector<32x128xf32> to vector<32x128xbf16>
    %cst_155 = arith.constant dense<0.000000e+00> : vector<32x128xf32>
    %300 = tpu.matmul %299, %284, %cst_155 {dimension_numbers = #tpu.dot_dimension_numbers<[1], [0], [0], [1], [0, 0, 1, 1], [], []>} : vector<32x128xbf16>, vector<128x128xbf16>, vector<32x128xf32> -> vector<32x128xf32>
    %301 = vector.broadcast %3 : vector<32x1xf32> to vector<32x128xf32>
    %302 = arith.addf %300, %301 : vector<32x128xf32>
    %cst_156 = arith.constant 0.000000e+00 : f32
    %303 = vector.broadcast %cst_156 : f32 to vector<32x128xf32>
    %304 = arith.cmpf ogt, %302, %303 : vector<32x128xf32>
    %cst_157 = arith.constant 1.000000e-01 : f32
    %305 = vector.broadcast %cst_157 : f32 to vector<32x128xf32>
    %306 = arith.mulf %305, %302 : vector<32x128xf32>
    %307 = arith.select %304, %302, %306 : vector<32x128xi1>, vector<32x128xf32>
    %308 = arith.truncf %307 : vector<32x128xf32> to vector<32x128xbf16>
    %cst_158 = arith.constant dense<0.000000e+00> : vector<32x128xf32>
    %309 = tpu.matmul %1, %308, %cst_158 {dimension_numbers = #tpu.dot_dimension_numbers<[1], [0], [0], [1], [0, 0, 1, 1], [], []>} : vector<32x32xbf16>, vector<32x128xbf16>, vector<32x128xf32> -> vector<32x128xf32>
    %310 = arith.truncf %309 : vector<32x128xf32> to vector<32x128xbf16>
    %cst_159 = arith.constant dense<0.000000e+00> : vector<32x128xf32>
    %311 = tpu.matmul %310, %284, %cst_159 {dimension_numbers = #tpu.dot_dimension_numbers<[1], [0], [0], [1], [0, 0, 1, 1], [], []>} : vector<32x128xbf16>, vector<128x128xbf16>, vector<32x128xf32> -> vector<32x128xf32>
    %312 = vector.broadcast %3 : vector<32x1xf32> to vector<32x128xf32>
    %313 = arith.addf %311, %312 : vector<32x128xf32>
    %cst_160 = arith.constant 0.000000e+00 : f32
    %314 = vector.broadcast %cst_160 : f32 to vector<32x128xf32>
    %315 = arith.cmpf ogt, %313, %314 : vector<32x128xf32>
    %cst_161 = arith.constant 1.000000e-01 : f32
    %316 = vector.broadcast %cst_161 : f32 to vector<32x128xf32>
    %317 = arith.mulf %316, %313 : vector<32x128xf32>
    %318 = arith.select %315, %313, %317 : vector<32x128xi1>, vector<32x128xf32>
    %319 = arith.truncf %318 : vector<32x128xf32> to vector<32x128xbf16>
    %cst_162 = arith.constant dense<0.000000e+00> : vector<1x128xf32>
    %320 = tpu.matmul %4, %319, %cst_162 {dimension_numbers = #tpu.dot_dimension_numbers<[1], [0], [0], [1], [0, 0, 1, 1], [], []>} : vector<1x32xbf16>, vector<32x128xbf16>, vector<1x128xf32> -> vector<1x128xf32>
    %321 = arith.truncf %320 : vector<1x128xf32> to vector<1x128xbf16>
    %cst_163 = arith.constant dense<0.000000e+00> : vector<1x128xf32>
    %322 = tpu.matmul %321, %284, %cst_163 {dimension_numbers = #tpu.dot_dimension_numbers<[1], [0], [0], [1], [0, 0, 1, 1], [], []>} : vector<1x128xbf16>, vector<128x128xbf16>, vector<1x128xf32> -> vector<1x128xf32>
    %323 = arith.truncf %322 : vector<1x128xf32> to vector<1x128xbf16>
    %cst_164 = arith.constant dense<0.000000e+00> : vector<1x8xf32>
    %324 = tpu.matmul %323, %5, %cst_164 {dimension_numbers = #tpu.dot_dimension_numbers<[1], [0], [0], [1], [0, 0, 1, 1], [], []>} : vector<1x128xbf16>, vector<128x8xbf16>, vector<1x8xf32> -> vector<1x8xf32>
    %325 = vector.broadcast %6 : f32 to vector<1x8xf32>
    %326 = arith.addf %324, %325 : vector<1x8xf32>
    %327 = vector.shape_cast %326 : vector<1x8xf32> to vector<1x1x8xf32>
    %c0_165 = arith.constant 0 : index
    %c0_166 = arith.constant 0 : index
    %c48 = arith.constant 48 : index
    %328 = vector.load %arg10[%c0_165, %c0_166, %c48] : memref<1x1x128xf32, #tpu.memory_space<vmem>>, vector<1x1x8xf32>
    tpu.vector_store %arg10[%c0_165, %c0_166, %c48], %327 {strides = array<i32>} : memref<1x1x128xf32, #tpu.memory_space<vmem>>, vector<1x1x8xf32>,
    %c7 = arith.constant 7 : index
    %c0_167 = arith.constant 0 : index
    %c0_168 = arith.constant 0 : index
    %329 = vector.load %arg1[%c7, %c0_167, %c0_168] : memref<16x128x128xbf16, #tpu.memory_space<vmem>>, vector<1x128x128xbf16>
    %330 = vector.shape_cast %329 : vector<1x128x128xbf16> to vector<128x128xbf16>
    %c7_169 = arith.constant 7 : index
    %c0_170 = arith.constant 0 : index
    %c0_171 = arith.constant 0 : index
    %331 = vector.load %arg2[%c7_169, %c0_170, %c0_171] : memref<16x8x128xbf16, #tpu.memory_space<vmem>>, vector<1x8x128xbf16>
    %332 = vector.shape_cast %331 : vector<1x8x128xbf16> to vector<8x128xbf16>
    %cst_172 = arith.constant dense<0.000000e+00> : vector<8x128xf32>
    %333 = tpu.matmul %332, %330, %cst_172 {dimension_numbers = #tpu.dot_dimension_numbers<[1], [0], [0], [1], [0, 0, 1, 1], [], []>} : vector<8x128xbf16>, vector<128x128xbf16>, vector<8x128xf32> -> vector<8x128xf32>
    %334 = arith.truncf %333 : vector<8x128xf32> to vector<8x128xbf16>
    %cst_173 = arith.constant dense<0.000000e+00> : vector<32x128xf32>
    %335 = tpu.matmul %0, %334, %cst_173 {dimension_numbers = #tpu.dot_dimension_numbers<[1], [0], [0], [1], [0, 0, 1, 1], [], []>} : vector<32x8xbf16>, vector<8x128xbf16>, vector<32x128xf32> -> vector<32x128xf32>
    %336 = vector.broadcast %2 : vector<32x1xf32> to vector<32x128xf32>
    %337 = arith.addf %335, %336 : vector<32x128xf32>
    %cst_174 = arith.constant 0.000000e+00 : f32
    %338 = vector.broadcast %cst_174 : f32 to vector<32x128xf32>
    %339 = arith.cmpf ogt, %337, %338 : vector<32x128xf32>
    %cst_175 = arith.constant 1.000000e-01 : f32
    %340 = vector.broadcast %cst_175 : f32 to vector<32x128xf32>
    %341 = arith.mulf %340, %337 : vector<32x128xf32>
    %342 = arith.select %339, %337, %341 : vector<32x128xi1>, vector<32x128xf32>
    %343 = arith.truncf %342 : vector<32x128xf32> to vector<32x128xbf16>
    %cst_176 = arith.constant dense<0.000000e+00> : vector<32x128xf32>
    %344 = tpu.matmul %1, %343, %cst_176 {dimension_numbers = #tpu.dot_dimension_numbers<[1], [0], [0], [1], [0, 0, 1, 1], [], []>} : vector<32x32xbf16>, vector<32x128xbf16>, vector<32x128xf32> -> vector<32x128xf32>
    %345 = arith.truncf %344 : vector<32x128xf32> to vector<32x128xbf16>
    %cst_177 = arith.constant dense<0.000000e+00> : vector<32x128xf32>
    %346 = tpu.matmul %345, %330, %cst_177 {dimension_numbers = #tpu.dot_dimension_numbers<[1], [0], [0], [1], [0, 0, 1, 1], [], []>} : vector<32x128xbf16>, vector<128x128xbf16>, vector<32x128xf32> -> vector<32x128xf32>
    %347 = vector.broadcast %3 : vector<32x1xf32> to vector<32x128xf32>
    %348 = arith.addf %346, %347 : vector<32x128xf32>
    %cst_178 = arith.constant 0.000000e+00 : f32
    %349 = vector.broadcast %cst_178 : f32 to vector<32x128xf32>
    %350 = arith.cmpf ogt, %348, %349 : vector<32x128xf32>
    %cst_179 = arith.constant 1.000000e-01 : f32
    %351 = vector.broadcast %cst_179 : f32 to vector<32x128xf32>
    %352 = arith.mulf %351, %348 : vector<32x128xf32>
    %353 = arith.select %350, %348, %352 : vector<32x128xi1>, vector<32x128xf32>
    %354 = arith.truncf %353 : vector<32x128xf32> to vector<32x128xbf16>
    %cst_180 = arith.constant dense<0.000000e+00> : vector<32x128xf32>
    %355 = tpu.matmul %1, %354, %cst_180 {dimension_numbers = #tpu.dot_dimension_numbers<[1], [0], [0], [1], [0, 0, 1, 1], [], []>} : vector<32x32xbf16>, vector<32x128xbf16>, vector<32x128xf32> -> vector<32x128xf32>
    %356 = arith.truncf %355 : vector<32x128xf32> to vector<32x128xbf16>
    %cst_181 = arith.constant dense<0.000000e+00> : vector<32x128xf32>
    %357 = tpu.matmul %356, %330, %cst_181 {dimension_numbers = #tpu.dot_dimension_numbers<[1], [0], [0], [1], [0, 0, 1, 1], [], []>} : vector<32x128xbf16>, vector<128x128xbf16>, vector<32x128xf32> -> vector<32x128xf32>
    %358 = vector.broadcast %3 : vector<32x1xf32> to vector<32x128xf32>
    %359 = arith.addf %357, %358 : vector<32x128xf32>
    %cst_182 = arith.constant 0.000000e+00 : f32
    %360 = vector.broadcast %cst_182 : f32 to vector<32x128xf32>
    %361 = arith.cmpf ogt, %359, %360 : vector<32x128xf32>
    %cst_183 = arith.constant 1.000000e-01 : f32
    %362 = vector.broadcast %cst_183 : f32 to vector<32x128xf32>
    %363 = arith.mulf %362, %359 : vector<32x128xf32>
    %364 = arith.select %361, %359, %363 : vector<32x128xi1>, vector<32x128xf32>
    %365 = arith.truncf %364 : vector<32x128xf32> to vector<32x128xbf16>
    %cst_184 = arith.constant dense<0.000000e+00> : vector<1x128xf32>
    %366 = tpu.matmul %4, %365, %cst_184 {dimension_numbers = #tpu.dot_dimension_numbers<[1], [0], [0], [1], [0, 0, 1, 1], [], []>} : vector<1x32xbf16>, vector<32x128xbf16>, vector<1x128xf32> -> vector<1x128xf32>
    %367 = arith.truncf %366 : vector<1x128xf32> to vector<1x128xbf16>
    %cst_185 = arith.constant dense<0.000000e+00> : vector<1x128xf32>
    %368 = tpu.matmul %367, %330, %cst_185 {dimension_numbers = #tpu.dot_dimension_numbers<[1], [0], [0], [1], [0, 0, 1, 1], [], []>} : vector<1x128xbf16>, vector<128x128xbf16>, vector<1x128xf32> -> vector<1x128xf32>
    %369 = arith.truncf %368 : vector<1x128xf32> to vector<1x128xbf16>
    %cst_186 = arith.constant dense<0.000000e+00> : vector<1x8xf32>
    %370 = tpu.matmul %369, %5, %cst_186 {dimension_numbers = #tpu.dot_dimension_numbers<[1], [0], [0], [1], [0, 0, 1, 1], [], []>} : vector<1x128xbf16>, vector<128x8xbf16>, vector<1x8xf32> -> vector<1x8xf32>
    %371 = vector.broadcast %6 : f32 to vector<1x8xf32>
    %372 = arith.addf %370, %371 : vector<1x8xf32>
    %373 = vector.shape_cast %372 : vector<1x8xf32> to vector<1x1x8xf32>
    %c0_187 = arith.constant 0 : index
    %c0_188 = arith.constant 0 : index
    %c56 = arith.constant 56 : index
    %374 = vector.load %arg10[%c0_187, %c0_188, %c56] : memref<1x1x128xf32, #tpu.memory_space<vmem>>, vector<1x1x8xf32>
    tpu.vector_store %arg10[%c0_187, %c0_188, %c56], %373 {strides = array<i32>} : memref<1x1x128xf32, #tpu.memory_space<vmem>>, vector<1x1x8xf32>,
    %c8_189 = arith.constant 8 : index
    %c0_190 = arith.constant 0 : index
    %c0_191 = arith.constant 0 : index
    %375 = vector.load %arg1[%c8_189, %c0_190, %c0_191] : memref<16x128x128xbf16, #tpu.memory_space<vmem>>, vector<1x128x128xbf16>
    %376 = vector.shape_cast %375 : vector<1x128x128xbf16> to vector<128x128xbf16>
    %c8_192 = arith.constant 8 : index
    %c0_193 = arith.constant 0 : index
    %c0_194 = arith.constant 0 : index
    %377 = vector.load %arg2[%c8_192, %c0_193, %c0_194] : memref<16x8x128xbf16, #tpu.memory_space<vmem>>, vector<1x8x128xbf16>
    %378 = vector.shape_cast %377 : vector<1x8x128xbf16> to vector<8x128xbf16>
    %cst_195 = arith.constant dense<0.000000e+00> : vector<8x128xf32>
    %379 = tpu.matmul %378, %376, %cst_195 {dimension_numbers = #tpu.dot_dimension_numbers<[1], [0], [0], [1], [0, 0, 1, 1], [], []>} : vector<8x128xbf16>, vector<128x128xbf16>, vector<8x128xf32> -> vector<8x128xf32>
    %380 = arith.truncf %379 : vector<8x128xf32> to vector<8x128xbf16>
    %cst_196 = arith.constant dense<0.000000e+00> : vector<32x128xf32>
    %381 = tpu.matmul %0, %380, %cst_196 {dimension_numbers = #tpu.dot_dimension_numbers<[1], [0], [0], [1], [0, 0, 1, 1], [], []>} : vector<32x8xbf16>, vector<8x128xbf16>, vector<32x128xf32> -> vector<32x128xf32>
    %382 = vector.broadcast %2 : vector<32x1xf32> to vector<32x128xf32>
    %383 = arith.addf %381, %382 : vector<32x128xf32>
    %cst_197 = arith.constant 0.000000e+00 : f32
    %384 = vector.broadcast %cst_197 : f32 to vector<32x128xf32>
    %385 = arith.cmpf ogt, %383, %384 : vector<32x128xf32>
    %cst_198 = arith.constant 1.000000e-01 : f32
    %386 = vector.broadcast %cst_198 : f32 to vector<32x128xf32>
    %387 = arith.mulf %386, %383 : vector<32x128xf32>
    %388 = arith.select %385, %383, %387 : vector<32x128xi1>, vector<32x128xf32>
    %389 = arith.truncf %388 : vector<32x128xf32> to vector<32x128xbf16>
    %cst_199 = arith.constant dense<0.000000e+00> : vector<32x128xf32>
    %390 = tpu.matmul %1, %389, %cst_199 {dimension_numbers = #tpu.dot_dimension_numbers<[1], [0], [0], [1], [0, 0, 1, 1], [], []>} : vector<32x32xbf16>, vector<32x128xbf16>, vector<32x128xf32> -> vector<32x128xf32>
    %391 = arith.truncf %390 : vector<32x128xf32> to vector<32x128xbf16>
    %cst_200 = arith.constant dense<0.000000e+00> : vector<32x128xf32>
    %392 = tpu.matmul %391, %376, %cst_200 {dimension_numbers = #tpu.dot_dimension_numbers<[1], [0], [0], [1], [0, 0, 1, 1], [], []>} : vector<32x128xbf16>, vector<128x128xbf16>, vector<32x128xf32> -> vector<32x128xf32>
    %393 = vector.broadcast %3 : vector<32x1xf32> to vector<32x128xf32>
    %394 = arith.addf %392, %393 : vector<32x128xf32>
    %cst_201 = arith.constant 0.000000e+00 : f32
    %395 = vector.broadcast %cst_201 : f32 to vector<32x128xf32>
    %396 = arith.cmpf ogt, %394, %395 : vector<32x128xf32>
    %cst_202 = arith.constant 1.000000e-01 : f32
    %397 = vector.broadcast %cst_202 : f32 to vector<32x128xf32>
    %398 = arith.mulf %397, %394 : vector<32x128xf32>
    %399 = arith.select %396, %394, %398 : vector<32x128xi1>, vector<32x128xf32>
    %400 = arith.truncf %399 : vector<32x128xf32> to vector<32x128xbf16>
    %cst_203 = arith.constant dense<0.000000e+00> : vector<32x128xf32>
    %401 = tpu.matmul %1, %400, %cst_203 {dimension_numbers = #tpu.dot_dimension_numbers<[1], [0], [0], [1], [0, 0, 1, 1], [], []>} : vector<32x32xbf16>, vector<32x128xbf16>, vector<32x128xf32> -> vector<32x128xf32>
    %402 = arith.truncf %401 : vector<32x128xf32> to vector<32x128xbf16>
    %cst_204 = arith.constant dense<0.000000e+00> : vector<32x128xf32>
    %403 = tpu.matmul %402, %376, %cst_204 {dimension_numbers = #tpu.dot_dimension_numbers<[1], [0], [0], [1], [0, 0, 1, 1], [], []>} : vector<32x128xbf16>, vector<128x128xbf16>, vector<32x128xf32> -> vector<32x128xf32>
    %404 = vector.broadcast %3 : vector<32x1xf32> to vector<32x128xf32>
    %405 = arith.addf %403, %404 : vector<32x128xf32>
    %cst_205 = arith.constant 0.000000e+00 : f32
    %406 = vector.broadcast %cst_205 : f32 to vector<32x128xf32>
    %407 = arith.cmpf ogt, %405, %406 : vector<32x128xf32>
    %cst_206 = arith.constant 1.000000e-01 : f32
    %408 = vector.broadcast %cst_206 : f32 to vector<32x128xf32>
    %409 = arith.mulf %408, %405 : vector<32x128xf32>
    %410 = arith.select %407, %405, %409 : vector<32x128xi1>, vector<32x128xf32>
    %411 = arith.truncf %410 : vector<32x128xf32> to vector<32x128xbf16>
    %cst_207 = arith.constant dense<0.000000e+00> : vector<1x128xf32>
    %412 = tpu.matmul %4, %411, %cst_207 {dimension_numbers = #tpu.dot_dimension_numbers<[1], [0], [0], [1], [0, 0, 1, 1], [], []>} : vector<1x32xbf16>, vector<32x128xbf16>, vector<1x128xf32> -> vector<1x128xf32>
    %413 = arith.truncf %412 : vector<1x128xf32> to vector<1x128xbf16>
    %cst_208 = arith.constant dense<0.000000e+00> : vector<1x128xf32>
    %414 = tpu.matmul %413, %376, %cst_208 {dimension_numbers = #tpu.dot_dimension_numbers<[1], [0], [0], [1], [0, 0, 1, 1], [], []>} : vector<1x128xbf16>, vector<128x128xbf16>, vector<1x128xf32> -> vector<1x128xf32>
    %415 = arith.truncf %414 : vector<1x128xf32> to vector<1x128xbf16>
    %cst_209 = arith.constant dense<0.000000e+00> : vector<1x8xf32>
    %416 = tpu.matmul %415, %5, %cst_209 {dimension_numbers = #tpu.dot_dimension_numbers<[1], [0], [0], [1], [0, 0, 1, 1], [], []>} : vector<1x128xbf16>, vector<128x8xbf16>, vector<1x8xf32> -> vector<1x8xf32>
    %417 = vector.broadcast %6 : f32 to vector<1x8xf32>
    %418 = arith.addf %416, %417 : vector<1x8xf32>
    %419 = vector.shape_cast %418 : vector<1x8xf32> to vector<1x1x8xf32>
    %c0_210 = arith.constant 0 : index
    %c0_211 = arith.constant 0 : index
    %c64 = arith.constant 64 : index
    %420 = vector.load %arg10[%c0_210, %c0_211, %c64] : memref<1x1x128xf32, #tpu.memory_space<vmem>>, vector<1x1x8xf32>
    tpu.vector_store %arg10[%c0_210, %c0_211, %c64], %419 {strides = array<i32>} : memref<1x1x128xf32, #tpu.memory_space<vmem>>, vector<1x1x8xf32>,
    %c9 = arith.constant 9 : index
    %c0_212 = arith.constant 0 : index
    %c0_213 = arith.constant 0 : index
    %421 = vector.load %arg1[%c9, %c0_212, %c0_213] : memref<16x128x128xbf16, #tpu.memory_space<vmem>>, vector<1x128x128xbf16>
    %422 = vector.shape_cast %421 : vector<1x128x128xbf16> to vector<128x128xbf16>
    %c9_214 = arith.constant 9 : index
    %c0_215 = arith.constant 0 : index
    %c0_216 = arith.constant 0 : index
    %423 = vector.load %arg2[%c9_214, %c0_215, %c0_216] : memref<16x8x128xbf16, #tpu.memory_space<vmem>>, vector<1x8x128xbf16>
    %424 = vector.shape_cast %423 : vector<1x8x128xbf16> to vector<8x128xbf16>
    %cst_217 = arith.constant dense<0.000000e+00> : vector<8x128xf32>
    %425 = tpu.matmul %424, %422, %cst_217 {dimension_numbers = #tpu.dot_dimension_numbers<[1], [0], [0], [1], [0, 0, 1, 1], [], []>} : vector<8x128xbf16>, vector<128x128xbf16>, vector<8x128xf32> -> vector<8x128xf32>
    %426 = arith.truncf %425 : vector<8x128xf32> to vector<8x128xbf16>
    %cst_218 = arith.constant dense<0.000000e+00> : vector<32x128xf32>
    %427 = tpu.matmul %0, %426, %cst_218 {dimension_numbers = #tpu.dot_dimension_numbers<[1], [0], [0], [1], [0, 0, 1, 1], [], []>} : vector<32x8xbf16>, vector<8x128xbf16>, vector<32x128xf32> -> vector<32x128xf32>
    %428 = vector.broadcast %2 : vector<32x1xf32> to vector<32x128xf32>
    %429 = arith.addf %427, %428 : vector<32x128xf32>
    %cst_219 = arith.constant 0.000000e+00 : f32
    %430 = vector.broadcast %cst_219 : f32 to vector<32x128xf32>
    %431 = arith.cmpf ogt, %429, %430 : vector<32x128xf32>
    %cst_220 = arith.constant 1.000000e-01 : f32
    %432 = vector.broadcast %cst_220 : f32 to vector<32x128xf32>
    %433 = arith.mulf %432, %429 : vector<32x128xf32>
    %434 = arith.select %431, %429, %433 : vector<32x128xi1>, vector<32x128xf32>
    %435 = arith.truncf %434 : vector<32x128xf32> to vector<32x128xbf16>
    %cst_221 = arith.constant dense<0.000000e+00> : vector<32x128xf32>
    %436 = tpu.matmul %1, %435, %cst_221 {dimension_numbers = #tpu.dot_dimension_numbers<[1], [0], [0], [1], [0, 0, 1, 1], [], []>} : vector<32x32xbf16>, vector<32x128xbf16>, vector<32x128xf32> -> vector<32x128xf32>
    %437 = arith.truncf %436 : vector<32x128xf32> to vector<32x128xbf16>
    %cst_222 = arith.constant dense<0.000000e+00> : vector<32x128xf32>
    %438 = tpu.matmul %437, %422, %cst_222 {dimension_numbers = #tpu.dot_dimension_numbers<[1], [0], [0], [1], [0, 0, 1, 1], [], []>} : vector<32x128xbf16>, vector<128x128xbf16>, vector<32x128xf32> -> vector<32x128xf32>
    %439 = vector.broadcast %3 : vector<32x1xf32> to vector<32x128xf32>
    %440 = arith.addf %438, %439 : vector<32x128xf32>
    %cst_223 = arith.constant 0.000000e+00 : f32
    %441 = vector.broadcast %cst_223 : f32 to vector<32x128xf32>
    %442 = arith.cmpf ogt, %440, %441 : vector<32x128xf32>
    %cst_224 = arith.constant 1.000000e-01 : f32
    %443 = vector.broadcast %cst_224 : f32 to vector<32x128xf32>
    %444 = arith.mulf %443, %440 : vector<32x128xf32>
    %445 = arith.select %442, %440, %444 : vector<32x128xi1>, vector<32x128xf32>
    %446 = arith.truncf %445 : vector<32x128xf32> to vector<32x128xbf16>
    %cst_225 = arith.constant dense<0.000000e+00> : vector<32x128xf32>
    %447 = tpu.matmul %1, %446, %cst_225 {dimension_numbers = #tpu.dot_dimension_numbers<[1], [0], [0], [1], [0, 0, 1, 1], [], []>} : vector<32x32xbf16>, vector<32x128xbf16>, vector<32x128xf32> -> vector<32x128xf32>
    %448 = arith.truncf %447 : vector<32x128xf32> to vector<32x128xbf16>
    %cst_226 = arith.constant dense<0.000000e+00> : vector<32x128xf32>
    %449 = tpu.matmul %448, %422, %cst_226 {dimension_numbers = #tpu.dot_dimension_numbers<[1], [0], [0], [1], [0, 0, 1, 1], [], []>} : vector<32x128xbf16>, vector<128x128xbf16>, vector<32x128xf32> -> vector<32x128xf32>
    %450 = vector.broadcast %3 : vector<32x1xf32> to vector<32x128xf32>
    %451 = arith.addf %449, %450 : vector<32x128xf32>
    %cst_227 = arith.constant 0.000000e+00 : f32
    %452 = vector.broadcast %cst_227 : f32 to vector<32x128xf32>
    %453 = arith.cmpf ogt, %451, %452 : vector<32x128xf32>
    %cst_228 = arith.constant 1.000000e-01 : f32
    %454 = vector.broadcast %cst_228 : f32 to vector<32x128xf32>
    %455 = arith.mulf %454, %451 : vector<32x128xf32>
    %456 = arith.select %453, %451, %455 : vector<32x128xi1>, vector<32x128xf32>
    %457 = arith.truncf %456 : vector<32x128xf32> to vector<32x128xbf16>
    %cst_229 = arith.constant dense<0.000000e+00> : vector<1x128xf32>
    %458 = tpu.matmul %4, %457, %cst_229 {dimension_numbers = #tpu.dot_dimension_numbers<[1], [0], [0], [1], [0, 0, 1, 1], [], []>} : vector<1x32xbf16>, vector<32x128xbf16>, vector<1x128xf32> -> vector<1x128xf32>
    %459 = arith.truncf %458 : vector<1x128xf32> to vector<1x128xbf16>
    %cst_230 = arith.constant dense<0.000000e+00> : vector<1x128xf32>
    %460 = tpu.matmul %459, %422, %cst_230 {dimension_numbers = #tpu.dot_dimension_numbers<[1], [0], [0], [1], [0, 0, 1, 1], [], []>} : vector<1x128xbf16>, vector<128x128xbf16>, vector<1x128xf32> -> vector<1x128xf32>
    %461 = arith.truncf %460 : vector<1x128xf32> to vector<1x128xbf16>
    %cst_231 = arith.constant dense<0.000000e+00> : vector<1x8xf32>
    %462 = tpu.matmul %461, %5, %cst_231 {dimension_numbers = #tpu.dot_dimension_numbers<[1], [0], [0], [1], [0, 0, 1, 1], [], []>} : vector<1x128xbf16>, vector<128x8xbf16>, vector<1x8xf32> -> vector<1x8xf32>
    %463 = vector.broadcast %6 : f32 to vector<1x8xf32>
    %464 = arith.addf %462, %463 : vector<1x8xf32>
    %465 = vector.shape_cast %464 : vector<1x8xf32> to vector<1x1x8xf32>
    %c0_232 = arith.constant 0 : index
    %c0_233 = arith.constant 0 : index
    %c72 = arith.constant 72 : index
    %466 = vector.load %arg10[%c0_232, %c0_233, %c72] : memref<1x1x128xf32, #tpu.memory_space<vmem>>, vector<1x1x8xf32>
    tpu.vector_store %arg10[%c0_232, %c0_233, %c72], %465 {strides = array<i32>} : memref<1x1x128xf32, #tpu.memory_space<vmem>>, vector<1x1x8xf32>,
    %c10 = arith.constant 10 : index
    %c0_234 = arith.constant 0 : index
    %c0_235 = arith.constant 0 : index
    %467 = vector.load %arg1[%c10, %c0_234, %c0_235] : memref<16x128x128xbf16, #tpu.memory_space<vmem>>, vector<1x128x128xbf16>
    %468 = vector.shape_cast %467 : vector<1x128x128xbf16> to vector<128x128xbf16>
    %c10_236 = arith.constant 10 : index
    %c0_237 = arith.constant 0 : index
    %c0_238 = arith.constant 0 : index
    %469 = vector.load %arg2[%c10_236, %c0_237, %c0_238] : memref<16x8x128xbf16, #tpu.memory_space<vmem>>, vector<1x8x128xbf16>
    %470 = vector.shape_cast %469 : vector<1x8x128xbf16> to vector<8x128xbf16>
    %cst_239 = arith.constant dense<0.000000e+00> : vector<8x128xf32>
    %471 = tpu.matmul %470, %468, %cst_239 {dimension_numbers = #tpu.dot_dimension_numbers<[1], [0], [0], [1], [0, 0, 1, 1], [], []>} : vector<8x128xbf16>, vector<128x128xbf16>, vector<8x128xf32> -> vector<8x128xf32>
    %472 = arith.truncf %471 : vector<8x128xf32> to vector<8x128xbf16>
    %cst_240 = arith.constant dense<0.000000e+00> : vector<32x128xf32>
    %473 = tpu.matmul %0, %472, %cst_240 {dimension_numbers = #tpu.dot_dimension_numbers<[1], [0], [0], [1], [0, 0, 1, 1], [], []>} : vector<32x8xbf16>, vector<8x128xbf16>, vector<32x128xf32> -> vector<32x128xf32>
    %474 = vector.broadcast %2 : vector<32x1xf32> to vector<32x128xf32>
    %475 = arith.addf %473, %474 : vector<32x128xf32>
    %cst_241 = arith.constant 0.000000e+00 : f32
    %476 = vector.broadcast %cst_241 : f32 to vector<32x128xf32>
    %477 = arith.cmpf ogt, %475, %476 : vector<32x128xf32>
    %cst_242 = arith.constant 1.000000e-01 : f32
    %478 = vector.broadcast %cst_242 : f32 to vector<32x128xf32>
    %479 = arith.mulf %478, %475 : vector<32x128xf32>
    %480 = arith.select %477, %475, %479 : vector<32x128xi1>, vector<32x128xf32>
    %481 = arith.truncf %480 : vector<32x128xf32> to vector<32x128xbf16>
    %cst_243 = arith.constant dense<0.000000e+00> : vector<32x128xf32>
    %482 = tpu.matmul %1, %481, %cst_243 {dimension_numbers = #tpu.dot_dimension_numbers<[1], [0], [0], [1], [0, 0, 1, 1], [], []>} : vector<32x32xbf16>, vector<32x128xbf16>, vector<32x128xf32> -> vector<32x128xf32>
    %483 = arith.truncf %482 : vector<32x128xf32> to vector<32x128xbf16>
    %cst_244 = arith.constant dense<0.000000e+00> : vector<32x128xf32>
    %484 = tpu.matmul %483, %468, %cst_244 {dimension_numbers = #tpu.dot_dimension_numbers<[1], [0], [0], [1], [0, 0, 1, 1], [], []>} : vector<32x128xbf16>, vector<128x128xbf16>, vector<32x128xf32> -> vector<32x128xf32>
    %485 = vector.broadcast %3 : vector<32x1xf32> to vector<32x128xf32>
    %486 = arith.addf %484, %485 : vector<32x128xf32>
    %cst_245 = arith.constant 0.000000e+00 : f32
    %487 = vector.broadcast %cst_245 : f32 to vector<32x128xf32>
    %488 = arith.cmpf ogt, %486, %487 : vector<32x128xf32>
    %cst_246 = arith.constant 1.000000e-01 : f32
    %489 = vector.broadcast %cst_246 : f32 to vector<32x128xf32>
    %490 = arith.mulf %489, %486 : vector<32x128xf32>
    %491 = arith.select %488, %486, %490 : vector<32x128xi1>, vector<32x128xf32>
    %492 = arith.truncf %491 : vector<32x128xf32> to vector<32x128xbf16>
    %cst_247 = arith.constant dense<0.000000e+00> : vector<32x128xf32>
    %493 = tpu.matmul %1, %492, %cst_247 {dimension_numbers = #tpu.dot_dimension_numbers<[1], [0], [0], [1], [0, 0, 1, 1], [], []>} : vector<32x32xbf16>, vector<32x128xbf16>, vector<32x128xf32> -> vector<32x128xf32>
    %494 = arith.truncf %493 : vector<32x128xf32> to vector<32x128xbf16>
    %cst_248 = arith.constant dense<0.000000e+00> : vector<32x128xf32>
    %495 = tpu.matmul %494, %468, %cst_248 {dimension_numbers = #tpu.dot_dimension_numbers<[1], [0], [0], [1], [0, 0, 1, 1], [], []>} : vector<32x128xbf16>, vector<128x128xbf16>, vector<32x128xf32> -> vector<32x128xf32>
    %496 = vector.broadcast %3 : vector<32x1xf32> to vector<32x128xf32>
    %497 = arith.addf %495, %496 : vector<32x128xf32>
    %cst_249 = arith.constant 0.000000e+00 : f32
    %498 = vector.broadcast %cst_249 : f32 to vector<32x128xf32>
    %499 = arith.cmpf ogt, %497, %498 : vector<32x128xf32>
    %cst_250 = arith.constant 1.000000e-01 : f32
    %500 = vector.broadcast %cst_250 : f32 to vector<32x128xf32>
    %501 = arith.mulf %500, %497 : vector<32x128xf32>
    %502 = arith.select %499, %497, %501 : vector<32x128xi1>, vector<32x128xf32>
    %503 = arith.truncf %502 : vector<32x128xf32> to vector<32x128xbf16>
    %cst_251 = arith.constant dense<0.000000e+00> : vector<1x128xf32>
    %504 = tpu.matmul %4, %503, %cst_251 {dimension_numbers = #tpu.dot_dimension_numbers<[1], [0], [0], [1], [0, 0, 1, 1], [], []>} : vector<1x32xbf16>, vector<32x128xbf16>, vector<1x128xf32> -> vector<1x128xf32>
    %505 = arith.truncf %504 : vector<1x128xf32> to vector<1x128xbf16>
    %cst_252 = arith.constant dense<0.000000e+00> : vector<1x128xf32>
    %506 = tpu.matmul %505, %468, %cst_252 {dimension_numbers = #tpu.dot_dimension_numbers<[1], [0], [0], [1], [0, 0, 1, 1], [], []>} : vector<1x128xbf16>, vector<128x128xbf16>, vector<1x128xf32> -> vector<1x128xf32>
    %507 = arith.truncf %506 : vector<1x128xf32> to vector<1x128xbf16>
    %cst_253 = arith.constant dense<0.000000e+00> : vector<1x8xf32>
    %508 = tpu.matmul %507, %5, %cst_253 {dimension_numbers = #tpu.dot_dimension_numbers<[1], [0], [0], [1], [0, 0, 1, 1], [], []>} : vector<1x128xbf16>, vector<128x8xbf16>, vector<1x8xf32> -> vector<1x8xf32>
    %509 = vector.broadcast %6 : f32 to vector<1x8xf32>
    %510 = arith.addf %508, %509 : vector<1x8xf32>
    %511 = vector.shape_cast %510 : vector<1x8xf32> to vector<1x1x8xf32>
    %c0_254 = arith.constant 0 : index
    %c0_255 = arith.constant 0 : index
    %c80 = arith.constant 80 : index
    %512 = vector.load %arg10[%c0_254, %c0_255, %c80] : memref<1x1x128xf32, #tpu.memory_space<vmem>>, vector<1x1x8xf32>
    tpu.vector_store %arg10[%c0_254, %c0_255, %c80], %511 {strides = array<i32>} : memref<1x1x128xf32, #tpu.memory_space<vmem>>, vector<1x1x8xf32>,
    %c11 = arith.constant 11 : index
    %c0_256 = arith.constant 0 : index
    %c0_257 = arith.constant 0 : index
    %513 = vector.load %arg1[%c11, %c0_256, %c0_257] : memref<16x128x128xbf16, #tpu.memory_space<vmem>>, vector<1x128x128xbf16>
    %514 = vector.shape_cast %513 : vector<1x128x128xbf16> to vector<128x128xbf16>
    %c11_258 = arith.constant 11 : index
    %c0_259 = arith.constant 0 : index
    %c0_260 = arith.constant 0 : index
    %515 = vector.load %arg2[%c11_258, %c0_259, %c0_260] : memref<16x8x128xbf16, #tpu.memory_space<vmem>>, vector<1x8x128xbf16>
    %516 = vector.shape_cast %515 : vector<1x8x128xbf16> to vector<8x128xbf16>
    %cst_261 = arith.constant dense<0.000000e+00> : vector<8x128xf32>
    %517 = tpu.matmul %516, %514, %cst_261 {dimension_numbers = #tpu.dot_dimension_numbers<[1], [0], [0], [1], [0, 0, 1, 1], [], []>} : vector<8x128xbf16>, vector<128x128xbf16>, vector<8x128xf32> -> vector<8x128xf32>
    %518 = arith.truncf %517 : vector<8x128xf32> to vector<8x128xbf16>
    %cst_262 = arith.constant dense<0.000000e+00> : vector<32x128xf32>
    %519 = tpu.matmul %0, %518, %cst_262 {dimension_numbers = #tpu.dot_dimension_numbers<[1], [0], [0], [1], [0, 0, 1, 1], [], []>} : vector<32x8xbf16>, vector<8x128xbf16>, vector<32x128xf32> -> vector<32x128xf32>
    %520 = vector.broadcast %2 : vector<32x1xf32> to vector<32x128xf32>
    %521 = arith.addf %519, %520 : vector<32x128xf32>
    %cst_263 = arith.constant 0.000000e+00 : f32
    %522 = vector.broadcast %cst_263 : f32 to vector<32x128xf32>
    %523 = arith.cmpf ogt, %521, %522 : vector<32x128xf32>
    %cst_264 = arith.constant 1.000000e-01 : f32
    %524 = vector.broadcast %cst_264 : f32 to vector<32x128xf32>
    %525 = arith.mulf %524, %521 : vector<32x128xf32>
    %526 = arith.select %523, %521, %525 : vector<32x128xi1>, vector<32x128xf32>
    %527 = arith.truncf %526 : vector<32x128xf32> to vector<32x128xbf16>
    %cst_265 = arith.constant dense<0.000000e+00> : vector<32x128xf32>
    %528 = tpu.matmul %1, %527, %cst_265 {dimension_numbers = #tpu.dot_dimension_numbers<[1], [0], [0], [1], [0, 0, 1, 1], [], []>} : vector<32x32xbf16>, vector<32x128xbf16>, vector<32x128xf32> -> vector<32x128xf32>
    %529 = arith.truncf %528 : vector<32x128xf32> to vector<32x128xbf16>
    %cst_266 = arith.constant dense<0.000000e+00> : vector<32x128xf32>
    %530 = tpu.matmul %529, %514, %cst_266 {dimension_numbers = #tpu.dot_dimension_numbers<[1], [0], [0], [1], [0, 0, 1, 1], [], []>} : vector<32x128xbf16>, vector<128x128xbf16>, vector<32x128xf32> -> vector<32x128xf32>
    %531 = vector.broadcast %3 : vector<32x1xf32> to vector<32x128xf32>
    %532 = arith.addf %530, %531 : vector<32x128xf32>
    %cst_267 = arith.constant 0.000000e+00 : f32
    %533 = vector.broadcast %cst_267 : f32 to vector<32x128xf32>
    %534 = arith.cmpf ogt, %532, %533 : vector<32x128xf32>
    %cst_268 = arith.constant 1.000000e-01 : f32
    %535 = vector.broadcast %cst_268 : f32 to vector<32x128xf32>
    %536 = arith.mulf %535, %532 : vector<32x128xf32>
    %537 = arith.select %534, %532, %536 : vector<32x128xi1>, vector<32x128xf32>
    %538 = arith.truncf %537 : vector<32x128xf32> to vector<32x128xbf16>
    %cst_269 = arith.constant dense<0.000000e+00> : vector<32x128xf32>
    %539 = tpu.matmul %1, %538, %cst_269 {dimension_numbers = #tpu.dot_dimension_numbers<[1], [0], [0], [1], [0, 0, 1, 1], [], []>} : vector<32x32xbf16>, vector<32x128xbf16>, vector<32x128xf32> -> vector<32x128xf32>
    %540 = arith.truncf %539 : vector<32x128xf32> to vector<32x128xbf16>
    %cst_270 = arith.constant dense<0.000000e+00> : vector<32x128xf32>
    %541 = tpu.matmul %540, %514, %cst_270 {dimension_numbers = #tpu.dot_dimension_numbers<[1], [0], [0], [1], [0, 0, 1, 1], [], []>} : vector<32x128xbf16>, vector<128x128xbf16>, vector<32x128xf32> -> vector<32x128xf32>
    %542 = vector.broadcast %3 : vector<32x1xf32> to vector<32x128xf32>
    %543 = arith.addf %541, %542 : vector<32x128xf32>
    %cst_271 = arith.constant 0.000000e+00 : f32
    %544 = vector.broadcast %cst_271 : f32 to vector<32x128xf32>
    %545 = arith.cmpf ogt, %543, %544 : vector<32x128xf32>
    %cst_272 = arith.constant 1.000000e-01 : f32
    %546 = vector.broadcast %cst_272 : f32 to vector<32x128xf32>
    %547 = arith.mulf %546, %543 : vector<32x128xf32>
    %548 = arith.select %545, %543, %547 : vector<32x128xi1>, vector<32x128xf32>
    %549 = arith.truncf %548 : vector<32x128xf32> to vector<32x128xbf16>
    %cst_273 = arith.constant dense<0.000000e+00> : vector<1x128xf32>
    %550 = tpu.matmul %4, %549, %cst_273 {dimension_numbers = #tpu.dot_dimension_numbers<[1], [0], [0], [1], [0, 0, 1, 1], [], []>} : vector<1x32xbf16>, vector<32x128xbf16>, vector<1x128xf32> -> vector<1x128xf32>
    %551 = arith.truncf %550 : vector<1x128xf32> to vector<1x128xbf16>
    %cst_274 = arith.constant dense<0.000000e+00> : vector<1x128xf32>
    %552 = tpu.matmul %551, %514, %cst_274 {dimension_numbers = #tpu.dot_dimension_numbers<[1], [0], [0], [1], [0, 0, 1, 1], [], []>} : vector<1x128xbf16>, vector<128x128xbf16>, vector<1x128xf32> -> vector<1x128xf32>
    %553 = arith.truncf %552 : vector<1x128xf32> to vector<1x128xbf16>
    %cst_275 = arith.constant dense<0.000000e+00> : vector<1x8xf32>
    %554 = tpu.matmul %553, %5, %cst_275 {dimension_numbers = #tpu.dot_dimension_numbers<[1], [0], [0], [1], [0, 0, 1, 1], [], []>} : vector<1x128xbf16>, vector<128x8xbf16>, vector<1x8xf32> -> vector<1x8xf32>
    %555 = vector.broadcast %6 : f32 to vector<1x8xf32>
    %556 = arith.addf %554, %555 : vector<1x8xf32>
    %557 = vector.shape_cast %556 : vector<1x8xf32> to vector<1x1x8xf32>
    %c0_276 = arith.constant 0 : index
    %c0_277 = arith.constant 0 : index
    %c88 = arith.constant 88 : index
    %558 = vector.load %arg10[%c0_276, %c0_277, %c88] : memref<1x1x128xf32, #tpu.memory_space<vmem>>, vector<1x1x8xf32>
    tpu.vector_store %arg10[%c0_276, %c0_277, %c88], %557 {strides = array<i32>} : memref<1x1x128xf32, #tpu.memory_space<vmem>>, vector<1x1x8xf32>,
    %c12 = arith.constant 12 : index
    %c0_278 = arith.constant 0 : index
    %c0_279 = arith.constant 0 : index
    %559 = vector.load %arg1[%c12, %c0_278, %c0_279] : memref<16x128x128xbf16, #tpu.memory_space<vmem>>, vector<1x128x128xbf16>
    %560 = vector.shape_cast %559 : vector<1x128x128xbf16> to vector<128x128xbf16>
    %c12_280 = arith.constant 12 : index
    %c0_281 = arith.constant 0 : index
    %c0_282 = arith.constant 0 : index
    %561 = vector.load %arg2[%c12_280, %c0_281, %c0_282] : memref<16x8x128xbf16, #tpu.memory_space<vmem>>, vector<1x8x128xbf16>
    %562 = vector.shape_cast %561 : vector<1x8x128xbf16> to vector<8x128xbf16>
    %cst_283 = arith.constant dense<0.000000e+00> : vector<8x128xf32>
    %563 = tpu.matmul %562, %560, %cst_283 {dimension_numbers = #tpu.dot_dimension_numbers<[1], [0], [0], [1], [0, 0, 1, 1], [], []>} : vector<8x128xbf16>, vector<128x128xbf16>, vector<8x128xf32> -> vector<8x128xf32>
    %564 = arith.truncf %563 : vector<8x128xf32> to vector<8x128xbf16>
    %cst_284 = arith.constant dense<0.000000e+00> : vector<32x128xf32>
    %565 = tpu.matmul %0, %564, %cst_284 {dimension_numbers = #tpu.dot_dimension_numbers<[1], [0], [0], [1], [0, 0, 1, 1], [], []>} : vector<32x8xbf16>, vector<8x128xbf16>, vector<32x128xf32> -> vector<32x128xf32>
    %566 = vector.broadcast %2 : vector<32x1xf32> to vector<32x128xf32>
    %567 = arith.addf %565, %566 : vector<32x128xf32>
    %cst_285 = arith.constant 0.000000e+00 : f32
    %568 = vector.broadcast %cst_285 : f32 to vector<32x128xf32>
    %569 = arith.cmpf ogt, %567, %568 : vector<32x128xf32>
    %cst_286 = arith.constant 1.000000e-01 : f32
    %570 = vector.broadcast %cst_286 : f32 to vector<32x128xf32>
    %571 = arith.mulf %570, %567 : vector<32x128xf32>
    %572 = arith.select %569, %567, %571 : vector<32x128xi1>, vector<32x128xf32>
    %573 = arith.truncf %572 : vector<32x128xf32> to vector<32x128xbf16>
    %cst_287 = arith.constant dense<0.000000e+00> : vector<32x128xf32>
    %574 = tpu.matmul %1, %573, %cst_287 {dimension_numbers = #tpu.dot_dimension_numbers<[1], [0], [0], [1], [0, 0, 1, 1], [], []>} : vector<32x32xbf16>, vector<32x128xbf16>, vector<32x128xf32> -> vector<32x128xf32>
    %575 = arith.truncf %574 : vector<32x128xf32> to vector<32x128xbf16>
    %cst_288 = arith.constant dense<0.000000e+00> : vector<32x128xf32>
    %576 = tpu.matmul %575, %560, %cst_288 {dimension_numbers = #tpu.dot_dimension_numbers<[1], [0], [0], [1], [0, 0, 1, 1], [], []>} : vector<32x128xbf16>, vector<128x128xbf16>, vector<32x128xf32> -> vector<32x128xf32>
    %577 = vector.broadcast %3 : vector<32x1xf32> to vector<32x128xf32>
    %578 = arith.addf %576, %577 : vector<32x128xf32>
    %cst_289 = arith.constant 0.000000e+00 : f32
    %579 = vector.broadcast %cst_289 : f32 to vector<32x128xf32>
    %580 = arith.cmpf ogt, %578, %579 : vector<32x128xf32>
    %cst_290 = arith.constant 1.000000e-01 : f32
    %581 = vector.broadcast %cst_290 : f32 to vector<32x128xf32>
    %582 = arith.mulf %581, %578 : vector<32x128xf32>
    %583 = arith.select %580, %578, %582 : vector<32x128xi1>, vector<32x128xf32>
    %584 = arith.truncf %583 : vector<32x128xf32> to vector<32x128xbf16>
    %cst_291 = arith.constant dense<0.000000e+00> : vector<32x128xf32>
    %585 = tpu.matmul %1, %584, %cst_291 {dimension_numbers = #tpu.dot_dimension_numbers<[1], [0], [0], [1], [0, 0, 1, 1], [], []>} : vector<32x32xbf16>, vector<32x128xbf16>, vector<32x128xf32> -> vector<32x128xf32>
    %586 = arith.truncf %585 : vector<32x128xf32> to vector<32x128xbf16>
    %cst_292 = arith.constant dense<0.000000e+00> : vector<32x128xf32>
    %587 = tpu.matmul %586, %560, %cst_292 {dimension_numbers = #tpu.dot_dimension_numbers<[1], [0], [0], [1], [0, 0, 1, 1], [], []>} : vector<32x128xbf16>, vector<128x128xbf16>, vector<32x128xf32> -> vector<32x128xf32>
    %588 = vector.broadcast %3 : vector<32x1xf32> to vector<32x128xf32>
    %589 = arith.addf %587, %588 : vector<32x128xf32>
    %cst_293 = arith.constant 0.000000e+00 : f32
    %590 = vector.broadcast %cst_293 : f32 to vector<32x128xf32>
    %591 = arith.cmpf ogt, %589, %590 : vector<32x128xf32>
    %cst_294 = arith.constant 1.000000e-01 : f32
    %592 = vector.broadcast %cst_294 : f32 to vector<32x128xf32>
    %593 = arith.mulf %592, %589 : vector<32x128xf32>
    %594 = arith.select %591, %589, %593 : vector<32x128xi1>, vector<32x128xf32>
    %595 = arith.truncf %594 : vector<32x128xf32> to vector<32x128xbf16>
    %cst_295 = arith.constant dense<0.000000e+00> : vector<1x128xf32>
    %596 = tpu.matmul %4, %595, %cst_295 {dimension_numbers = #tpu.dot_dimension_numbers<[1], [0], [0], [1], [0, 0, 1, 1], [], []>} : vector<1x32xbf16>, vector<32x128xbf16>, vector<1x128xf32> -> vector<1x128xf32>
    %597 = arith.truncf %596 : vector<1x128xf32> to vector<1x128xbf16>
    %cst_296 = arith.constant dense<0.000000e+00> : vector<1x128xf32>
    %598 = tpu.matmul %597, %560, %cst_296 {dimension_numbers = #tpu.dot_dimension_numbers<[1], [0], [0], [1], [0, 0, 1, 1], [], []>} : vector<1x128xbf16>, vector<128x128xbf16>, vector<1x128xf32> -> vector<1x128xf32>
    %599 = arith.truncf %598 : vector<1x128xf32> to vector<1x128xbf16>
    %cst_297 = arith.constant dense<0.000000e+00> : vector<1x8xf32>
    %600 = tpu.matmul %599, %5, %cst_297 {dimension_numbers = #tpu.dot_dimension_numbers<[1], [0], [0], [1], [0, 0, 1, 1], [], []>} : vector<1x128xbf16>, vector<128x8xbf16>, vector<1x8xf32> -> vector<1x8xf32>
    %601 = vector.broadcast %6 : f32 to vector<1x8xf32>
    %602 = arith.addf %600, %601 : vector<1x8xf32>
    %603 = vector.shape_cast %602 : vector<1x8xf32> to vector<1x1x8xf32>
    %c0_298 = arith.constant 0 : index
    %c0_299 = arith.constant 0 : index
    %c96 = arith.constant 96 : index
    %604 = vector.load %arg10[%c0_298, %c0_299, %c96] : memref<1x1x128xf32, #tpu.memory_space<vmem>>, vector<1x1x8xf32>
    tpu.vector_store %arg10[%c0_298, %c0_299, %c96], %603 {strides = array<i32>} : memref<1x1x128xf32, #tpu.memory_space<vmem>>, vector<1x1x8xf32>,
    %c13 = arith.constant 13 : index
    %c0_300 = arith.constant 0 : index
    %c0_301 = arith.constant 0 : index
    %605 = vector.load %arg1[%c13, %c0_300, %c0_301] : memref<16x128x128xbf16, #tpu.memory_space<vmem>>, vector<1x128x128xbf16>
    %606 = vector.shape_cast %605 : vector<1x128x128xbf16> to vector<128x128xbf16>
    %c13_302 = arith.constant 13 : index
    %c0_303 = arith.constant 0 : index
    %c0_304 = arith.constant 0 : index
    %607 = vector.load %arg2[%c13_302, %c0_303, %c0_304] : memref<16x8x128xbf16, #tpu.memory_space<vmem>>, vector<1x8x128xbf16>
    %608 = vector.shape_cast %607 : vector<1x8x128xbf16> to vector<8x128xbf16>
    %cst_305 = arith.constant dense<0.000000e+00> : vector<8x128xf32>
    %609 = tpu.matmul %608, %606, %cst_305 {dimension_numbers = #tpu.dot_dimension_numbers<[1], [0], [0], [1], [0, 0, 1, 1], [], []>} : vector<8x128xbf16>, vector<128x128xbf16>, vector<8x128xf32> -> vector<8x128xf32>
    %610 = arith.truncf %609 : vector<8x128xf32> to vector<8x128xbf16>
    %cst_306 = arith.constant dense<0.000000e+00> : vector<32x128xf32>
    %611 = tpu.matmul %0, %610, %cst_306 {dimension_numbers = #tpu.dot_dimension_numbers<[1], [0], [0], [1], [0, 0, 1, 1], [], []>} : vector<32x8xbf16>, vector<8x128xbf16>, vector<32x128xf32> -> vector<32x128xf32>
    %612 = vector.broadcast %2 : vector<32x1xf32> to vector<32x128xf32>
    %613 = arith.addf %611, %612 : vector<32x128xf32>
    %cst_307 = arith.constant 0.000000e+00 : f32
    %614 = vector.broadcast %cst_307 : f32 to vector<32x128xf32>
    %615 = arith.cmpf ogt, %613, %614 : vector<32x128xf32>
    %cst_308 = arith.constant 1.000000e-01 : f32
    %616 = vector.broadcast %cst_308 : f32 to vector<32x128xf32>
    %617 = arith.mulf %616, %613 : vector<32x128xf32>
    %618 = arith.select %615, %613, %617 : vector<32x128xi1>, vector<32x128xf32>
    %619 = arith.truncf %618 : vector<32x128xf32> to vector<32x128xbf16>
    %cst_309 = arith.constant dense<0.000000e+00> : vector<32x128xf32>
    %620 = tpu.matmul %1, %619, %cst_309 {dimension_numbers = #tpu.dot_dimension_numbers<[1], [0], [0], [1], [0, 0, 1, 1], [], []>} : vector<32x32xbf16>, vector<32x128xbf16>, vector<32x128xf32> -> vector<32x128xf32>
    %621 = arith.truncf %620 : vector<32x128xf32> to vector<32x128xbf16>
    %cst_310 = arith.constant dense<0.000000e+00> : vector<32x128xf32>
    %622 = tpu.matmul %621, %606, %cst_310 {dimension_numbers = #tpu.dot_dimension_numbers<[1], [0], [0], [1], [0, 0, 1, 1], [], []>} : vector<32x128xbf16>, vector<128x128xbf16>, vector<32x128xf32> -> vector<32x128xf32>
    %623 = vector.broadcast %3 : vector<32x1xf32> to vector<32x128xf32>
    %624 = arith.addf %622, %623 : vector<32x128xf32>
    %cst_311 = arith.constant 0.000000e+00 : f32
    %625 = vector.broadcast %cst_311 : f32 to vector<32x128xf32>
    %626 = arith.cmpf ogt, %624, %625 : vector<32x128xf32>
    %cst_312 = arith.constant 1.000000e-01 : f32
    %627 = vector.broadcast %cst_312 : f32 to vector<32x128xf32>
    %628 = arith.mulf %627, %624 : vector<32x128xf32>
    %629 = arith.select %626, %624, %628 : vector<32x128xi1>, vector<32x128xf32>
    %630 = arith.truncf %629 : vector<32x128xf32> to vector<32x128xbf16>
    %cst_313 = arith.constant dense<0.000000e+00> : vector<32x128xf32>
    %631 = tpu.matmul %1, %630, %cst_313 {dimension_numbers = #tpu.dot_dimension_numbers<[1], [0], [0], [1], [0, 0, 1, 1], [], []>} : vector<32x32xbf16>, vector<32x128xbf16>, vector<32x128xf32> -> vector<32x128xf32>
    %632 = arith.truncf %631 : vector<32x128xf32> to vector<32x128xbf16>
    %cst_314 = arith.constant dense<0.000000e+00> : vector<32x128xf32>
    %633 = tpu.matmul %632, %606, %cst_314 {dimension_numbers = #tpu.dot_dimension_numbers<[1], [0], [0], [1], [0, 0, 1, 1], [], []>} : vector<32x128xbf16>, vector<128x128xbf16>, vector<32x128xf32> -> vector<32x128xf32>
    %634 = vector.broadcast %3 : vector<32x1xf32> to vector<32x128xf32>
    %635 = arith.addf %633, %634 : vector<32x128xf32>
    %cst_315 = arith.constant 0.000000e+00 : f32
    %636 = vector.broadcast %cst_315 : f32 to vector<32x128xf32>
    %637 = arith.cmpf ogt, %635, %636 : vector<32x128xf32>
    %cst_316 = arith.constant 1.000000e-01 : f32
    %638 = vector.broadcast %cst_316 : f32 to vector<32x128xf32>
    %639 = arith.mulf %638, %635 : vector<32x128xf32>
    %640 = arith.select %637, %635, %639 : vector<32x128xi1>, vector<32x128xf32>
    %641 = arith.truncf %640 : vector<32x128xf32> to vector<32x128xbf16>
    %cst_317 = arith.constant dense<0.000000e+00> : vector<1x128xf32>
    %642 = tpu.matmul %4, %641, %cst_317 {dimension_numbers = #tpu.dot_dimension_numbers<[1], [0], [0], [1], [0, 0, 1, 1], [], []>} : vector<1x32xbf16>, vector<32x128xbf16>, vector<1x128xf32> -> vector<1x128xf32>
    %643 = arith.truncf %642 : vector<1x128xf32> to vector<1x128xbf16>
    %cst_318 = arith.constant dense<0.000000e+00> : vector<1x128xf32>
    %644 = tpu.matmul %643, %606, %cst_318 {dimension_numbers = #tpu.dot_dimension_numbers<[1], [0], [0], [1], [0, 0, 1, 1], [], []>} : vector<1x128xbf16>, vector<128x128xbf16>, vector<1x128xf32> -> vector<1x128xf32>
    %645 = arith.truncf %644 : vector<1x128xf32> to vector<1x128xbf16>
    %cst_319 = arith.constant dense<0.000000e+00> : vector<1x8xf32>
    %646 = tpu.matmul %645, %5, %cst_319 {dimension_numbers = #tpu.dot_dimension_numbers<[1], [0], [0], [1], [0, 0, 1, 1], [], []>} : vector<1x128xbf16>, vector<128x8xbf16>, vector<1x8xf32> -> vector<1x8xf32>
    %647 = vector.broadcast %6 : f32 to vector<1x8xf32>
    %648 = arith.addf %646, %647 : vector<1x8xf32>
    %649 = vector.shape_cast %648 : vector<1x8xf32> to vector<1x1x8xf32>
    %c0_320 = arith.constant 0 : index
    %c0_321 = arith.constant 0 : index
    %c104 = arith.constant 104 : index
    %650 = vector.load %arg10[%c0_320, %c0_321, %c104] : memref<1x1x128xf32, #tpu.memory_space<vmem>>, vector<1x1x8xf32>
    tpu.vector_store %arg10[%c0_320, %c0_321, %c104], %649 {strides = array<i32>} : memref<1x1x128xf32, #tpu.memory_space<vmem>>, vector<1x1x8xf32>,
    %c14 = arith.constant 14 : index
    %c0_322 = arith.constant 0 : index
    %c0_323 = arith.constant 0 : index
    %651 = vector.load %arg1[%c14, %c0_322, %c0_323] : memref<16x128x128xbf16, #tpu.memory_space<vmem>>, vector<1x128x128xbf16>
    %652 = vector.shape_cast %651 : vector<1x128x128xbf16> to vector<128x128xbf16>
    %c14_324 = arith.constant 14 : index
    %c0_325 = arith.constant 0 : index
    %c0_326 = arith.constant 0 : index
    %653 = vector.load %arg2[%c14_324, %c0_325, %c0_326] : memref<16x8x128xbf16, #tpu.memory_space<vmem>>, vector<1x8x128xbf16>
    %654 = vector.shape_cast %653 : vector<1x8x128xbf16> to vector<8x128xbf16>
    %cst_327 = arith.constant dense<0.000000e+00> : vector<8x128xf32>
    %655 = tpu.matmul %654, %652, %cst_327 {dimension_numbers = #tpu.dot_dimension_numbers<[1], [0], [0], [1], [0, 0, 1, 1], [], []>} : vector<8x128xbf16>, vector<128x128xbf16>, vector<8x128xf32> -> vector<8x128xf32>
    %656 = arith.truncf %655 : vector<8x128xf32> to vector<8x128xbf16>
    %cst_328 = arith.constant dense<0.000000e+00> : vector<32x128xf32>
    %657 = tpu.matmul %0, %656, %cst_328 {dimension_numbers = #tpu.dot_dimension_numbers<[1], [0], [0], [1], [0, 0, 1, 1], [], []>} : vector<32x8xbf16>, vector<8x128xbf16>, vector<32x128xf32> -> vector<32x128xf32>
    %658 = vector.broadcast %2 : vector<32x1xf32> to vector<32x128xf32>
    %659 = arith.addf %657, %658 : vector<32x128xf32>
    %cst_329 = arith.constant 0.000000e+00 : f32
    %660 = vector.broadcast %cst_329 : f32 to vector<32x128xf32>
    %661 = arith.cmpf ogt, %659, %660 : vector<32x128xf32>
    %cst_330 = arith.constant 1.000000e-01 : f32
    %662 = vector.broadcast %cst_330 : f32 to vector<32x128xf32>
    %663 = arith.mulf %662, %659 : vector<32x128xf32>
    %664 = arith.select %661, %659, %663 : vector<32x128xi1>, vector<32x128xf32>
    %665 = arith.truncf %664 : vector<32x128xf32> to vector<32x128xbf16>
    %cst_331 = arith.constant dense<0.000000e+00> : vector<32x128xf32>
    %666 = tpu.matmul %1, %665, %cst_331 {dimension_numbers = #tpu.dot_dimension_numbers<[1], [0], [0], [1], [0, 0, 1, 1], [], []>} : vector<32x32xbf16>, vector<32x128xbf16>, vector<32x128xf32> -> vector<32x128xf32>
    %667 = arith.truncf %666 : vector<32x128xf32> to vector<32x128xbf16>
    %cst_332 = arith.constant dense<0.000000e+00> : vector<32x128xf32>
    %668 = tpu.matmul %667, %652, %cst_332 {dimension_numbers = #tpu.dot_dimension_numbers<[1], [0], [0], [1], [0, 0, 1, 1], [], []>} : vector<32x128xbf16>, vector<128x128xbf16>, vector<32x128xf32> -> vector<32x128xf32>
    %669 = vector.broadcast %3 : vector<32x1xf32> to vector<32x128xf32>
    %670 = arith.addf %668, %669 : vector<32x128xf32>
    %cst_333 = arith.constant 0.000000e+00 : f32
    %671 = vector.broadcast %cst_333 : f32 to vector<32x128xf32>
    %672 = arith.cmpf ogt, %670, %671 : vector<32x128xf32>
    %cst_334 = arith.constant 1.000000e-01 : f32
    %673 = vector.broadcast %cst_334 : f32 to vector<32x128xf32>
    %674 = arith.mulf %673, %670 : vector<32x128xf32>
    %675 = arith.select %672, %670, %674 : vector<32x128xi1>, vector<32x128xf32>
    %676 = arith.truncf %675 : vector<32x128xf32> to vector<32x128xbf16>
    %cst_335 = arith.constant dense<0.000000e+00> : vector<32x128xf32>
    %677 = tpu.matmul %1, %676, %cst_335 {dimension_numbers = #tpu.dot_dimension_numbers<[1], [0], [0], [1], [0, 0, 1, 1], [], []>} : vector<32x32xbf16>, vector<32x128xbf16>, vector<32x128xf32> -> vector<32x128xf32>
    %678 = arith.truncf %677 : vector<32x128xf32> to vector<32x128xbf16>
    %cst_336 = arith.constant dense<0.000000e+00> : vector<32x128xf32>
    %679 = tpu.matmul %678, %652, %cst_336 {dimension_numbers = #tpu.dot_dimension_numbers<[1], [0], [0], [1], [0, 0, 1, 1], [], []>} : vector<32x128xbf16>, vector<128x128xbf16>, vector<32x128xf32> -> vector<32x128xf32>
    %680 = vector.broadcast %3 : vector<32x1xf32> to vector<32x128xf32>
    %681 = arith.addf %679, %680 : vector<32x128xf32>
    %cst_337 = arith.constant 0.000000e+00 : f32
    %682 = vector.broadcast %cst_337 : f32 to vector<32x128xf32>
    %683 = arith.cmpf ogt, %681, %682 : vector<32x128xf32>
    %cst_338 = arith.constant 1.000000e-01 : f32
    %684 = vector.broadcast %cst_338 : f32 to vector<32x128xf32>
    %685 = arith.mulf %684, %681 : vector<32x128xf32>
    %686 = arith.select %683, %681, %685 : vector<32x128xi1>, vector<32x128xf32>
    %687 = arith.truncf %686 : vector<32x128xf32> to vector<32x128xbf16>
    %cst_339 = arith.constant dense<0.000000e+00> : vector<1x128xf32>
    %688 = tpu.matmul %4, %687, %cst_339 {dimension_numbers = #tpu.dot_dimension_numbers<[1], [0], [0], [1], [0, 0, 1, 1], [], []>} : vector<1x32xbf16>, vector<32x128xbf16>, vector<1x128xf32> -> vector<1x128xf32>
    %689 = arith.truncf %688 : vector<1x128xf32> to vector<1x128xbf16>
    %cst_340 = arith.constant dense<0.000000e+00> : vector<1x128xf32>
    %690 = tpu.matmul %689, %652, %cst_340 {dimension_numbers = #tpu.dot_dimension_numbers<[1], [0], [0], [1], [0, 0, 1, 1], [], []>} : vector<1x128xbf16>, vector<128x128xbf16>, vector<1x128xf32> -> vector<1x128xf32>
    %691 = arith.truncf %690 : vector<1x128xf32> to vector<1x128xbf16>
    %cst_341 = arith.constant dense<0.000000e+00> : vector<1x8xf32>
    %692 = tpu.matmul %691, %5, %cst_341 {dimension_numbers = #tpu.dot_dimension_numbers<[1], [0], [0], [1], [0, 0, 1, 1], [], []>} : vector<1x128xbf16>, vector<128x8xbf16>, vector<1x8xf32> -> vector<1x8xf32>
    %693 = vector.broadcast %6 : f32 to vector<1x8xf32>
    %694 = arith.addf %692, %693 : vector<1x8xf32>
    %695 = vector.shape_cast %694 : vector<1x8xf32> to vector<1x1x8xf32>
    %c0_342 = arith.constant 0 : index
    %c0_343 = arith.constant 0 : index
    %c112 = arith.constant 112 : index
    %696 = vector.load %arg10[%c0_342, %c0_343, %c112] : memref<1x1x128xf32, #tpu.memory_space<vmem>>, vector<1x1x8xf32>
    tpu.vector_store %arg10[%c0_342, %c0_343, %c112], %695 {strides = array<i32>} : memref<1x1x128xf32, #tpu.memory_space<vmem>>, vector<1x1x8xf32>,
    %c15 = arith.constant 15 : index
    %c0_344 = arith.constant 0 : index
    %c0_345 = arith.constant 0 : index
    %697 = vector.load %arg1[%c15, %c0_344, %c0_345] : memref<16x128x128xbf16, #tpu.memory_space<vmem>>, vector<1x128x128xbf16>
    %698 = vector.shape_cast %697 : vector<1x128x128xbf16> to vector<128x128xbf16>
    %c15_346 = arith.constant 15 : index
    %c0_347 = arith.constant 0 : index
    %c0_348 = arith.constant 0 : index
    %699 = vector.load %arg2[%c15_346, %c0_347, %c0_348] : memref<16x8x128xbf16, #tpu.memory_space<vmem>>, vector<1x8x128xbf16>
    %700 = vector.shape_cast %699 : vector<1x8x128xbf16> to vector<8x128xbf16>
    %cst_349 = arith.constant dense<0.000000e+00> : vector<8x128xf32>
    %701 = tpu.matmul %700, %698, %cst_349 {dimension_numbers = #tpu.dot_dimension_numbers<[1], [0], [0], [1], [0, 0, 1, 1], [], []>} : vector<8x128xbf16>, vector<128x128xbf16>, vector<8x128xf32> -> vector<8x128xf32>
    %702 = arith.truncf %701 : vector<8x128xf32> to vector<8x128xbf16>
    %cst_350 = arith.constant dense<0.000000e+00> : vector<32x128xf32>
    %703 = tpu.matmul %0, %702, %cst_350 {dimension_numbers = #tpu.dot_dimension_numbers<[1], [0], [0], [1], [0, 0, 1, 1], [], []>} : vector<32x8xbf16>, vector<8x128xbf16>, vector<32x128xf32> -> vector<32x128xf32>
    %704 = vector.broadcast %2 : vector<32x1xf32> to vector<32x128xf32>
    %705 = arith.addf %703, %704 : vector<32x128xf32>
    %cst_351 = arith.constant 0.000000e+00 : f32
    %706 = vector.broadcast %cst_351 : f32 to vector<32x128xf32>
    %707 = arith.cmpf ogt, %705, %706 : vector<32x128xf32>
    %cst_352 = arith.constant 1.000000e-01 : f32
    %708 = vector.broadcast %cst_352 : f32 to vector<32x128xf32>
    %709 = arith.mulf %708, %705 : vector<32x128xf32>
    %710 = arith.select %707, %705, %709 : vector<32x128xi1>, vector<32x128xf32>
    %711 = arith.truncf %710 : vector<32x128xf32> to vector<32x128xbf16>
    %cst_353 = arith.constant dense<0.000000e+00> : vector<32x128xf32>
    %712 = tpu.matmul %1, %711, %cst_353 {dimension_numbers = #tpu.dot_dimension_numbers<[1], [0], [0], [1], [0, 0, 1, 1], [], []>} : vector<32x32xbf16>, vector<32x128xbf16>, vector<32x128xf32> -> vector<32x128xf32>
    %713 = arith.truncf %712 : vector<32x128xf32> to vector<32x128xbf16>
    %cst_354 = arith.constant dense<0.000000e+00> : vector<32x128xf32>
    %714 = tpu.matmul %713, %698, %cst_354 {dimension_numbers = #tpu.dot_dimension_numbers<[1], [0], [0], [1], [0, 0, 1, 1], [], []>} : vector<32x128xbf16>, vector<128x128xbf16>, vector<32x128xf32> -> vector<32x128xf32>
    %715 = vector.broadcast %3 : vector<32x1xf32> to vector<32x128xf32>
    %716 = arith.addf %714, %715 : vector<32x128xf32>
    %cst_355 = arith.constant 0.000000e+00 : f32
    %717 = vector.broadcast %cst_355 : f32 to vector<32x128xf32>
    %718 = arith.cmpf ogt, %716, %717 : vector<32x128xf32>
    %cst_356 = arith.constant 1.000000e-01 : f32
    %719 = vector.broadcast %cst_356 : f32 to vector<32x128xf32>
    %720 = arith.mulf %719, %716 : vector<32x128xf32>
    %721 = arith.select %718, %716, %720 : vector<32x128xi1>, vector<32x128xf32>
    %722 = arith.truncf %721 : vector<32x128xf32> to vector<32x128xbf16>
    %cst_357 = arith.constant dense<0.000000e+00> : vector<32x128xf32>
    %723 = tpu.matmul %1, %722, %cst_357 {dimension_numbers = #tpu.dot_dimension_numbers<[1], [0], [0], [1], [0, 0, 1, 1], [], []>} : vector<32x32xbf16>, vector<32x128xbf16>, vector<32x128xf32> -> vector<32x128xf32>
    %724 = arith.truncf %723 : vector<32x128xf32> to vector<32x128xbf16>
    %cst_358 = arith.constant dense<0.000000e+00> : vector<32x128xf32>
    %725 = tpu.matmul %724, %698, %cst_358 {dimension_numbers = #tpu.dot_dimension_numbers<[1], [0], [0], [1], [0, 0, 1, 1], [], []>} : vector<32x128xbf16>, vector<128x128xbf16>, vector<32x128xf32> -> vector<32x128xf32>
    %726 = vector.broadcast %3 : vector<32x1xf32> to vector<32x128xf32>
    %727 = arith.addf %725, %726 : vector<32x128xf32>
    %cst_359 = arith.constant 0.000000e+00 : f32
    %728 = vector.broadcast %cst_359 : f32 to vector<32x128xf32>
    %729 = arith.cmpf ogt, %727, %728 : vector<32x128xf32>
    %cst_360 = arith.constant 1.000000e-01 : f32
    %730 = vector.broadcast %cst_360 : f32 to vector<32x128xf32>
    %731 = arith.mulf %730, %727 : vector<32x128xf32>
    %732 = arith.select %729, %727, %731 : vector<32x128xi1>, vector<32x128xf32>
    %733 = arith.truncf %732 : vector<32x128xf32> to vector<32x128xbf16>
    %cst_361 = arith.constant dense<0.000000e+00> : vector<1x128xf32>
    %734 = tpu.matmul %4, %733, %cst_361 {dimension_numbers = #tpu.dot_dimension_numbers<[1], [0], [0], [1], [0, 0, 1, 1], [], []>} : vector<1x32xbf16>, vector<32x128xbf16>, vector<1x128xf32> -> vector<1x128xf32>
    %735 = arith.truncf %734 : vector<1x128xf32> to vector<1x128xbf16>
    %cst_362 = arith.constant dense<0.000000e+00> : vector<1x128xf32>
    %736 = tpu.matmul %735, %698, %cst_362 {dimension_numbers = #tpu.dot_dimension_numbers<[1], [0], [0], [1], [0, 0, 1, 1], [], []>} : vector<1x128xbf16>, vector<128x128xbf16>, vector<1x128xf32> -> vector<1x128xf32>
    %737 = arith.truncf %736 : vector<1x128xf32> to vector<1x128xbf16>
    %cst_363 = arith.constant dense<0.000000e+00> : vector<1x8xf32>
    %738 = tpu.matmul %737, %5, %cst_363 {dimension_numbers = #tpu.dot_dimension_numbers<[1], [0], [0], [1], [0, 0, 1, 1], [], []>} : vector<1x128xbf16>, vector<128x8xbf16>, vector<1x8xf32> -> vector<1x8xf32>
    %739 = vector.broadcast %6 : f32 to vector<1x8xf32>
    %740 = arith.addf %738, %739 : vector<1x8xf32>
    %741 = vector.shape_cast %740 : vector<1x8xf32> to vector<1x1x8xf32>
    %c0_364 = arith.constant 0 : index
    %c0_365 = arith.constant 0 : index
    %c120 = arith.constant 120 : index
    %742 = vector.load %arg10[%c0_364, %c0_365, %c120] : memref<1x1x128xf32, #tpu.memory_space<vmem>>, vector<1x1x8xf32>
    tpu.vector_store %arg10[%c0_364, %c0_365, %c120], %741 {strides = array<i32>} : memref<1x1x128xf32, #tpu.memory_space<vmem>>, vector<1x1x8xf32>,
    return
  }
  func.func @transform_0(%arg0: i32) -> (i32, i32, i32) {
    %c0_i32 = arith.constant 0 : i32
    %c0_i32_0 = arith.constant 0 : i32
    %c0_i32_1 = arith.constant 0 : i32
    return %arg0, %c0_i32, %c0_i32_0 : i32, i32, i32
  }
  func.func @transform_1(%arg0: i32) -> (i32, i32, i32) {
    %c0_i32 = arith.constant 0 : i32
    %c0_i32_0 = arith.constant 0 : i32
    %c0_i32_1 = arith.constant 0 : i32
    return %arg0, %c0_i32, %c0_i32_0 : i32, i32, i32
  }
  func.func @transform_2(%arg0: i32) -> (i32, i32) {
    %c0_i32 = arith.constant 0 : i32
    %c0_i32_0 = arith.constant 0 : i32
    %c0_i32_1 = arith.constant 0 : i32
    return %c0_i32, %c0_i32_0 : i32, i32
  }
  func.func @transform_3(%arg0: i32) -> (i32, i32) {
    %c0_i32 = arith.constant 0 : i32
    %c0_i32_0 = arith.constant 0 : i32
    %c0_i32_1 = arith.constant 0 : i32
    return %c0_i32, %c0_i32_0 : i32, i32
  }
  func.func @transform_4(%arg0: i32) -> (i32, i32) {
    %c0_i32 = arith.constant 0 : i32
    %c0_i32_0 = arith.constant 0 : i32
    %c0_i32_1 = arith.constant 0 : i32
    return %c0_i32, %c0_i32_0 : i32, i32
  }
  func.func @transform_5(%arg0: i32) -> (i32, i32) {
    %c0_i32 = arith.constant 0 : i32
    %c0_i32_0 = arith.constant 0 : i32
    %c0_i32_1 = arith.constant 0 : i32
    return %c0_i32, %c0_i32_0 : i32, i32
  }
  func.func @transform_6(%arg0: i32) -> (i32, i32) {
    %c0_i32 = arith.constant 0 : i32
    %c0_i32_0 = arith.constant 0 : i32
    %c0_i32_1 = arith.constant 0 : i32
    return %c0_i32, %c0_i32_0 : i32, i32
  }
  func.func @transform_7(%arg0: i32) -> (i32, i32) {
    %c0_i32 = arith.constant 0 : i32
    %c0_i32_0 = arith.constant 0 : i32
    %c0_i32_1 = arith.constant 0 : i32
    return %c0_i32, %c0_i32_0 : i32, i32
  }
  func.func @transform_8(%arg0: i32) -> i32 {
    %c0_i32 = arith.constant 0 : i32
    %c0_i32_0 = arith.constant 0 : i32
    return %c0_i32 : i32
  }
  func.func @transform_9(%arg0: i32) -> (i32, i32, i32) {
    %c0_i32 = arith.constant 0 : i32
    %c0_i32_0 = arith.constant 0 : i32
    %c0_i32_1 = arith.constant 0 : i32
    return %arg0, %c0_i32, %c0_i32_0 : i32, i32, i32
  }
}

</mosaic_0001>

<bundles_post_ra>
// kernel: tpu_custom_call.1
= control target key start
LH: loop header
LB: loop body
LE: loop exit
PB: predicated region body
PF: predicated region fallthrough
CT: control target
= control target key end

     0   :  { %s16034_s0 = inlined_call_operand.hbm [shape: bf16[32,128,128], index: 0, kind: input, shape index: {}]   ;;  %s16035_s1 = inlined_call_operand.vmem [shape: bf16[32,8,128], index: 1, kind: input, shape index: {}]   ;;  %s16036_s2 = inlined_call_operand.vmem [shape: bf16[32,8], index: 2, kind: input, shape index: {}]   ;;  %s16037_s3 = inlined_call_operand.vmem [shape: f32[32,1], index: 3, kind: input, shape index: {}]   ;;  %s16038_s4 = inlined_call_operand.vmem [shape: bf16[32,32], index: 4, kind: input, shape index: {}]   ;;  %s16039_s5 = inlined_call_operand.vmem [shape: f32[32,1], index: 5, kind: input, shape index: {}]   ;;  %s16040_s6 = inlined_call_operand.vmem [shape: bf16[1,32], index: 6, kind: input, shape index: {}]   ;;  %s16041_s7 = inlined_call_operand.vmem [shape: bf16[128,8], index: 7, kind: input, shape index: {}]   ;;  %s16042_s8 = inlined_call_operand.<no memory space> [shape: f32[1], index: 8, kind: input, shape index: {}]   ;;  %s16043_s9 = inlined_call_operand.hbm [shape: f32[2,1,128], index: 9, kind: output, shape index: {}]  }
   0x1   :  { %14 = sst [smem:[#allocation2]] %s16042_s8 }
   0x2   :  { %15 = vsyncpa [#allocation4], 0 }
   0x3   :  { %17 = vsyncpa [#allocation4 + $0x1], 0 }
   0x4   :  { %18 = vsyncpa [#allocation5], 0 }
   0x5   :  { %20 = vsyncpa [#allocation5 + $0x1], 0  ;;  %s13143_s11 = smov 0   ;;  %s13145_s12 = smov 0  }
   0x6   :  { %s13147_s13 = smov 0   ;;  %s13149_s14 = smov 0  }
   0x7 LB: > { %s13164_s8 = sadd.s32 4294967295, %s13066_s14   ;;  %s9102_s15 = sadd.s32 4294967294, %s13066_s14   ;;  %s13066_s14 = sphi %s13149_s14, %s16056_s14   ;;  %s13062_s13 = sphi %s13147_s13, %s16055_s13   ;;  %s13058_s12 = sphi %s13145_s12, %s16054_s12   ;;  %s13054_s11 = sphi %s13143_s11, %s16053_s11  }
   0x8   : > { %s13168_s16 = sadd.s32 1, %s13066_s14   ;;  %s33_s17 = sadd.s32 1, %s13062_s13 }
   0x9   : > { %s30_s18 = ssub.s32 %s13066_s14, %s13168_s16  ;;  %p40_p0 = scmp.ne.s32.totalorder %s13062_s13, %s13058_s12 }
   0xa   : > { %p31_p1 = scmp.eq.s32.totalorder %s30_s18, 0  ;;  %p41_p2 = scmp.eq.s32.totalorder %s13066_s14, 0 }
   0xb   : > { %p46_p3 = scmp.ne.s32.totalorder %s13058_s12, %s13054_s11  ;;  %p47_p4 = scmp.eq.s32.totalorder %s13164_s8, 0 }
   0xc   : > { %s13180_s19 = scalar_select %p31_p1, %s13062_s13, %s33_s17  }
   0xd   : > { %p13182_p5 = por %p41_p2, %p40_p0  ;;  %p13186_p6 = por %p47_p4, %p46_p3 }
   0xe   : > { %p243_p7 = scmp.eq.s32.totalorder %s13164_s8, 1  ;;  %p249_p8 = scmp.eq.s32.totalorder %s9102_s15, 1 }
   0xf   : > { %p12709_p10 = scmp.lt.s32.totalorder %s13066_s14, 2  ;;  %s290_s24 = sand.u32 1, %s13062_s13  }
  0x10   : > { %p13193_p11 = por %p243_p7, %p40_p0  ;;  %p13197_p12 = por %p249_p8, %p46_p3 }
  0x11   : > { %s9624_s25 = sshll.u32 %s13066_s14, 14  ;;  %s9105_s26 = sshll.u32 %s290_s24, 10 }
  0x12   : > { %s16047_s22 = scalar_select %p13193_p11, 1, 0 }
  0x13   : > { %s16048_s23 = scalar_select %p13197_p12, 1, 0 }
  0x14   : > { %s13206_s29 = scalar_lea.hbm %s16034_s0, %s9624_s25  ;;  %s294_s30 = scalar_lea.vmem [#allocation3], %s9105_s26 }
  0x15   : > { %s302_s10 = sshll.u32 %s294_s30, 4  ;;  %p13210_p13 = pnand %p12709_p10, %p13182_p5  ;;  %s13214_s10 = int_to_ptr.vmem [resolvable:$true] %s302_s10 }
  0x16   : > { %s13216_s17 = scalar_lea.sflag [#allocation4], %s290_s24  ;;  %s12970_s18 = scalar_lea.hbm %s13206_s29, 16384 }
  0x17   : > { %p12971_p0 = scmp.ne.s32.totalorder %s13206_s29, %s12970_s18  ;;  %p12972_p1 = pneg %p13210_p13 }
  0x18   : > { %s12975_s26 = scalar_lea.hbm %s16034_s0, 32768  ;;  %p12976_p4 = scmp.lt.u32.totalorder %s13206_s29, %s16034_s0 }
  0x19   : > { %p12973_p2 = pnand %p12972_p1, %p12971_p0  ;;  %p12977_p5 = scmp.lt.u32.totalorder %s12975_s26, %s12970_s18 }
  0x1a   : > { %p12979_p8 = scmp.lt.u32.totalorder %s12970_s18, %s13206_s29 }
  0x1b   : > { %p12974_p3 = pneg %p12973_p2  ;;  %p12978_p7 = por %p12977_p5, %p12976_p4 }
  0x1d   : > { %p12980_p10 = por %p12979_p8, %p12978_p7 }
  0x1f   : > { %p12981_p9 = pnand %p12980_p10, %p12974_p3 }
  0x21   : > { %12984 = shalt.err (!%p12981_p9)
}
  0x22   : > { %s12985_s24 = scalar_lea.vmem %s13214_s10, 16384  ;;  %s13068_s30 = smov [#allocation3]  }
  0x23   : > { %p12986_p0 = scmp.ne.s32.totalorder %s13214_s10, %s12985_s24  ;;  %s12990_s25 = sshll.u32 %s13068_s30, 4  ;;  %s12991_s25 = int_to_ptr.vmem [resolvable:$false] %s12990_s25 }
  0x24   : > { %s12992_s20 = scalar_lea.vmem %s12991_s25, 32768  ;;  %p12993_p11 = scmp.lt.s32.totalorder %s13214_s10, %s12991_s25 }
  0x25   : > { %p12988_p2 = pnand %p12986_p0, %p12972_p1  ;;  %p12994_p4 = scmp.lt.s32.totalorder %s12992_s20, %s12985_s24 }
  0x27   : > { %p12989_p12 = pneg %p12988_p2  ;;  %p12995_p5 = por %p12994_p4, %p12993_p11 }
  0x29   : > { %p12996_p7 = pnand %p12995_p5, %p12989_p12 }
  0x2b   : > { %12999 = shalt.err (!%p12996_p7)
}
  0x2c   : > { %s13069_s18 = smov 64   ;;  %s13070_s26 = smov 4  }
  0x2d   : > { %12704 = dma.hbm_to_vmem [thread:$0]  (!%p13210_p13), %s13206_s29, 16384, %s13214_s10, %s13216_s17, %s13069_s18, %s13069_s18, %s13070_s26  }
  0x2e   : > { %p9109_p9 = scmp.ge.s32.totalorder %s13066_s14, 1  ;;  %p319_p1 = scmp.lt.s32.totalorder %s13066_s14, 3 }
  0x30   : > { %p320_p3 = pnand %p9109_p9, %p319_p1 }
  0x31   : > { %s13247_s27 = sand.u32 (!%p320_p3), 1, %s13058_s12  }
  0x32   : > { %323 = sbr.rel (%p320_p3) target bundleno = 26040 (0x65b8), region = 56  ;;  %s9110_s28 = sshll.u32 (!%p320_p3), %s13247_s27, 10 }
  0x33   : > { %s326_s24 = scalar_lea.sflag (!%p320_p3), [#allocation4], %s13247_s27  ;;  %s13251_s30 = scalar_lea.vmem (!%p320_p3), [#allocation3], %s9110_s28 }
  0x39   : > { %13045 = dma.done.wait (%p13186_p6), %s326_s24, 16384  }
  0x3a   : > { %13047 = vsyncadd (%p13186_p6), %s326_s24, 4294950912  ;;  %v13071_v0 = vmov 0.0   ;;  %vm13072_vm0 = vmmov 0   ;;  %s13261_s29 = sshll.u32 %s13164_s8, 4  ;;  %v13264_v1 = vld [vmem:[%s13251_s30] sm:$0xff]   ;;  %v13269_v2 = vld [vmem:[%s13251_s30 + $0x8] sm:$0xff]  }
  0x3b   : > { %10601 = vmatprep.subr.bf16.mxu0 %v13071_v0  ;;  %10617 = vmatprep.mubr.msk.bf16.mxu0 %vm13072_vm0, %v13071_v0  ;;  %p370_p6 = scmp.lt.s32.totalorder %s13261_s29, 31  ;;  %v13275_v3 = vld [vmem:[%s13251_s30 + $0x10] sm:$0xff]   ;;  %v13279_v4 = vld [vmem:[%s13251_s30 + $0x18] sm:$0xff]   ;;  %v13284_v5 = vld [vmem:[%s13251_s30 + $0x20] sm:$0xff]   ;;  %vm546_vm1 = vcmask 64512   ;;  %v13073_v13 = vmov 0  }
  0x3c   : > { %10602 = vmatpush3.bf16.msra.mxu0 %v13264_v1  ;;  %v13289_v6 = vld [vmem:[%s13251_s30 + $0x28] sm:$0xff]   ;;  %v13294_v7 = vld [vmem:[%s13251_s30 + $0x30] sm:$0xff]   ;;  %v13299_v8 = vld [vmem:[%s13251_s30 + $0x38] sm:$0xff]   ;;  %12763 = vset.pattern.permute.xlu0 %v13073_v13  ;;  %vm553_vm2 = vcmask 1043456   ;;  %vm630_vm3 = vcmask 261120   ;;  %s409_s18 = sld [smem:[#allocation2]] }
  0x3d   : > { %10603 = vmatprep.subr.bf16.mxu0 %v13071_v0  ;;  %s371_s21 = scalar_select %p370_p6, %s13261_s29, 31  ;;  %v13313_v10 = vld [vmem:[%s16036_s2] sm:$0xff]   ;;  %v386_v12 = vld [vmem:[%s16037_s3 + $0x10] sm:$0xff]  ;;  %12764 = vset.pattern.permute.xlu1 %v13073_v13  ;;  %v385_v14 = vld [vmem:[%s16037_s3 + $0x8] sm:$0xff] }
  0x3e   : > { %10623 = vmatprep.mubr.msk.bf16.mxu1 %vm546_vm1, %v13313_v10  ;;  %v384_v11 = vld [vmem:[%s16037_s3] sm:$0xff]  ;;  %528 = vperm.xlu1 %12764, %v386_v12   ;;  %v387_v15 = vld [vmem:[%s16037_s3 + $0x18] sm:$0xff]  ;;  %v389_v17 = vld [vmem:[%s16039_s5 + $0x8] sm:$0xff]  ;;  %s13587_s26 = scalar_lea.vmem [#allocation6], %s13247_s27  ;;  %s13074_s28 = smov 8  }
  0x3f   : > { %s9112_s8 = sshll.u32 %s371_s21, 2  ;;  %518 = vperm.xlu0 %12763, %v384_v11   ;;  %v388_v16 = vld [vmem:[%s16039_s5] sm:$0xff]  ;;  %v390_v18 = vld [vmem:[%s16039_s5 + $0x10] sm:$0xff]  ;;  %v391_v19 = vld [vmem:[%s16039_s5 + $0x18] sm:$0xff]  ;;  %s13076_s24 = smov 24  }
  0x40   : > { %10604 = vmatpush3.bf16.msra.mxu0 %v13269_v2  ;;  %s13304_s17 = scalar_lea.vmem %s16035_s1, %s9112_s8  ;;  %v13346_v26 = vld [vmem:[%s16036_s2 + $0x8] sm:$0xff]   ;;  %v13353_v27 = vld [vmem:[%s16038_s4] sm:$0xff]   ;;  %s13077_s21 = smov 32  }
  0x41   : > { %10605 = vmatprep.subr.bf16.mxu0 %v13071_v0  ;;  %v426_v9 = vld [vmem:[%s13304_s17] sm:$0xf]  ;;  %v13374_v50 = vld [vmem:[%s16038_s4 + $0x8] sm:$0xff]   ;;  %s13079_s8 = smov 48   ;;  %s13080_s10 = smov 56  }
  0x42   : > { %533 = vperm.xlu1 %12764, %v387_v15   ;;  %s13082_s15 = smov 72   ;;  %s13083_s25 = smov 80  }
  0x43   : > { %523 = vperm.xlu0 %12763, %v385_v14   ;;  %s13085_s20 = smov 96   ;;  %p16050_p12 = scmp.ne.s32.totalorder %s16047_s22, 0 }
  0x44   : > { %10606 = vmatpush3.bf16.msra.mxu0 %v13275_v3 }
  0x45   : > { %10607 = vmatprep.subr.bf16.mxu0 %v13071_v0 }
  0x46   : > { %695 = vperm.xlu1 %12764, %v389_v17  }
  0x47   : > { %690 = vperm.xlu0 %12763, %v388_v16  }
  0x48   : > { %10608 = vmatpush3.bf16.msra.mxu0 %v13279_v4 }
  0x49   : > { %10609 = vmatprep.subr.bf16.mxu0 %v13071_v0 }
  0x4a   : > { %705 = vperm.xlu1 %12764, %v391_v19  }
  0x4b   : > { %700 = vperm.xlu0 %12763, %v390_v18  }
  0x4c   : > { %10610 = vmatpush3.bf16.msra.mxu0 %v13284_v5 }
  0x4d   : > { %10611 = vmatprep.subr.bf16.mxu0 %v13071_v0 }
  0x50   : > { %10612 = vmatpush3.bf16.msra.mxu0 %v13289_v6 }
  0x51   : > { %10613 = vmatprep.subr.bf16.mxu0 %v13071_v0 }
  0x54   : > { %10614 = vmatpush3.bf16.msra.mxu0 %v13294_v7 }
  0x55   : > { %10615 = vmatprep.subr.bf16.mxu0 %v13071_v0 }
  0x58   : > { %10616 = vmatpush3.bf16.msra.mxu0 %v13299_v8 }
  0x5b   : > { %10618 = vmatmul.mubr.bf16.vlgmr.msra.gmra.mrb[0].mxu0 %v426_v9 }
  0x5c   : > { %10659 = vmatprep.mubr.msk.bf16.mxu0 %vm630_vm3, %v13353_v27 }
  0xbd   : > { %v13359_v28 = vpop.permute.xlu1 %528 }
  0xbe   : > { %v13361_v29 = vpop.permute.xlu0 %518 }
  0xc1   : > { %v13364_v33 = vpop.permute.xlu1 %533 }
  0xc2   : > { %v13367_v36 = vpop.permute.xlu0 %523 }
  0xc5   : > { %v13399_v58 = vpop.permute.xlu1 %695 }
  0xc6   : > { %v13397_v57 = vpop.permute.xlu0 %690 }
  0xc9   : > { %v13404_v63 = vpop.permute.xlu1 %705 }
  0xca   : > { %v13401_v59 = vpop.permute.xlu0 %700 }
 0x12e   : > { %v509_v20 = vpop.f32.mrb[0].mxu0 }
 0x12f   : > { %v10619_v21 = vpop.f32.mrb[1].mxu0  ;;  %v515_v22 = vpack.c.bf16 %v509_v20, %v509_v20 }
 0x130   : > { %v512_v23 = vpop.f32.mrb[2].mxu0 }
 0x131   : > { %v10620_v24 = vpop.f32.mrb[3].mxu0  ;;  %12681 = vmatprep.subr.msk.bf16.mxu1 %vm553_vm2, %v515_v22  ;;  %v555_v25 = vsel %vm553_vm2, %v515_v22, 0 }
 0x132   : > { %10622 = vmatpush3.bf16.msra.mxu1 %v555_v25 }
 0x135   : > { %10624 = vmatmul.mubr.msk.bf16.vlgmr.msra.gmra.mrb[0].mxu1 %vm546_vm1, %v13346_v26 }
 0x136   : > { %10631 = vmatprep.mubr.msk.bf16.mxu1 %vm630_vm3, %v13353_v27 }
 0x208   : > { %v10625_v30 = vpop.f32.mrb[0].mxu1 }
 0x209   : > { %v600_v31 = vadd.f32 %v10625_v30, %v13359_v28  ;;  %v591_v32 = vpop.f32.mrb[1].mxu1 }
 0x20a   : > { %v592_v34 = vadd.f32 %v591_v32, %v13361_v29  ;;  %v10626_v35 = vpop.f32.mrb[2].mxu1 }
 0x20b   : > { %v612_v37 = vmul.f32 0.1, %v600_v31  ;;  %v603_v38 = vadd.f32 %v10626_v35, %v13364_v33  ;;  %v594_v39 = vpop.f32.mrb[3].mxu1  ;;  %vm608_vm4 = vcmp.gt.f32.partialorder %v600_v31, 0.0 }
 0x20c   : > { %v610_v40 = vmul.f32 0.1, %v592_v34  ;;  %v595_v41 = vadd.f32 %v594_v39, %v13367_v36  ;;  %vm606_vm5 = vcmp.gt.f32.partialorder %v592_v34, 0.0 }
 0x20d   : > { %v613_v42 = vmul.f32 0.1, %v603_v38  ;;  %vm609_vm6 = vcmp.gt.f32.partialorder %v603_v38, 0.0  ;;  %v616_v44 = vsel %vm608_vm4, %v600_v31, %v612_v37  ;;  %vm1059_vm4 = vcmask 57344  }
 0x20e   : > { %v611_v43 = vmul.f32 0.1, %v595_v41  ;;  %vm607_vm7 = vcmp.gt.f32.partialorder %v595_v41, 0.0  ;;  %v614_v46 = vsel %vm606_vm5, %v592_v34, %v610_v40 }
 0x20f   : > { %v617_v45 = vsel %vm609_vm6, %v603_v38, %v613_v42 }
 0x210   : > { %v615_v47 = vsel %vm607_vm7, %v595_v41, %v611_v43  ;;  %v619_v48 = vpack.c.bf16 %v617_v45, %v616_v44 }
 0x211   : > { %v618_v49 = vpack.c.bf16 %v615_v47, %v614_v46 }
 0x213   : > { %10627 = vmatprep.subr.bf16.mxu1 %v618_v49 }
 0x214   : > { %10628 = vmatpush3.bf16.msra.mxu1 %v618_v49 }
 0x215   : > { %10629 = vmatprep.subr.bf16.mxu1 %v619_v48 }
 0x218   : > { %10630 = vmatpush3.bf16.msra.mxu1 %v619_v48 }
 0x219   : > { %10635 = vmatprep.subr.bf16.mxu1 %v13264_v1 }
 0x21b   : > { %10632 = vmatmul.mubr.msk.bf16.vlgmr.msra.gmra.mrb[4].mxu1 %vm630_vm3, %v13374_v50 }
 0x21c   : > { %10636 = vmatpush3.bf16.msra.mxu1 %v13264_v1 }
 0x21d   : > { %10637 = vmatprep.subr.bf16.mxu1 %v13269_v2 }
 0x220   : > { %10638 = vmatpush3.bf16.msra.mxu1 %v13269_v2 }
 0x221   : > { %10639 = vmatprep.subr.bf16.mxu1 %v13275_v3 }
 0x224   : > { %10640 = vmatpush3.bf16.msra.mxu1 %v13275_v3 }
 0x225   : > { %10641 = vmatprep.subr.bf16.mxu1 %v13279_v4 }
 0x228   : > { %10642 = vmatpush3.bf16.msra.mxu1 %v13279_v4 }
 0x229   : > { %10643 = vmatprep.subr.bf16.mxu1 %v13284_v5 }
 0x22c   : > { %10644 = vmatpush3.bf16.msra.mxu1 %v13284_v5 }
 0x22d   : > { %10645 = vmatprep.subr.bf16.mxu1 %v13289_v6 }
 0x230   : > { %10646 = vmatpush3.bf16.msra.mxu1 %v13289_v6 }
 0x231   : > { %10647 = vmatprep.subr.bf16.mxu1 %v13294_v7 }
 0x234   : > { %10648 = vmatpush3.bf16.msra.mxu1 %v13294_v7 }
 0x235   : > { %10649 = vmatprep.subr.bf16.mxu1 %v13299_v8 }
 0x238   : > { %10650 = vmatpush3.bf16.msra.mxu1 %v13299_v8 }
 0x239   : > { %10683 = vmatprep.subr.bf16.mxu1 %v13071_v0 }
 0x2ee   : > { %v10633_v51 = vpop.f32.mrb[4].mxu1 }
 0x2ef   : > { %v671_v52 = vpop.f32.mrb[5].mxu1 }
 0x2f0   : > { %v10634_v53 = vpop.f32.mrb[6].mxu1 }
 0x2f1   : > { %v687_v54 = vpack.c.bf16 %v10634_v53, %v10633_v51  ;;  %v674_v55 = vpop.f32.mrb[7].mxu1 }
 0x2f2   : > { %v686_v56 = vpack.c.bf16 %v674_v55, %v671_v52 }
 0x2f4   : > { %10651 = vmatprep.mubr.bf16.mxu1 %v686_v56  ;;  %v13438_v56 = vld [vmem:[%s16040_s6] sm:$0x1] }
 0x2f5   : > { %10652 = vmatmul.mubr.bf16.vlgmr.msra.gmra.mrb[8].mxu1 %v687_v54 }
 0x2f6   : > { %10687 = vmatprep.mubr.msk.bf16.mxu1 %vm13072_vm0, %v13071_v0 }
 0x3c8   : > { %v10653_v60 = vpop.f32.mrb[8].mxu1 }
 0x3c9   : > { %v751_v61 = vadd.f32 %v10653_v60, %v13401_v59  ;;  %v742_v62 = vpop.f32.mrb[9].mxu1  ;;  %v13511_v60 = vld [vmem:[%s13251_s30 + $0x40] sm:$0xff]  }
 0x3ca   : > { %v743_v9 = vadd.f32 %v742_v62, %v13397_v57  ;;  %v10654_v11 = vpop.f32.mrb[10].mxu1 }
 0x3cb   : > { %v763_v12 = vmul.f32 0.1, %v751_v61  ;;  %v754_v13 = vadd.f32 %v10654_v11, %v13404_v63  ;;  %v745_v14 = vpop.f32.mrb[11].mxu1  ;;  %vm759_vm8 = vcmp.gt.f32.partialorder %v751_v61, 0.0 }
 0x3cc   : > { %v761_v15 = vmul.f32 0.1, %v743_v9  ;;  %v746_v16 = vadd.f32 %v745_v14, %v13399_v58  ;;  %vm757_vm9 = vcmp.gt.f32.partialorder %v743_v9, 0.0  ;;  %v13527_v14 = vld [vmem:[%s13251_s30 + $0x58] sm:$0xff]  }
 0x3cd   : > { %v764_v17 = vmul.f32 0.1, %v754_v13  ;;  %vm760_vm10 = vcmp.gt.f32.partialorder %v754_v13, 0.0  ;;  %v767_v19 = vsel %vm759_vm8, %v751_v61, %v763_v12  ;;  %v13515_v12 = vld [vmem:[%s13251_s30 + $0x48] sm:$0xff]  }
 0x3ce   : > { %v762_v18 = vmul.f32 0.1, %v746_v16  ;;  %vm758_vm11 = vcmp.gt.f32.partialorder %v746_v16, 0.0  ;;  %v765_v21 = vsel %vm757_vm9, %v743_v9, %v761_v15  ;;  %v13532_v15 = vld [vmem:[%s13251_s30 + $0x60] sm:$0xff]  }
 0x3cf   : > { %v768_v20 = vsel %vm760_vm10, %v754_v13, %v764_v17  ;;  %v13522_v13 = vld [vmem:[%s13251_s30 + $0x50] sm:$0xff]  }
 0x3d0   : > { %v766_v22 = vsel %vm758_vm11, %v746_v16, %v762_v18  ;;  %v770_v23 = vpack.c.bf16 %v768_v20, %v767_v19  ;;  %v13537_v16 = vld [vmem:[%s13251_s30 + $0x68] sm:$0xff]   ;;  %v13542_v17 = vld [vmem:[%s13251_s30 + $0x70] sm:$0xff]   ;;  %v13547_v18 = vld [vmem:[%s13251_s30 + $0x78] sm:$0xff]  }
 0x3d1   : > { %v769_v24 = vpack.c.bf16 %v766_v22, %v765_v21  ;;  %v9156_v19 = vld [vmem:[%s13304_s17 + $0x4] sm:$0xf]  ;;  %v13572_v20 = vld [vmem:[%s16041_s7 + $0x38] sm:$0xff]  }
 0x3d3   : > { %10655 = vmatprep.subr.bf16.mxu0 %v769_v24 }
 0x3d4   : > { %10656 = vmatpush3.bf16.msra.mxu0 %v769_v24 }
 0x3d5   : > { %10657 = vmatprep.subr.bf16.mxu0 %v770_v23 }
 0x3d8   : > { %10658 = vmatpush3.bf16.msra.mxu0 %v770_v23 }
 0x3d9   : > { %10663 = vmatprep.subr.bf16.mxu0 %v13264_v1 }
 0x3db   : > { %10660 = vmatmul.mubr.msk.bf16.vlgmr.msra.gmra.mrb[4].mxu0 %vm630_vm3, %v13374_v50 }
 0x3dc   : > { %10664 = vmatpush3.bf16.msra.mxu0 %v13264_v1 }
 0x3dd   : > { %10665 = vmatprep.subr.bf16.mxu0 %v13269_v2 }
 0x3e0   : > { %10666 = vmatpush3.bf16.msra.mxu0 %v13269_v2 }
 0x3e1   : > { %10667 = vmatprep.subr.bf16.mxu0 %v13275_v3 }
 0x3e4   : > { %10668 = vmatpush3.bf16.msra.mxu0 %v13275_v3 }
 0x3e5   : > { %10669 = vmatprep.subr.bf16.mxu0 %v13279_v4 }
 0x3e8   : > { %10670 = vmatpush3.bf16.msra.mxu0 %v13279_v4 }
 0x3e9   : > { %10671 = vmatprep.subr.bf16.mxu0 %v13284_v5 }
 0x3ec   : > { %10672 = vmatpush3.bf16.msra.mxu0 %v13284_v5 }
 0x3ed   : > { %10673 = vmatprep.subr.bf16.mxu0 %v13289_v6 }
 0x3f0   : > { %10674 = vmatpush3.bf16.msra.mxu0 %v13289_v6 }
 0x3f1   : > { %10675 = vmatprep.subr.bf16.mxu0 %v13294_v7 }
 0x3f4   : > { %10676 = vmatpush3.bf16.msra.mxu0 %v13294_v7 }
 0x3f5   : > { %10677 = vmatprep.subr.bf16.mxu0 %v13299_v8 }
 0x3f8   : > { %10678 = vmatpush3.bf16.msra.mxu0 %v13299_v8 }
 0x3f9   : > { %10711 = vmatprep.subr.bf16.mxu0 %v13071_v0 }
 0x4ae   : > { %v10661_v25 = vpop.f32.mrb[4].mxu0 }
 0x4af   : > { %v805_v30 = vpop.f32.mrb[5].mxu0 }
 0x4b0   : > { %v10662_v31 = vpop.f32.mrb[6].mxu0 }
 0x4b1   : > { %v821_v32 = vpack.c.bf16 %v10662_v31, %v10661_v25  ;;  %v808_v34 = vpop.f32.mrb[7].mxu0 }
 0x4b2   : > { %v820_v35 = vpack.c.bf16 %v808_v34, %v805_v30 }
 0x4b4   : > { %10679 = vmatprep.mubr.bf16.mxu0 %v820_v35 }
 0x4b5   : > { %10680 = vmatmul.mubr.bf16.vlgmr.msra.gmra.mrb[8].mxu0 %v821_v32 }
 0x4b6   : > { %10727 = vmatprep.mubr.msk.bf16.mxu0 %vm13072_vm0, %v13071_v0 }
 0x588   : > { %v10681_v37 = vpop.f32.mrb[8].mxu0 }
 0x589   : > { %v865_v38 = vadd.f32 %v10681_v37, %v13401_v59  ;;  %v856_v39 = vpop.f32.mrb[9].mxu0 }
 0x58a   : > { %v857_v40 = vadd.f32 %v856_v39, %v13397_v57  ;;  %v10682_v41 = vpop.f32.mrb[10].mxu0 }
 0x58b   : > { %v877_v42 = vmul.f32 0.1, %v865_v38  ;;  %v868_v43 = vadd.f32 %v10682_v41, %v13404_v63  ;;  %v859_v44 = vpop.f32.mrb[11].mxu0  ;;  %vm873_vm12 = vcmp.gt.f32.partialorder %v865_v38, 0.0 }
 0x58c   : > { %v875_v45 = vmul.f32 0.1, %v857_v40  ;;  %v860_v46 = vadd.f32 %v859_v44, %v13399_v58  ;;  %vm871_vm13 = vcmp.gt.f32.partialorder %v857_v40, 0.0 }
 0x58d   : > { %vm874_vm14 = vcmp.gt.f32.partialorder %v868_v43, 0.0  ;;  %v878_v47 = vmul.f32 0.1, %v868_v43  ;;  %v881_v49 = vsel %vm873_vm12, %v865_v38, %v877_v42  ;;  %v13583_v38 = vstv %s409_s18  ;;  %s13086_s18 = smov 104  }
 0x58e   : > { %vm872_vm15 = vcmp.gt.f32.partialorder %v860_v46, 0.0  ;;  %v876_v48 = vmul.f32 0.1, %v860_v46  ;;  %v879_v52 = vsel %vm871_vm13, %v857_v40, %v875_v45 }
 0x58f   : > { %v882_v51 = vsel %vm874_vm14, %v868_v43, %v878_v47 }
 0x590   : > { %v880_v53 = vsel %vm872_vm15, %v860_v46, %v876_v48  ;;  %v884_v54 = vpack.c.bf16 %v882_v51, %v881_v49 }
 0x591   : > { %v883_v55 = vpack.c.bf16 %v880_v53, %v879_v52 }
 0x593   : > { %10684 = vmatpush3.bf16.msra.mxu1 %v883_v55 }
 0x594   : > { %10685 = vmatprep.subr.bf16.mxu1 %v13071_v0 }
 0x597   : > { %10686 = vmatpush3.bf16.msra.mxu1 %v884_v54 }
 0x598   : > { %10691 = vmatprep.subr.bf16.mxu1 %v13071_v0 }
 0x59a   : > { %10688 = vmatmul.mubr.msk.bf16.vlgmr.msra.gmra.mrb[12].mxu1 %vm630_vm3, %v13438_v56 }
 0x59b   : > { %10692 = vmatpush3.bf16.msra.mxu1 %v13264_v1  ;;  %10707 = vmatprep.mubr.msk.bf16.mxu1 %vm13072_vm0, %v13071_v0  ;;  %v13464_v1 = vld [vmem:[%s16041_s7] sm:$0xff]  }
 0x59c   : > { %10693 = vmatprep.subr.bf16.mxu1 %v13071_v0  ;;  %10712 = vmatpush3.bf16.msra.mxu0 %v13464_v1 }
 0x59d   : > { %10713 = vmatprep.subr.bf16.mxu0 %v13071_v0 }
 0x59f   : > { %10694 = vmatpush3.bf16.msra.mxu1 %v13269_v2  ;;  %v13470_v2 = vld [vmem:[%s16041_s7 + $0x8] sm:$0xff]  }
 0x5a0   : > { %10695 = vmatprep.subr.bf16.mxu1 %v13071_v0  ;;  %10714 = vmatpush3.bf16.msra.mxu0 %v13470_v2 }
 0x5a1   : > { %10715 = vmatprep.subr.bf16.mxu0 %v13071_v0 }
 0x5a3   : > { %10696 = vmatpush3.bf16.msra.mxu1 %v13275_v3  ;;  %v13477_v3 = vld [vmem:[%s16041_s7 + $0x10] sm:$0xff]  }
 0x5a4   : > { %10697 = vmatprep.subr.bf16.mxu1 %v13071_v0  ;;  %10716 = vmatpush3.bf16.msra.mxu0 %v13477_v3 }
 0x5a5   : > { %10717 = vmatprep.subr.bf16.mxu0 %v13071_v0 }
 0x5a7   : > { %10698 = vmatpush3.bf16.msra.mxu1 %v13279_v4  ;;  %v13484_v4 = vld [vmem:[%s16041_s7 + $0x18] sm:$0xff]  }
 0x5a8   : > { %10699 = vmatprep.subr.bf16.mxu1 %v13071_v0  ;;  %10718 = vmatpush3.bf16.msra.mxu0 %v13484_v4 }
 0x5a9   : > { %10719 = vmatprep.subr.bf16.mxu0 %v13071_v0 }
 0x5ab   : > { %10700 = vmatpush3.bf16.msra.mxu1 %v13284_v5  ;;  %v13491_v5 = vld [vmem:[%s16041_s7 + $0x20] sm:$0xff]  }
 0x5ac   : > { %10701 = vmatprep.subr.bf16.mxu1 %v13071_v0  ;;  %10720 = vmatpush3.bf16.msra.mxu0 %v13491_v5 }
 0x5ad   : > { %10721 = vmatprep.subr.bf16.mxu0 %v13071_v0 }
 0x5af   : > { %10702 = vmatpush3.bf16.msra.mxu1 %v13289_v6  ;;  %v13498_v6 = vld [vmem:[%s16041_s7 + $0x28] sm:$0xff]  }
 0x5b0   : > { %10703 = vmatprep.subr.bf16.mxu1 %v13071_v0  ;;  %10722 = vmatpush3.bf16.msra.mxu0 %v13498_v6 }
 0x5b1   : > { %10723 = vmatprep.subr.bf16.mxu0 %v13071_v0 }
 0x5b3   : > { %10704 = vmatpush3.bf16.msra.mxu1 %v13294_v7  ;;  %v13505_v7 = vld [vmem:[%s16041_s7 + $0x30] sm:$0xff]  }
 0x5b4   : > { %10705 = vmatprep.subr.bf16.mxu1 %v13071_v0  ;;  %10724 = vmatpush3.bf16.msra.mxu0 %v13505_v7 }
 0x5b5   : > { %10725 = vmatprep.subr.bf16.mxu0 %v13071_v0 }
 0x5b7   : > { %10706 = vmatpush3.bf16.msra.mxu1 %v13299_v8 }
 0x5b8   : > { %10731 = vmatprep.subr.bf16.mxu1 %v13071_v0  ;;  %10726 = vmatpush3.bf16.msra.mxu0 %v13572_v20 }
 0x66d   : > { %v922_v8 = vpop.f32.mrb[12].mxu1 }
 0x66e   : > { %v928_v61 = vpack.c.bf16 %v922_v8, %v922_v8  ;;  %v10689_v62 = vpop.f32.mrb[13].mxu1 }
 0x66f   : > { %v925_v9 = vpop.f32.mrb[14].mxu1 }
 0x670   : > { %v10690_v11 = vpop.f32.mrb[15].mxu1  ;;  %10708 = vmatmul.mubr.bf16.vlgmr.msra.gmra.mrb[16].mxu1 %v928_v61 }
 0x671   : > { %10732 = vmatpush3.bf16.msra.mxu1 %v13511_v60  ;;  %10747 = vmatprep.mubr.msk.bf16.mxu1 %vm13072_vm0, %v13071_v0 }
 0x672   : > { %10733 = vmatprep.subr.bf16.mxu1 %v13071_v0 }
 0x675   : > { %10734 = vmatpush3.bf16.msra.mxu1 %v13515_v12 }
 0x676   : > { %10735 = vmatprep.subr.bf16.mxu1 %v13071_v0 }
 0x679   : > { %10736 = vmatpush3.bf16.msra.mxu1 %v13522_v13 }
 0x67a   : > { %10737 = vmatprep.subr.bf16.mxu1 %v13071_v0 }
 0x67d   : > { %10738 = vmatpush3.bf16.msra.mxu1 %v13527_v14 }
 0x67e   : > { %10739 = vmatprep.subr.bf16.mxu1 %v13071_v0 }
 0x681   : > { %10740 = vmatpush3.bf16.msra.mxu1 %v13532_v15 }
 0x682   : > { %10741 = vmatprep.subr.bf16.mxu1 %v13071_v0 }
 0x685   : > { %10742 = vmatpush3.bf16.msra.mxu1 %v13537_v16 }
 0x686   : > { %10743 = vmatprep.subr.bf16.mxu1 %v13071_v0 }
 0x689   : > { %10744 = vmatpush3.bf16.msra.mxu1 %v13542_v17 }
 0x68a   : > { %10745 = vmatprep.subr.bf16.mxu1 %v13071_v0 }
 0x68d   : > { %10746 = vmatpush3.bf16.msra.mxu1 %v13547_v18 }
 0x68e   : > { %10765 = vmatprep.subr.bf16.mxu1 %v13511_v60 }
 0x690   : > { %10748 = vmatmul.mubr.bf16.vlgmr.msra.gmra.mrb[20].mxu1 %v9156_v19 }
 0x691   : > { %10766 = vmatpush3.bf16.msra.mxu1 %v13511_v60 }
 0x692   : > { %10767 = vmatprep.subr.bf16.mxu1 %v13515_v12 }
 0x695   : > { %10768 = vmatpush3.bf16.msra.mxu1 %v13515_v12 }
 0x696   : > { %10769 = vmatprep.subr.bf16.mxu1 %v13522_v13 }
 0x699   : > { %10770 = vmatpush3.bf16.msra.mxu1 %v13522_v13 }
 0x69a   : > { %10771 = vmatprep.subr.bf16.mxu1 %v13527_v14 }
 0x69d   : > { %10772 = vmatpush3.bf16.msra.mxu1 %v13527_v14 }
 0x69e   : > { %10773 = vmatprep.subr.bf16.mxu1 %v13532_v15 }
 0x6a1   : > { %10774 = vmatpush3.bf16.msra.mxu1 %v13532_v15 }
 0x6a2   : > { %10775 = vmatprep.subr.bf16.mxu1 %v13537_v16 }
 0x6a5   : > { %10776 = vmatpush3.bf16.msra.mxu1 %v13537_v16 }
 0x6a6   : > { %10777 = vmatprep.subr.bf16.mxu1 %v13542_v17 }
 0x6a9   : > { %10778 = vmatpush3.bf16.msra.mxu1 %v13542_v17 }
 0x6aa   : > { %10779 = vmatprep.subr.bf16.mxu1 %v13547_v18 }
 0x6ad   : > { %10780 = vmatpush3.bf16.msra.mxu1 %v13547_v18 }
 0x6ae   : > { %10813 = vmatprep.subr.bf16.mxu1 %v13071_v0 }
 0x743   : > { %v963_v21 = vpop.f32.mrb[16].mxu1 }
 0x744   : > { %v969_v22 = vpack.c.bf16 %v963_v21, %v963_v21  ;;  %v10709_v23 = vpop.f32.mrb[17].mxu1 }
 0x745   : > { %v966_v24 = vpop.f32.mrb[18].mxu1 }
 0x746   : > { %v10710_v25 = vpop.f32.mrb[19].mxu1  ;;  %10728 = vmatmul.mubr.bf16.vlgmr.msra.gmra.mrb[12].mxu0 %v969_v22 }
 0x747   : > { %10753 = vmatprep.mubr.msk.bf16.mxu0 %vm546_vm1, %v13313_v10 }
 0x763   : > { %v1162_v30 = vpop.f32.mrb[20].mxu1 }
 0x764   : > { %v1168_v31 = vpack.c.bf16 %v1162_v30, %v1162_v30  ;;  %v10749_v32 = vpop.f32.mrb[21].mxu1 }
 0x765   : > { %v1165_v34 = vpop.f32.mrb[22].mxu1 }
 0x766   : > { %v10750_v35 = vpop.f32.mrb[23].mxu1  ;;  %12682 = vmatprep.subr.msk.bf16.mxu0 %vm553_vm2, %v1168_v31  ;;  %v1170_v37 = vsel %vm553_vm2, %v1168_v31, 0 }
 0x767   : > { %10752 = vmatpush3.bf16.msra.mxu0 %v1170_v37 }
 0x76a   : > { %10754 = vmatmul.mubr.msk.bf16.vlgmr.msra.gmra.mrb[16].mxu0 %vm546_vm1, %v13346_v26 }
 0x76b   : > { %10761 = vmatprep.mubr.msk.bf16.mxu0 %vm630_vm3, %v13353_v27 }
 0x819   : > { %v1053_v39 = vpop.f32.mrb[12].mxu0 }
 0x81a   : > { %v1054_v40 = vadd.f32 %v1053_v39, %v13583_v38  ;;  %v10729_v41 = vpop.f32.mrb[13].mxu0 }
 0x81b   : > { %v1056_v42 = vpop.f32.mrb[14].mxu0 }
 0x81c   : > { %1060 = vst.msk [vmem:[%s13587_s26] sm:$0x1] %vm1059_vm4, %v1054_v40  ;;  %v10730_v43 = vpop.f32.mrb[15].mxu0 }
 0x83d   : > { %v10755_v44 = vpop.f32.mrb[16].mxu0 }
 0x83e   : > { %v1215_v45 = vadd.f32 %v10755_v44, %v13359_v28  ;;  %v1206_v46 = vpop.f32.mrb[17].mxu0 }
 0x83f   : > { %v1207_v47 = vadd.f32 %v1206_v46, %v13361_v29  ;;  %v10756_v48 = vpop.f32.mrb[18].mxu0 }
 0x840   : > { %v1227_v49 = vmul.f32 0.1, %v1215_v45  ;;  %v1218_v51 = vadd.f32 %v10756_v48, %v13364_v33  ;;  %v1209_v52 = vpop.f32.mrb[19].mxu0  ;;  %vm1223_vm5 = vcmp.gt.f32.partialorder %v1215_v45, 0.0 }
 0x841   : > { %v1225_v53 = vmul.f32 0.1, %v1207_v47  ;;  %v1210_v54 = vadd.f32 %v1209_v52, %v13367_v36  ;;  %vm1221_vm6 = vcmp.gt.f32.partialorder %v1207_v47, 0.0 }
 0x842   : > { %v1228_v55 = vmul.f32 0.1, %v1218_v51  ;;  %vm1224_vm7 = vcmp.gt.f32.partialorder %v1218_v51, 0.0  ;;  %v1231_v61 = vsel %vm1223_vm5, %v1215_v45, %v1227_v49 }
 0x843   : > { %v1226_v8 = vmul.f32 0.1, %v1210_v54  ;;  %vm1222_vm8 = vcmp.gt.f32.partialorder %v1210_v54, 0.0  ;;  %v1229_v9 = vsel %vm1221_vm6, %v1207_v47, %v1225_v53 }
 0x844   : > { %v1232_v62 = vsel %vm1224_vm7, %v1218_v51, %v1228_v55 }
 0x845   : > { %v1230_v11 = vsel %vm1222_vm8, %v1210_v54, %v1226_v8  ;;  %v1234_v19 = vpack.c.bf16 %v1232_v62, %v1231_v61 }
 0x846   : > { %v1233_v21 = vpack.c.bf16 %v1230_v11, %v1229_v9 }
 0x848   : > { %10757 = vmatprep.subr.bf16.mxu0 %v1233_v21 }
 0x849   : > { %10758 = vmatpush3.bf16.msra.mxu0 %v1233_v21 }
 0x84a   : > { %10759 = vmatprep.subr.bf16.mxu0 %v1234_v19 }
 0x84d   : > { %10760 = vmatpush3.bf16.msra.mxu0 %v1234_v19 }
 0x850   : > { %10762 = vmatmul.mubr.msk.bf16.vlgmr.msra.gmra.mrb[20].mxu0 %vm630_vm3, %v13374_v50 }
 0x851   : > { %10789 = vmatprep.mubr.msk.bf16.mxu0 %vm630_vm3, %v13353_v27 }
 0x923   : > { %v10763_v22 = vpop.f32.mrb[20].mxu0 }
 0x924   : > { %v1269_v23 = vpop.f32.mrb[21].mxu0 }
 0x925   : > { %v10764_v24 = vpop.f32.mrb[22].mxu0 }
 0x926   : > { %v1285_v25 = vpack.c.bf16 %v10764_v24, %v10763_v22  ;;  %v1272_v30 = vpop.f32.mrb[23].mxu0 }
 0x927   : > { %v1284_v31 = vpack.c.bf16 %v1272_v30, %v1269_v23 }
 0x929   : > { %10781 = vmatprep.mubr.bf16.mxu1 %v1284_v31 }
 0x92a   : > { %10782 = vmatmul.mubr.bf16.vlgmr.msra.gmra.mrb[24].mxu1 %v1285_v25 }
 0x92b   : > { %10817 = vmatprep.mubr.msk.bf16.mxu1 %vm13072_vm0, %v13071_v0 }
 0x9fd   : > { %v10783_v32 = vpop.f32.mrb[24].mxu1 }
 0x9fe   : > { %v1329_v34 = vadd.f32 %v10783_v32, %v13401_v59  ;;  %v1320_v35 = vpop.f32.mrb[25].mxu1 }
 0x9ff   : > { %v1321_v37 = vadd.f32 %v1320_v35, %v13397_v57  ;;  %v10784_v39 = vpop.f32.mrb[26].mxu1 }
 0xa00   : > { %v1341_v40 = vmul.f32 0.1, %v1329_v34  ;;  %v1332_v41 = vadd.f32 %v10784_v39, %v13404_v63  ;;  %v1323_v42 = vpop.f32.mrb[27].mxu1  ;;  %vm1337_vm9 = vcmp.gt.f32.partialorder %v1329_v34, 0.0 }
 0xa01   : > { %v1339_v43 = vmul.f32 0.1, %v1321_v37  ;;  %v1324_v44 = vadd.f32 %v1323_v42, %v13399_v58  ;;  %vm1335_vm10 = vcmp.gt.f32.partialorder %v1321_v37, 0.0 }
 0xa02   : > { %v1342_v45 = vmul.f32 0.1, %v1332_v41  ;;  %vm1338_vm11 = vcmp.gt.f32.partialorder %v1332_v41, 0.0  ;;  %v1345_v47 = vsel %vm1337_vm9, %v1329_v34, %v1341_v40  ;;  %vm1589_vm9 = vcmask 122944  }
 0xa03   : > { %v1340_v46 = vmul.f32 0.1, %v1324_v44  ;;  %vm1336_vm12 = vcmp.gt.f32.partialorder %v1324_v44, 0.0  ;;  %v1343_v49 = vsel %vm1335_vm10, %v1321_v37, %v1339_v43 }
 0xa04   : > { %v1346_v48 = vsel %vm1338_vm11, %v1332_v41, %v1342_v45  ;;  %v13688_v45 = vld [vmem:[%s13251_s30 + $0xa0] sm:$0xff]  }
 0xa05   : > { %v1344_v51 = vsel %vm1336_vm12, %v1324_v44, %v1340_v46  ;;  %v1348_v52 = vpack.c.bf16 %v1346_v48, %v1345_v47  ;;  %v13683_v44 = vld [vmem:[%s13251_s30 + $0x98] sm:$0xff]   ;;  %v13693_v46 = vld [vmem:[%s13251_s30 + $0xa8] sm:$0xff]   ;;  %v13698_v47 = vld [vmem:[%s13251_s30 + $0xb0] sm:$0xff]  }
 0xa06   : > { %v1347_v53 = vpack.c.bf16 %v1344_v51, %v1343_v49  ;;  %v13703_v48 = vld [vmem:[%s13251_s30 + $0xb8] sm:$0xff]   ;;  %v9188_v49 = vld [vmem:[%s13304_s17 + $0x8] sm:$0xf] }
 0xa08   : > { %10785 = vmatprep.subr.bf16.mxu0 %v1347_v53 }
 0xa09   : > { %10786 = vmatpush3.bf16.msra.mxu0 %v1347_v53 }
 0xa0a   : > { %10787 = vmatprep.subr.bf16.mxu0 %v1348_v52 }
 0xa0d   : > { %10788 = vmatpush3.bf16.msra.mxu0 %v1348_v52 }
 0xa0e   : > { %10793 = vmatprep.subr.bf16.mxu0 %v13511_v60 }
 0xa10   : > { %10790 = vmatmul.mubr.msk.bf16.vlgmr.msra.gmra.mrb[24].mxu0 %vm630_vm3, %v13374_v50 }
 0xa11   : > { %10794 = vmatpush3.bf16.msra.mxu0 %v13511_v60 }
 0xa12   : > { %10795 = vmatprep.subr.bf16.mxu0 %v13515_v12 }
 0xa15   : > { %10796 = vmatpush3.bf16.msra.mxu0 %v13515_v12 }
 0xa16   : > { %10797 = vmatprep.subr.bf16.mxu0 %v13522_v13 }
 0xa19   : > { %10798 = vmatpush3.bf16.msra.mxu0 %v13522_v13 }
 0xa1a   : > { %10799 = vmatprep.subr.bf16.mxu0 %v13527_v14 }
 0xa1d   : > { %10800 = vmatpush3.bf16.msra.mxu0 %v13527_v14 }
 0xa1e   : > { %10801 = vmatprep.subr.bf16.mxu0 %v13532_v15 }
 0xa21   : > { %10802 = vmatpush3.bf16.msra.mxu0 %v13532_v15 }
 0xa22   : > { %10803 = vmatprep.subr.bf16.mxu0 %v13537_v16 }
 0xa25   : > { %10804 = vmatpush3.bf16.msra.mxu0 %v13537_v16 }
 0xa26   : > { %10805 = vmatprep.subr.bf16.mxu0 %v13542_v17 }
 0xa29   : > { %10806 = vmatpush3.bf16.msra.mxu0 %v13542_v17 }
 0xa2a   : > { %10807 = vmatprep.subr.bf16.mxu0 %v13547_v18 }
 0xa2d   : > { %10808 = vmatpush3.bf16.msra.mxu0 %v13547_v18 }
 0xa2e   : > { %10841 = vmatprep.subr.bf16.mxu0 %v13071_v0 }
 0xae3   : > { %v10791_v54 = vpop.f32.mrb[24].mxu0 }
 0xae4   : > { %v1383_v55 = vpop.f32.mrb[25].mxu0 }
 0xae5   : > { %v10792_v8 = vpop.f32.mrb[26].mxu0 }
 0xae6   : > { %v1399_v61 = vpack.c.bf16 %v10792_v8, %v10791_v54  ;;  %v1386_v62 = vpop.f32.mrb[27].mxu0 }
 0xae7   : > { %v1398_v9 = vpack.c.bf16 %v1386_v62, %v1383_v55 }
 0xae9   : > { %10809 = vmatprep.mubr.bf16.mxu0 %v1398_v9 }
 0xaea   : > { %10810 = vmatmul.mubr.bf16.vlgmr.msra.gmra.mrb[28].mxu0 %v1399_v61 }
 0xaeb   : > { %10842 = vmatpush3.bf16.msra.mxu0 %v13464_v1  ;;  %10857 = vmatprep.mubr.msk.bf16.mxu0 %vm13072_vm0, %v13071_v0 }
 0xaec   : > { %10843 = vmatprep.subr.bf16.mxu0 %v13071_v0 }
 0xaef   : > { %10844 = vmatpush3.bf16.msra.mxu0 %v13470_v2 }
 0xaf0   : > { %10845 = vmatprep.subr.bf16.mxu0 %v13071_v0 }
 0xaf3   : > { %10846 = vmatpush3.bf16.msra.mxu0 %v13477_v3 }
 0xaf4   : > { %10847 = vmatprep.subr.bf16.mxu0 %v13071_v0 }
 0xaf7   : > { %10848 = vmatpush3.bf16.msra.mxu0 %v13484_v4 }
 0xaf8   : > { %10849 = vmatprep.subr.bf16.mxu0 %v13071_v0 }
 0xafb   : > { %10850 = vmatpush3.bf16.msra.mxu0 %v13491_v5 }
 0xafc   : > { %10851 = vmatprep.subr.bf16.mxu0 %v13071_v0 }
 0xaff   : > { %10852 = vmatpush3.bf16.msra.mxu0 %v13498_v6 }
 0xb00   : > { %10853 = vmatprep.subr.bf16.mxu0 %v13071_v0 }
 0xb03   : > { %10854 = vmatpush3.bf16.msra.mxu0 %v13505_v7 }
 0xb04   : > { %10855 = vmatprep.subr.bf16.mxu0 %v13071_v0 }
 0xb07   : > { %10856 = vmatpush3.bf16.msra.mxu0 %v13572_v20 }
 0xbbd   : > { %v10811_v11 = vpop.f32.mrb[28].mxu0 }
 0xbbe   : > { %v1443_v19 = vadd.f32 %v10811_v11, %v13401_v59  ;;  %v1434_v21 = vpop.f32.mrb[29].mxu0 }
 0xbbf   : > { %v1435_v22 = vadd.f32 %v1434_v21, %v13397_v57  ;;  %v10812_v23 = vpop.f32.mrb[30].mxu0 }
 0xbc0   : > { %v1455_v24 = vmul.f32 0.1, %v1443_v19  ;;  %v1446_v25 = vadd.f32 %v10812_v23, %v13404_v63  ;;  %v1437_v30 = vpop.f32.mrb[31].mxu0  ;;  %vm1451_vm13 = vcmp.gt.f32.partialorder %v1443_v19, 0.0 }
 0xbc1   : > { %v1453_v31 = vmul.f32 0.1, %v1435_v22  ;;  %v1438_v32 = vadd.f32 %v1437_v30, %v13399_v58  ;;  %vm1449_vm14 = vcmp.gt.f32.partialorder %v1435_v22, 0.0 }
 0xbc2   : > { %vm1452_vm15 = vcmp.gt.f32.partialorder %v1446_v25, 0.0  ;;  %v1456_v34 = vmul.f32 0.1, %v1446_v25  ;;  %v1459_v37 = vsel %vm1451_vm13, %v1443_v19, %v1455_v24 }
 0xbc3   : > { %vm1450_vm4 = vcmp.gt.f32.partialorder %v1438_v32, 0.0  ;;  %v1454_v35 = vmul.f32 0.1, %v1438_v32  ;;  %v1457_v40 = vsel %vm1449_vm14, %v1435_v22, %v1453_v31 }
 0xbc4   : > { %v1460_v39 = vsel %vm1452_vm15, %v1446_v25, %v1456_v34 }
 0xbc5   : > { %v1458_v41 = vsel %vm1450_vm4, %v1438_v32, %v1454_v35  ;;  %v1462_v42 = vpack.c.bf16 %v1460_v39, %v1459_v37 }
 0xbc6   : > { %v1461_v43 = vpack.c.bf16 %v1458_v41, %v1457_v40 }
 0xbc8   : > { %10814 = vmatpush3.bf16.msra.mxu1 %v1461_v43 }
 0xbc9   : > { %10815 = vmatprep.subr.bf16.mxu1 %v13071_v0 }
 0xbcc   : > { %10816 = vmatpush3.bf16.msra.mxu1 %v1462_v42 }
 0xbcd   : > { %10821 = vmatprep.subr.bf16.mxu1 %v13071_v0 }
 0xbcf   : > { %10818 = vmatmul.mubr.msk.bf16.vlgmr.msra.gmra.mrb[28].mxu1 %vm630_vm3, %v13438_v56 }
 0xbd0   : > { %10822 = vmatpush3.bf16.msra.mxu1 %v13511_v60  ;;  %10837 = vmatprep.mubr.msk.bf16.mxu1 %vm13072_vm0, %v13071_v0 }
 0xbd1   : > { %10823 = vmatprep.subr.bf16.mxu1 %v13071_v0 }
 0xbd4   : > { %10824 = vmatpush3.bf16.msra.mxu1 %v13515_v12  ;;  %v13667_v12 = vld [vmem:[%s13251_s30 + $0x80] sm:$0xff]  }
 0xbd5   : > { %10825 = vmatprep.subr.bf16.mxu1 %v13071_v0 }
 0xbd8   : > { %10826 = vmatpush3.bf16.msra.mxu1 %v13522_v13 }
 0xbd9   : > { %10827 = vmatprep.subr.bf16.mxu1 %v13071_v0 }
 0xbdc   : > { %10828 = vmatpush3.bf16.msra.mxu1 %v13527_v14 }
 0xbdd   : > { %10829 = vmatprep.subr.bf16.mxu1 %v13071_v0 }
 0xbe0   : > { %10830 = vmatpush3.bf16.msra.mxu1 %v13532_v15 }
 0xbe1   : > { %10831 = vmatprep.subr.bf16.mxu1 %v13071_v0 }
 0xbe4   : > { %10832 = vmatpush3.bf16.msra.mxu1 %v13537_v16 }
 0xbe5   : > { %10833 = vmatprep.subr.bf16.mxu1 %v13071_v0 }
 0xbe8   : > { %10834 = vmatpush3.bf16.msra.mxu1 %v13542_v17  ;;  %v13671_v17 = vld [vmem:[%s13251_s30 + $0x88] sm:$0xff]  }
 0xbe9   : > { %10835 = vmatprep.subr.bf16.mxu1 %v13071_v0 }
 0xbec   : > { %10836 = vmatpush3.bf16.msra.mxu1 %v13547_v18  ;;  %v13678_v18 = vld [vmem:[%s13251_s30 + $0x90] sm:$0xff]  }
 0xbed   : > { %10861 = vmatprep.subr.bf16.mxu1 %v13071_v0 }
 0xca2   : > { %v1497_v60 = vpop.f32.mrb[28].mxu1 }
 0xca3   : > { %v1503_v13 = vpack.c.bf16 %v1497_v60, %v1497_v60  ;;  %v10819_v14 = vpop.f32.mrb[29].mxu1 }
 0xca4   : > { %v1500_v15 = vpop.f32.mrb[30].mxu1 }
 0xca5   : > { %v10820_v16 = vpop.f32.mrb[31].mxu1  ;;  %10838 = vmatmul.mubr.bf16.vlgmr.msra.gmra.mrb[32].mxu1 %v1503_v13 }
 0xca6   : > { %10862 = vmatpush3.bf16.msra.mxu1 %v13667_v12  ;;  %10877 = vmatprep.mubr.msk.bf16.mxu1 %vm13072_vm0, %v13071_v0 }
 0xca7   : > { %10863 = vmatprep.subr.bf16.mxu1 %v13071_v0 }
 0xcaa   : > { %10864 = vmatpush3.bf16.msra.mxu1 %v13671_v17 }
 0xcab   : > { %10865 = vmatprep.subr.bf16.mxu1 %v13071_v0 }
 0xcae   : > { %10866 = vmatpush3.bf16.msra.mxu1 %v13678_v18 }
 0xcaf   : > { %10867 = vmatprep.subr.bf16.mxu1 %v13071_v0 }
 0xcb2   : > { %10868 = vmatpush3.bf16.msra.mxu1 %v13683_v44 }
 0xcb3   : > { %10869 = vmatprep.subr.bf16.mxu1 %v13071_v0 }
 0xcb6   : > { %10870 = vmatpush3.bf16.msra.mxu1 %v13688_v45 }
 0xcb7   : > { %10871 = vmatprep.subr.bf16.mxu1 %v13071_v0 }
 0xcba   : > { %10872 = vmatpush3.bf16.msra.mxu1 %v13693_v46 }
 0xcbb   : > { %10873 = vmatprep.subr.bf16.mxu1 %v13071_v0 }
 0xcbe   : > { %10874 = vmatpush3.bf16.msra.mxu1 %v13698_v47 }
 0xcbf   : > { %10875 = vmatprep.subr.bf16.mxu1 %v13071_v0 }
 0xcc2   : > { %10876 = vmatpush3.bf16.msra.mxu1 %v13703_v48 }
 0xcc5   : > { %10878 = vmatmul.mubr.bf16.vlgmr.msra.gmra.mrb[36].mxu1 %v9188_v49 }
 0xcc6   : > { %10919 = vmatprep.mubr.msk.bf16.mxu1 %vm630_vm3, %v13353_v27 }
 0xd78   : > { %v1538_v51 = vpop.f32.mrb[32].mxu1 }
 0xd79   : > { %v1544_v52 = vpack.c.bf16 %v1538_v51, %v1538_v51  ;;  %v10839_v53 = vpop.f32.mrb[33].mxu1 }
 0xd7a   : > { %v1541_v54 = vpop.f32.mrb[34].mxu1 }
 0xd7b   : > { %v10840_v55 = vpop.f32.mrb[35].mxu1  ;;  %10858 = vmatmul.mubr.bf16.vlgmr.msra.gmra.mrb[32].mxu0 %v1544_v52 }
 0xd7c   : > { %10883 = vmatprep.mubr.msk.bf16.mxu0 %vm546_vm1, %v13313_v10 }
 0xd98   : > { %v1692_v8 = vpop.f32.mrb[36].mxu1 }
 0xd99   : > { %v1698_v61 = vpack.c.bf16 %v1692_v8, %v1692_v8  ;;  %v10879_v62 = vpop.f32.mrb[37].mxu1 }
 0xd9a   : > { %v1695_v9 = vpop.f32.mrb[38].mxu1 }
 0xd9b   : > { %v1700_v11 = vsel %vm553_vm2, %v1698_v61, 0  ;;  %v10880_v19 = vpop.f32.mrb[39].mxu1  ;;  %12683 = vmatprep.subr.msk.bf16.mxu0 %vm553_vm2, %v1698_v61 }
 0xd9c   : > { %10882 = vmatpush3.bf16.msra.mxu0 %v1700_v11 }
 0xd9f   : > { %10884 = vmatmul.mubr.msk.bf16.vlgmr.msra.gmra.mrb[36].mxu0 %vm546_vm1, %v13346_v26 }
 0xda0   : > { %10891 = vmatprep.mubr.msk.bf16.mxu0 %vm630_vm3, %v13353_v27 }
 0xe4e   : > { %v1579_v21 = vpop.f32.mrb[32].mxu0 }
 0xe4f   : > { %v1580_v22 = vadd.f32 %v1579_v21, %v13583_v38  ;;  %v10859_v10 = vpop.f32.mrb[33].mxu0 }
 0xe50   : > { %v1582_v23 = vpop.f32.mrb[34].mxu0 }
 0xe51   : > { %1586 = vrot.lane.b32.xlu0 %v1580_v22, %s13074_s28  ;;  %v10860_v24 = vpop.f32.mrb[35].mxu0  ;;  %s13075_s28 = smov 16  }
 0xe72   : > { %v10885_v25 = vpop.f32.mrb[36].mxu0 }
 0xe73   : > { %v1745_v30 = vadd.f32 %v10885_v25, %v13359_v28  ;;  %v1736_v31 = vpop.f32.mrb[37].mxu0 }
 0xe74   : > { %v1737_v32 = vadd.f32 %v1736_v31, %v13361_v29  ;;  %v10886_v34 = vpop.f32.mrb[38].mxu0 }
 0xe75   : > { %v1757_v35 = vmul.f32 0.1, %v1745_v30  ;;  %v1748_v26 = vadd.f32 %v10886_v34, %v13364_v33  ;;  %v1739_v37 = vpop.f32.mrb[39].mxu0  ;;  %vm1753_vm5 = vcmp.gt.f32.partialorder %v1745_v30, 0.0 }
 0xe76   : > { %v1755_v27 = vmul.f32 0.1, %v1737_v32  ;;  %v1740_v39 = vadd.f32 %v1739_v37, %v13367_v36  ;;  %vm1751_vm6 = vcmp.gt.f32.partialorder %v1737_v32, 0.0 }
 0xe77   : > { %vm1754_vm7 = vcmp.gt.f32.partialorder %v1748_v26, 0.0  ;;  %v1758_v40 = vmul.f32 0.1, %v1748_v26  ;;  %v1761_v42 = vsel %vm1753_vm5, %v1745_v30, %v1757_v35 }
 0xe78   : > { %vm1752_vm8 = vcmp.gt.f32.partialorder %v1740_v39, 0.0  ;;  %v1756_v41 = vmul.f32 0.1, %v1740_v39  ;;  %v1759_v60 = vsel %vm1751_vm6, %v1737_v32, %v1755_v27 }
 0xe79   : > { %v1762_v43 = vsel %vm1754_vm7, %v1748_v26, %v1758_v40  ;;  %v13753_v26 = vld [vmem:[%s16038_s4 + $0x8] sm:$0xff]  }
 0xe7a   : > { %v1760_v13 = vsel %vm1752_vm8, %v1740_v39, %v1756_v41  ;;  %v1764_v14 = vpack.c.bf16 %v1762_v43, %v1761_v42 }
 0xe7b   : > { %v1763_v15 = vpack.c.bf16 %v1760_v13, %v1759_v60 }
 0xe7d   : > { %10887 = vmatprep.subr.bf16.mxu0 %v1763_v15 }
 0xe7e   : > { %10888 = vmatpush3.bf16.msra.mxu0 %v1763_v15 }
 0xe7f   : > { %10889 = vmatprep.subr.bf16.mxu0 %v1764_v14 }
 0xe82   : > { %10890 = vmatpush3.bf16.msra.mxu0 %v1764_v14 }
 0xe83   : > { %10895 = vmatprep.subr.bf16.mxu0 %v13667_v12 }
 0xe85   : > { %10892 = vmatmul.mubr.msk.bf16.vlgmr.msra.gmra.mrb[40].mxu0 %vm630_vm3, %v13374_v50 }
 0xe86   : > { %10896 = vmatpush3.bf16.msra.mxu0 %v13667_v12 }
 0xe87   : > { %10897 = vmatprep.subr.bf16.mxu0 %v13671_v17 }
 0xe8a   : > { %10898 = vmatpush3.bf16.msra.mxu0 %v13671_v17 }
 0xe8b   : > { %10899 = vmatprep.subr.bf16.mxu0 %v13678_v18 }
 0xe8e   : > { %10900 = vmatpush3.bf16.msra.mxu0 %v13678_v18 }
 0xe8f   : > { %10901 = vmatprep.subr.bf16.mxu0 %v13683_v44 }
 0xe92   : > { %10902 = vmatpush3.bf16.msra.mxu0 %v13683_v44 }
 0xe93   : > { %10903 = vmatprep.subr.bf16.mxu0 %v13688_v45 }
 0xe96   : > { %10904 = vmatpush3.bf16.msra.mxu0 %v13688_v45 }
 0xe97   : > { %10905 = vmatprep.subr.bf16.mxu0 %v13693_v46 }
 0xe9a   : > { %10906 = vmatpush3.bf16.msra.mxu0 %v13693_v46 }
 0xe9b   : > { %10907 = vmatprep.subr.bf16.mxu0 %v13698_v47 }
 0xe9e   : > { %10908 = vmatpush3.bf16.msra.mxu0 %v13698_v47 }
 0xe9f   : > { %10909 = vmatprep.subr.bf16.mxu0 %v13703_v48 }
 0xea2   : > { %10910 = vmatpush3.bf16.msra.mxu0 %v13703_v48 }
 0xea3   : > { %10943 = vmatprep.subr.bf16.mxu0 %v13071_v0 }
 0xec3   : > { %v1587_v50 = vpop.permute.xlu0 %1586 }
 0xec4   : > { %1590 = vst.msk [vmem:[%s13587_s26] sm:$0x1] %vm1589_vm9, %v1587_v50 }
 0xf58   : > { %v10893_v16 = vpop.f32.mrb[40].mxu0 }
 0xf59   : > { %v1799_v49 = vpop.f32.mrb[41].mxu0 }
 0xf5a   : > { %v10894_v51 = vpop.f32.mrb[42].mxu0 }
 0xf5b   : > { %v1815_v52 = vpack.c.bf16 %v10894_v51, %v10893_v16  ;;  %v1802_v53 = vpop.f32.mrb[43].mxu0 }
 0xf5c   : > { %v1814_v54 = vpack.c.bf16 %v1802_v53, %v1799_v49  ;;  %v13838_v53 = vld [vmem:[%s13251_s30 + $0xe0] sm:$0xff]  }
 0xf5e   : > { %10911 = vmatprep.mubr.bf16.mxu0 %v1814_v54  ;;  %v13843_v54 = vld [vmem:[%s13251_s30 + $0xe8] sm:$0xff]  }
 0xf5f   : > { %10912 = vmatmul.mubr.bf16.vlgmr.msra.gmra.mrb[44].mxu0 %v1815_v52 }
 0xf60   : > { %10947 = vmatprep.mubr.msk.bf16.mxu0 %vm13072_vm0, %v13071_v0 }
0x1032   : > { %v10913_v55 = vpop.f32.mrb[44].mxu0 }
0x1033   : > { %v1859_v8 = vadd.f32 %v10913_v55, %v13401_v59  ;;  %v1850_v61 = vpop.f32.mrb[45].mxu0  ;;  %v13848_v55 = vld [vmem:[%s13251_s30 + $0xf0] sm:$0xff]  }
0x1034   : > { %v1851_v62 = vadd.f32 %v1850_v61, %v13397_v57  ;;  %v10914_v9 = vpop.f32.mrb[46].mxu0  ;;  %v9220_v61 = vld [vmem:[%s13304_s17 + $0xc] sm:$0xf] }
0x1035   : > { %v1871_v11 = vmul.f32 0.1, %v1859_v8  ;;  %v1862_v19 = vadd.f32 %v10914_v9, %v13404_v63  ;;  %v1853_v21 = vpop.f32.mrb[47].mxu0  ;;  %vm1867_vm10 = vcmp.gt.f32.partialorder %v1859_v8, 0.0 }
0x1036   : > { %v1869_v22 = vmul.f32 0.1, %v1851_v62  ;;  %v1854_v10 = vadd.f32 %v1853_v21, %v13399_v58  ;;  %vm1865_vm11 = vcmp.gt.f32.partialorder %v1851_v62, 0.0 }
0x1037   : > { %vm1868_vm12 = vcmp.gt.f32.partialorder %v1862_v19, 0.0  ;;  %v1872_v23 = vmul.f32 0.1, %v1862_v19  ;;  %v1875_v25 = vsel %vm1867_vm10, %v1859_v8, %v1871_v11  ;;  %v13853_v8 = vld [vmem:[%s13251_s30 + $0xf8] sm:$0xff]   ;;  %vm2119_vm10 = vcmask 188544  }
0x1038   : > { %vm1866_vm13 = vcmp.gt.f32.partialorder %v1854_v10, 0.0  ;;  %v1870_v24 = vmul.f32 0.1, %v1854_v10  ;;  %v1873_v31 = vsel %vm1865_vm11, %v1851_v62, %v1869_v22  ;;  %v13861_v62 = vld [vmem:[%s16038_s4] sm:$0xff]  }
0x1039   : > { %v1876_v30 = vsel %vm1868_vm12, %v1862_v19, %v1872_v23 }
0x103a   : > { %v1874_v32 = vsel %vm1866_vm13, %v1854_v10, %v1870_v24  ;;  %v1878_v34 = vpack.c.bf16 %v1876_v30, %v1875_v25  ;;  %v13868_v10 = vld [vmem:[%s16036_s2] sm:$0xff]  }
0x103b   : > { %v1877_v35 = vpack.c.bf16 %v1874_v32, %v1873_v31 }
0x103d   : > { %10915 = vmatprep.subr.bf16.mxu1 %v1877_v35 }
0x103e   : > { %10916 = vmatpush3.bf16.msra.mxu1 %v1877_v35 }
0x103f   : > { %10917 = vmatprep.subr.bf16.mxu1 %v1878_v34 }
0x1042   : > { %10918 = vmatpush3.bf16.msra.mxu1 %v1878_v34  ;;  %v13877_v34 = vld [vmem:[%s16036_s2 + $0x8] sm:$0xff]  }
0x1043   : > { %10923 = vmatprep.subr.bf16.mxu1 %v13667_v12 }
0x1045   : > { %10920 = vmatmul.mubr.msk.bf16.vlgmr.msra.gmra.mrb[40].mxu1 %vm630_vm3, %v13753_v26 }
0x1046   : > { %10924 = vmatpush3.bf16.msra.mxu1 %v13667_v12 }
0x1047   : > { %10925 = vmatprep.subr.bf16.mxu1 %v13671_v17 }
0x104a   : > { %10926 = vmatpush3.bf16.msra.mxu1 %v13671_v17 }
0x104b   : > { %10927 = vmatprep.subr.bf16.mxu1 %v13678_v18 }
0x104e   : > { %10928 = vmatpush3.bf16.msra.mxu1 %v13678_v18 }
0x104f   : > { %10929 = vmatprep.subr.bf16.mxu1 %v13683_v44 }
0x1052   : > { %10930 = vmatpush3.bf16.msra.mxu1 %v13683_v44 }
0x1053   : > { %10931 = vmatprep.subr.bf16.mxu1 %v13688_v45 }
0x1056   : > { %10932 = vmatpush3.bf16.msra.mxu1 %v13688_v45 }
0x1057   : > { %10933 = vmatprep.subr.bf16.mxu1 %v13693_v46 }
0x105a   : > { %10934 = vmatpush3.bf16.msra.mxu1 %v13693_v46 }
0x105b   : > { %10935 = vmatprep.subr.bf16.mxu1 %v13698_v47 }
0x105e   : > { %10936 = vmatpush3.bf16.msra.mxu1 %v13698_v47 }
0x105f   : > { %10937 = vmatprep.subr.bf16.mxu1 %v13703_v48 }
0x1062   : > { %10938 = vmatpush3.bf16.msra.mxu1 %v13703_v48 }
0x1063   : > { %10971 = vmatprep.subr.bf16.mxu1 %v13071_v0 }
0x1118   : > { %v10921_v37 = vpop.f32.mrb[40].mxu1 }
0x1119   : > { %v1913_v27 = vpop.f32.mrb[41].mxu1 }
0x111a   : > { %v10922_v39 = vpop.f32.mrb[42].mxu1 }
0x111b   : > { %v1929_v40 = vpack.c.bf16 %v10922_v39, %v10921_v37  ;;  %v1916_v41 = vpop.f32.mrb[43].mxu1 }
0x111c   : > { %v1928_v42 = vpack.c.bf16 %v1916_v41, %v1913_v27 }
0x111e   : > { %10939 = vmatprep.mubr.bf16.mxu1 %v1928_v42 }
0x111f   : > { %10940 = vmatmul.mubr.bf16.vlgmr.msra.gmra.mrb[44].mxu1 %v1929_v40 }
0x1120   : > { %10972 = vmatpush3.bf16.msra.mxu1 %v13464_v1  ;;  %10987 = vmatprep.mubr.msk.bf16.mxu1 %vm13072_vm0, %v13071_v0 }
0x1121   : > { %10973 = vmatprep.subr.bf16.mxu1 %v13071_v0 }
0x1124   : > { %10974 = vmatpush3.bf16.msra.mxu1 %v13470_v2 }
0x1125   : > { %10975 = vmatprep.subr.bf16.mxu1 %v13071_v0 }
0x1128   : > { %10976 = vmatpush3.bf16.msra.mxu1 %v13477_v3 }
0x1129   : > { %10977 = vmatprep.subr.bf16.mxu1 %v13071_v0 }
0x112c   : > { %10978 = vmatpush3.bf16.msra.mxu1 %v13484_v4 }
0x112d   : > { %10979 = vmatprep.subr.bf16.mxu1 %v13071_v0 }
0x1130   : > { %10980 = vmatpush3.bf16.msra.mxu1 %v13491_v5 }
0x1131   : > { %10981 = vmatprep.subr.bf16.mxu1 %v13071_v0 }
0x1134   : > { %10982 = vmatpush3.bf16.msra.mxu1 %v13498_v6 }
0x1135   : > { %10983 = vmatprep.subr.bf16.mxu1 %v13071_v0 }
0x1138   : > { %10984 = vmatpush3.bf16.msra.mxu1 %v13505_v7 }
0x1139   : > { %10985 = vmatprep.subr.bf16.mxu1 %v13071_v0 }
0x113c   : > { %10986 = vmatpush3.bf16.msra.mxu1 %v13572_v20 }
0x11f2   : > { %v10941_v1 = vpop.f32.mrb[44].mxu1 }
0x11f3   : > { %v1973_v2 = vadd.f32 %v10941_v1, %v13401_v59  ;;  %v1964_v3 = vpop.f32.mrb[45].mxu1 }
0x11f4   : > { %v1965_v4 = vadd.f32 %v1964_v3, %v13397_v57  ;;  %v10942_v43 = vpop.f32.mrb[46].mxu1 }
0x11f5   : > { %v1985_v5 = vmul.f32 0.1, %v1973_v2  ;;  %v1976_v60 = vadd.f32 %v10942_v43, %v13404_v63  ;;  %v1967_v13 = vpop.f32.mrb[47].mxu1  ;;  %vm1981_vm14 = vcmp.gt.f32.partialorder %v1973_v2, 0.0 }
0x11f6   : > { %v1983_v6 = vmul.f32 0.1, %v1965_v4  ;;  %v1968_v14 = vadd.f32 %v1967_v13, %v13399_v58  ;;  %vm1979_vm15 = vcmp.gt.f32.partialorder %v1965_v4, 0.0 }
0x11f7   : > { %vm1982_vm4 = vcmp.gt.f32.partialorder %v1976_v60, 0.0  ;;  %v1986_v7 = vmul.f32 0.1, %v1976_v60  ;;  %v1989_v15 = vsel %vm1981_vm14, %v1973_v2, %v1985_v5 }
0x11f8   : > { %vm1980_vm5 = vcmp.gt.f32.partialorder %v1968_v14, 0.0  ;;  %v1984_v20 = vmul.f32 0.1, %v1968_v14  ;;  %v1987_v16 = vsel %vm1979_vm15, %v1965_v4, %v1983_v6 }
0x11f9   : > { %v1990_v50 = vsel %vm1982_vm4, %v1976_v60, %v1986_v7 }
0x11fa   : > { %v1992_v49 = vpack.c.bf16 %v1990_v50, %v1989_v15  ;;  %v1988_v51 = vsel %vm1980_vm5, %v1968_v14, %v1984_v20 }
0x11fb   : > { %v1991_v52 = vpack.c.bf16 %v1988_v51, %v1987_v16 }
0x11fd   : > { %10944 = vmatpush3.bf16.msra.mxu0 %v1991_v52 }
0x11fe   : > { %10945 = vmatprep.subr.bf16.mxu0 %v13071_v0 }
0x1201   : > { %10946 = vmatpush3.bf16.msra.mxu0 %v1992_v49 }
0x1202   : > { %10951 = vmatprep.subr.bf16.mxu0 %v13071_v0 }
0x1204   : > { %10948 = vmatmul.mubr.msk.bf16.vlgmr.msra.gmra.mrb[48].mxu0 %vm630_vm3, %v13438_v56 }
0x1205   : > { %10952 = vmatpush3.bf16.msra.mxu0 %v13667_v12  ;;  %10967 = vmatprep.mubr.msk.bf16.mxu0 %vm13072_vm0, %v13071_v0  ;;  %v13817_v12 = vld [vmem:[%s13251_s30 + $0xc0] sm:$0xff]  }
0x1206   : > { %10953 = vmatprep.subr.bf16.mxu0 %v13071_v0 }
0x1209   : > { %10954 = vmatpush3.bf16.msra.mxu0 %v13671_v17 }
0x120a   : > { %10955 = vmatprep.subr.bf16.mxu0 %v13071_v0 }
0x120d   : > { %10956 = vmatpush3.bf16.msra.mxu0 %v13678_v18 }
0x120e   : > { %10957 = vmatprep.subr.bf16.mxu0 %v13071_v0 }
0x1211   : > { %10958 = vmatpush3.bf16.msra.mxu0 %v13683_v44 }
0x1212   : > { %10959 = vmatprep.subr.bf16.mxu0 %v13071_v0 }
0x1215   : > { %10960 = vmatpush3.bf16.msra.mxu0 %v13688_v45 }
0x1216   : > { %10961 = vmatprep.subr.bf16.mxu0 %v13071_v0 }
0x1219   : > { %10962 = vmatpush3.bf16.msra.mxu0 %v13693_v46  ;;  %v13821_v46 = vld [vmem:[%s13251_s30 + $0xc8] sm:$0xff]  }
0x121a   : > { %10963 = vmatprep.subr.bf16.mxu0 %v13071_v0 }
0x121d   : > { %10964 = vmatpush3.bf16.msra.mxu0 %v13698_v47  ;;  %v13828_v47 = vld [vmem:[%s13251_s30 + $0xd0] sm:$0xff]  }
0x121e   : > { %10965 = vmatprep.subr.bf16.mxu0 %v13071_v0 }
0x1221   : > { %10966 = vmatpush3.bf16.msra.mxu0 %v13703_v48  ;;  %v13833_v48 = vld [vmem:[%s13251_s30 + $0xd8] sm:$0xff]  }
0x1222   : > { %10991 = vmatprep.subr.bf16.mxu0 %v13071_v0 }
0x12d7   : > { %v2027_v56 = vpop.f32.mrb[48].mxu0 }
0x12d8   : > { %v2033_v17 = vpack.c.bf16 %v2027_v56, %v2027_v56  ;;  %v10949_v18 = vpop.f32.mrb[49].mxu0 }
0x12d9   : > { %v2030_v44 = vpop.f32.mrb[50].mxu0 }
0x12da   : > { %v10950_v45 = vpop.f32.mrb[51].mxu0  ;;  %10968 = vmatmul.mubr.bf16.vlgmr.msra.gmra.mrb[52].mxu0 %v2033_v17 }
0x12db   : > { %10992 = vmatpush3.bf16.msra.mxu0 %v13817_v12  ;;  %11007 = vmatprep.mubr.msk.bf16.mxu0 %vm13072_vm0, %v13071_v0 }
0x12dc   : > { %10993 = vmatprep.subr.bf16.mxu0 %v13071_v0 }
0x12df   : > { %10994 = vmatpush3.bf16.msra.mxu0 %v13821_v46 }
0x12e0   : > { %10995 = vmatprep.subr.bf16.mxu0 %v13071_v0 }
0x12e3   : > { %10996 = vmatpush3.bf16.msra.mxu0 %v13828_v47 }
0x12e4   : > { %10997 = vmatprep.subr.bf16.mxu0 %v13071_v0 }
0x12e7   : > { %10998 = vmatpush3.bf16.msra.mxu0 %v13833_v48 }
0x12e8   : > { %10999 = vmatprep.subr.bf16.mxu0 %v13071_v0 }
0x12eb   : > { %11000 = vmatpush3.bf16.msra.mxu0 %v13838_v53 }
0x12ec   : > { %11001 = vmatprep.subr.bf16.mxu0 %v13071_v0 }
0x12ef   : > { %11002 = vmatpush3.bf16.msra.mxu0 %v13843_v54 }
0x12f0   : > { %11003 = vmatprep.subr.bf16.mxu0 %v13071_v0 }
0x12f3   : > { %11004 = vmatpush3.bf16.msra.mxu0 %v13848_v55 }
0x12f4   : > { %11005 = vmatprep.subr.bf16.mxu0 %v13071_v0 }
0x12f7   : > { %11006 = vmatpush3.bf16.msra.mxu0 %v13853_v8 }
0x12fa   : > { %11008 = vmatmul.mubr.bf16.vlgmr.msra.gmra.mrb[56].mxu0 %v9220_v61 }
0x12fb   : > { %11049 = vmatprep.mubr.msk.bf16.mxu0 %vm630_vm3, %v13861_v62 }
0x13ad   : > { %v2068_v9 = vpop.f32.mrb[52].mxu0 }
0x13ae   : > { %v2074_v11 = vpack.c.bf16 %v2068_v9, %v2068_v9  ;;  %v10969_v19 = vpop.f32.mrb[53].mxu0 }
0x13af   : > { %v2071_v21 = vpop.f32.mrb[54].mxu0 }
0x13b0   : > { %v10970_v22 = vpop.f32.mrb[55].mxu0  ;;  %10988 = vmatmul.mubr.bf16.vlgmr.msra.gmra.mrb[48].mxu1 %v2074_v11 }
0x13b1   : > { %11013 = vmatprep.mubr.msk.bf16.mxu1 %vm546_vm1, %v13868_v10 }
0x13cd   : > { %v2222_v23 = vpop.f32.mrb[56].mxu0 }
0x13ce   : > { %v2228_v24 = vpack.c.bf16 %v2222_v23, %v2222_v23  ;;  %v11009_v25 = vpop.f32.mrb[57].mxu0 }
0x13cf   : > { %v2225_v30 = vpop.f32.mrb[58].mxu0 }
0x13d0   : > { %v2230_v31 = vsel %vm553_vm2, %v2228_v24, 0  ;;  %v11010_v32 = vpop.f32.mrb[59].mxu0  ;;  %12684 = vmatprep.subr.msk.bf16.mxu1 %vm553_vm2, %v2228_v24 }
0x13d1   : > { %11012 = vmatpush3.bf16.msra.mxu1 %v2230_v31 }
0x13d4   : > { %11014 = vmatmul.mubr.msk.bf16.vlgmr.msra.gmra.mrb[52].mxu1 %vm546_vm1, %v13877_v34 }
0x13d5   : > { %11021 = vmatprep.mubr.msk.bf16.mxu1 %vm630_vm3, %v13861_v62 }
0x1483   : > { %v2109_v35 = vpop.f32.mrb[48].mxu1 }
0x1484   : > { %v2110_v37 = vadd.f32 %v2109_v35, %v13583_v38  ;;  %v10989_v27 = vpop.f32.mrb[49].mxu1 }
0x1485   : > { %v2112_v39 = vpop.f32.mrb[50].mxu1 }
0x1486   : > { %2116 = vrot.lane.b32.xlu1 %v2110_v37, %s13075_s28  ;;  %v10990_v40 = vpop.f32.mrb[51].mxu1 }
0x14a7   : > { %v11015_v41 = vpop.f32.mrb[52].mxu1 }
0x14a8   : > { %v2275_v42 = vadd.f32 %v11015_v41, %v13359_v28  ;;  %v2266_v1 = vpop.f32.mrb[53].mxu1 }
0x14a9   : > { %v2267_v2 = vadd.f32 %v2266_v1, %v13361_v29  ;;  %v11016_v3 = vpop.f32.mrb[54].mxu1 }
0x14aa   : > { %v2287_v4 = vmul.f32 0.1, %v2275_v42  ;;  %v2278_v43 = vadd.f32 %v11016_v3, %v13364_v33  ;;  %v2269_v5 = vpop.f32.mrb[55].mxu1  ;;  %vm2283_vm6 = vcmp.gt.f32.partialorder %v2275_v42, 0.0 }
0x14ab   : > { %v2285_v60 = vmul.f32 0.1, %v2267_v2  ;;  %v2270_v13 = vadd.f32 %v2269_v5, %v13367_v36  ;;  %vm2281_vm7 = vcmp.gt.f32.partialorder %v2267_v2, 0.0  ;;  %v13936_v5 = vld [vmem:[%s16041_s7] sm:$0xff]  }
0x14ac   : > { %vm2284_vm8 = vcmp.gt.f32.partialorder %v2278_v43, 0.0  ;;  %v2288_v6 = vmul.f32 0.1, %v2278_v43  ;;  %v2291_v7 = vsel %vm2283_vm6, %v2275_v42, %v2287_v4 }
0x14ad   : > { %vm2282_vm9 = vcmp.gt.f32.partialorder %v2270_v13, 0.0  ;;  %v2286_v14 = vmul.f32 0.1, %v2270_v13  ;;  %v2289_v15 = vsel %vm2281_vm7, %v2267_v2, %v2285_v60  ;;  %v13945_v60 = vld [vmem:[%s16041_s7 + $0x8] sm:$0xff]  }
0x14ae   : > { %v2292_v20 = vsel %vm2284_vm8, %v2278_v43, %v2288_v6  ;;  %v13959_v6 = vld [vmem:[%s16041_s7 + $0x18] sm:$0xff]  }
0x14af   : > { %v2290_v50 = vsel %vm2282_vm9, %v2270_v13, %v2286_v14  ;;  %v2294_v16 = vpack.c.bf16 %v2292_v20, %v2291_v7  ;;  %v13952_v13 = vld [vmem:[%s16041_s7 + $0x10] sm:$0xff]   ;;  %v13966_v14 = vld [vmem:[%s16041_s7 + $0x20] sm:$0xff]   ;;  %v13973_v7 = vld [vmem:[%s16041_s7 + $0x28] sm:$0xff]  }
0x14b0   : > { %v2293_v49 = vpack.c.bf16 %v2290_v50, %v2289_v15  ;;  %v13980_v20 = vld [vmem:[%s16041_s7 + $0x30] sm:$0xff]   ;;  %v13987_v15 = vld [vmem:[%s16041_s7 + $0x38] sm:$0xff]  }
0x14b2   : > { %11017 = vmatprep.subr.bf16.mxu1 %v2293_v49 }
0x14b3   : > { %11018 = vmatpush3.bf16.msra.mxu1 %v2293_v49 }
0x14b4   : > { %11019 = vmatprep.subr.bf16.mxu1 %v2294_v16 }
0x14b7   : > { %11020 = vmatpush3.bf16.msra.mxu1 %v2294_v16 }
0x14b8   : > { %11025 = vmatprep.subr.bf16.mxu1 %v13817_v12 }
0x14ba   : > { %11022 = vmatmul.mubr.msk.bf16.vlgmr.msra.gmra.mrb[56].mxu1 %vm630_vm3, %v13753_v26 }
0x14bb   : > { %11026 = vmatpush3.bf16.msra.mxu1 %v13817_v12 }
0x14bc   : > { %11027 = vmatprep.subr.bf16.mxu1 %v13821_v46 }
0x14bf   : > { %11028 = vmatpush3.bf16.msra.mxu1 %v13821_v46 }
0x14c0   : > { %11029 = vmatprep.subr.bf16.mxu1 %v13828_v47 }
0x14c3   : > { %11030 = vmatpush3.bf16.msra.mxu1 %v13828_v47 }
0x14c4   : > { %11031 = vmatprep.subr.bf16.mxu1 %v13833_v48 }
0x14c7   : > { %11032 = vmatpush3.bf16.msra.mxu1 %v13833_v48 }
0x14c8   : > { %11033 = vmatprep.subr.bf16.mxu1 %v13838_v53 }
0x14cb   : > { %11034 = vmatpush3.bf16.msra.mxu1 %v13838_v53 }
0x14cc   : > { %11035 = vmatprep.subr.bf16.mxu1 %v13843_v54 }
0x14cf   : > { %11036 = vmatpush3.bf16.msra.mxu1 %v13843_v54 }
0x14d0   : > { %11037 = vmatprep.subr.bf16.mxu1 %v13848_v55 }
0x14d3   : > { %11038 = vmatpush3.bf16.msra.mxu1 %v13848_v55 }
0x14d4   : > { %11039 = vmatprep.subr.bf16.mxu1 %v13853_v8 }
0x14d7   : > { %11040 = vmatpush3.bf16.msra.mxu1 %v13853_v8 }
0x14d8   : > { %11073 = vmatprep.subr.bf16.mxu1 %v13071_v0 }
0x14f8   : > { %v2117_v51 = vpop.permute.xlu1 %2116 }
0x14f9   : > { %2120 = vst.msk [vmem:[%s13587_s26] sm:$0x1] %vm2119_vm10, %v2117_v51 }
0x158d   : > { %v11023_v52 = vpop.f32.mrb[56].mxu1 }
0x158e   : > { %v2329_v56 = vpop.f32.mrb[57].mxu1 }
0x158f   : > { %v11024_v17 = vpop.f32.mrb[58].mxu1 }
0x1590   : > { %v2345_v18 = vpack.c.bf16 %v11024_v17, %v11023_v52  ;;  %v2332_v44 = vpop.f32.mrb[59].mxu1 }
0x1591   : > { %v2344_v45 = vpack.c.bf16 %v2332_v44, %v2329_v56 }
0x1593   : > { %11041 = vmatprep.mubr.bf16.mxu1 %v2344_v45 }
0x1594   : > { %11042 = vmatmul.mubr.bf16.vlgmr.msra.gmra.mrb[60].mxu1 %v2345_v18 }
0x1595   : > { %11077 = vmatprep.mubr.msk.bf16.mxu1 %vm13072_vm0, %v13071_v0 }
0x1667   : > { %v11043_v61 = vpop.f32.mrb[60].mxu1 }
0x1668   : > { %v2389_v9 = vadd.f32 %v11043_v61, %v13401_v59  ;;  %v2380_v11 = vpop.f32.mrb[61].mxu1 }
0x1669   : > { %v2381_v19 = vadd.f32 %v2380_v11, %v13397_v57  ;;  %v11044_v21 = vpop.f32.mrb[62].mxu1 }
0x166a   : > { %v2401_v22 = vmul.f32 0.1, %v2389_v9  ;;  %v2392_v23 = vadd.f32 %v11044_v21, %v13404_v63  ;;  %v2383_v24 = vpop.f32.mrb[63].mxu1  ;;  %vm2397_vm11 = vcmp.gt.f32.partialorder %v2389_v9, 0.0 }
0x166b   : > { %v2399_v25 = vmul.f32 0.1, %v2381_v19  ;;  %v2384_v30 = vadd.f32 %v2383_v24, %v13399_v58  ;;  %vm2395_vm12 = vcmp.gt.f32.partialorder %v2381_v19, 0.0 }
0x166c   : > { %vm2398_vm13 = vcmp.gt.f32.partialorder %v2392_v23, 0.0  ;;  %v2402_v31 = vmul.f32 0.1, %v2392_v23  ;;  %v2405_v35 = vsel %vm2397_vm11, %v2389_v9, %v2401_v22  ;;  %vm2649_vm11 = vcmask 254144  }
0x166d   : > { %vm2396_vm14 = vcmp.gt.f32.partialorder %v2384_v30, 0.0  ;;  %v2400_v32 = vmul.f32 0.1, %v2384_v30  ;;  %v2403_v27 = vsel %vm2395_vm12, %v2381_v19, %v2399_v25  ;;  %v13999_v25 = vld [vmem:[%s16040_s6] sm:$0x1] }
0x166e   : > { %v2406_v37 = vsel %vm2398_vm13, %v2392_v23, %v2402_v31  ;;  %v14043_v31 = vld [vmem:[%s13251_s30 + $0x120] sm:$0xff]  }
0x166f   : > { %v2404_v39 = vsel %vm2396_vm14, %v2384_v30, %v2400_v32  ;;  %v2408_v40 = vpack.c.bf16 %v2406_v37, %v2405_v35  ;;  %v14038_v30 = vld [vmem:[%s13251_s30 + $0x118] sm:$0xff]   ;;  %v14048_v32 = vld [vmem:[%s13251_s30 + $0x128] sm:$0xff]   ;;  %v14053_v35 = vld [vmem:[%s13251_s30 + $0x130] sm:$0xff]  }
0x1670   : > { %v2407_v41 = vpack.c.bf16 %v2404_v39, %v2403_v27  ;;  %v14058_v37 = vld [vmem:[%s13251_s30 + $0x138] sm:$0xff]   ;;  %v9252_v27 = vld [vmem:[%s13304_s17 + $0x10] sm:$0xf] }
0x1672   : > { %11045 = vmatprep.subr.bf16.mxu0 %v2407_v41 }
0x1673   : > { %11046 = vmatpush3.bf16.msra.mxu0 %v2407_v41 }
0x1674   : > { %11047 = vmatprep.subr.bf16.mxu0 %v2408_v40 }
0x1677   : > { %11048 = vmatpush3.bf16.msra.mxu0 %v2408_v40 }
0x1678   : > { %11053 = vmatprep.subr.bf16.mxu0 %v13817_v12 }
0x167a   : > { %11050 = vmatmul.mubr.msk.bf16.vlgmr.msra.gmra.mrb[60].mxu0 %vm630_vm3, %v13753_v26 }
0x167b   : > { %11054 = vmatpush3.bf16.msra.mxu0 %v13817_v12 }
0x167c   : > { %11055 = vmatprep.subr.bf16.mxu0 %v13821_v46 }
0x167f   : > { %11056 = vmatpush3.bf16.msra.mxu0 %v13821_v46 }
0x1680   : > { %11057 = vmatprep.subr.bf16.mxu0 %v13828_v47 }
0x1683   : > { %11058 = vmatpush3.bf16.msra.mxu0 %v13828_v47 }
0x1684   : > { %11059 = vmatprep.subr.bf16.mxu0 %v13833_v48 }
0x1687   : > { %11060 = vmatpush3.bf16.msra.mxu0 %v13833_v48 }
0x1688   : > { %11061 = vmatprep.subr.bf16.mxu0 %v13838_v53 }
0x168b   : > { %11062 = vmatpush3.bf16.msra.mxu0 %v13838_v53 }
0x168c   : > { %11063 = vmatprep.subr.bf16.mxu0 %v13843_v54 }
0x168f   : > { %11064 = vmatpush3.bf16.msra.mxu0 %v13843_v54 }
0x1690   : > { %11065 = vmatprep.subr.bf16.mxu0 %v13848_v55 }
0x1693   : > { %11066 = vmatpush3.bf16.msra.mxu0 %v13848_v55 }
0x1694   : > { %11067 = vmatprep.subr.bf16.mxu0 %v13853_v8 }
0x1697   : > { %11068 = vmatpush3.bf16.msra.mxu0 %v13853_v8 }
0x1698   : > { %11101 = vmatprep.subr.bf16.mxu0 %v13071_v0 }
0x174d   : > { %v11051_v42 = vpop.f32.mrb[60].mxu0 }
0x174e   : > { %v2443_v1 = vpop.f32.mrb[61].mxu0 }
0x174f   : > { %v11052_v2 = vpop.f32.mrb[62].mxu0 }
0x1750   : > { %v2459_v3 = vpack.c.bf16 %v11052_v2, %v11051_v42  ;;  %v2446_v4 = vpop.f32.mrb[63].mxu0 }
0x1751   : > { %v2458_v43 = vpack.c.bf16 %v2446_v4, %v2443_v1 }
0x1753   : > { %11069 = vmatprep.mubr.bf16.mxu0 %v2458_v43 }
0x1754   : > { %11070 = vmatmul.mubr.bf16.vlgmr.msra.gmra.mrb[64].mxu0 %v2459_v3 }
0x1755   : > { %11102 = vmatpush3.bf16.msra.mxu0 %v13936_v5  ;;  %11117 = vmatprep.mubr.msk.bf16.mxu0 %vm13072_vm0, %v13071_v0 }
0x1756   : > { %11103 = vmatprep.subr.bf16.mxu0 %v13071_v0 }
0x1759   : > { %11104 = vmatpush3.bf16.msra.mxu0 %v13945_v60 }
0x175a   : > { %11105 = vmatprep.subr.bf16.mxu0 %v13071_v0 }
0x175d   : > { %11106 = vmatpush3.bf16.msra.mxu0 %v13952_v13 }
0x175e   : > { %11107 = vmatprep.subr.bf16.mxu0 %v13071_v0 }
0x1761   : > { %11108 = vmatpush3.bf16.msra.mxu0 %v13959_v6 }
0x1762   : > { %11109 = vmatprep.subr.bf16.mxu0 %v13071_v0 }
0x1765   : > { %11110 = vmatpush3.bf16.msra.mxu0 %v13966_v14 }
0x1766   : > { %11111 = vmatprep.subr.bf16.mxu0 %v13071_v0 }
0x1769   : > { %11112 = vmatpush3.bf16.msra.mxu0 %v13973_v7 }
0x176a   : > { %11113 = vmatprep.subr.bf16.mxu0 %v13071_v0 }
0x176d   : > { %11114 = vmatpush3.bf16.msra.mxu0 %v13980_v20 }
0x176e   : > { %11115 = vmatprep.subr.bf16.mxu0 %v13071_v0 }
0x1771   : > { %11116 = vmatpush3.bf16.msra.mxu0 %v13987_v15 }
0x1827   : > { %v11071_v50 = vpop.f32.mrb[64].mxu0 }
0x1828   : > { %v2503_v16 = vadd.f32 %v11071_v50, %v13401_v59  ;;  %v2494_v49 = vpop.f32.mrb[65].mxu0 }
0x1829   : > { %v2495_v51 = vadd.f32 %v2494_v49, %v13397_v57  ;;  %v11072_v52 = vpop.f32.mrb[66].mxu0 }
0x182a   : > { %v2515_v56 = vmul.f32 0.1, %v2503_v16  ;;  %v2506_v17 = vadd.f32 %v11072_v52, %v13404_v63  ;;  %v2497_v18 = vpop.f32.mrb[67].mxu0  ;;  %vm2511_vm15 = vcmp.gt.f32.partialorder %v2503_v16, 0.0 }
0x182b   : > { %v2513_v44 = vmul.f32 0.1, %v2495_v51  ;;  %v2498_v45 = vadd.f32 %v2497_v18, %v13399_v58  ;;  %vm2509_vm4 = vcmp.gt.f32.partialorder %v2495_v51, 0.0 }
0x182c   : > { %vm2512_vm5 = vcmp.gt.f32.partialorder %v2506_v17, 0.0  ;;  %v2516_v61 = vmul.f32 0.1, %v2506_v17  ;;  %v2519_v11 = vsel %vm2511_vm15, %v2503_v16, %v2515_v56 }
0x182d   : > { %vm2510_vm6 = vcmp.gt.f32.partialorder %v2498_v45, 0.0  ;;  %v2514_v9 = vmul.f32 0.1, %v2498_v45  ;;  %v2517_v21 = vsel %vm2509_vm4, %v2495_v51, %v2513_v44 }
0x182e   : > { %v2520_v19 = vsel %vm2512_vm5, %v2506_v17, %v2516_v61 }
0x182f   : > { %v2522_v22 = vpack.c.bf16 %v2520_v19, %v2519_v11  ;;  %v2518_v23 = vsel %vm2510_vm6, %v2498_v45, %v2514_v9 }
0x1830   : > { %v2521_v24 = vpack.c.bf16 %v2518_v23, %v2517_v21 }
0x1832   : > { %11074 = vmatpush3.bf16.msra.mxu1 %v2521_v24 }
0x1833   : > { %11075 = vmatprep.subr.bf16.mxu1 %v13071_v0 }
0x1836   : > { %11076 = vmatpush3.bf16.msra.mxu1 %v2522_v22 }
0x1837   : > { %11081 = vmatprep.subr.bf16.mxu1 %v13071_v0 }
0x1839   : > { %11078 = vmatmul.mubr.msk.bf16.vlgmr.msra.gmra.mrb[64].mxu1 %vm630_vm3, %v13999_v25 }
0x183a   : > { %11082 = vmatpush3.bf16.msra.mxu1 %v13817_v12  ;;  %11097 = vmatprep.mubr.msk.bf16.mxu1 %vm13072_vm0, %v13071_v0 }
0x183b   : > { %11083 = vmatprep.subr.bf16.mxu1 %v13071_v0 }
0x183e   : > { %11084 = vmatpush3.bf16.msra.mxu1 %v13821_v46  ;;  %v14022_v46 = vld [vmem:[%s13251_s30 + $0x100] sm:$0xff]  }
0x183f   : > { %11085 = vmatprep.subr.bf16.mxu1 %v13071_v0 }
0x1842   : > { %11086 = vmatpush3.bf16.msra.mxu1 %v13828_v47 }
0x1843   : > { %11087 = vmatprep.subr.bf16.mxu1 %v13071_v0 }
0x1846   : > { %11088 = vmatpush3.bf16.msra.mxu1 %v13833_v48 }
0x1847   : > { %11089 = vmatprep.subr.bf16.mxu1 %v13071_v0 }
0x184a   : > { %11090 = vmatpush3.bf16.msra.mxu1 %v13838_v53 }
0x184b   : > { %11091 = vmatprep.subr.bf16.mxu1 %v13071_v0 }
0x184e   : > { %11092 = vmatpush3.bf16.msra.mxu1 %v13843_v54 }
0x184f   : > { %11093 = vmatprep.subr.bf16.mxu1 %v13071_v0 }
0x1852   : > { %11094 = vmatpush3.bf16.msra.mxu1 %v13848_v55  ;;  %v14026_v55 = vld [vmem:[%s13251_s30 + $0x108] sm:$0xff]  }
0x1853   : > { %11095 = vmatprep.subr.bf16.mxu1 %v13071_v0 }
0x1856   : > { %11096 = vmatpush3.bf16.msra.mxu1 %v13853_v8  ;;  %v14033_v8 = vld [vmem:[%s13251_s30 + $0x110] sm:$0xff]  }
0x1857   : > { %11121 = vmatprep.subr.bf16.mxu1 %v13071_v0 }
0x190c   : > { %v2557_v12 = vpop.f32.mrb[64].mxu1 }
0x190d   : > { %v2563_v47 = vpack.c.bf16 %v2557_v12, %v2557_v12  ;;  %v11079_v48 = vpop.f32.mrb[65].mxu1 }
0x190e   : > { %v2560_v53 = vpop.f32.mrb[66].mxu1 }
0x190f   : > { %v11080_v54 = vpop.f32.mrb[67].mxu1  ;;  %11098 = vmatmul.mubr.bf16.vlgmr.msra.gmra.mrb[68].mxu1 %v2563_v47 }
0x1910   : > { %11122 = vmatpush3.bf16.msra.mxu1 %v14022_v46  ;;  %11137 = vmatprep.mubr.msk.bf16.mxu1 %vm13072_vm0, %v13071_v0 }
0x1911   : > { %11123 = vmatprep.subr.bf16.mxu1 %v13071_v0 }
0x1914   : > { %11124 = vmatpush3.bf16.msra.mxu1 %v14026_v55 }
0x1915   : > { %11125 = vmatprep.subr.bf16.mxu1 %v13071_v0 }
0x1918   : > { %11126 = vmatpush3.bf16.msra.mxu1 %v14033_v8 }
0x1919   : > { %11127 = vmatprep.subr.bf16.mxu1 %v13071_v0 }
0x191c   : > { %11128 = vmatpush3.bf16.msra.mxu1 %v14038_v30 }
0x191d   : > { %11129 = vmatprep.subr.bf16.mxu1 %v13071_v0 }
0x1920   : > { %11130 = vmatpush3.bf16.msra.mxu1 %v14043_v31 }
0x1921   : > { %11131 = vmatprep.subr.bf16.mxu1 %v13071_v0 }
0x1924   : > { %11132 = vmatpush3.bf16.msra.mxu1 %v14048_v32 }
0x1925   : > { %11133 = vmatprep.subr.bf16.mxu1 %v13071_v0 }
0x1928   : > { %11134 = vmatpush3.bf16.msra.mxu1 %v14053_v35 }
0x1929   : > { %11135 = vmatprep.subr.bf16.mxu1 %v13071_v0 }
0x192c   : > { %11136 = vmatpush3.bf16.msra.mxu1 %v14058_v37 }
0x192f   : > { %11138 = vmatmul.mubr.bf16.vlgmr.msra.gmra.mrb[72].mxu1 %v9252_v27 }
0x1930   : > { %11179 = vmatprep.mubr.msk.bf16.mxu1 %vm630_vm3, %v13861_v62 }
0x19e2   : > { %v2598_v39 = vpop.f32.mrb[68].mxu1 }
0x19e3   : > { %v2604_v40 = vpack.c.bf16 %v2598_v39, %v2598_v39  ;;  %v11099_v41 = vpop.f32.mrb[69].mxu1 }
0x19e4   : > { %v2601_v42 = vpop.f32.mrb[70].mxu1 }
0x19e5   : > { %v11100_v1 = vpop.f32.mrb[71].mxu1  ;;  %11118 = vmatmul.mubr.bf16.vlgmr.msra.gmra.mrb[68].mxu0 %v2604_v40 }
0x19e6   : > { %11143 = vmatprep.mubr.msk.bf16.mxu0 %vm546_vm1, %v13868_v10 }
0x1a02   : > { %v2752_v2 = vpop.f32.mrb[72].mxu1 }
0x1a03   : > { %v2758_v3 = vpack.c.bf16 %v2752_v2, %v2752_v2  ;;  %v11139_v4 = vpop.f32.mrb[73].mxu1 }
0x1a04   : > { %v2755_v43 = vpop.f32.mrb[74].mxu1 }
0x1a05   : > { %v2760_v50 = vsel %vm553_vm2, %v2758_v3, 0  ;;  %v11140_v16 = vpop.f32.mrb[75].mxu1  ;;  %12685 = vmatprep.subr.msk.bf16.mxu0 %vm553_vm2, %v2758_v3 }
0x1a06   : > { %11142 = vmatpush3.bf16.msra.mxu0 %v2760_v50 }
0x1a09   : > { %11144 = vmatmul.mubr.msk.bf16.vlgmr.msra.gmra.mrb[72].mxu0 %vm546_vm1, %v13877_v34 }
0x1a0a   : > { %11151 = vmatprep.mubr.msk.bf16.mxu0 %vm630_vm3, %v13861_v62 }
0x1ab8   : > { %v2639_v49 = vpop.f32.mrb[68].mxu0 }
0x1ab9   : > { %v2640_v51 = vadd.f32 %v2639_v49, %v13583_v38  ;;  %v11119_v52 = vpop.f32.mrb[69].mxu0 }
0x1aba   : > { %v2642_v56 = vpop.f32.mrb[70].mxu0 }
0x1abb   : > { %2646 = vrot.lane.b32.xlu0 %v2640_v51, %s13076_s24  ;;  %v11120_v17 = vpop.f32.mrb[71].mxu0  ;;  %s13089_s24 = smov [#allocation6]  }
0x1adc   : > { %v11145_v18 = vpop.f32.mrb[72].mxu0 }
0x1add   : > { %v2805_v44 = vadd.f32 %v11145_v18, %v13359_v28  ;;  %v2796_v45 = vpop.f32.mrb[73].mxu0 }
0x1ade   : > { %v2797_v61 = vadd.f32 %v2796_v45, %v13361_v29  ;;  %v11146_v9 = vpop.f32.mrb[74].mxu0 }
0x1adf   : > { %v2817_v11 = vmul.f32 0.1, %v2805_v44  ;;  %v2808_v19 = vadd.f32 %v11146_v9, %v13364_v33  ;;  %v2799_v21 = vpop.f32.mrb[75].mxu0  ;;  %vm2813_vm7 = vcmp.gt.f32.partialorder %v2805_v44, 0.0 }
0x1ae0   : > { %v2815_v22 = vmul.f32 0.1, %v2797_v61  ;;  %v2800_v23 = vadd.f32 %v2799_v21, %v13367_v36  ;;  %vm2811_vm8 = vcmp.gt.f32.partialorder %v2797_v61, 0.0 }
0x1ae1   : > { %vm2814_vm9 = vcmp.gt.f32.partialorder %v2808_v19, 0.0  ;;  %v2818_v24 = vmul.f32 0.1, %v2808_v19  ;;  %v2821_v47 = vsel %vm2813_vm7, %v2805_v44, %v2817_v11 }
0x1ae2   : > { %vm2812_vm10 = vcmp.gt.f32.partialorder %v2800_v23, 0.0  ;;  %v2816_v12 = vmul.f32 0.1, %v2800_v23  ;;  %v2819_v53 = vsel %vm2811_vm8, %v2797_v61, %v2815_v22 }
0x1ae3   : > { %v2822_v48 = vsel %vm2814_vm9, %v2808_v19, %v2818_v24 }
0x1ae4   : > { %v2820_v54 = vsel %vm2812_vm10, %v2800_v23, %v2816_v12  ;;  %v2824_v27 = vpack.c.bf16 %v2822_v48, %v2821_v47 }
0x1ae5   : > { %v2823_v39 = vpack.c.bf16 %v2820_v54, %v2819_v53 }
0x1ae7   : > { %11147 = vmatprep.subr.bf16.mxu0 %v2823_v39 }
0x1ae8   : > { %11148 = vmatpush3.bf16.msra.mxu0 %v2823_v39 }
0x1ae9   : > { %11149 = vmatprep.subr.bf16.mxu0 %v2824_v27 }
0x1aec   : > { %11150 = vmatpush3.bf16.msra.mxu0 %v2824_v27 }
0x1aed   : > { %11155 = vmatprep.subr.bf16.mxu0 %v14022_v46 }
0x1aef   : > { %11152 = vmatmul.mubr.msk.bf16.vlgmr.msra.gmra.mrb[76].mxu0 %vm630_vm3, %v13753_v26 }
0x1af0   : > { %11156 = vmatpush3.bf16.msra.mxu0 %v14022_v46 }
0x1af1   : > { %11157 = vmatprep.subr.bf16.mxu0 %v14026_v55 }
0x1af4   : > { %11158 = vmatpush3.bf16.msra.mxu0 %v14026_v55 }
0x1af5   : > { %11159 = vmatprep.subr.bf16.mxu0 %v14033_v8 }
0x1af8   : > { %11160 = vmatpush3.bf16.msra.mxu0 %v14033_v8 }
0x1af9   : > { %11161 = vmatprep.subr.bf16.mxu0 %v14038_v30 }
0x1afc   : > { %11162 = vmatpush3.bf16.msra.mxu0 %v14038_v30 }
0x1afd   : > { %11163 = vmatprep.subr.bf16.mxu0 %v14043_v31 }
0x1b00   : > { %11164 = vmatpush3.bf16.msra.mxu0 %v14043_v31 }
0x1b01   : > { %11165 = vmatprep.subr.bf16.mxu0 %v14048_v32 }
0x1b04   : > { %11166 = vmatpush3.bf16.msra.mxu0 %v14048_v32 }
0x1b05   : > { %11167 = vmatprep.subr.bf16.mxu0 %v14053_v35 }
0x1b08   : > { %11168 = vmatpush3.bf16.msra.mxu0 %v14053_v35 }
0x1b09   : > { %11169 = vmatprep.subr.bf16.mxu0 %v14058_v37 }
0x1b0c   : > { %11170 = vmatpush3.bf16.msra.mxu0 %v14058_v37 }
0x1b0d   : > { %11203 = vmatprep.subr.bf16.mxu0 %v13071_v0 }
0x1b2d   : > { %v2647_v40 = vpop.permute.xlu0 %2646 }
0x1b2e   : > { %2650 = vst.msk [vmem:[%s13587_s26] sm:$0x1] %vm2649_vm11, %v2647_v40 }
0x1bc2   : > { %v11153_v41 = vpop.f32.mrb[76].mxu0 }
0x1bc3   : > { %v2859_v42 = vpop.f32.mrb[77].mxu0 }
0x1bc4   : > { %v11154_v1 = vpop.f32.mrb[78].mxu0 }
0x1bc5   : > { %v2875_v2 = vpack.c.bf16 %v11154_v1, %v11153_v41  ;;  %v2862_v3 = vpop.f32.mrb[79].mxu0 }
0x1bc6   : > { %v2874_v4 = vpack.c.bf16 %v2862_v3, %v2859_v42 }
0x1bc8   : > { %11171 = vmatprep.mubr.bf16.mxu0 %v2874_v4 }
0x1bc9   : > { %11172 = vmatmul.mubr.bf16.vlgmr.msra.gmra.mrb[80].mxu0 %v2875_v2 }
0x1bca   : > { %11207 = vmatprep.mubr.msk.bf16.mxu0 %vm13072_vm0, %v13071_v0 }
0x1c9c   : > { %v11173_v43 = vpop.f32.mrb[80].mxu0 }
0x1c9d   : > { %v2919_v50 = vadd.f32 %v11173_v43, %v13401_v59  ;;  %v2910_v16 = vpop.f32.mrb[81].mxu0 }
0x1c9e   : > { %v2911_v49 = vadd.f32 %v2910_v16, %v13397_v57  ;;  %v11174_v51 = vpop.f32.mrb[82].mxu0 }
0x1c9f   : > { %v2931_v52 = vmul.f32 0.1, %v2919_v50  ;;  %v2922_v56 = vadd.f32 %v11174_v51, %v13404_v63  ;;  %v2913_v17 = vpop.f32.mrb[83].mxu0  ;;  %vm2927_vm12 = vcmp.gt.f32.partialorder %v2919_v50, 0.0 }
0x1ca0   : > { %v2929_v18 = vmul.f32 0.1, %v2911_v49  ;;  %v2914_v44 = vadd.f32 %v2913_v17, %v13399_v58  ;;  %vm2925_vm13 = vcmp.gt.f32.partialorder %v2911_v49, 0.0 }
0x1ca1   : > { %vm2928_vm14 = vcmp.gt.f32.partialorder %v2922_v56, 0.0  ;;  %v2932_v45 = vmul.f32 0.1, %v2922_v56  ;;  %v2935_v9 = vsel %vm2927_vm12, %v2919_v50, %v2931_v52  ;;  %vm3179_vm12 = vcmask 319744  }
0x1ca2   : > { %vm2926_vm15 = vcmp.gt.f32.partialorder %v2914_v44, 0.0  ;;  %v2930_v61 = vmul.f32 0.1, %v2914_v44  ;;  %v2933_v19 = vsel %vm2925_vm13, %v2911_v49, %v2929_v18  ;;  %v14183_v18 = vld [vmem:[%s13251_s30 + $0x158] sm:$0xff]  }
0x1ca3   : > { %v2936_v11 = vsel %vm2928_vm14, %v2922_v56, %v2932_v45  ;;  %v14193_v45 = vld [vmem:[%s13251_s30 + $0x168] sm:$0xff]  }
0x1ca4   : > { %v2934_v21 = vsel %vm2926_vm15, %v2914_v44, %v2930_v61  ;;  %v2938_v22 = vpack.c.bf16 %v2936_v11, %v2935_v9  ;;  %v14188_v44 = vld [vmem:[%s13251_s30 + $0x160] sm:$0xff]   ;;  %v14198_v61 = vld [vmem:[%s13251_s30 + $0x170] sm:$0xff]   ;;  %v14203_v9 = vld [vmem:[%s13251_s30 + $0x178] sm:$0xff]  }
0x1ca5   : > { %v2937_v23 = vpack.c.bf16 %v2934_v21, %v2933_v19  ;;  %v9284_v11 = vld [vmem:[%s13304_s17 + $0x14] sm:$0xf] }
0x1ca7   : > { %11175 = vmatprep.subr.bf16.mxu1 %v2937_v23 }
0x1ca8   : > { %11176 = vmatpush3.bf16.msra.mxu1 %v2937_v23 }
0x1ca9   : > { %11177 = vmatprep.subr.bf16.mxu1 %v2938_v22 }
0x1cac   : > { %11178 = vmatpush3.bf16.msra.mxu1 %v2938_v22 }
0x1cad   : > { %11183 = vmatprep.subr.bf16.mxu1 %v14022_v46 }
0x1caf   : > { %11180 = vmatmul.mubr.msk.bf16.vlgmr.msra.gmra.mrb[76].mxu1 %vm630_vm3, %v13753_v26 }
0x1cb0   : > { %11184 = vmatpush3.bf16.msra.mxu1 %v14022_v46 }
0x1cb1   : > { %11185 = vmatprep.subr.bf16.mxu1 %v14026_v55 }
0x1cb4   : > { %11186 = vmatpush3.bf16.msra.mxu1 %v14026_v55 }
0x1cb5   : > { %11187 = vmatprep.subr.bf16.mxu1 %v14033_v8 }
0x1cb8   : > { %11188 = vmatpush3.bf16.msra.mxu1 %v14033_v8 }
0x1cb9   : > { %11189 = vmatprep.subr.bf16.mxu1 %v14038_v30 }
0x1cbc   : > { %11190 = vmatpush3.bf16.msra.mxu1 %v14038_v30 }
0x1cbd   : > { %11191 = vmatprep.subr.bf16.mxu1 %v14043_v31 }
0x1cc0   : > { %11192 = vmatpush3.bf16.msra.mxu1 %v14043_v31 }
0x1cc1   : > { %11193 = vmatprep.subr.bf16.mxu1 %v14048_v32 }
0x1cc4   : > { %11194 = vmatpush3.bf16.msra.mxu1 %v14048_v32 }
0x1cc5   : > { %11195 = vmatprep.subr.bf16.mxu1 %v14053_v35 }
0x1cc8   : > { %11196 = vmatpush3.bf16.msra.mxu1 %v14053_v35 }
0x1cc9   : > { %11197 = vmatprep.subr.bf16.mxu1 %v14058_v37 }
0x1ccc   : > { %11198 = vmatpush3.bf16.msra.mxu1 %v14058_v37 }
0x1ccd   : > { %11231 = vmatprep.subr.bf16.mxu1 %v13071_v0 }
0x1d82   : > { %v11181_v26 = vpop.f32.mrb[76].mxu1 }
0x1d83   : > { %v2973_v24 = vpop.f32.mrb[77].mxu1 }
0x1d84   : > { %v11182_v12 = vpop.f32.mrb[78].mxu1 }
0x1d85   : > { %v2989_v47 = vpack.c.bf16 %v11182_v12, %v11181_v26  ;;  %v2976_v48 = vpop.f32.mrb[79].mxu1 }
0x1d86   : > { %v2988_v53 = vpack.c.bf16 %v2976_v48, %v2973_v24 }
0x1d88   : > { %11199 = vmatprep.mubr.bf16.mxu1 %v2988_v53 }
0x1d89   : > { %11200 = vmatmul.mubr.bf16.vlgmr.msra.gmra.mrb[80].mxu1 %v2989_v47 }
0x1d8a   : > { %11232 = vmatpush3.bf16.msra.mxu1 %v13936_v5  ;;  %11247 = vmatprep.mubr.msk.bf16.mxu1 %vm13072_vm0, %v13071_v0 }
0x1d8b   : > { %11233 = vmatprep.subr.bf16.mxu1 %v13071_v0 }
0x1d8e   : > { %11234 = vmatpush3.bf16.msra.mxu1 %v13945_v60 }
0x1d8f   : > { %11235 = vmatprep.subr.bf16.mxu1 %v13071_v0 }
0x1d92   : > { %11236 = vmatpush3.bf16.msra.mxu1 %v13952_v13 }
0x1d93   : > { %11237 = vmatprep.subr.bf16.mxu1 %v13071_v0 }
0x1d96   : > { %11238 = vmatpush3.bf16.msra.mxu1 %v13959_v6 }
0x1d97   : > { %11239 = vmatprep.subr.bf16.mxu1 %v13071_v0 }
0x1d9a   : > { %11240 = vmatpush3.bf16.msra.mxu1 %v13966_v14 }
0x1d9b   : > { %11241 = vmatprep.subr.bf16.mxu1 %v13071_v0 }
0x1d9e   : > { %11242 = vmatpush3.bf16.msra.mxu1 %v13973_v7 }
0x1d9f   : > { %11243 = vmatprep.subr.bf16.mxu1 %v13071_v0 }
0x1da2   : > { %11244 = vmatpush3.bf16.msra.mxu1 %v13980_v20 }
0x1da3   : > { %11245 = vmatprep.subr.bf16.mxu1 %v13071_v0 }
0x1da6   : > { %11246 = vmatpush3.bf16.msra.mxu1 %v13987_v15 }
0x1e5c   : > { %v11201_v54 = vpop.f32.mrb[80].mxu1 }
0x1e5d   : > { %v3033_v27 = vadd.f32 %v11201_v54, %v13401_v59  ;;  %v3024_v39 = vpop.f32.mrb[81].mxu1 }
0x1e5e   : > { %v3025_v40 = vadd.f32 %v3024_v39, %v13397_v57  ;;  %v11202_v41 = vpop.f32.mrb[82].mxu1 }
0x1e5f   : > { %v3045_v42 = vmul.f32 0.1, %v3033_v27  ;;  %v3036_v1 = vadd.f32 %v11202_v41, %v13404_v63  ;;  %v3027_v2 = vpop.f32.mrb[83].mxu1  ;;  %vm3041_vm4 = vcmp.gt.f32.partialorder %v3033_v27, 0.0 }
0x1e60   : > { %v3043_v3 = vmul.f32 0.1, %v3025_v40  ;;  %v3028_v4 = vadd.f32 %v3027_v2, %v13399_v58  ;;  %vm3039_vm5 = vcmp.gt.f32.partialorder %v3025_v40, 0.0 }
0x1e61   : > { %vm3042_vm6 = vcmp.gt.f32.partialorder %v3036_v1, 0.0  ;;  %v3046_v43 = vmul.f32 0.1, %v3036_v1  ;;  %v3049_v16 = vsel %vm3041_vm4, %v3033_v27, %v3045_v42 }
0x1e62   : > { %vm3040_vm7 = vcmp.gt.f32.partialorder %v3028_v4, 0.0  ;;  %v3044_v50 = vmul.f32 0.1, %v3028_v4  ;;  %v3047_v51 = vsel %vm3039_vm5, %v3025_v40, %v3043_v3 }
0x1e63   : > { %v3050_v49 = vsel %vm3042_vm6, %v3036_v1, %v3046_v43 }
0x1e64   : > { %v3052_v52 = vpack.c.bf16 %v3050_v49, %v3049_v16  ;;  %v3048_v56 = vsel %vm3040_vm7, %v3028_v4, %v3044_v50 }
0x1e65   : > { %v3051_v17 = vpack.c.bf16 %v3048_v56, %v3047_v51 }
0x1e67   : > { %11204 = vmatpush3.bf16.msra.mxu0 %v3051_v17 }
0x1e68   : > { %11205 = vmatprep.subr.bf16.mxu0 %v13071_v0 }
0x1e6b   : > { %11206 = vmatpush3.bf16.msra.mxu0 %v3052_v52 }
0x1e6c   : > { %11211 = vmatprep.subr.bf16.mxu0 %v13071_v0 }
0x1e6e   : > { %11208 = vmatmul.mubr.msk.bf16.vlgmr.msra.gmra.mrb[84].mxu0 %vm630_vm3, %v13999_v25 }
0x1e6f   : > { %11212 = vmatpush3.bf16.msra.mxu0 %v14022_v46  ;;  %11227 = vmatprep.mubr.msk.bf16.mxu0 %vm13072_vm0, %v13071_v0 }
0x1e70   : > { %11213 = vmatprep.subr.bf16.mxu0 %v13071_v0 }
0x1e73   : > { %11214 = vmatpush3.bf16.msra.mxu0 %v14026_v55  ;;  %v14167_v55 = vld [vmem:[%s13251_s30 + $0x140] sm:$0xff]  }
0x1e74   : > { %11215 = vmatprep.subr.bf16.mxu0 %v13071_v0 }
0x1e77   : > { %11216 = vmatpush3.bf16.msra.mxu0 %v14033_v8 }
0x1e78   : > { %11217 = vmatprep.subr.bf16.mxu0 %v13071_v0 }
0x1e7b   : > { %11218 = vmatpush3.bf16.msra.mxu0 %v14038_v30 }
0x1e7c   : > { %11219 = vmatprep.subr.bf16.mxu0 %v13071_v0 }
0x1e7f   : > { %11220 = vmatpush3.bf16.msra.mxu0 %v14043_v31 }
0x1e80   : > { %11221 = vmatprep.subr.bf16.mxu0 %v13071_v0 }
0x1e83   : > { %11222 = vmatpush3.bf16.msra.mxu0 %v14048_v32 }
0x1e84   : > { %11223 = vmatprep.subr.bf16.mxu0 %v13071_v0 }
0x1e87   : > { %11224 = vmatpush3.bf16.msra.mxu0 %v14053_v35  ;;  %v14171_v35 = vld [vmem:[%s13251_s30 + $0x148] sm:$0xff]  }
0x1e88   : > { %11225 = vmatprep.subr.bf16.mxu0 %v13071_v0 }
0x1e8b   : > { %11226 = vmatpush3.bf16.msra.mxu0 %v14058_v37  ;;  %v14178_v37 = vld [vmem:[%s13251_s30 + $0x150] sm:$0xff]  }
0x1e8c   : > { %11251 = vmatprep.subr.bf16.mxu0 %v13071_v0 }
0x1f41   : > { %v3087_v46 = vpop.f32.mrb[84].mxu0 }
0x1f42   : > { %v3093_v8 = vpack.c.bf16 %v3087_v46, %v3087_v46  ;;  %v11209_v30 = vpop.f32.mrb[85].mxu0 }
0x1f43   : > { %v3090_v31 = vpop.f32.mrb[86].mxu0 }
0x1f44   : > { %v11210_v32 = vpop.f32.mrb[87].mxu0  ;;  %11228 = vmatmul.mubr.bf16.vlgmr.msra.gmra.mrb[88].mxu0 %v3093_v8  ;;  %v14227_v31 = vld [vmem:[%s16038_s4 + $0x8] sm:$0xff]  }
0x1f45   : > { %11252 = vmatpush3.bf16.msra.mxu0 %v14167_v55  ;;  %11267 = vmatprep.mubr.msk.bf16.mxu0 %vm13072_vm0, %v13071_v0 }
0x1f46   : > { %11253 = vmatprep.subr.bf16.mxu0 %v13071_v0 }
0x1f49   : > { %11254 = vmatpush3.bf16.msra.mxu0 %v14171_v35 }
0x1f4a   : > { %11255 = vmatprep.subr.bf16.mxu0 %v13071_v0 }
0x1f4d   : > { %11256 = vmatpush3.bf16.msra.mxu0 %v14178_v37 }
0x1f4e   : > { %11257 = vmatprep.subr.bf16.mxu0 %v13071_v0 }
0x1f51   : > { %11258 = vmatpush3.bf16.msra.mxu0 %v14183_v18 }
0x1f52   : > { %11259 = vmatprep.subr.bf16.mxu0 %v13071_v0 }
0x1f55   : > { %11260 = vmatpush3.bf16.msra.mxu0 %v14188_v44 }
0x1f56   : > { %11261 = vmatprep.subr.bf16.mxu0 %v13071_v0 }
0x1f59   : > { %11262 = vmatpush3.bf16.msra.mxu0 %v14193_v45 }
0x1f5a   : > { %11263 = vmatprep.subr.bf16.mxu0 %v13071_v0 }
0x1f5d   : > { %11264 = vmatpush3.bf16.msra.mxu0 %v14198_v61 }
0x1f5e   : > { %11265 = vmatprep.subr.bf16.mxu0 %v13071_v0 }
0x1f61   : > { %11266 = vmatpush3.bf16.msra.mxu0 %v14203_v9 }
0x1f64   : > { %11268 = vmatmul.mubr.bf16.vlgmr.msra.gmra.mrb[92].mxu0 %v9284_v11 }
0x1f65   : > { %11309 = vmatprep.mubr.msk.bf16.mxu0 %vm630_vm3, %v13861_v62 }
0x2017   : > { %v3128_v19 = vpop.f32.mrb[88].mxu0 }
0x2018   : > { %v3134_v21 = vpack.c.bf16 %v3128_v19, %v3128_v19  ;;  %v11229_v22 = vpop.f32.mrb[89].mxu0 }
0x2019   : > { %v3131_v23 = vpop.f32.mrb[90].mxu0 }
0x201a   : > { %v11230_v26 = vpop.f32.mrb[91].mxu0  ;;  %11248 = vmatmul.mubr.bf16.vlgmr.msra.gmra.mrb[84].mxu1 %v3134_v21 }
0x201b   : > { %11273 = vmatprep.mubr.msk.bf16.mxu1 %vm546_vm1, %v13868_v10 }
0x2037   : > { %v3282_v24 = vpop.f32.mrb[92].mxu0 }
0x2038   : > { %v3288_v12 = vpack.c.bf16 %v3282_v24, %v3282_v24  ;;  %v11269_v47 = vpop.f32.mrb[93].mxu0 }
0x2039   : > { %v3285_v48 = vpop.f32.mrb[94].mxu0 }
0x203a   : > { %v3290_v53 = vsel %vm553_vm2, %v3288_v12, 0  ;;  %v11270_v54 = vpop.f32.mrb[95].mxu0  ;;  %12686 = vmatprep.subr.msk.bf16.mxu1 %vm553_vm2, %v3288_v12 }
0x203b   : > { %11272 = vmatpush3.bf16.msra.mxu1 %v3290_v53 }
0x203e   : > { %11274 = vmatmul.mubr.msk.bf16.vlgmr.msra.gmra.mrb[88].mxu1 %vm546_vm1, %v13877_v34 }
0x203f   : > { %11281 = vmatprep.mubr.msk.bf16.mxu1 %vm630_vm3, %v13861_v62 }
0x20ed   : > { %v3169_v27 = vpop.f32.mrb[84].mxu1 }
0x20ee   : > { %v3170_v39 = vadd.f32 %v3169_v27, %v13583_v38  ;;  %v11249_v10 = vpop.f32.mrb[85].mxu1 }
0x20ef   : > { %v3172_v40 = vpop.f32.mrb[86].mxu1 }
0x20f0   : > { %3176 = vrot.lane.b32.xlu1 %v3170_v39, %s13077_s21  ;;  %v11250_v41 = vpop.f32.mrb[87].mxu1  ;;  %s13078_s21 = smov 40  }
0x2111   : > { %v11275_v42 = vpop.f32.mrb[88].mxu1 }
0x2112   : > { %v3335_v1 = vadd.f32 %v11275_v42, %v13359_v28  ;;  %v3326_v2 = vpop.f32.mrb[89].mxu1 }
0x2113   : > { %v3327_v3 = vadd.f32 %v3326_v2, %v13361_v29  ;;  %v11276_v4 = vpop.f32.mrb[90].mxu1 }
0x2114   : > { %v3347_v43 = vmul.f32 0.1, %v3335_v1  ;;  %v3338_v34 = vadd.f32 %v11276_v4, %v13364_v33  ;;  %v3329_v50 = vpop.f32.mrb[91].mxu1  ;;  %vm3343_vm8 = vcmp.gt.f32.partialorder %v3335_v1, 0.0 }
0x2115   : > { %v3345_v62 = vmul.f32 0.1, %v3327_v3  ;;  %v3330_v16 = vadd.f32 %v3329_v50, %v13367_v36  ;;  %vm3341_vm9 = vcmp.gt.f32.partialorder %v3327_v3, 0.0 }
0x2116   : > { %vm3344_vm10 = vcmp.gt.f32.partialorder %v3338_v34, 0.0  ;;  %v3348_v49 = vmul.f32 0.1, %v3338_v34  ;;  %v3351_v52 = vsel %vm3343_vm8, %v3335_v1, %v3347_v43 }
0x2117   : > { %vm3342_vm11 = vcmp.gt.f32.partialorder %v3330_v16, 0.0  ;;  %v3346_v51 = vmul.f32 0.1, %v3330_v16  ;;  %v3349_v17 = vsel %vm3341_vm9, %v3327_v3, %v3345_v62 }
0x2118   : > { %v3352_v56 = vsel %vm3344_vm10, %v3338_v34, %v3348_v49 }
0x2119   : > { %v3350_v46 = vsel %vm3342_vm11, %v3330_v16, %v3346_v51  ;;  %v3354_v8 = vpack.c.bf16 %v3352_v56, %v3351_v52 }
0x211a   : > { %v3353_v30 = vpack.c.bf16 %v3350_v46, %v3349_v17 }
0x211c   : > { %11277 = vmatprep.subr.bf16.mxu1 %v3353_v30 }
0x211d   : > { %11278 = vmatpush3.bf16.msra.mxu1 %v3353_v30 }
0x211e   : > { %11279 = vmatprep.subr.bf16.mxu1 %v3354_v8 }
0x2121   : > { %11280 = vmatpush3.bf16.msra.mxu1 %v3354_v8 }
0x2122   : > { %11285 = vmatprep.subr.bf16.mxu1 %v14167_v55 }
0x2124   : > { %11282 = vmatmul.mubr.msk.bf16.vlgmr.msra.gmra.mrb[92].mxu1 %vm630_vm3, %v14227_v31 }
0x2125   : > { %11286 = vmatpush3.bf16.msra.mxu1 %v14167_v55 }
0x2126   : > { %11287 = vmatprep.subr.bf16.mxu1 %v14171_v35 }
0x2129   : > { %11288 = vmatpush3.bf16.msra.mxu1 %v14171_v35 }
0x212a   : > { %11289 = vmatprep.subr.bf16.mxu1 %v14178_v37 }
0x212d   : > { %11290 = vmatpush3.bf16.msra.mxu1 %v14178_v37 }
0x212e   : > { %11291 = vmatprep.subr.bf16.mxu1 %v14183_v18 }
0x2131   : > { %11292 = vmatpush3.bf16.msra.mxu1 %v14183_v18 }
0x2132   : > { %11293 = vmatprep.subr.bf16.mxu1 %v14188_v44 }
0x2135   : > { %11294 = vmatpush3.bf16.msra.mxu1 %v14188_v44 }
0x2136   : > { %11295 = vmatprep.subr.bf16.mxu1 %v14193_v45 }
0x2139   : > { %11296 = vmatpush3.bf16.msra.mxu1 %v14193_v45 }
0x213a   : > { %11297 = vmatprep.subr.bf16.mxu1 %v14198_v61 }
0x213d   : > { %11298 = vmatpush3.bf16.msra.mxu1 %v14198_v61 }
0x213e   : > { %11299 = vmatprep.subr.bf16.mxu1 %v14203_v9 }
0x2141   : > { %11300 = vmatpush3.bf16.msra.mxu1 %v14203_v9 }
0x2142   : > { %11333 = vmatprep.subr.bf16.mxu1 %v13071_v0 }
0x2162   : > { %v3177_v32 = vpop.permute.xlu1 %3176 }
0x2163   : > { %3180 = vst.msk [vmem:[%s13587_s26] sm:$0x1] %vm3179_vm12, %v3177_v32 }
0x21f7   : > { %v11283_v11 = vpop.f32.mrb[92].mxu1 }
0x21f8   : > { %v3389_v19 = vpop.f32.mrb[93].mxu1 }
0x21f9   : > { %v11284_v21 = vpop.f32.mrb[94].mxu1 }
0x21fa   : > { %v3405_v22 = vpack.c.bf16 %v11284_v21, %v11283_v11  ;;  %v3392_v23 = vpop.f32.mrb[95].mxu1 }
0x21fb   : > { %v3404_v26 = vpack.c.bf16 %v3392_v23, %v3389_v19  ;;  %v14338_v23 = vld [vmem:[%s13251_s30 + $0x1a0] sm:$0xff]  }
0x21fd   : > { %11301 = vmatprep.mubr.bf16.mxu1 %v3404_v26  ;;  %v14343_v26 = vld [vmem:[%s13251_s30 + $0x1a8] sm:$0xff]  }
0x21fe   : > { %11302 = vmatmul.mubr.bf16.vlgmr.msra.gmra.mrb[96].mxu1 %v3405_v22 }
0x21ff   : > { %11337 = vmatprep.mubr.msk.bf16.mxu1 %vm13072_vm0, %v13071_v0 }
0x22d1   : > { %v11303_v24 = vpop.f32.mrb[96].mxu1 }
0x22d2   : > { %v3449_v12 = vadd.f32 %v11303_v24, %v13401_v59  ;;  %v3440_v47 = vpop.f32.mrb[97].mxu1  ;;  %v14348_v24 = vld [vmem:[%s13251_s30 + $0x1b0] sm:$0xff]  }
0x22d3   : > { %v3441_v48 = vadd.f32 %v3440_v47, %v13397_v57  ;;  %v11304_v53 = vpop.f32.mrb[98].mxu1  ;;  %v9316_v47 = vld [vmem:[%s13304_s17 + $0x18] sm:$0xf] }
0x22d4   : > { %v3461_v54 = vmul.f32 0.1, %v3449_v12  ;;  %v3452_v27 = vadd.f32 %v11304_v53, %v13404_v63  ;;  %v3443_v39 = vpop.f32.mrb[99].mxu1  ;;  %vm3457_vm13 = vcmp.gt.f32.partialorder %v3449_v12, 0.0 }
0x22d5   : > { %v3459_v10 = vmul.f32 0.1, %v3441_v48  ;;  %v3444_v40 = vadd.f32 %v3443_v39, %v13399_v58  ;;  %vm3455_vm14 = vcmp.gt.f32.partialorder %v3441_v48, 0.0 }
0x22d6   : > { %vm3458_vm15 = vcmp.gt.f32.partialorder %v3452_v27, 0.0  ;;  %v3462_v41 = vmul.f32 0.1, %v3452_v27  ;;  %v3465_v1 = vsel %vm3457_vm13, %v3449_v12, %v3461_v54  ;;  %v14353_v12 = vld [vmem:[%s13251_s30 + $0x1b8] sm:$0xff]   ;;  %vm3709_vm13 = vcmask 385344  }
0x22d7   : > { %vm3456_vm4 = vcmp.gt.f32.partialorder %v3444_v40, 0.0  ;;  %v3460_v42 = vmul.f32 0.1, %v3444_v40  ;;  %v3463_v3 = vsel %vm3455_vm14, %v3441_v48, %v3459_v10  ;;  %v14361_v48 = vld [vmem:[%s16038_s4] sm:$0xff]  }
0x22d8   : > { %v3466_v2 = vsel %vm3458_vm15, %v3452_v27, %v3462_v41 }
0x22d9   : > { %v3464_v4 = vsel %vm3456_vm4, %v3444_v40, %v3460_v42  ;;  %v3468_v43 = vpack.c.bf16 %v3466_v2, %v3465_v1  ;;  %v14368_v40 = vld [vmem:[%s16036_s2] sm:$0xff]  }
0x22da   : > { %v3467_v34 = vpack.c.bf16 %v3464_v4, %v3463_v3 }
0x22dc   : > { %11305 = vmatprep.subr.bf16.mxu0 %v3467_v34 }
0x22dd   : > { %11306 = vmatpush3.bf16.msra.mxu0 %v3467_v34 }
0x22de   : > { %11307 = vmatprep.subr.bf16.mxu0 %v3468_v43 }
0x22e1   : > { %11308 = vmatpush3.bf16.msra.mxu0 %v3468_v43  ;;  %v14377_v43 = vld [vmem:[%s16036_s2 + $0x8] sm:$0xff]  }
0x22e2   : > { %11313 = vmatprep.subr.bf16.mxu0 %v14167_v55 }
0x22e4   : > { %11310 = vmatmul.mubr.msk.bf16.vlgmr.msra.gmra.mrb[96].mxu0 %vm630_vm3, %v14227_v31 }
0x22e5   : > { %11314 = vmatpush3.bf16.msra.mxu0 %v14167_v55 }
0x22e6   : > { %11315 = vmatprep.subr.bf16.mxu0 %v14171_v35 }
0x22e9   : > { %11316 = vmatpush3.bf16.msra.mxu0 %v14171_v35 }
0x22ea   : > { %11317 = vmatprep.subr.bf16.mxu0 %v14178_v37 }
0x22ed   : > { %11318 = vmatpush3.bf16.msra.mxu0 %v14178_v37 }
0x22ee   : > { %11319 = vmatprep.subr.bf16.mxu0 %v14183_v18 }
0x22f1   : > { %11320 = vmatpush3.bf16.msra.mxu0 %v14183_v18 }
0x22f2   : > { %11321 = vmatprep.subr.bf16.mxu0 %v14188_v44 }
0x22f5   : > { %11322 = vmatpush3.bf16.msra.mxu0 %v14188_v44 }
0x22f6   : > { %11323 = vmatprep.subr.bf16.mxu0 %v14193_v45 }
0x22f9   : > { %11324 = vmatpush3.bf16.msra.mxu0 %v14193_v45 }
0x22fa   : > { %11325 = vmatprep.subr.bf16.mxu0 %v14198_v61 }
0x22fd   : > { %11326 = vmatpush3.bf16.msra.mxu0 %v14198_v61 }
0x22fe   : > { %11327 = vmatprep.subr.bf16.mxu0 %v14203_v9 }
0x2301   : > { %11328 = vmatpush3.bf16.msra.mxu0 %v14203_v9 }
0x2302   : > { %11361 = vmatprep.subr.bf16.mxu0 %v13071_v0 }
0x23b7   : > { %v11311_v50 = vpop.f32.mrb[96].mxu0 }
0x23b8   : > { %v3503_v62 = vpop.f32.mrb[97].mxu0 }
0x23b9   : > { %v11312_v16 = vpop.f32.mrb[98].mxu0 }
0x23ba   : > { %v3519_v49 = vpack.c.bf16 %v11312_v16, %v11311_v50  ;;  %v3506_v51 = vpop.f32.mrb[99].mxu0 }
0x23bb   : > { %v3518_v52 = vpack.c.bf16 %v3506_v51, %v3503_v62 }
0x23bd   : > { %11329 = vmatprep.mubr.bf16.mxu0 %v3518_v52 }
0x23be   : > { %11330 = vmatmul.mubr.bf16.vlgmr.msra.gmra.mrb[100].mxu0 %v3519_v49 }
0x23bf   : > { %11362 = vmatpush3.bf16.msra.mxu0 %v13936_v5  ;;  %11377 = vmatprep.mubr.msk.bf16.mxu0 %vm13072_vm0, %v13071_v0 }
0x23c0   : > { %11363 = vmatprep.subr.bf16.mxu0 %v13071_v0 }
0x23c3   : > { %11364 = vmatpush3.bf16.msra.mxu0 %v13945_v60 }
0x23c4   : > { %11365 = vmatprep.subr.bf16.mxu0 %v13071_v0 }
0x23c7   : > { %11366 = vmatpush3.bf16.msra.mxu0 %v13952_v13 }
0x23c8   : > { %11367 = vmatprep.subr.bf16.mxu0 %v13071_v0 }
0x23cb   : > { %11368 = vmatpush3.bf16.msra.mxu0 %v13959_v6 }
0x23cc   : > { %11369 = vmatprep.subr.bf16.mxu0 %v13071_v0 }
0x23cf   : > { %11370 = vmatpush3.bf16.msra.mxu0 %v13966_v14 }
0x23d0   : > { %11371 = vmatprep.subr.bf16.mxu0 %v13071_v0 }
0x23d3   : > { %11372 = vmatpush3.bf16.msra.mxu0 %v13973_v7 }
0x23d4   : > { %11373 = vmatprep.subr.bf16.mxu0 %v13071_v0 }
0x23d7   : > { %11374 = vmatpush3.bf16.msra.mxu0 %v13980_v20 }
0x23d8   : > { %11375 = vmatprep.subr.bf16.mxu0 %v13071_v0 }
0x23db   : > { %11376 = vmatpush3.bf16.msra.mxu0 %v13987_v15 }
0x2491   : > { %v11331_v5 = vpop.f32.mrb[100].mxu0 }
0x2492   : > { %v3563_v60 = vadd.f32 %v11331_v5, %v13401_v59  ;;  %v3554_v13 = vpop.f32.mrb[101].mxu0 }
0x2493   : > { %v3555_v6 = vadd.f32 %v3554_v13, %v13397_v57  ;;  %v11332_v56 = vpop.f32.mrb[102].mxu0 }
0x2494   : > { %v3575_v14 = vmul.f32 0.1, %v3563_v60  ;;  %v3566_v17 = vadd.f32 %v11332_v56, %v13404_v63  ;;  %v3557_v46 = vpop.f32.mrb[103].mxu0  ;;  %vm3571_vm5 = vcmp.gt.f32.partialorder %v3563_v60, 0.0 }
0x2495   : > { %v3573_v7 = vmul.f32 0.1, %v3555_v6  ;;  %v3558_v8 = vadd.f32 %v3557_v46, %v13399_v58  ;;  %vm3569_vm6 = vcmp.gt.f32.partialorder %v3555_v6, 0.0 }
0x2496   : > { %vm3572_vm7 = vcmp.gt.f32.partialorder %v3566_v17, 0.0  ;;  %v3576_v20 = vmul.f32 0.1, %v3566_v17  ;;  %v3579_v30 = vsel %vm3571_vm5, %v3563_v60, %v3575_v14 }
0x2497   : > { %vm3570_vm8 = vcmp.gt.f32.partialorder %v3558_v8, 0.0  ;;  %v3574_v15 = vmul.f32 0.1, %v3558_v8  ;;  %v3577_v11 = vsel %vm3569_vm6, %v3555_v6, %v3573_v7 }
0x2498   : > { %v3580_v32 = vsel %vm3572_vm7, %v3566_v17, %v3576_v20 }
0x2499   : > { %v3582_v19 = vpack.c.bf16 %v3580_v32, %v3579_v30  ;;  %v3578_v21 = vsel %vm3570_vm8, %v3558_v8, %v3574_v15 }
0x249a   : > { %v3581_v22 = vpack.c.bf16 %v3578_v21, %v3577_v11 }
0x249c   : > { %11334 = vmatpush3.bf16.msra.mxu1 %v3581_v22 }
0x249d   : > { %11335 = vmatprep.subr.bf16.mxu1 %v13071_v0 }
0x24a0   : > { %11336 = vmatpush3.bf16.msra.mxu1 %v3582_v19 }
0x24a1   : > { %11341 = vmatprep.subr.bf16.mxu1 %v13071_v0 }
0x24a3   : > { %11338 = vmatmul.mubr.msk.bf16.vlgmr.msra.gmra.mrb[100].mxu1 %vm630_vm3, %v13999_v25 }
0x24a4   : > { %11342 = vmatpush3.bf16.msra.mxu1 %v14167_v55  ;;  %11357 = vmatprep.mubr.msk.bf16.mxu1 %vm13072_vm0, %v13071_v0  ;;  %v14317_v55 = vld [vmem:[%s13251_s30 + $0x180] sm:$0xff]  }
0x24a5   : > { %11343 = vmatprep.subr.bf16.mxu1 %v13071_v0 }
0x24a8   : > { %11344 = vmatpush3.bf16.msra.mxu1 %v14171_v35 }
0x24a9   : > { %11345 = vmatprep.subr.bf16.mxu1 %v13071_v0 }
0x24ac   : > { %11346 = vmatpush3.bf16.msra.mxu1 %v14178_v37 }
0x24ad   : > { %11347 = vmatprep.subr.bf16.mxu1 %v13071_v0 }
0x24b0   : > { %11348 = vmatpush3.bf16.msra.mxu1 %v14183_v18 }
0x24b1   : > { %11349 = vmatprep.subr.bf16.mxu1 %v13071_v0 }
0x24b4   : > { %11350 = vmatpush3.bf16.msra.mxu1 %v14188_v44 }
0x24b5   : > { %11351 = vmatprep.subr.bf16.mxu1 %v13071_v0 }
0x24b8   : > { %11352 = vmatpush3.bf16.msra.mxu1 %v14193_v45  ;;  %v14321_v45 = vld [vmem:[%s13251_s30 + $0x188] sm:$0xff]  }
0x24b9   : > { %11353 = vmatprep.subr.bf16.mxu1 %v13071_v0 }
0x24bc   : > { %11354 = vmatpush3.bf16.msra.mxu1 %v14198_v61  ;;  %v14328_v61 = vld [vmem:[%s13251_s30 + $0x190] sm:$0xff]  }
0x24bd   : > { %11355 = vmatprep.subr.bf16.mxu1 %v13071_v0 }
0x24c0   : > { %11356 = vmatpush3.bf16.msra.mxu1 %v14203_v9  ;;  %v14333_v9 = vld [vmem:[%s13251_s30 + $0x198] sm:$0xff]  }
0x24c1   : > { %11381 = vmatprep.subr.bf16.mxu1 %v13071_v0 }
0x2576   : > { %v3617_v25 = vpop.f32.mrb[100].mxu1 }
0x2577   : > { %v3623_v35 = vpack.c.bf16 %v3617_v25, %v3617_v25  ;;  %v11339_v37 = vpop.f32.mrb[101].mxu1 }
0x2578   : > { %v3620_v18 = vpop.f32.mrb[102].mxu1 }
0x2579   : > { %v11340_v44 = vpop.f32.mrb[103].mxu1  ;;  %11358 = vmatmul.mubr.bf16.vlgmr.msra.gmra.mrb[104].mxu1 %v3623_v35 }
0x257a   : > { %11382 = vmatpush3.bf16.msra.mxu1 %v14317_v55  ;;  %11397 = vmatprep.mubr.msk.bf16.mxu1 %vm13072_vm0, %v13071_v0 }
0x257b   : > { %11383 = vmatprep.subr.bf16.mxu1 %v13071_v0 }
0x257e   : > { %11384 = vmatpush3.bf16.msra.mxu1 %v14321_v45 }
0x257f   : > { %11385 = vmatprep.subr.bf16.mxu1 %v13071_v0 }
0x2582   : > { %11386 = vmatpush3.bf16.msra.mxu1 %v14328_v61 }
0x2583   : > { %11387 = vmatprep.subr.bf16.mxu1 %v13071_v0 }
0x2586   : > { %11388 = vmatpush3.bf16.msra.mxu1 %v14333_v9 }
0x2587   : > { %11389 = vmatprep.subr.bf16.mxu1 %v13071_v0 }
0x258a   : > { %11390 = vmatpush3.bf16.msra.mxu1 %v14338_v23 }
0x258b   : > { %11391 = vmatprep.subr.bf16.mxu1 %v13071_v0 }
0x258e   : > { %11392 = vmatpush3.bf16.msra.mxu1 %v14343_v26 }
0x258f   : > { %11393 = vmatprep.subr.bf16.mxu1 %v13071_v0 }
0x2592   : > { %11394 = vmatpush3.bf16.msra.mxu1 %v14348_v24 }
0x2593   : > { %11395 = vmatprep.subr.bf16.mxu1 %v13071_v0 }
0x2596   : > { %11396 = vmatpush3.bf16.msra.mxu1 %v14353_v12 }
0x2599   : > { %11398 = vmatmul.mubr.bf16.vlgmr.msra.gmra.mrb[108].mxu1 %v9316_v47 }
0x259a   : > { %11439 = vmatprep.mubr.msk.bf16.mxu1 %vm630_vm3, %v14361_v48 }
0x264c   : > { %v3658_v53 = vpop.f32.mrb[104].mxu1 }
0x264d   : > { %v3664_v54 = vpack.c.bf16 %v3658_v53, %v3658_v53  ;;  %v11359_v27 = vpop.f32.mrb[105].mxu1 }
0x264e   : > { %v3661_v39 = vpop.f32.mrb[106].mxu1 }
0x264f   : > { %v11360_v10 = vpop.f32.mrb[107].mxu1  ;;  %11378 = vmatmul.mubr.bf16.vlgmr.msra.gmra.mrb[104].mxu0 %v3664_v54 }
0x2650   : > { %11403 = vmatprep.mubr.msk.bf16.mxu0 %vm546_vm1, %v14368_v40 }
0x266c   : > { %v3812_v41 = vpop.f32.mrb[108].mxu1 }
0x266d   : > { %v3818_v42 = vpack.c.bf16 %v3812_v41, %v3812_v41  ;;  %v11399_v1 = vpop.f32.mrb[109].mxu1 }
0x266e   : > { %v3815_v2 = vpop.f32.mrb[110].mxu1 }
0x266f   : > { %v3820_v3 = vsel %vm553_vm2, %v3818_v42, 0  ;;  %v11400_v4 = vpop.f32.mrb[111].mxu1  ;;  %12687 = vmatprep.subr.msk.bf16.mxu0 %vm553_vm2, %v3818_v42 }
0x2670   : > { %11402 = vmatpush3.bf16.msra.mxu0 %v3820_v3 }
0x2673   : > { %11404 = vmatmul.mubr.msk.bf16.vlgmr.msra.gmra.mrb[108].mxu0 %vm546_vm1, %v14377_v43 }
0x2674   : > { %11411 = vmatprep.mubr.msk.bf16.mxu0 %vm630_vm3, %v14361_v48 }
0x2722   : > { %v3699_v34 = vpop.f32.mrb[104].mxu0 }
0x2723   : > { %v3700_v50 = vadd.f32 %v3699_v34, %v13583_v38  ;;  %v11379_v62 = vpop.f32.mrb[105].mxu0 }
0x2724   : > { %v3702_v16 = vpop.f32.mrb[106].mxu0 }
0x2725   : > { %3706 = vrot.lane.b32.xlu0 %v3700_v50, %s13078_s21  ;;  %v11380_v49 = vpop.f32.mrb[107].mxu0  ;;  %s13004_s21 = sshll.u32 %s13089_s24, 4  ;;  %s13005_s21 = int_to_ptr.vmem [resolvable:$false] %s13004_s21 }
0x2746   : > { %v11405_v51 = vpop.f32.mrb[108].mxu0 }
0x2747   : > { %v3865_v52 = vadd.f32 %v11405_v51, %v13359_v28  ;;  %v3856_v5 = vpop.f32.mrb[109].mxu0 }
0x2748   : > { %v3857_v60 = vadd.f32 %v3856_v5, %v13361_v29  ;;  %v11406_v13 = vpop.f32.mrb[110].mxu0 }
0x2749   : > { %v3877_v6 = vmul.f32 0.1, %v3865_v52  ;;  %v3868_v56 = vadd.f32 %v11406_v13, %v13364_v33  ;;  %v3859_v14 = vpop.f32.mrb[111].mxu0  ;;  %vm3873_vm9 = vcmp.gt.f32.partialorder %v3865_v52, 0.0 }
0x274a   : > { %v3875_v17 = vmul.f32 0.1, %v3857_v60  ;;  %v3860_v46 = vadd.f32 %v3859_v14, %v13367_v36  ;;  %vm3871_vm10 = vcmp.gt.f32.partialorder %v3857_v60, 0.0  ;;  %v14436_v14 = vld [vmem:[%s16041_s7] sm:$0xff]  }
0x274b   : > { %vm3874_vm11 = vcmp.gt.f32.partialorder %v3868_v56, 0.0  ;;  %v3878_v7 = vmul.f32 0.1, %v3868_v56  ;;  %v3881_v20 = vsel %vm3873_vm9, %v3865_v52, %v3877_v6 }
0x274c   : > { %vm3872_vm12 = vcmp.gt.f32.partialorder %v3860_v46, 0.0  ;;  %v3876_v8 = vmul.f32 0.1, %v3860_v46  ;;  %v3879_v30 = vsel %vm3871_vm10, %v3857_v60, %v3875_v17  ;;  %v14445_v17 = vld [vmem:[%s16041_s7 + $0x8] sm:$0xff]  }
0x274d   : > { %v3882_v15 = vsel %vm3874_vm11, %v3868_v56, %v3878_v7  ;;  %v14459_v7 = vld [vmem:[%s16041_s7 + $0x18] sm:$0xff]  }
0x274e   : > { %v3880_v32 = vsel %vm3872_vm12, %v3860_v46, %v3876_v8  ;;  %v3884_v11 = vpack.c.bf16 %v3882_v15, %v3881_v20  ;;  %v14452_v46 = vld [vmem:[%s16041_s7 + $0x10] sm:$0xff]   ;;  %v14466_v8 = vld [vmem:[%s16041_s7 + $0x20] sm:$0xff]   ;;  %v14473_v20 = vld [vmem:[%s16041_s7 + $0x28] sm:$0xff]  }
0x274f   : > { %v3883_v19 = vpack.c.bf16 %v3880_v32, %v3879_v30  ;;  %v14480_v15 = vld [vmem:[%s16041_s7 + $0x30] sm:$0xff]   ;;  %v14487_v30 = vld [vmem:[%s16041_s7 + $0x38] sm:$0xff]  }
0x2751   : > { %11407 = vmatprep.subr.bf16.mxu0 %v3883_v19 }
0x2752   : > { %11408 = vmatpush3.bf16.msra.mxu0 %v3883_v19 }
0x2753   : > { %11409 = vmatprep.subr.bf16.mxu0 %v3884_v11 }
0x2756   : > { %11410 = vmatpush3.bf16.msra.mxu0 %v3884_v11 }
0x2757   : > { %11415 = vmatprep.subr.bf16.mxu0 %v14317_v55 }
0x2759   : > { %11412 = vmatmul.mubr.msk.bf16.vlgmr.msra.gmra.mrb[112].mxu0 %vm630_vm3, %v14227_v31 }
0x275a   : > { %11416 = vmatpush3.bf16.msra.mxu0 %v14317_v55 }
0x275b   : > { %11417 = vmatprep.subr.bf16.mxu0 %v14321_v45 }
0x275e   : > { %11418 = vmatpush3.bf16.msra.mxu0 %v14321_v45 }
0x275f   : > { %11419 = vmatprep.subr.bf16.mxu0 %v14328_v61 }
0x2762   : > { %11420 = vmatpush3.bf16.msra.mxu0 %v14328_v61 }
0x2763   : > { %11421 = vmatprep.subr.bf16.mxu0 %v14333_v9 }
0x2766   : > { %11422 = vmatpush3.bf16.msra.mxu0 %v14333_v9 }
0x2767   : > { %11423 = vmatprep.subr.bf16.mxu0 %v14338_v23 }
0x276a   : > { %11424 = vmatpush3.bf16.msra.mxu0 %v14338_v23 }
0x276b   : > { %11425 = vmatprep.subr.bf16.mxu0 %v14343_v26 }
0x276e   : > { %11426 = vmatpush3.bf16.msra.mxu0 %v14343_v26 }
0x276f   : > { %11427 = vmatprep.subr.bf16.mxu0 %v14348_v24 }
0x2772   : > { %11428 = vmatpush3.bf16.msra.mxu0 %v14348_v24 }
0x2773   : > { %11429 = vmatprep.subr.bf16.mxu0 %v14353_v12 }
0x2776   : > { %11430 = vmatpush3.bf16.msra.mxu0 %v14353_v12 }
0x2777   : > { %11463 = vmatprep.subr.bf16.mxu0 %v13071_v0 }
0x2797   : > { %v3707_v21 = vpop.permute.xlu0 %3706 }
0x2798   : > { %3710 = vst.msk [vmem:[%s13587_s26] sm:$0x1] %vm3709_vm13, %v3707_v21 }
0x282c   : > { %v11413_v22 = vpop.f32.mrb[112].mxu0 }
0x282d   : > { %v3919_v25 = vpop.f32.mrb[113].mxu0 }
0x282e   : > { %v11414_v35 = vpop.f32.mrb[114].mxu0 }
0x282f   : > { %v3935_v37 = vpack.c.bf16 %v11414_v35, %v11413_v22  ;;  %v3922_v18 = vpop.f32.mrb[115].mxu0 }
0x2830   : > { %v3934_v44 = vpack.c.bf16 %v3922_v18, %v3919_v25 }
0x2832   : > { %11431 = vmatprep.mubr.bf16.mxu0 %v3934_v44 }
0x2833   : > { %11432 = vmatmul.mubr.bf16.vlgmr.msra.gmra.mrb[116].mxu0 %v3935_v37 }
0x2834   : > { %11467 = vmatprep.mubr.msk.bf16.mxu0 %vm13072_vm0, %v13071_v0 }
0x2906   : > { %v11433_v47 = vpop.f32.mrb[116].mxu0 }
0x2907   : > { %v3979_v53 = vadd.f32 %v11433_v47, %v13401_v59  ;;  %v3970_v54 = vpop.f32.mrb[117].mxu0 }
0x2908   : > { %v3971_v27 = vadd.f32 %v3970_v54, %v13397_v57  ;;  %v11434_v39 = vpop.f32.mrb[118].mxu0 }
0x2909   : > { %v3991_v10 = vmul.f32 0.1, %v3979_v53  ;;  %v3982_v41 = vadd.f32 %v11434_v39, %v13404_v63  ;;  %v3973_v42 = vpop.f32.mrb[119].mxu0  ;;  %vm3987_vm14 = vcmp.gt.f32.partialorder %v3979_v53, 0.0 }
0x290a   : > { %v3989_v1 = vmul.f32 0.1, %v3971_v27  ;;  %v3974_v2 = vadd.f32 %v3973_v42, %v13399_v58  ;;  %vm3985_vm15 = vcmp.gt.f32.partialorder %v3971_v27, 0.0 }
0x290b   : > { %vm3988_vm4 = vcmp.gt.f32.partialorder %v3982_v41, 0.0  ;;  %v3992_v3 = vmul.f32 0.1, %v3982_v41  ;;  %v3995_v34 = vsel %vm3987_vm14, %v3979_v53, %v3991_v10  ;;  %vm4239_vm14 = vcmask 450944  }
0x290c   : > { %vm3986_vm5 = vcmp.gt.f32.partialorder %v3974_v2, 0.0  ;;  %v3990_v4 = vmul.f32 0.1, %v3974_v2  ;;  %v3993_v62 = vsel %vm3985_vm15, %v3971_v27, %v3989_v1  ;;  %v14499_v1 = vld [vmem:[%s16040_s6] sm:$0x1] }
0x290d   : > { %v3996_v50 = vsel %vm3988_vm4, %v3982_v41, %v3992_v3  ;;  %v14543_v3 = vld [vmem:[%s13251_s30 + $0x1e0] sm:$0xff]  }
0x290e   : > { %v3994_v16 = vsel %vm3986_vm5, %v3974_v2, %v3990_v4  ;;  %v3998_v49 = vpack.c.bf16 %v3996_v50, %v3995_v34  ;;  %v14538_v2 = vld [vmem:[%s13251_s30 + $0x1d8] sm:$0xff]   ;;  %v14548_v4 = vld [vmem:[%s13251_s30 + $0x1e8] sm:$0xff]   ;;  %v14553_v34 = vld [vmem:[%s13251_s30 + $0x1f0] sm:$0xff]  }
0x290f   : > { %v3997_v51 = vpack.c.bf16 %v3994_v16, %v3993_v62  ;;  %v14558_v50 = vld [vmem:[%s13251_s30 + $0x1f8] sm:$0xff]  }
0x2910   : > { %v9348_v62 = vld [vmem:[%s13304_s17 + $0x1c] sm:$0xf] }
0x2911   : > { %11435 = vmatprep.subr.bf16.mxu1 %v3997_v51 }
0x2912   : > { %11436 = vmatpush3.bf16.msra.mxu1 %v3997_v51 }
0x2913   : > { %11437 = vmatprep.subr.bf16.mxu1 %v3998_v49 }
0x2916   : > { %11438 = vmatpush3.bf16.msra.mxu1 %v3998_v49 }
0x2917   : > { %11443 = vmatprep.subr.bf16.mxu1 %v14317_v55 }
0x2919   : > { %11440 = vmatmul.mubr.msk.bf16.vlgmr.msra.gmra.mrb[112].mxu1 %vm630_vm3, %v14227_v31 }
0x291a   : > { %11444 = vmatpush3.bf16.msra.mxu1 %v14317_v55 }
0x291b   : > { %11445 = vmatprep.subr.bf16.mxu1 %v14321_v45 }
0x291e   : > { %11446 = vmatpush3.bf16.msra.mxu1 %v14321_v45 }
0x291f   : > { %11447 = vmatprep.subr.bf16.mxu1 %v14328_v61 }
0x2922   : > { %11448 = vmatpush3.bf16.msra.mxu1 %v14328_v61 }
0x2923   : > { %11449 = vmatprep.subr.bf16.mxu1 %v14333_v9 }
0x2926   : > { %11450 = vmatpush3.bf16.msra.mxu1 %v14333_v9 }
0x2927   : > { %11451 = vmatprep.subr.bf16.mxu1 %v14338_v23 }
0x292a   : > { %11452 = vmatpush3.bf16.msra.mxu1 %v14338_v23 }
0x292b   : > { %11453 = vmatprep.subr.bf16.mxu1 %v14343_v26 }
0x292e   : > { %11454 = vmatpush3.bf16.msra.mxu1 %v14343_v26 }
0x292f   : > { %11455 = vmatprep.subr.bf16.mxu1 %v14348_v24 }
0x2932   : > { %11456 = vmatpush3.bf16.msra.mxu1 %v14348_v24 }
0x2933   : > { %11457 = vmatprep.subr.bf16.mxu1 %v14353_v12 }
0x2936   : > { %11458 = vmatpush3.bf16.msra.mxu1 %v14353_v12 }
0x2937   : > { %11491 = vmatprep.subr.bf16.mxu1 %v13071_v0 }
0x29ec   : > { %v11441_v52 = vpop.f32.mrb[112].mxu1 }
0x29ed   : > { %v4033_v5 = vpop.f32.mrb[113].mxu1 }
0x29ee   : > { %v11442_v60 = vpop.f32.mrb[114].mxu1 }
0x29ef   : > { %v4049_v13 = vpack.c.bf16 %v11442_v60, %v11441_v52  ;;  %v4036_v6 = vpop.f32.mrb[115].mxu1 }
0x29f0   : > { %v4048_v56 = vpack.c.bf16 %v4036_v6, %v4033_v5 }
0x29f2   : > { %11459 = vmatprep.mubr.bf16.mxu1 %v4048_v56 }
0x29f3   : > { %11460 = vmatmul.mubr.bf16.vlgmr.msra.gmra.mrb[116].mxu1 %v4049_v13 }
0x29f4   : > { %11492 = vmatpush3.bf16.msra.mxu1 %v14436_v14  ;;  %11507 = vmatprep.mubr.msk.bf16.mxu1 %vm13072_vm0, %v13071_v0 }
0x29f5   : > { %11493 = vmatprep.subr.bf16.mxu1 %v13071_v0 }
0x29f8   : > { %11494 = vmatpush3.bf16.msra.mxu1 %v14445_v17 }
0x29f9   : > { %11495 = vmatprep.subr.bf16.mxu1 %v13071_v0 }
0x29fc   : > { %11496 = vmatpush3.bf16.msra.mxu1 %v14452_v46 }
0x29fd   : > { %11497 = vmatprep.subr.bf16.mxu1 %v13071_v0 }
0x2a00   : > { %11498 = vmatpush3.bf16.msra.mxu1 %v14459_v7 }
0x2a01   : > { %11499 = vmatprep.subr.bf16.mxu1 %v13071_v0 }
0x2a04   : > { %11500 = vmatpush3.bf16.msra.mxu1 %v14466_v8 }
0x2a05   : > { %11501 = vmatprep.subr.bf16.mxu1 %v13071_v0 }
0x2a08   : > { %11502 = vmatpush3.bf16.msra.mxu1 %v14473_v20 }
0x2a09   : > { %11503 = vmatprep.subr.bf16.mxu1 %v13071_v0 }
0x2a0c   : > { %11504 = vmatpush3.bf16.msra.mxu1 %v14480_v15 }
0x2a0d   : > { %11505 = vmatprep.subr.bf16.mxu1 %v13071_v0 }
0x2a10   : > { %11506 = vmatpush3.bf16.msra.mxu1 %v14487_v30 }
0x2ac6   : > { %v11461_v32 = vpop.f32.mrb[116].mxu1 }
0x2ac7   : > { %v4093_v11 = vadd.f32 %v11461_v32, %v13401_v59  ;;  %v4084_v19 = vpop.f32.mrb[117].mxu1 }
0x2ac8   : > { %v4085_v21 = vadd.f32 %v4084_v19, %v13397_v57  ;;  %v11462_v22 = vpop.f32.mrb[118].mxu1 }
0x2ac9   : > { %v4105_v25 = vmul.f32 0.1, %v4093_v11  ;;  %v4096_v35 = vadd.f32 %v11462_v22, %v13404_v63  ;;  %v4087_v37 = vpop.f32.mrb[119].mxu1  ;;  %vm4101_vm6 = vcmp.gt.f32.partialorder %v4093_v11, 0.0 }
0x2aca   : > { %v4103_v18 = vmul.f32 0.1, %v4085_v21  ;;  %v4088_v44 = vadd.f32 %v4087_v37, %v13399_v58  ;;  %vm4099_vm7 = vcmp.gt.f32.partialorder %v4085_v21, 0.0 }
0x2acb   : > { %vm4102_vm8 = vcmp.gt.f32.partialorder %v4096_v35, 0.0  ;;  %v4106_v47 = vmul.f32 0.1, %v4096_v35  ;;  %v4109_v54 = vsel %vm4101_vm6, %v4093_v11, %v4105_v25 }
0x2acc   : > { %vm4100_vm9 = vcmp.gt.f32.partialorder %v4088_v44, 0.0  ;;  %v4104_v53 = vmul.f32 0.1, %v4088_v44  ;;  %v4107_v39 = vsel %vm4099_vm7, %v4085_v21, %v4103_v18 }
0x2acd   : > { %v4110_v27 = vsel %vm4102_vm8, %v4096_v35, %v4106_v47 }
0x2ace   : > { %v4112_v10 = vpack.c.bf16 %v4110_v27, %v4109_v54  ;;  %v4108_v41 = vsel %vm4100_vm9, %v4088_v44, %v4104_v53 }
0x2acf   : > { %v4111_v42 = vpack.c.bf16 %v4108_v41, %v4107_v39 }
0x2ad1   : > { %11464 = vmatpush3.bf16.msra.mxu0 %v4111_v42 }
0x2ad2   : > { %11465 = vmatprep.subr.bf16.mxu0 %v13071_v0 }
0x2ad5   : > { %11466 = vmatpush3.bf16.msra.mxu0 %v4112_v10 }
0x2ad6   : > { %11471 = vmatprep.subr.bf16.mxu0 %v13071_v0 }
0x2ad8   : > { %11468 = vmatmul.mubr.msk.bf16.vlgmr.msra.gmra.mrb[120].mxu0 %vm630_vm3, %v14499_v1 }
0x2ad9   : > { %11472 = vmatpush3.bf16.msra.mxu0 %v14317_v55  ;;  %11487 = vmatprep.mubr.msk.bf16.mxu0 %vm13072_vm0, %v13071_v0 }
0x2ada   : > { %11473 = vmatprep.subr.bf16.mxu0 %v13071_v0 }
0x2add   : > { %11474 = vmatpush3.bf16.msra.mxu0 %v14321_v45  ;;  %v14522_v45 = vld [vmem:[%s13251_s30 + $0x1c0] sm:$0xff]  }
0x2ade   : > { %11475 = vmatprep.subr.bf16.mxu0 %v13071_v0 }
0x2ae1   : > { %11476 = vmatpush3.bf16.msra.mxu0 %v14328_v61 }
0x2ae2   : > { %11477 = vmatprep.subr.bf16.mxu0 %v13071_v0 }
0x2ae5   : > { %11478 = vmatpush3.bf16.msra.mxu0 %v14333_v9 }
0x2ae6   : > { %11479 = vmatprep.subr.bf16.mxu0 %v13071_v0 }
0x2ae9   : > { %11480 = vmatpush3.bf16.msra.mxu0 %v14338_v23 }
0x2aea   : > { %11481 = vmatprep.subr.bf16.mxu0 %v13071_v0 }
0x2aed   : > { %11482 = vmatpush3.bf16.msra.mxu0 %v14343_v26 }
0x2aee   : > { %11483 = vmatprep.subr.bf16.mxu0 %v13071_v0 }
0x2af1   : > { %11484 = vmatpush3.bf16.msra.mxu0 %v14348_v24  ;;  %v14526_v24 = vld [vmem:[%s13251_s30 + $0x1c8] sm:$0xff]  }
0x2af2   : > { %11485 = vmatprep.subr.bf16.mxu0 %v13071_v0 }
0x2af5   : > { %11486 = vmatpush3.bf16.msra.mxu0 %v14353_v12  ;;  %v14533_v12 = vld [vmem:[%s13251_s30 + $0x1d0] sm:$0xff]  }
0x2af6   : > { %11511 = vmatprep.subr.bf16.mxu0 %v13071_v0 }
0x2bab   : > { %v4147_v55 = vpop.f32.mrb[120].mxu0 }
0x2bac   : > { %v4153_v61 = vpack.c.bf16 %v4147_v55, %v4147_v55  ;;  %v11469_v9 = vpop.f32.mrb[121].mxu0 }
0x2bad   : > { %v4150_v23 = vpop.f32.mrb[122].mxu0 }
0x2bae   : > { %v11470_v26 = vpop.f32.mrb[123].mxu0  ;;  %11488 = vmatmul.mubr.bf16.vlgmr.msra.gmra.mrb[124].mxu0 %v4153_v61 }
0x2baf   : > { %11512 = vmatpush3.bf16.msra.mxu0 %v14522_v45  ;;  %11527 = vmatprep.mubr.msk.bf16.mxu0 %vm13072_vm0, %v13071_v0 }
0x2bb0   : > { %11513 = vmatprep.subr.bf16.mxu0 %v13071_v0 }
0x2bb3   : > { %11514 = vmatpush3.bf16.msra.mxu0 %v14526_v24 }
0x2bb4   : > { %11515 = vmatprep.subr.bf16.mxu0 %v13071_v0 }
0x2bb7   : > { %11516 = vmatpush3.bf16.msra.mxu0 %v14533_v12 }
0x2bb8   : > { %11517 = vmatprep.subr.bf16.mxu0 %v13071_v0 }
0x2bbb   : > { %11518 = vmatpush3.bf16.msra.mxu0 %v14538_v2 }
0x2bbc   : > { %11519 = vmatprep.subr.bf16.mxu0 %v13071_v0 }
0x2bbf   : > { %11520 = vmatpush3.bf16.msra.mxu0 %v14543_v3 }
0x2bc0   : > { %11521 = vmatprep.subr.bf16.mxu0 %v13071_v0 }
0x2bc3   : > { %11522 = vmatpush3.bf16.msra.mxu0 %v14548_v4 }
0x2bc4   : > { %11523 = vmatprep.subr.bf16.mxu0 %v13071_v0 }
0x2bc7   : > { %11524 = vmatpush3.bf16.msra.mxu0 %v14553_v34 }
0x2bc8   : > { %11525 = vmatprep.subr.bf16.mxu0 %v13071_v0 }
0x2bcb   : > { %11526 = vmatpush3.bf16.msra.mxu0 %v14558_v50 }
0x2bce   : > { %11528 = vmatmul.mubr.bf16.vlgmr.msra.gmra.mrb[128].mxu0 %v9348_v62 }
0x2bcf   : > { %11569 = vmatprep.mubr.msk.bf16.mxu0 %vm630_vm3, %v14361_v48 }
0x2c81   : > { %v4188_v16 = vpop.f32.mrb[124].mxu0 }
0x2c82   : > { %v4194_v49 = vpack.c.bf16 %v4188_v16, %v4188_v16  ;;  %v11489_v51 = vpop.f32.mrb[125].mxu0 }
0x2c83   : > { %v4191_v52 = vpop.f32.mrb[126].mxu0 }
0x2c84   : > { %v11490_v5 = vpop.f32.mrb[127].mxu0  ;;  %11508 = vmatmul.mubr.bf16.vlgmr.msra.gmra.mrb[120].mxu1 %v4194_v49 }
0x2c85   : > { %11533 = vmatprep.mubr.msk.bf16.mxu1 %vm546_vm1, %v14368_v40 }
0x2ca1   : > { %v4342_v60 = vpop.f32.mrb[128].mxu0 }
0x2ca2   : > { %v4348_v13 = vpack.c.bf16 %v4342_v60, %v4342_v60  ;;  %v11529_v6 = vpop.f32.mrb[129].mxu0 }
0x2ca3   : > { %v4345_v56 = vpop.f32.mrb[130].mxu0 }
0x2ca4   : > { %v4350_v32 = vsel %vm553_vm2, %v4348_v13, 0  ;;  %v11530_v11 = vpop.f32.mrb[131].mxu0  ;;  %12688 = vmatprep.subr.msk.bf16.mxu1 %vm553_vm2, %v4348_v13 }
0x2ca5   : > { %11532 = vmatpush3.bf16.msra.mxu1 %v4350_v32 }
0x2ca8   : > { %11534 = vmatmul.mubr.msk.bf16.vlgmr.msra.gmra.mrb[124].mxu1 %vm546_vm1, %v14377_v43 }
0x2ca9   : > { %11541 = vmatprep.mubr.msk.bf16.mxu1 %vm630_vm3, %v14361_v48 }
0x2d57   : > { %v4229_v19 = vpop.f32.mrb[120].mxu1 }
0x2d58   : > { %v4230_v21 = vadd.f32 %v4229_v19, %v13583_v38  ;;  %v11509_v22 = vpop.f32.mrb[121].mxu1 }
0x2d59   : > { %v4232_v25 = vpop.f32.mrb[122].mxu1 }
0x2d5a   : > { %4236 = vrot.lane.b32.xlu1 %v4230_v21, %s13079_s8  ;;  %v11510_v35 = vpop.f32.mrb[123].mxu1  ;;  %s13006_s8 = scalar_lea.vmem %s13005_s21, 32 }
0x2d7b   : > { %v11535_v37 = vpop.f32.mrb[124].mxu1 }
0x2d7c   : > { %v4395_v18 = vadd.f32 %v11535_v37, %v13359_v28  ;;  %v4386_v44 = vpop.f32.mrb[125].mxu1 }
0x2d7d   : > { %v4387_v47 = vadd.f32 %v4386_v44, %v13361_v29  ;;  %v11536_v53 = vpop.f32.mrb[126].mxu1 }
0x2d7e   : > { %v4407_v54 = vmul.f32 0.1, %v4395_v18  ;;  %v4398_v27 = vadd.f32 %v11536_v53, %v13364_v33  ;;  %v4389_v39 = vpop.f32.mrb[127].mxu1  ;;  %vm4403_vm10 = vcmp.gt.f32.partialorder %v4395_v18, 0.0 }
0x2d7f   : > { %v4405_v10 = vmul.f32 0.1, %v4387_v47  ;;  %v4390_v41 = vadd.f32 %v4389_v39, %v13367_v36  ;;  %vm4401_vm11 = vcmp.gt.f32.partialorder %v4387_v47, 0.0 }
0x2d80   : > { %vm4404_vm12 = vcmp.gt.f32.partialorder %v4398_v27, 0.0  ;;  %v4408_v42 = vmul.f32 0.1, %v4398_v27  ;;  %v4411_v61 = vsel %vm4403_vm10, %v4395_v18, %v4407_v54 }
0x2d81   : > { %vm4402_vm13 = vcmp.gt.f32.partialorder %v4390_v41, 0.0  ;;  %v4406_v55 = vmul.f32 0.1, %v4390_v41  ;;  %v4409_v23 = vsel %vm4401_vm11, %v4387_v47, %v4405_v10 }
0x2d82   : > { %v4412_v9 = vsel %vm4404_vm12, %v4398_v27, %v4408_v42 }
0x2d83   : > { %v4410_v26 = vsel %vm4402_vm13, %v4390_v41, %v4406_v55  ;;  %v4414_v62 = vpack.c.bf16 %v4412_v9, %v4411_v61 }
0x2d84   : > { %v4413_v16 = vpack.c.bf16 %v4410_v26, %v4409_v23 }
0x2d86   : > { %11537 = vmatprep.subr.bf16.mxu1 %v4413_v16 }
0x2d87   : > { %11538 = vmatpush3.bf16.msra.mxu1 %v4413_v16 }
0x2d88   : > { %11539 = vmatprep.subr.bf16.mxu1 %v4414_v62 }
0x2d8b   : > { %11540 = vmatpush3.bf16.msra.mxu1 %v4414_v62 }
0x2d8c   : > { %11545 = vmatprep.subr.bf16.mxu1 %v14522_v45 }
0x2d8e   : > { %11542 = vmatmul.mubr.msk.bf16.vlgmr.msra.gmra.mrb[128].mxu1 %vm630_vm3, %v14227_v31 }
0x2d8f   : > { %11546 = vmatpush3.bf16.msra.mxu1 %v14522_v45 }
0x2d90   : > { %11547 = vmatprep.subr.bf16.mxu1 %v14526_v24 }
0x2d93   : > { %11548 = vmatpush3.bf16.msra.mxu1 %v14526_v24 }
0x2d94   : > { %11549 = vmatprep.subr.bf16.mxu1 %v14533_v12 }
0x2d97   : > { %11550 = vmatpush3.bf16.msra.mxu1 %v14533_v12 }
0x2d98   : > { %11551 = vmatprep.subr.bf16.mxu1 %v14538_v2 }
0x2d9b   : > { %11552 = vmatpush3.bf16.msra.mxu1 %v14538_v2 }
0x2d9c   : > { %11553 = vmatprep.subr.bf16.mxu1 %v14543_v3 }
0x2d9f   : > { %11554 = vmatpush3.bf16.msra.mxu1 %v14543_v3 }
0x2da0   : > { %11555 = vmatprep.subr.bf16.mxu1 %v14548_v4 }
0x2da3   : > { %11556 = vmatpush3.bf16.msra.mxu1 %v14548_v4 }
0x2da4   : > { %11557 = vmatprep.subr.bf16.mxu1 %v14553_v34 }
0x2da7   : > { %11558 = vmatpush3.bf16.msra.mxu1 %v14553_v34 }
0x2da8   : > { %11559 = vmatprep.subr.bf16.mxu1 %v14558_v50 }
0x2dab   : > { %11560 = vmatpush3.bf16.msra.mxu1 %v14558_v50 }
0x2dac   : > { %11593 = vmatprep.subr.bf16.mxu1 %v13071_v0 }
0x2dcc   : > { %v4237_v49 = vpop.permute.xlu1 %4236 }
0x2dcd   : > { %4240 = vst.msk [vmem:[%s13587_s26] sm:$0x1] %vm4239_vm14, %v4237_v49 }
0x2e61   : > { %v11543_v51 = vpop.f32.mrb[128].mxu1 }
0x2e62   : > { %v4449_v52 = vpop.f32.mrb[129].mxu1 }
0x2e63   : > { %v11544_v5 = vpop.f32.mrb[130].mxu1 }
0x2e64   : > { %v4465_v60 = vpack.c.bf16 %v11544_v5, %v11543_v51  ;;  %v4452_v13 = vpop.f32.mrb[131].mxu1 }
0x2e65   : > { %v4464_v6 = vpack.c.bf16 %v4452_v13, %v4449_v52 }
0x2e67   : > { %11561 = vmatprep.mubr.bf16.mxu1 %v4464_v6 }
0x2e68   : > { %11562 = vmatmul.mubr.bf16.vlgmr.msra.gmra.mrb[132].mxu1 %v4465_v60 }
0x2e69   : > { %11597 = vmatprep.mubr.msk.bf16.mxu1 %vm13072_vm0, %v13071_v0 }
0x2f3b   : > { %v11563_v56 = vpop.f32.mrb[132].mxu1 }
0x2f3c   : > { %v4509_v32 = vadd.f32 %v11563_v56, %v13401_v59  ;;  %v4500_v11 = vpop.f32.mrb[133].mxu1 }
0x2f3d   : > { %v4501_v19 = vadd.f32 %v4500_v11, %v13397_v57  ;;  %v11564_v21 = vpop.f32.mrb[134].mxu1 }
0x2f3e   : > { %v4521_v22 = vmul.f32 0.1, %v4509_v32  ;;  %v4512_v25 = vadd.f32 %v11564_v21, %v13404_v63  ;;  %v4503_v35 = vpop.f32.mrb[135].mxu1  ;;  %vm4517_vm15 = vcmp.gt.f32.partialorder %v4509_v32, 0.0 }
0x2f3f   : > { %v4519_v37 = vmul.f32 0.1, %v4501_v19  ;;  %v4504_v18 = vadd.f32 %v4503_v35, %v13399_v58  ;;  %vm4515_vm4 = vcmp.gt.f32.partialorder %v4501_v19, 0.0 }
0x2f40   : > { %vm4518_vm5 = vcmp.gt.f32.partialorder %v4512_v25, 0.0  ;;  %v4522_v44 = vmul.f32 0.1, %v4512_v25  ;;  %v4525_v53 = vsel %vm4517_vm15, %v4509_v32, %v4521_v22  ;;  %vm4769_vm15 = vcmask 516544  }
0x2f41   : > { %vm4516_vm6 = vcmp.gt.f32.partialorder %v4504_v18, 0.0  ;;  %v4520_v47 = vmul.f32 0.1, %v4504_v18  ;;  %v4523_v27 = vsel %vm4515_vm4, %v4501_v19, %v4519_v37  ;;  %v14683_v37 = vld [vmem:[%s13251_s30 + $0x218] sm:$0xff]  }
0x2f42   : > { %v4526_v54 = vsel %vm4518_vm5, %v4512_v25, %v4522_v44  ;;  %v14693_v44 = vld [vmem:[%s13251_s30 + $0x228] sm:$0xff]  }
0x2f43   : > { %v4524_v39 = vsel %vm4516_vm6, %v4504_v18, %v4520_v47  ;;  %v4528_v10 = vpack.c.bf16 %v4526_v54, %v4525_v53  ;;  %v14688_v18 = vld [vmem:[%s13251_s30 + $0x220] sm:$0xff]   ;;  %v14698_v47 = vld [vmem:[%s13251_s30 + $0x230] sm:$0xff]   ;;  %v14703_v53 = vld [vmem:[%s13251_s30 + $0x238] sm:$0xff]  }
0x2f44   : > { %v4527_v41 = vpack.c.bf16 %v4524_v39, %v4523_v27  ;;  %v9380_v54 = vld [vmem:[%s13304_s17 + $0x20] sm:$0xf] }
0x2f46   : > { %11565 = vmatprep.subr.bf16.mxu0 %v4527_v41 }
0x2f47   : > { %11566 = vmatpush3.bf16.msra.mxu0 %v4527_v41 }
0x2f48   : > { %11567 = vmatprep.subr.bf16.mxu0 %v4528_v10 }
0x2f4b   : > { %11568 = vmatpush3.bf16.msra.mxu0 %v4528_v10 }
0x2f4c   : > { %11573 = vmatprep.subr.bf16.mxu0 %v14522_v45 }
0x2f4e   : > { %11570 = vmatmul.mubr.msk.bf16.vlgmr.msra.gmra.mrb[132].mxu0 %vm630_vm3, %v14227_v31 }
0x2f4f   : > { %11574 = vmatpush3.bf16.msra.mxu0 %v14522_v45 }
0x2f50   : > { %11575 = vmatprep.subr.bf16.mxu0 %v14526_v24 }
0x2f53   : > { %11576 = vmatpush3.bf16.msra.mxu0 %v14526_v24 }
0x2f54   : > { %11577 = vmatprep.subr.bf16.mxu0 %v14533_v12 }
0x2f57   : > { %11578 = vmatpush3.bf16.msra.mxu0 %v14533_v12 }
0x2f58   : > { %11579 = vmatprep.subr.bf16.mxu0 %v14538_v2 }
0x2f5b   : > { %11580 = vmatpush3.bf16.msra.mxu0 %v14538_v2 }
0x2f5c   : > { %11581 = vmatprep.subr.bf16.mxu0 %v14543_v3 }
0x2f5f   : > { %11582 = vmatpush3.bf16.msra.mxu0 %v14543_v3 }
0x2f60   : > { %11583 = vmatprep.subr.bf16.mxu0 %v14548_v4 }
0x2f63   : > { %11584 = vmatpush3.bf16.msra.mxu0 %v14548_v4 }
0x2f64   : > { %11585 = vmatprep.subr.bf16.mxu0 %v14553_v34 }
0x2f67   : > { %11586 = vmatpush3.bf16.msra.mxu0 %v14553_v34 }
0x2f68   : > { %11587 = vmatprep.subr.bf16.mxu0 %v14558_v50 }
0x2f6b   : > { %11588 = vmatpush3.bf16.msra.mxu0 %v14558_v50 }
0x2f6c   : > { %11621 = vmatprep.subr.bf16.mxu0 %v13071_v0 }
0x3021   : > { %v11571_v31 = vpop.f32.mrb[132].mxu0 }
0x3022   : > { %v4563_v42 = vpop.f32.mrb[133].mxu0 }
0x3023   : > { %v11572_v55 = vpop.f32.mrb[134].mxu0 }
0x3024   : > { %v4579_v61 = vpack.c.bf16 %v11572_v55, %v11571_v31  ;;  %v4566_v9 = vpop.f32.mrb[135].mxu0 }
0x3025   : > { %v4578_v23 = vpack.c.bf16 %v4566_v9, %v4563_v42 }
0x3027   : > { %11589 = vmatprep.mubr.bf16.mxu0 %v4578_v23 }
0x3028   : > { %11590 = vmatmul.mubr.bf16.vlgmr.msra.gmra.mrb[136].mxu0 %v4579_v61 }
0x3029   : > { %11622 = vmatpush3.bf16.msra.mxu0 %v14436_v14  ;;  %11637 = vmatprep.mubr.msk.bf16.mxu0 %vm13072_vm0, %v13071_v0 }
0x302a   : > { %11623 = vmatprep.subr.bf16.mxu0 %v13071_v0 }
0x302d   : > { %11624 = vmatpush3.bf16.msra.mxu0 %v14445_v17 }
0x302e   : > { %11625 = vmatprep.subr.bf16.mxu0 %v13071_v0 }
0x3031   : > { %11626 = vmatpush3.bf16.msra.mxu0 %v14452_v46 }
0x3032   : > { %11627 = vmatprep.subr.bf16.mxu0 %v13071_v0 }
0x3035   : > { %11628 = vmatpush3.bf16.msra.mxu0 %v14459_v7 }
0x3036   : > { %11629 = vmatprep.subr.bf16.mxu0 %v13071_v0 }
0x3039   : > { %11630 = vmatpush3.bf16.msra.mxu0 %v14466_v8 }
0x303a   : > { %11631 = vmatprep.subr.bf16.mxu0 %v13071_v0 }
0x303d   : > { %11632 = vmatpush3.bf16.msra.mxu0 %v14473_v20 }
0x303e   : > { %11633 = vmatprep.subr.bf16.mxu0 %v13071_v0 }
0x3041   : > { %11634 = vmatpush3.bf16.msra.mxu0 %v14480_v15 }
0x3042   : > { %11635 = vmatprep.subr.bf16.mxu0 %v13071_v0 }
0x3045   : > { %11636 = vmatpush3.bf16.msra.mxu0 %v14487_v30 }
0x30fb   : > { %v11591_v26 = vpop.f32.mrb[136].mxu0 }
0x30fc   : > { %v4623_v62 = vadd.f32 %v11591_v26, %v13401_v59  ;;  %v4614_v16 = vpop.f32.mrb[137].mxu0 }
0x30fd   : > { %v4615_v49 = vadd.f32 %v4614_v16, %v13397_v57  ;;  %v11592_v51 = vpop.f32.mrb[138].mxu0 }
0x30fe   : > { %v4635_v52 = vmul.f32 0.1, %v4623_v62  ;;  %v4626_v5 = vadd.f32 %v11592_v51, %v13404_v63  ;;  %v4617_v60 = vpop.f32.mrb[139].mxu0  ;;  %vm4631_vm7 = vcmp.gt.f32.partialorder %v4623_v62, 0.0 }
0x30ff   : > { %v4633_v13 = vmul.f32 0.1, %v4615_v49  ;;  %v4618_v6 = vadd.f32 %v4617_v60, %v13399_v58  ;;  %vm4629_vm8 = vcmp.gt.f32.partialorder %v4615_v49, 0.0 }
0x3100   : > { %vm4632_vm9 = vcmp.gt.f32.partialorder %v4626_v5, 0.0  ;;  %v4636_v56 = vmul.f32 0.1, %v4626_v5  ;;  %v4639_v11 = vsel %vm4631_vm7, %v4623_v62, %v4635_v52 }
0x3101   : > { %vm4630_vm10 = vcmp.gt.f32.partialorder %v4618_v6, 0.0  ;;  %v4634_v32 = vmul.f32 0.1, %v4618_v6  ;;  %v4637_v21 = vsel %vm4629_vm8, %v4615_v49, %v4633_v13 }
0x3102   : > { %v4640_v19 = vsel %vm4632_vm9, %v4626_v5, %v4636_v56 }
0x3103   : > { %v4642_v22 = vpack.c.bf16 %v4640_v19, %v4639_v11  ;;  %v4638_v25 = vsel %vm4630_vm10, %v4618_v6, %v4634_v32 }
0x3104   : > { %v4641_v35 = vpack.c.bf16 %v4638_v25, %v4637_v21 }
0x3106   : > { %11594 = vmatpush3.bf16.msra.mxu1 %v4641_v35 }
0x3107   : > { %11595 = vmatprep.subr.bf16.mxu1 %v13071_v0 }
0x310a   : > { %11596 = vmatpush3.bf16.msra.mxu1 %v4642_v22 }
0x310b   : > { %11601 = vmatprep.subr.bf16.mxu1 %v13071_v0 }
0x310d   : > { %11598 = vmatmul.mubr.msk.bf16.vlgmr.msra.gmra.mrb[136].mxu1 %vm630_vm3, %v14499_v1 }
0x310e   : > { %11602 = vmatpush3.bf16.msra.mxu1 %v14522_v45  ;;  %11617 = vmatprep.mubr.msk.bf16.mxu1 %vm13072_vm0, %v13071_v0 }
0x310f   : > { %11603 = vmatprep.subr.bf16.mxu1 %v13071_v0 }
0x3112   : > { %11604 = vmatpush3.bf16.msra.mxu1 %v14526_v24  ;;  %v14667_v24 = vld [vmem:[%s13251_s30 + $0x200] sm:$0xff]  }
0x3113   : > { %11605 = vmatprep.subr.bf16.mxu1 %v13071_v0 }
0x3116   : > { %11606 = vmatpush3.bf16.msra.mxu1 %v14533_v12 }
0x3117   : > { %11607 = vmatprep.subr.bf16.mxu1 %v13071_v0 }
0x311a   : > { %11608 = vmatpush3.bf16.msra.mxu1 %v14538_v2 }
0x311b   : > { %11609 = vmatprep.subr.bf16.mxu1 %v13071_v0 }
0x311e   : > { %11610 = vmatpush3.bf16.msra.mxu1 %v14543_v3 }
0x311f   : > { %11611 = vmatprep.subr.bf16.mxu1 %v13071_v0 }
0x3122   : > { %11612 = vmatpush3.bf16.msra.mxu1 %v14548_v4 }
0x3123   : > { %11613 = vmatprep.subr.bf16.mxu1 %v13071_v0 }
0x3126   : > { %11614 = vmatpush3.bf16.msra.mxu1 %v14553_v34  ;;  %v14671_v34 = vld [vmem:[%s13251_s30 + $0x208] sm:$0xff]  }
0x3127   : > { %11615 = vmatprep.subr.bf16.mxu1 %v13071_v0 }
0x312a   : > { %11616 = vmatpush3.bf16.msra.mxu1 %v14558_v50  ;;  %v14678_v50 = vld [vmem:[%s13251_s30 + $0x210] sm:$0xff]  }
0x312b   : > { %11641 = vmatprep.subr.bf16.mxu1 %v13071_v0 }
0x31e0   : > { %v4677_v45 = vpop.f32.mrb[136].mxu1 }
0x31e1   : > { %v4683_v12 = vpack.c.bf16 %v4677_v45, %v4677_v45  ;;  %v11599_v2 = vpop.f32.mrb[137].mxu1 }
0x31e2   : > { %v4680_v3 = vpop.f32.mrb[138].mxu1 }
0x31e3   : > { %v11600_v4 = vpop.f32.mrb[139].mxu1  ;;  %11618 = vmatmul.mubr.bf16.vlgmr.msra.gmra.mrb[140].mxu1 %v4683_v12  ;;  %v14727_v3 = vld [vmem:[%s16038_s4 + $0x8] sm:$0xff]  }
0x31e4   : > { %11642 = vmatpush3.bf16.msra.mxu1 %v14667_v24  ;;  %11657 = vmatprep.mubr.msk.bf16.mxu1 %vm13072_vm0, %v13071_v0 }
0x31e5   : > { %11643 = vmatprep.subr.bf16.mxu1 %v13071_v0 }
0x31e8   : > { %11644 = vmatpush3.bf16.msra.mxu1 %v14671_v34 }
0x31e9   : > { %11645 = vmatprep.subr.bf16.mxu1 %v13071_v0 }
0x31ec   : > { %11646 = vmatpush3.bf16.msra.mxu1 %v14678_v50 }
0x31ed   : > { %11647 = vmatprep.subr.bf16.mxu1 %v13071_v0 }
0x31f0   : > { %11648 = vmatpush3.bf16.msra.mxu1 %v14683_v37 }
0x31f1   : > { %11649 = vmatprep.subr.bf16.mxu1 %v13071_v0 }
0x31f4   : > { %11650 = vmatpush3.bf16.msra.mxu1 %v14688_v18 }
0x31f5   : > { %11651 = vmatprep.subr.bf16.mxu1 %v13071_v0 }
0x31f8   : > { %11652 = vmatpush3.bf16.msra.mxu1 %v14693_v44 }
0x31f9   : > { %11653 = vmatprep.subr.bf16.mxu1 %v13071_v0 }
0x31fc   : > { %11654 = vmatpush3.bf16.msra.mxu1 %v14698_v47 }
0x31fd   : > { %11655 = vmatprep.subr.bf16.mxu1 %v13071_v0 }
0x3200   : > { %11656 = vmatpush3.bf16.msra.mxu1 %v14703_v53 }
0x3203   : > { %11658 = vmatmul.mubr.bf16.vlgmr.msra.gmra.mrb[144].mxu1 %v9380_v54 }
0x3204   : > { %11699 = vmatprep.mubr.msk.bf16.mxu1 %vm630_vm3, %v14361_v48 }
0x32b6   : > { %v4718_v27 = vpop.f32.mrb[140].mxu1 }
0x32b7   : > { %v4724_v39 = vpack.c.bf16 %v4718_v27, %v4718_v27  ;;  %v11619_v10 = vpop.f32.mrb[141].mxu1 }
0x32b8   : > { %v4721_v41 = vpop.f32.mrb[142].mxu1 }
0x32b9   : > { %v11620_v31 = vpop.f32.mrb[143].mxu1  ;;  %11638 = vmatmul.mubr.bf16.vlgmr.msra.gmra.mrb[140].mxu0 %v4724_v39 }
0x32ba   : > { %11663 = vmatprep.mubr.msk.bf16.mxu0 %vm546_vm1, %v14368_v40 }
0x32d6   : > { %v4872_v42 = vpop.f32.mrb[144].mxu1 }
0x32d7   : > { %v4878_v55 = vpack.c.bf16 %v4872_v42, %v4872_v42  ;;  %v11659_v61 = vpop.f32.mrb[145].mxu1 }
0x32d8   : > { %v4875_v9 = vpop.f32.mrb[146].mxu1 }
0x32d9   : > { %v4880_v23 = vsel %vm553_vm2, %v4878_v55, 0  ;;  %v11660_v26 = vpop.f32.mrb[147].mxu1  ;;  %12689 = vmatprep.subr.msk.bf16.mxu0 %vm553_vm2, %v4878_v55 }
0x32da   : > { %11662 = vmatpush3.bf16.msra.mxu0 %v4880_v23 }
0x32dd   : > { %11664 = vmatmul.mubr.msk.bf16.vlgmr.msra.gmra.mrb[144].mxu0 %vm546_vm1, %v14377_v43 }
0x32de   : > { %11671 = vmatprep.mubr.msk.bf16.mxu0 %vm630_vm3, %v14361_v48 }
0x338c   : > { %v4759_v62 = vpop.f32.mrb[140].mxu0 }
0x338d   : > { %v4760_v16 = vadd.f32 %v4759_v62, %v13583_v38  ;;  %v11639_v40 = vpop.f32.mrb[141].mxu0 }
0x338e   : > { %v4762_v49 = vpop.f32.mrb[142].mxu0 }
0x338f   : > { %4766 = vrot.lane.b32.xlu0 %v4760_v16, %s13080_s10  ;;  %v11640_v51 = vpop.f32.mrb[143].mxu0  ;;  %s13081_s10 = smov 64  }
0x33b0   : > { %v11665_v52 = vpop.f32.mrb[144].mxu0 }
0x33b1   : > { %v4925_v5 = vadd.f32 %v11665_v52, %v13359_v28  ;;  %v4916_v60 = vpop.f32.mrb[145].mxu0 }
0x33b2   : > { %v4917_v13 = vadd.f32 %v4916_v60, %v13361_v29  ;;  %v11666_v6 = vpop.f32.mrb[146].mxu0 }
0x33b3   : > { %v4937_v56 = vmul.f32 0.1, %v4925_v5  ;;  %v4928_v43 = vadd.f32 %v11666_v6, %v13364_v33  ;;  %v4919_v32 = vpop.f32.mrb[147].mxu0  ;;  %vm4933_vm11 = vcmp.gt.f32.partialorder %v4925_v5, 0.0 }
0x33b4   : > { %v4935_v48 = vmul.f32 0.1, %v4917_v13  ;;  %v4920_v11 = vadd.f32 %v4919_v32, %v13367_v36  ;;  %vm4931_vm12 = vcmp.gt.f32.partialorder %v4917_v13, 0.0 }
0x33b5   : > { %vm4934_vm13 = vcmp.gt.f32.partialorder %v4928_v43, 0.0  ;;  %v4938_v19 = vmul.f32 0.1, %v4928_v43  ;;  %v4941_v22 = vsel %vm4933_vm11, %v4925_v5, %v4937_v56 }
0x33b6   : > { %vm4932_vm14 = vcmp.gt.f32.partialorder %v4920_v11, 0.0  ;;  %v4936_v21 = vmul.f32 0.1, %v4920_v11  ;;  %v4939_v35 = vsel %vm4931_vm12, %v4917_v13, %v4935_v48 }
0x33b7   : > { %v4942_v25 = vsel %vm4934_vm13, %v4928_v43, %v4938_v19 }
0x33b8   : > { %v4940_v45 = vsel %vm4932_vm14, %v4920_v11, %v4936_v21  ;;  %v4944_v12 = vpack.c.bf16 %v4942_v25, %v4941_v22 }
0x33b9   : > { %v4943_v2 = vpack.c.bf16 %v4940_v45, %v4939_v35 }
0x33bb   : > { %11667 = vmatprep.subr.bf16.mxu0 %v4943_v2 }
0x33bc   : > { %11668 = vmatpush3.bf16.msra.mxu0 %v4943_v2 }
0x33bd   : > { %11669 = vmatprep.subr.bf16.mxu0 %v4944_v12 }
0x33c0   : > { %11670 = vmatpush3.bf16.msra.mxu0 %v4944_v12 }
0x33c1   : > { %11675 = vmatprep.subr.bf16.mxu0 %v14667_v24 }
0x33c3   : > { %11672 = vmatmul.mubr.msk.bf16.vlgmr.msra.gmra.mrb[148].mxu0 %vm630_vm3, %v14727_v3 }
0x33c4   : > { %11676 = vmatpush3.bf16.msra.mxu0 %v14667_v24 }
0x33c5   : > { %11677 = vmatprep.subr.bf16.mxu0 %v14671_v34 }
0x33c8   : > { %11678 = vmatpush3.bf16.msra.mxu0 %v14671_v34 }
0x33c9   : > { %11679 = vmatprep.subr.bf16.mxu0 %v14678_v50 }
0x33cc   : > { %11680 = vmatpush3.bf16.msra.mxu0 %v14678_v50 }
0x33cd   : > { %11681 = vmatprep.subr.bf16.mxu0 %v14683_v37 }
0x33d0   : > { %11682 = vmatpush3.bf16.msra.mxu0 %v14683_v37 }
0x33d1   : > { %11683 = vmatprep.subr.bf16.mxu0 %v14688_v18 }
0x33d4   : > { %11684 = vmatpush3.bf16.msra.mxu0 %v14688_v18 }
0x33d5   : > { %11685 = vmatprep.subr.bf16.mxu0 %v14693_v44 }
0x33d8   : > { %11686 = vmatpush3.bf16.msra.mxu0 %v14693_v44 }
0x33d9   : > { %11687 = vmatprep.subr.bf16.mxu0 %v14698_v47 }
0x33dc   : > { %11688 = vmatpush3.bf16.msra.mxu0 %v14698_v47 }
0x33dd   : > { %11689 = vmatprep.subr.bf16.mxu0 %v14703_v53 }
0x33e0   : > { %11690 = vmatpush3.bf16.msra.mxu0 %v14703_v53 }
0x33e1   : > { %11723 = vmatprep.subr.bf16.mxu0 %v13071_v0 }
0x3401   : > { %v4767_v4 = vpop.permute.xlu0 %4766 }
0x3402   : > { %4770 = vst.msk [vmem:[%s13587_s26] sm:$0x1] %vm4769_vm15, %v4767_v4 }
0x3496   : > { %v11673_v54 = vpop.f32.mrb[148].mxu0 }
0x3497   : > { %v4979_v27 = vpop.f32.mrb[149].mxu0 }
0x3498   : > { %v11674_v39 = vpop.f32.mrb[150].mxu0 }
0x3499   : > { %v4995_v10 = vpack.c.bf16 %v11674_v39, %v11673_v54  ;;  %v4982_v41 = vpop.f32.mrb[151].mxu0 }
0x349a   : > { %v4994_v31 = vpack.c.bf16 %v4982_v41, %v4979_v27  ;;  %v14838_v41 = vld [vmem:[%s13251_s30 + $0x260] sm:$0xff]  }
0x349c   : > { %11691 = vmatprep.mubr.bf16.mxu0 %v4994_v31  ;;  %v14843_v31 = vld [vmem:[%s13251_s30 + $0x268] sm:$0xff]  }
0x349d   : > { %11692 = vmatmul.mubr.bf16.vlgmr.msra.gmra.mrb[152].mxu0 %v4995_v10 }
0x349e   : > { %11727 = vmatprep.mubr.msk.bf16.mxu0 %vm13072_vm0, %v13071_v0 }
0x3570   : > { %v11693_v42 = vpop.f32.mrb[152].mxu0 }
0x3571   : > { %v5039_v55 = vadd.f32 %v11693_v42, %v13401_v59  ;;  %v5030_v61 = vpop.f32.mrb[153].mxu0  ;;  %v14848_v42 = vld [vmem:[%s13251_s30 + $0x270] sm:$0xff]  }
0x3572   : > { %v5031_v9 = vadd.f32 %v5030_v61, %v13397_v57  ;;  %v11694_v23 = vpop.f32.mrb[154].mxu0  ;;  %v9412_v61 = vld [vmem:[%s13304_s17 + $0x24] sm:$0xf] }
0x3573   : > { %v5051_v26 = vmul.f32 0.1, %v5039_v55  ;;  %v5042_v62 = vadd.f32 %v11694_v23, %v13404_v63  ;;  %v5033_v16 = vpop.f32.mrb[155].mxu0  ;;  %vm5047_vm4 = vcmp.gt.f32.partialorder %v5039_v55, 0.0 }
0x3574   : > { %v5049_v40 = vmul.f32 0.1, %v5031_v9  ;;  %v5034_v49 = vadd.f32 %v5033_v16, %v13399_v58  ;;  %vm5045_vm5 = vcmp.gt.f32.partialorder %v5031_v9, 0.0 }
0x3575   : > { %vm5048_vm6 = vcmp.gt.f32.partialorder %v5042_v62, 0.0  ;;  %v5052_v51 = vmul.f32 0.1, %v5042_v62  ;;  %v5055_v5 = vsel %vm5047_vm4, %v5039_v55, %v5051_v26  ;;  %v14853_v55 = vld [vmem:[%s13251_s30 + $0x278] sm:$0xff]   ;;  %vm5299_vm4 = vcmask 582144  }
0x3576   : > { %vm5046_vm7 = vcmp.gt.f32.partialorder %v5034_v49, 0.0  ;;  %v5050_v52 = vmul.f32 0.1, %v5034_v49  ;;  %v5053_v13 = vsel %vm5045_vm5, %v5031_v9, %v5049_v40  ;;  %v14861_v9 = vld [vmem:[%s16038_s4] sm:$0xff]  }
0x3577   : > { %v5056_v60 = vsel %vm5048_vm6, %v5042_v62, %v5052_v51 }
0x3578   : > { %v5054_v6 = vsel %vm5046_vm7, %v5034_v49, %v5050_v52  ;;  %v5058_v56 = vpack.c.bf16 %v5056_v60, %v5055_v5  ;;  %v14868_v49 = vld [vmem:[%s16036_s2] sm:$0xff]  }
0x3579   : > { %v5057_v43 = vpack.c.bf16 %v5054_v6, %v5053_v13 }
0x357b   : > { %11695 = vmatprep.subr.bf16.mxu1 %v5057_v43 }
0x357c   : > { %11696 = vmatpush3.bf16.msra.mxu1 %v5057_v43 }
0x357d   : > { %11697 = vmatprep.subr.bf16.mxu1 %v5058_v56 }
0x3580   : > { %11698 = vmatpush3.bf16.msra.mxu1 %v5058_v56  ;;  %v14877_v56 = vld [vmem:[%s16036_s2 + $0x8] sm:$0xff]  }
0x3581   : > { %11703 = vmatprep.subr.bf16.mxu1 %v14667_v24 }
0x3583   : > { %11700 = vmatmul.mubr.msk.bf16.vlgmr.msra.gmra.mrb[148].mxu1 %vm630_vm3, %v14727_v3 }
0x3584   : > { %11704 = vmatpush3.bf16.msra.mxu1 %v14667_v24 }
0x3585   : > { %11705 = vmatprep.subr.bf16.mxu1 %v14671_v34 }
0x3588   : > { %11706 = vmatpush3.bf16.msra.mxu1 %v14671_v34 }
0x3589   : > { %11707 = vmatprep.subr.bf16.mxu1 %v14678_v50 }
0x358c   : > { %11708 = vmatpush3.bf16.msra.mxu1 %v14678_v50 }
0x358d   : > { %11709 = vmatprep.subr.bf16.mxu1 %v14683_v37 }
0x3590   : > { %11710 = vmatpush3.bf16.msra.mxu1 %v14683_v37 }
0x3591   : > { %11711 = vmatprep.subr.bf16.mxu1 %v14688_v18 }
0x3594   : > { %11712 = vmatpush3.bf16.msra.mxu1 %v14688_v18 }
0x3595   : > { %11713 = vmatprep.subr.bf16.mxu1 %v14693_v44 }
0x3598   : > { %11714 = vmatpush3.bf16.msra.mxu1 %v14693_v44 }
0x3599   : > { %11715 = vmatprep.subr.bf16.mxu1 %v14698_v47 }
0x359c   : > { %11716 = vmatpush3.bf16.msra.mxu1 %v14698_v47 }
0x359d   : > { %11717 = vmatprep.subr.bf16.mxu1 %v14703_v53 }
0x35a0   : > { %11718 = vmatpush3.bf16.msra.mxu1 %v14703_v53 }
0x35a1   : > { %11751 = vmatprep.subr.bf16.mxu1 %v13071_v0 }
0x3656   : > { %v11701_v32 = vpop.f32.mrb[148].mxu1 }
0x3657   : > { %v5093_v48 = vpop.f32.mrb[149].mxu1 }
0x3658   : > { %v11702_v11 = vpop.f32.mrb[150].mxu1 }
0x3659   : > { %v5109_v19 = vpack.c.bf16 %v11702_v11, %v11701_v32  ;;  %v5096_v21 = vpop.f32.mrb[151].mxu1 }
0x365a   : > { %v5108_v22 = vpack.c.bf16 %v5096_v21, %v5093_v48 }
0x365c   : > { %11719 = vmatprep.mubr.bf16.mxu1 %v5108_v22 }
0x365d   : > { %11720 = vmatmul.mubr.bf16.vlgmr.msra.gmra.mrb[152].mxu1 %v5109_v19 }
0x365e   : > { %11752 = vmatpush3.bf16.msra.mxu1 %v14436_v14  ;;  %11767 = vmatprep.mubr.msk.bf16.mxu1 %vm13072_vm0, %v13071_v0 }
0x365f   : > { %11753 = vmatprep.subr.bf16.mxu1 %v13071_v0 }
0x3662   : > { %11754 = vmatpush3.bf16.msra.mxu1 %v14445_v17 }
0x3663   : > { %11755 = vmatprep.subr.bf16.mxu1 %v13071_v0 }
0x3666   : > { %11756 = vmatpush3.bf16.msra.mxu1 %v14452_v46 }
0x3667   : > { %11757 = vmatprep.subr.bf16.mxu1 %v13071_v0 }
0x366a   : > { %11758 = vmatpush3.bf16.msra.mxu1 %v14459_v7 }
0x366b   : > { %11759 = vmatprep.subr.bf16.mxu1 %v13071_v0 }
0x366e   : > { %11760 = vmatpush3.bf16.msra.mxu1 %v14466_v8 }
0x366f   : > { %11761 = vmatprep.subr.bf16.mxu1 %v13071_v0 }
0x3672   : > { %11762 = vmatpush3.bf16.msra.mxu1 %v14473_v20 }
0x3673   : > { %11763 = vmatprep.subr.bf16.mxu1 %v13071_v0 }
0x3676   : > { %11764 = vmatpush3.bf16.msra.mxu1 %v14480_v15 }
0x3677   : > { %11765 = vmatprep.subr.bf16.mxu1 %v13071_v0 }
0x367a   : > { %11766 = vmatpush3.bf16.msra.mxu1 %v14487_v30 }
0x3730   : > { %v11721_v14 = vpop.f32.mrb[152].mxu1 }
0x3731   : > { %v5153_v17 = vadd.f32 %v11721_v14, %v13401_v59  ;;  %v5144_v46 = vpop.f32.mrb[153].mxu1 }
0x3732   : > { %v5145_v7 = vadd.f32 %v5144_v46, %v13397_v57  ;;  %v11722_v25 = vpop.f32.mrb[154].mxu1 }
0x3733   : > { %v5165_v8 = vmul.f32 0.1, %v5153_v17  ;;  %v5156_v35 = vadd.f32 %v11722_v25, %v13404_v63  ;;  %v5147_v45 = vpop.f32.mrb[155].mxu1  ;;  %vm5161_vm8 = vcmp.gt.f32.partialorder %v5153_v17, 0.0 }
0x3734   : > { %v5163_v20 = vmul.f32 0.1, %v5145_v7  ;;  %v5148_v12 = vadd.f32 %v5147_v45, %v13399_v58  ;;  %vm5159_vm9 = vcmp.gt.f32.partialorder %v5145_v7, 0.0 }
0x3735   : > { %vm5162_vm10 = vcmp.gt.f32.partialorder %v5156_v35, 0.0  ;;  %v5166_v15 = vmul.f32 0.1, %v5156_v35  ;;  %v5169_v2 = vsel %vm5161_vm8, %v5153_v17, %v5165_v8 }
0x3736   : > { %vm5160_vm11 = vcmp.gt.f32.partialorder %v5148_v12, 0.0  ;;  %v5164_v30 = vmul.f32 0.1, %v5148_v12  ;;  %v5167_v54 = vsel %vm5159_vm9, %v5145_v7, %v5163_v20 }
0x3737   : > { %v5170_v4 = vsel %vm5162_vm10, %v5156_v35, %v5166_v15 }
0x3738   : > { %v5172_v27 = vpack.c.bf16 %v5170_v4, %v5169_v2  ;;  %v5168_v39 = vsel %vm5160_vm11, %v5148_v12, %v5164_v30 }
0x3739   : > { %v5171_v10 = vpack.c.bf16 %v5168_v39, %v5167_v54 }
0x373b   : > { %11724 = vmatpush3.bf16.msra.mxu0 %v5171_v10 }
0x373c   : > { %11725 = vmatprep.subr.bf16.mxu0 %v13071_v0 }
0x373f   : > { %11726 = vmatpush3.bf16.msra.mxu0 %v5172_v27 }
0x3740   : > { %11731 = vmatprep.subr.bf16.mxu0 %v13071_v0 }
0x3742   : > { %11728 = vmatmul.mubr.msk.bf16.vlgmr.msra.gmra.mrb[156].mxu0 %vm630_vm3, %v14499_v1 }
0x3743   : > { %11732 = vmatpush3.bf16.msra.mxu0 %v14667_v24  ;;  %11747 = vmatprep.mubr.msk.bf16.mxu0 %vm13072_vm0, %v13071_v0  ;;  %v14817_v24 = vld [vmem:[%s13251_s30 + $0x240] sm:$0xff]  }
0x3744   : > { %11733 = vmatprep.subr.bf16.mxu0 %v13071_v0 }
0x3747   : > { %11734 = vmatpush3.bf16.msra.mxu0 %v14671_v34 }
0x3748   : > { %11735 = vmatprep.subr.bf16.mxu0 %v13071_v0 }
0x374b   : > { %11736 = vmatpush3.bf16.msra.mxu0 %v14678_v50 }
0x374c   : > { %11737 = vmatprep.subr.bf16.mxu0 %v13071_v0 }
0x374f   : > { %11738 = vmatpush3.bf16.msra.mxu0 %v14683_v37 }
0x3750   : > { %11739 = vmatprep.subr.bf16.mxu0 %v13071_v0 }
0x3753   : > { %11740 = vmatpush3.bf16.msra.mxu0 %v14688_v18 }
0x3754   : > { %11741 = vmatprep.subr.bf16.mxu0 %v13071_v0 }
0x3757   : > { %11742 = vmatpush3.bf16.msra.mxu0 %v14693_v44  ;;  %v14821_v44 = vld [vmem:[%s13251_s30 + $0x248] sm:$0xff]  }
0x3758   : > { %11743 = vmatprep.subr.bf16.mxu0 %v13071_v0 }
0x375b   : > { %11744 = vmatpush3.bf16.msra.mxu0 %v14698_v47  ;;  %v14828_v47 = vld [vmem:[%s13251_s30 + $0x250] sm:$0xff]  }
0x375c   : > { %11745 = vmatprep.subr.bf16.mxu0 %v13071_v0 }
0x375f   : > { %11746 = vmatpush3.bf16.msra.mxu0 %v14703_v53  ;;  %v14833_v53 = vld [vmem:[%s13251_s30 + $0x258] sm:$0xff]  }
0x3760   : > { %11771 = vmatprep.subr.bf16.mxu0 %v13071_v0 }
0x3815   : > { %v5207_v1 = vpop.f32.mrb[156].mxu0 }
0x3816   : > { %v5213_v34 = vpack.c.bf16 %v5207_v1, %v5207_v1  ;;  %v11729_v50 = vpop.f32.mrb[157].mxu0 }
0x3817   : > { %v5210_v37 = vpop.f32.mrb[158].mxu0 }
0x3818   : > { %v11730_v18 = vpop.f32.mrb[159].mxu0  ;;  %11748 = vmatmul.mubr.bf16.vlgmr.msra.gmra.mrb[160].mxu0 %v5213_v34 }
0x3819   : > { %11772 = vmatpush3.bf16.msra.mxu0 %v14817_v24  ;;  %11787 = vmatprep.mubr.msk.bf16.mxu0 %vm13072_vm0, %v13071_v0 }
0x381a   : > { %11773 = vmatprep.subr.bf16.mxu0 %v13071_v0 }
0x381d   : > { %11774 = vmatpush3.bf16.msra.mxu0 %v14821_v44 }
0x381e   : > { %11775 = vmatprep.subr.bf16.mxu0 %v13071_v0 }
0x3821   : > { %11776 = vmatpush3.bf16.msra.mxu0 %v14828_v47 }
0x3822   : > { %11777 = vmatprep.subr.bf16.mxu0 %v13071_v0 }
0x3825   : > { %11778 = vmatpush3.bf16.msra.mxu0 %v14833_v53 }
0x3826   : > { %11779 = vmatprep.subr.bf16.mxu0 %v13071_v0 }
0x3829   : > { %11780 = vmatpush3.bf16.msra.mxu0 %v14838_v41 }
0x382a   : > { %11781 = vmatprep.subr.bf16.mxu0 %v13071_v0 }
0x382d   : > { %11782 = vmatpush3.bf16.msra.mxu0 %v14843_v31 }
0x382e   : > { %11783 = vmatprep.subr.bf16.mxu0 %v13071_v0 }
0x3831   : > { %11784 = vmatpush3.bf16.msra.mxu0 %v14848_v42 }
0x3832   : > { %11785 = vmatprep.subr.bf16.mxu0 %v13071_v0 }
0x3835   : > { %11786 = vmatpush3.bf16.msra.mxu0 %v14853_v55 }
0x3838   : > { %11788 = vmatmul.mubr.bf16.vlgmr.msra.gmra.mrb[164].mxu0 %v9412_v61 }
0x3839   : > { %11829 = vmatprep.mubr.msk.bf16.mxu0 %vm630_vm3, %v14861_v9 }
0x38eb   : > { %v5248_v23 = vpop.f32.mrb[160].mxu0 }
0x38ec   : > { %v5254_v26 = vpack.c.bf16 %v5248_v23, %v5248_v23  ;;  %v11749_v62 = vpop.f32.mrb[161].mxu0 }
0x38ed   : > { %v5251_v16 = vpop.f32.mrb[162].mxu0 }
0x38ee   : > { %v11750_v40 = vpop.f32.mrb[163].mxu0  ;;  %11768 = vmatmul.mubr.bf16.vlgmr.msra.gmra.mrb[156].mxu1 %v5254_v26 }
0x38ef   : > { %11793 = vmatprep.mubr.msk.bf16.mxu1 %vm546_vm1, %v14868_v49 }
0x390b   : > { %v5402_v51 = vpop.f32.mrb[164].mxu0 }
0x390c   : > { %v5408_v52 = vpack.c.bf16 %v5402_v51, %v5402_v51  ;;  %v11789_v5 = vpop.f32.mrb[165].mxu0 }
0x390d   : > { %v5405_v60 = vpop.f32.mrb[166].mxu0 }
0x390e   : > { %v5410_v13 = vsel %vm553_vm2, %v5408_v52, 0  ;;  %v11790_v6 = vpop.f32.mrb[167].mxu0  ;;  %12690 = vmatprep.subr.msk.bf16.mxu1 %vm553_vm2, %v5408_v52 }
0x390f   : > { %11792 = vmatpush3.bf16.msra.mxu1 %v5410_v13 }
0x3912   : > { %11794 = vmatmul.mubr.msk.bf16.vlgmr.msra.gmra.mrb[160].mxu1 %vm546_vm1, %v14877_v56 }
0x3913   : > { %11801 = vmatprep.mubr.msk.bf16.mxu1 %vm630_vm3, %v14861_v9 }
0x39c1   : > { %v5289_v43 = vpop.f32.mrb[156].mxu1 }
0x39c2   : > { %v5290_v32 = vadd.f32 %v5289_v43, %v13583_v38  ;;  %v11769_v48 = vpop.f32.mrb[157].mxu1 }
0x39c3   : > { %v5292_v11 = vpop.f32.mrb[158].mxu1 }
0x39c4   : > { %5296 = vrot.lane.b32.xlu1 %v5290_v32, %s13081_s10  ;;  %v11770_v19 = vpop.f32.mrb[159].mxu1  ;;  %s13088_s10 = smov 120  }
0x39e5   : > { %v11795_v21 = vpop.f32.mrb[160].mxu1 }
0x39e6   : > { %v5455_v22 = vadd.f32 %v11795_v21, %v13359_v28  ;;  %v5446_v14 = vpop.f32.mrb[161].mxu1 }
0x39e7   : > { %v5447_v17 = vadd.f32 %v5446_v14, %v13361_v29  ;;  %v11796_v46 = vpop.f32.mrb[162].mxu1 }
0x39e8   : > { %v5467_v7 = vmul.f32 0.1, %v5455_v22  ;;  %v5458_v25 = vadd.f32 %v11796_v46, %v13364_v33  ;;  %v5449_v8 = vpop.f32.mrb[163].mxu1  ;;  %vm5463_vm12 = vcmp.gt.f32.partialorder %v5455_v22, 0.0 }
0x39e9   : > { %v5465_v35 = vmul.f32 0.1, %v5447_v17  ;;  %v5450_v45 = vadd.f32 %v5449_v8, %v13367_v36  ;;  %vm5461_vm13 = vcmp.gt.f32.partialorder %v5447_v17, 0.0  ;;  %v14936_v8 = vld [vmem:[%s16041_s7] sm:$0xff]  }
0x39ea   : > { %vm5464_vm14 = vcmp.gt.f32.partialorder %v5458_v25, 0.0  ;;  %v5468_v20 = vmul.f32 0.1, %v5458_v25  ;;  %v5471_v15 = vsel %vm5463_vm12, %v5455_v22, %v5467_v7 }
0x39eb   : > { %vm5462_vm15 = vcmp.gt.f32.partialorder %v5450_v45, 0.0  ;;  %v5466_v12 = vmul.f32 0.1, %v5450_v45  ;;  %v5469_v2 = vsel %vm5461_vm13, %v5447_v17, %v5465_v35  ;;  %v14945_v35 = vld [vmem:[%s16041_s7 + $0x8] sm:$0xff]  }
0x39ec   : > { %v5472_v30 = vsel %vm5464_vm14, %v5458_v25, %v5468_v20  ;;  %v14959_v20 = vld [vmem:[%s16041_s7 + $0x18] sm:$0xff]  }
0x39ed   : > { %v5470_v4 = vsel %vm5462_vm15, %v5450_v45, %v5466_v12  ;;  %v5474_v54 = vpack.c.bf16 %v5472_v30, %v5471_v15  ;;  %v14952_v45 = vld [vmem:[%s16041_s7 + $0x10] sm:$0xff]   ;;  %v14966_v12 = vld [vmem:[%s16041_s7 + $0x20] sm:$0xff]   ;;  %v14973_v15 = vld [vmem:[%s16041_s7 + $0x28] sm:$0xff]  }
0x39ee   : > { %v5473_v27 = vpack.c.bf16 %v5470_v4, %v5469_v2  ;;  %v14980_v30 = vld [vmem:[%s16041_s7 + $0x30] sm:$0xff]   ;;  %v14987_v2 = vld [vmem:[%s16041_s7 + $0x38] sm:$0xff]  }
0x39f0   : > { %11797 = vmatprep.subr.bf16.mxu1 %v5473_v27 }
0x39f1   : > { %11798 = vmatpush3.bf16.msra.mxu1 %v5473_v27 }
0x39f2   : > { %11799 = vmatprep.subr.bf16.mxu1 %v5474_v54 }
0x39f5   : > { %11800 = vmatpush3.bf16.msra.mxu1 %v5474_v54 }
0x39f6   : > { %11805 = vmatprep.subr.bf16.mxu1 %v14817_v24 }
0x39f8   : > { %11802 = vmatmul.mubr.msk.bf16.vlgmr.msra.gmra.mrb[164].mxu1 %vm630_vm3, %v14727_v3 }
0x39f9   : > { %11806 = vmatpush3.bf16.msra.mxu1 %v14817_v24 }
0x39fa   : > { %11807 = vmatprep.subr.bf16.mxu1 %v14821_v44 }
0x39fd   : > { %11808 = vmatpush3.bf16.msra.mxu1 %v14821_v44 }
0x39fe   : > { %11809 = vmatprep.subr.bf16.mxu1 %v14828_v47 }
0x3a01   : > { %11810 = vmatpush3.bf16.msra.mxu1 %v14828_v47 }
0x3a02   : > { %11811 = vmatprep.subr.bf16.mxu1 %v14833_v53 }
0x3a05   : > { %11812 = vmatpush3.bf16.msra.mxu1 %v14833_v53 }
0x3a06   : > { %11813 = vmatprep.subr.bf16.mxu1 %v14838_v41 }
0x3a09   : > { %11814 = vmatpush3.bf16.msra.mxu1 %v14838_v41 }
0x3a0a   : > { %11815 = vmatprep.subr.bf16.mxu1 %v14843_v31 }
0x3a0d   : > { %11816 = vmatpush3.bf16.msra.mxu1 %v14843_v31 }
0x3a0e   : > { %11817 = vmatprep.subr.bf16.mxu1 %v14848_v42 }
0x3a11   : > { %11818 = vmatpush3.bf16.msra.mxu1 %v14848_v42 }
0x3a12   : > { %11819 = vmatprep.subr.bf16.mxu1 %v14853_v55 }
0x3a15   : > { %11820 = vmatpush3.bf16.msra.mxu1 %v14853_v55 }
0x3a16   : > { %11853 = vmatprep.subr.bf16.mxu1 %v13071_v0 }
0x3a36   : > { %v5297_v39 = vpop.permute.xlu1 %5296 }
0x3a37   : > { %5300 = vst.msk [vmem:[%s13587_s26] sm:$0x1] %vm5299_vm4, %v5297_v39 }
0x3acb   : > { %v11803_v10 = vpop.f32.mrb[164].mxu1 }
0x3acc   : > { %v5509_v1 = vpop.f32.mrb[165].mxu1 }
0x3acd   : > { %v11804_v34 = vpop.f32.mrb[166].mxu1 }
0x3ace   : > { %v5525_v50 = vpack.c.bf16 %v11804_v34, %v11803_v10  ;;  %v5512_v37 = vpop.f32.mrb[167].mxu1 }
0x3acf   : > { %v5524_v18 = vpack.c.bf16 %v5512_v37, %v5509_v1 }
0x3ad1   : > { %11821 = vmatprep.mubr.bf16.mxu1 %v5524_v18 }
0x3ad2   : > { %11822 = vmatmul.mubr.bf16.vlgmr.msra.gmra.mrb[168].mxu1 %v5525_v50 }
0x3ad3   : > { %11857 = vmatprep.mubr.msk.bf16.mxu1 %vm13072_vm0, %v13071_v0 }
0x3ba5   : > { %v11823_v61 = vpop.f32.mrb[168].mxu1 }
0x3ba6   : > { %v5569_v23 = vadd.f32 %v11823_v61, %v13401_v59  ;;  %v5560_v26 = vpop.f32.mrb[169].mxu1 }
0x3ba7   : > { %v5561_v62 = vadd.f32 %v5560_v26, %v13397_v57  ;;  %v11824_v16 = vpop.f32.mrb[170].mxu1 }
0x3ba8   : > { %v5581_v40 = vmul.f32 0.1, %v5569_v23  ;;  %v5572_v51 = vadd.f32 %v11824_v16, %v13404_v63  ;;  %v5563_v52 = vpop.f32.mrb[171].mxu1  ;;  %vm5577_vm5 = vcmp.gt.f32.partialorder %v5569_v23, 0.0 }
0x3ba9   : > { %v5579_v5 = vmul.f32 0.1, %v5561_v62  ;;  %v5564_v60 = vadd.f32 %v5563_v52, %v13399_v58  ;;  %vm5575_vm6 = vcmp.gt.f32.partialorder %v5561_v62, 0.0 }
0x3baa   : > { %vm5578_vm7 = vcmp.gt.f32.partialorder %v5572_v51, 0.0  ;;  %v5582_v13 = vmul.f32 0.1, %v5572_v51  ;;  %v5585_v43 = vsel %vm5577_vm5, %v5569_v23, %v5581_v40  ;;  %vm5829_vm5 = vcmask 647744  }
0x3bab   : > { %vm5576_vm8 = vcmp.gt.f32.partialorder %v5564_v60, 0.0  ;;  %v5580_v6 = vmul.f32 0.1, %v5564_v60  ;;  %v5583_v48 = vsel %vm5575_vm6, %v5561_v62, %v5579_v5  ;;  %v14999_v5 = vld [vmem:[%s16040_s6] sm:$0x1] }
0x3bac   : > { %v5586_v32 = vsel %vm5578_vm7, %v5572_v51, %v5582_v13  ;;  %v15043_v13 = vld [vmem:[%s13251_s30 + $0x2a0] sm:$0xff]  }
0x3bad   : > { %v5584_v11 = vsel %vm5576_vm8, %v5564_v60, %v5580_v6  ;;  %v5588_v19 = vpack.c.bf16 %v5586_v32, %v5585_v43  ;;  %v15038_v60 = vld [vmem:[%s13251_s30 + $0x298] sm:$0xff]   ;;  %v15048_v6 = vld [vmem:[%s13251_s30 + $0x2a8] sm:$0xff]   ;;  %v15053_v43 = vld [vmem:[%s13251_s30 + $0x2b0] sm:$0xff]  }
0x3bae   : > { %v5587_v21 = vpack.c.bf16 %v5584_v11, %v5583_v48  ;;  %v15058_v32 = vld [vmem:[%s13251_s30 + $0x2b8] sm:$0xff]   ;;  %v9444_v48 = vld [vmem:[%s13304_s17 + $0x28] sm:$0xf] }
0x3bb0   : > { %11825 = vmatprep.subr.bf16.mxu0 %v5587_v21 }
0x3bb1   : > { %11826 = vmatpush3.bf16.msra.mxu0 %v5587_v21 }
0x3bb2   : > { %11827 = vmatprep.subr.bf16.mxu0 %v5588_v19 }
0x3bb5   : > { %11828 = vmatpush3.bf16.msra.mxu0 %v5588_v19 }
0x3bb6   : > { %11833 = vmatprep.subr.bf16.mxu0 %v14817_v24 }
0x3bb8   : > { %11830 = vmatmul.mubr.msk.bf16.vlgmr.msra.gmra.mrb[168].mxu0 %vm630_vm3, %v14727_v3 }
0x3bb9   : > { %11834 = vmatpush3.bf16.msra.mxu0 %v14817_v24 }
0x3bba   : > { %11835 = vmatprep.subr.bf16.mxu0 %v14821_v44 }
0x3bbd   : > { %11836 = vmatpush3.bf16.msra.mxu0 %v14821_v44 }
0x3bbe   : > { %11837 = vmatprep.subr.bf16.mxu0 %v14828_v47 }
0x3bc1   : > { %11838 = vmatpush3.bf16.msra.mxu0 %v14828_v47 }
0x3bc2   : > { %11839 = vmatprep.subr.bf16.mxu0 %v14833_v53 }
0x3bc5   : > { %11840 = vmatpush3.bf16.msra.mxu0 %v14833_v53 }
0x3bc6   : > { %11841 = vmatprep.subr.bf16.mxu0 %v14838_v41 }
0x3bc9   : > { %11842 = vmatpush3.bf16.msra.mxu0 %v14838_v41 }
0x3bca   : > { %11843 = vmatprep.subr.bf16.mxu0 %v14843_v31 }
0x3bcd   : > { %11844 = vmatpush3.bf16.msra.mxu0 %v14843_v31 }
0x3bce   : > { %11845 = vmatprep.subr.bf16.mxu0 %v14848_v42 }
0x3bd1   : > { %11846 = vmatpush3.bf16.msra.mxu0 %v14848_v42 }
0x3bd2   : > { %11847 = vmatprep.subr.bf16.mxu0 %v14853_v55 }
0x3bd5   : > { %11848 = vmatpush3.bf16.msra.mxu0 %v14853_v55 }
0x3bd6   : > { %11881 = vmatprep.subr.bf16.mxu0 %v13071_v0 }
0x3c8b   : > { %v11831_v22 = vpop.f32.mrb[168].mxu0 }
0x3c8c   : > { %v5623_v14 = vpop.f32.mrb[169].mxu0 }
0x3c8d   : > { %v11832_v17 = vpop.f32.mrb[170].mxu0 }
0x3c8e   : > { %v5639_v46 = vpack.c.bf16 %v11832_v17, %v11831_v22  ;;  %v5626_v7 = vpop.f32.mrb[171].mxu0 }
0x3c8f   : > { %v5638_v25 = vpack.c.bf16 %v5626_v7, %v5623_v14 }
0x3c91   : > { %11849 = vmatprep.mubr.bf16.mxu0 %v5638_v25 }
0x3c92   : > { %11850 = vmatmul.mubr.bf16.vlgmr.msra.gmra.mrb[172].mxu0 %v5639_v46 }
0x3c93   : > { %11882 = vmatpush3.bf16.msra.mxu0 %v14936_v8  ;;  %11897 = vmatprep.mubr.msk.bf16.mxu0 %vm13072_vm0, %v13071_v0 }
0x3c94   : > { %11883 = vmatprep.subr.bf16.mxu0 %v13071_v0 }
0x3c97   : > { %11884 = vmatpush3.bf16.msra.mxu0 %v14945_v35 }
0x3c98   : > { %11885 = vmatprep.subr.bf16.mxu0 %v13071_v0 }
0x3c9b   : > { %11886 = vmatpush3.bf16.msra.mxu0 %v14952_v45 }
0x3c9c   : > { %11887 = vmatprep.subr.bf16.mxu0 %v13071_v0 }
0x3c9f   : > { %11888 = vmatpush3.bf16.msra.mxu0 %v14959_v20 }
0x3ca0   : > { %11889 = vmatprep.subr.bf16.mxu0 %v13071_v0 }
0x3ca3   : > { %11890 = vmatpush3.bf16.msra.mxu0 %v14966_v12 }
0x3ca4   : > { %11891 = vmatprep.subr.bf16.mxu0 %v13071_v0 }
0x3ca7   : > { %11892 = vmatpush3.bf16.msra.mxu0 %v14973_v15 }
0x3ca8   : > { %11893 = vmatprep.subr.bf16.mxu0 %v13071_v0 }
0x3cab   : > { %11894 = vmatpush3.bf16.msra.mxu0 %v14980_v30 }
0x3cac   : > { %11895 = vmatprep.subr.bf16.mxu0 %v13071_v0 }
0x3caf   : > { %11896 = vmatpush3.bf16.msra.mxu0 %v14987_v2 }
0x3d65   : > { %v11851_v4 = vpop.f32.mrb[172].mxu0 }
0x3d66   : > { %v5683_v54 = vadd.f32 %v11851_v4, %v13401_v59  ;;  %v5674_v27 = vpop.f32.mrb[173].mxu0 }
0x3d67   : > { %v5675_v39 = vadd.f32 %v5674_v27, %v13397_v57  ;;  %v11852_v10 = vpop.f32.mrb[174].mxu0 }
0x3d68   : > { %v5695_v1 = vmul.f32 0.1, %v5683_v54  ;;  %v5686_v34 = vadd.f32 %v11852_v10, %v13404_v63  ;;  %v5677_v50 = vpop.f32.mrb[175].mxu0  ;;  %vm5691_vm9 = vcmp.gt.f32.partialorder %v5683_v54, 0.0 }
0x3d69   : > { %v5693_v37 = vmul.f32 0.1, %v5675_v39  ;;  %v5678_v18 = vadd.f32 %v5677_v50, %v13399_v58  ;;  %vm5689_vm10 = vcmp.gt.f32.partialorder %v5675_v39, 0.0 }
0x3d6a   : > { %vm5692_vm11 = vcmp.gt.f32.partialorder %v5686_v34, 0.0  ;;  %v5696_v61 = vmul.f32 0.1, %v5686_v34  ;;  %v5699_v26 = vsel %vm5691_vm9, %v5683_v54, %v5695_v1 }
0x3d6b   : > { %vm5690_vm12 = vcmp.gt.f32.partialorder %v5678_v18, 0.0  ;;  %v5694_v23 = vmul.f32 0.1, %v5678_v18  ;;  %v5697_v16 = vsel %vm5689_vm10, %v5675_v39, %v5693_v37 }
0x3d6c   : > { %v5700_v62 = vsel %vm5692_vm11, %v5686_v34, %v5696_v61 }
0x3d6d   : > { %v5702_v40 = vpack.c.bf16 %v5700_v62, %v5699_v26  ;;  %v5698_v51 = vsel %vm5690_vm12, %v5678_v18, %v5694_v23 }
0x3d6e   : > { %v5701_v52 = vpack.c.bf16 %v5698_v51, %v5697_v16 }
0x3d70   : > { %11854 = vmatpush3.bf16.msra.mxu1 %v5701_v52 }
0x3d71   : > { %11855 = vmatprep.subr.bf16.mxu1 %v13071_v0 }
0x3d74   : > { %11856 = vmatpush3.bf16.msra.mxu1 %v5702_v40 }
0x3d75   : > { %11861 = vmatprep.subr.bf16.mxu1 %v13071_v0 }
0x3d77   : > { %11858 = vmatmul.mubr.msk.bf16.vlgmr.msra.gmra.mrb[172].mxu1 %vm630_vm3, %v14999_v5 }
0x3d78   : > { %11862 = vmatpush3.bf16.msra.mxu1 %v14817_v24  ;;  %11877 = vmatprep.mubr.msk.bf16.mxu1 %vm13072_vm0, %v13071_v0 }
0x3d79   : > { %11863 = vmatprep.subr.bf16.mxu1 %v13071_v0 }
0x3d7c   : > { %11864 = vmatpush3.bf16.msra.mxu1 %v14821_v44  ;;  %v15022_v44 = vld [vmem:[%s13251_s30 + $0x280] sm:$0xff]  }
0x3d7d   : > { %11865 = vmatprep.subr.bf16.mxu1 %v13071_v0 }
0x3d80   : > { %11866 = vmatpush3.bf16.msra.mxu1 %v14828_v47 }
0x3d81   : > { %11867 = vmatprep.subr.bf16.mxu1 %v13071_v0 }
0x3d84   : > { %11868 = vmatpush3.bf16.msra.mxu1 %v14833_v53 }
0x3d85   : > { %11869 = vmatprep.subr.bf16.mxu1 %v13071_v0 }
0x3d88   : > { %11870 = vmatpush3.bf16.msra.mxu1 %v14838_v41 }
0x3d89   : > { %11871 = vmatprep.subr.bf16.mxu1 %v13071_v0 }
0x3d8c   : > { %11872 = vmatpush3.bf16.msra.mxu1 %v14843_v31 }
0x3d8d   : > { %11873 = vmatprep.subr.bf16.mxu1 %v13071_v0 }
0x3d90   : > { %11874 = vmatpush3.bf16.msra.mxu1 %v14848_v42  ;;  %v15026_v42 = vld [vmem:[%s13251_s30 + $0x288] sm:$0xff]  }
0x3d91   : > { %11875 = vmatprep.subr.bf16.mxu1 %v13071_v0 }
0x3d94   : > { %11876 = vmatpush3.bf16.msra.mxu1 %v14853_v55  ;;  %v15033_v55 = vld [vmem:[%s13251_s30 + $0x290] sm:$0xff]  }
0x3d95   : > { %11901 = vmatprep.subr.bf16.mxu1 %v13071_v0 }
0x3e4a   : > { %v5737_v24 = vpop.f32.mrb[172].mxu1 }
0x3e4b   : > { %v5743_v47 = vpack.c.bf16 %v5737_v24, %v5737_v24  ;;  %v11859_v53 = vpop.f32.mrb[173].mxu1 }
0x3e4c   : > { %v5740_v41 = vpop.f32.mrb[174].mxu1 }
0x3e4d   : > { %v11860_v31 = vpop.f32.mrb[175].mxu1  ;;  %11878 = vmatmul.mubr.bf16.vlgmr.msra.gmra.mrb[176].mxu1 %v5743_v47 }
0x3e4e   : > { %11902 = vmatpush3.bf16.msra.mxu1 %v15022_v44  ;;  %11917 = vmatprep.mubr.msk.bf16.mxu1 %vm13072_vm0, %v13071_v0 }
0x3e4f   : > { %11903 = vmatprep.subr.bf16.mxu1 %v13071_v0 }
0x3e52   : > { %11904 = vmatpush3.bf16.msra.mxu1 %v15026_v42 }
0x3e53   : > { %11905 = vmatprep.subr.bf16.mxu1 %v13071_v0 }
0x3e56   : > { %11906 = vmatpush3.bf16.msra.mxu1 %v15033_v55 }
0x3e57   : > { %11907 = vmatprep.subr.bf16.mxu1 %v13071_v0 }
0x3e5a   : > { %11908 = vmatpush3.bf16.msra.mxu1 %v15038_v60 }
0x3e5b   : > { %11909 = vmatprep.subr.bf16.mxu1 %v13071_v0 }
0x3e5e   : > { %11910 = vmatpush3.bf16.msra.mxu1 %v15043_v13 }
0x3e5f   : > { %11911 = vmatprep.subr.bf16.mxu1 %v13071_v0 }
0x3e62   : > { %11912 = vmatpush3.bf16.msra.mxu1 %v15048_v6 }
0x3e63   : > { %11913 = vmatprep.subr.bf16.mxu1 %v13071_v0 }
0x3e66   : > { %11914 = vmatpush3.bf16.msra.mxu1 %v15053_v43 }
0x3e67   : > { %11915 = vmatprep.subr.bf16.mxu1 %v13071_v0 }
0x3e6a   : > { %11916 = vmatpush3.bf16.msra.mxu1 %v15058_v32 }
0x3e6d   : > { %11918 = vmatmul.mubr.bf16.vlgmr.msra.gmra.mrb[180].mxu1 %v9444_v48 }
0x3e6e   : > { %11959 = vmatprep.mubr.msk.bf16.mxu1 %vm630_vm3, %v14861_v9 }
0x3f20   : > { %v5778_v11 = vpop.f32.mrb[176].mxu1 }
0x3f21   : > { %v5784_v19 = vpack.c.bf16 %v5778_v11, %v5778_v11  ;;  %v11879_v21 = vpop.f32.mrb[177].mxu1 }
0x3f22   : > { %v5781_v22 = vpop.f32.mrb[178].mxu1 }
0x3f23   : > { %v11880_v14 = vpop.f32.mrb[179].mxu1  ;;  %11898 = vmatmul.mubr.bf16.vlgmr.msra.gmra.mrb[176].mxu0 %v5784_v19 }
0x3f24   : > { %11923 = vmatprep.mubr.msk.bf16.mxu0 %vm546_vm1, %v14868_v49 }
0x3f40   : > { %v5932_v17 = vpop.f32.mrb[180].mxu1 }
0x3f41   : > { %v5938_v46 = vpack.c.bf16 %v5932_v17, %v5932_v17  ;;  %v11919_v7 = vpop.f32.mrb[181].mxu1 }
0x3f42   : > { %v5935_v25 = vpop.f32.mrb[182].mxu1 }
0x3f43   : > { %v5940_v4 = vsel %vm553_vm2, %v5938_v46, 0  ;;  %v11920_v54 = vpop.f32.mrb[183].mxu1  ;;  %12691 = vmatprep.subr.msk.bf16.mxu0 %vm553_vm2, %v5938_v46 }
0x3f44   : > { %11922 = vmatpush3.bf16.msra.mxu0 %v5940_v4 }
0x3f47   : > { %11924 = vmatmul.mubr.msk.bf16.vlgmr.msra.gmra.mrb[180].mxu0 %vm546_vm1, %v14877_v56 }
0x3f48   : > { %11931 = vmatprep.mubr.msk.bf16.mxu0 %vm630_vm3, %v14861_v9 }
0x3ff6   : > { %v5819_v27 = vpop.f32.mrb[176].mxu0 }
0x3ff7   : > { %v5820_v39 = vadd.f32 %v5819_v27, %v13583_v38  ;;  %v11899_v10 = vpop.f32.mrb[177].mxu0 }
0x3ff8   : > { %v5822_v1 = vpop.f32.mrb[178].mxu0 }
0x3ff9   : > { %5826 = vrot.lane.b32.xlu0 %v5820_v39, %s13082_s15  ;;  %v11900_v34 = vpop.f32.mrb[179].mxu0 }
0x401a   : > { %v11925_v50 = vpop.f32.mrb[180].mxu0 }
0x401b   : > { %v5985_v37 = vadd.f32 %v11925_v50, %v13359_v28  ;;  %v5976_v18 = vpop.f32.mrb[181].mxu0 }
0x401c   : > { %v5977_v61 = vadd.f32 %v5976_v18, %v13361_v29  ;;  %v11926_v23 = vpop.f32.mrb[182].mxu0 }
0x401d   : > { %v5997_v26 = vmul.f32 0.1, %v5985_v37  ;;  %v5988_v62 = vadd.f32 %v11926_v23, %v13364_v33  ;;  %v5979_v16 = vpop.f32.mrb[183].mxu0  ;;  %vm5993_vm13 = vcmp.gt.f32.partialorder %v5985_v37, 0.0 }
0x401e   : > { %v5995_v40 = vmul.f32 0.1, %v5977_v61  ;;  %v5980_v51 = vadd.f32 %v5979_v16, %v13367_v36  ;;  %vm5991_vm14 = vcmp.gt.f32.partialorder %v5977_v61, 0.0 }
0x401f   : > { %vm5994_vm15 = vcmp.gt.f32.partialorder %v5988_v62, 0.0  ;;  %v5998_v52 = vmul.f32 0.1, %v5988_v62  ;;  %v6001_v47 = vsel %vm5993_vm13, %v5985_v37, %v5997_v26 }
0x4020   : > { %vm5992_vm4 = vcmp.gt.f32.partialorder %v5980_v51, 0.0  ;;  %v5996_v24 = vmul.f32 0.1, %v5980_v51  ;;  %v5999_v41 = vsel %vm5991_vm14, %v5977_v61, %v5995_v40 }
0x4021   : > { %v6002_v53 = vsel %vm5994_vm15, %v5988_v62, %v5998_v52 }
0x4022   : > { %v6000_v31 = vsel %vm5992_vm4, %v5980_v51, %v5996_v24  ;;  %v6004_v48 = vpack.c.bf16 %v6002_v53, %v6001_v47 }
0x4023   : > { %v6003_v11 = vpack.c.bf16 %v6000_v31, %v5999_v41 }
0x4025   : > { %11927 = vmatprep.subr.bf16.mxu0 %v6003_v11 }
0x4026   : > { %11928 = vmatpush3.bf16.msra.mxu0 %v6003_v11 }
0x4027   : > { %11929 = vmatprep.subr.bf16.mxu0 %v6004_v48 }
0x402a   : > { %11930 = vmatpush3.bf16.msra.mxu0 %v6004_v48 }
0x402b   : > { %11935 = vmatprep.subr.bf16.mxu0 %v15022_v44 }
0x402d   : > { %11932 = vmatmul.mubr.msk.bf16.vlgmr.msra.gmra.mrb[184].mxu0 %vm630_vm3, %v14727_v3 }
0x402e   : > { %11936 = vmatpush3.bf16.msra.mxu0 %v15022_v44 }
0x402f   : > { %11937 = vmatprep.subr.bf16.mxu0 %v15026_v42 }
0x4032   : > { %11938 = vmatpush3.bf16.msra.mxu0 %v15026_v42 }
0x4033   : > { %11939 = vmatprep.subr.bf16.mxu0 %v15033_v55 }
0x4036   : > { %11940 = vmatpush3.bf16.msra.mxu0 %v15033_v55 }
0x4037   : > { %11941 = vmatprep.subr.bf16.mxu0 %v15038_v60 }
0x403a   : > { %11942 = vmatpush3.bf16.msra.mxu0 %v15038_v60 }
0x403b   : > { %11943 = vmatprep.subr.bf16.mxu0 %v15043_v13 }
0x403e   : > { %11944 = vmatpush3.bf16.msra.mxu0 %v15043_v13 }
0x403f   : > { %11945 = vmatprep.subr.bf16.mxu0 %v15048_v6 }
0x4042   : > { %11946 = vmatpush3.bf16.msra.mxu0 %v15048_v6 }
0x4043   : > { %11947 = vmatprep.subr.bf16.mxu0 %v15053_v43 }
0x4046   : > { %11948 = vmatpush3.bf16.msra.mxu0 %v15053_v43 }
0x4047   : > { %11949 = vmatprep.subr.bf16.mxu0 %v15058_v32 }
0x404a   : > { %11950 = vmatpush3.bf16.msra.mxu0 %v15058_v32 }
0x404b   : > { %11983 = vmatprep.subr.bf16.mxu0 %v13071_v0 }
0x406b   : > { %v5827_v19 = vpop.permute.xlu0 %5826 }
0x406c   : > { %5830 = vst.msk [vmem:[%s13587_s26] sm:$0x1] %vm5829_vm5, %v5827_v19 }
0x4100   : > { %v11933_v21 = vpop.f32.mrb[184].mxu0 }
0x4101   : > { %v6039_v22 = vpop.f32.mrb[185].mxu0 }
0x4102   : > { %v11934_v14 = vpop.f32.mrb[186].mxu0 }
0x4103   : > { %v6055_v17 = vpack.c.bf16 %v11934_v14, %v11933_v21  ;;  %v6042_v46 = vpop.f32.mrb[187].mxu0 }
0x4104   : > { %v6054_v7 = vpack.c.bf16 %v6042_v46, %v6039_v22 }
0x4106   : > { %11951 = vmatprep.mubr.bf16.mxu0 %v6054_v7 }
0x4107   : > { %11952 = vmatmul.mubr.bf16.vlgmr.msra.gmra.mrb[188].mxu0 %v6055_v17 }
0x4108   : > { %11987 = vmatprep.mubr.msk.bf16.mxu0 %vm13072_vm0, %v13071_v0 }
0x41da   : > { %v11953_v25 = vpop.f32.mrb[188].mxu0 }
0x41db   : > { %v6099_v4 = vadd.f32 %v11953_v25, %v13401_v59  ;;  %v6090_v54 = vpop.f32.mrb[189].mxu0 }
0x41dc   : > { %v6091_v27 = vadd.f32 %v6090_v54, %v13397_v57  ;;  %v11954_v39 = vpop.f32.mrb[190].mxu0 }
0x41dd   : > { %v6111_v10 = vmul.f32 0.1, %v6099_v4  ;;  %v6102_v1 = vadd.f32 %v11954_v39, %v13404_v63  ;;  %v6093_v34 = vpop.f32.mrb[191].mxu0  ;;  %vm6107_vm6 = vcmp.gt.f32.partialorder %v6099_v4, 0.0 }
0x41de   : > { %v6109_v50 = vmul.f32 0.1, %v6091_v27  ;;  %v6094_v37 = vadd.f32 %v6093_v34, %v13399_v58  ;;  %vm6105_vm7 = vcmp.gt.f32.partialorder %v6091_v27, 0.0 }
0x41df   : > { %vm6108_vm8 = vcmp.gt.f32.partialorder %v6102_v1, 0.0  ;;  %v6112_v18 = vmul.f32 0.1, %v6102_v1  ;;  %v6115_v23 = vsel %vm6107_vm6, %v6099_v4, %v6111_v10  ;;  %vm6359_vm6 = vcmask 713344  }
0x41e0   : > { %vm6106_vm9 = vcmp.gt.f32.partialorder %v6094_v37, 0.0  ;;  %v6110_v61 = vmul.f32 0.1, %v6094_v37  ;;  %v6113_v62 = vsel %vm6105_vm7, %v6091_v27, %v6109_v50  ;;  %v15183_v50 = vld [vmem:[%s13251_s30 + $0x2d8] sm:$0xff]  }
0x41e1   : > { %v6116_v26 = vsel %vm6108_vm8, %v6102_v1, %v6112_v18  ;;  %v15193_v18 = vld [vmem:[%s13251_s30 + $0x2e8] sm:$0xff]  }
0x41e2   : > { %v6114_v16 = vsel %vm6106_vm9, %v6094_v37, %v6110_v61  ;;  %v6118_v40 = vpack.c.bf16 %v6116_v26, %v6115_v23  ;;  %v15188_v37 = vld [vmem:[%s13251_s30 + $0x2e0] sm:$0xff]   ;;  %v15198_v61 = vld [vmem:[%s13251_s30 + $0x2f0] sm:$0xff]   ;;  %v15203_v23 = vld [vmem:[%s13251_s30 + $0x2f8] sm:$0xff]  }
0x41e3   : > { %v6117_v51 = vpack.c.bf16 %v6114_v16, %v6113_v62  ;;  %v9476_v26 = vld [vmem:[%s13304_s17 + $0x2c] sm:$0xf] }
0x41e5   : > { %11955 = vmatprep.subr.bf16.mxu1 %v6117_v51 }
0x41e6   : > { %11956 = vmatpush3.bf16.msra.mxu1 %v6117_v51 }
0x41e7   : > { %11957 = vmatprep.subr.bf16.mxu1 %v6118_v40 }
0x41ea   : > { %11958 = vmatpush3.bf16.msra.mxu1 %v6118_v40 }
0x41eb   : > { %11963 = vmatprep.subr.bf16.mxu1 %v15022_v44 }
0x41ed   : > { %11960 = vmatmul.mubr.msk.bf16.vlgmr.msra.gmra.mrb[184].mxu1 %vm630_vm3, %v14727_v3 }
0x41ee   : > { %11964 = vmatpush3.bf16.msra.mxu1 %v15022_v44 }
0x41ef   : > { %11965 = vmatprep.subr.bf16.mxu1 %v15026_v42 }
0x41f2   : > { %11966 = vmatpush3.bf16.msra.mxu1 %v15026_v42 }
0x41f3   : > { %11967 = vmatprep.subr.bf16.mxu1 %v15033_v55 }
0x41f6   : > { %11968 = vmatpush3.bf16.msra.mxu1 %v15033_v55 }
0x41f7   : > { %11969 = vmatprep.subr.bf16.mxu1 %v15038_v60 }
0x41fa   : > { %11970 = vmatpush3.bf16.msra.mxu1 %v15038_v60 }
0x41fb   : > { %11971 = vmatprep.subr.bf16.mxu1 %v15043_v13 }
0x41fe   : > { %11972 = vmatpush3.bf16.msra.mxu1 %v15043_v13 }
0x41ff   : > { %11973 = vmatprep.subr.bf16.mxu1 %v15048_v6 }
0x4202   : > { %11974 = vmatpush3.bf16.msra.mxu1 %v15048_v6 }
0x4203   : > { %11975 = vmatprep.subr.bf16.mxu1 %v15053_v43 }
0x4206   : > { %11976 = vmatpush3.bf16.msra.mxu1 %v15053_v43 }
0x4207   : > { %11977 = vmatprep.subr.bf16.mxu1 %v15058_v32 }
0x420a   : > { %11978 = vmatpush3.bf16.msra.mxu1 %v15058_v32 }
0x420b   : > { %12011 = vmatprep.subr.bf16.mxu1 %v13071_v0 }
0x42c0   : > { %v11961_v3 = vpop.f32.mrb[184].mxu1 }
0x42c1   : > { %v6153_v52 = vpop.f32.mrb[185].mxu1 }
0x42c2   : > { %v11962_v24 = vpop.f32.mrb[186].mxu1 }
0x42c3   : > { %v6169_v47 = vpack.c.bf16 %v11962_v24, %v11961_v3  ;;  %v6156_v53 = vpop.f32.mrb[187].mxu1 }
0x42c4   : > { %v6168_v41 = vpack.c.bf16 %v6156_v53, %v6153_v52 }
0x42c6   : > { %11979 = vmatprep.mubr.bf16.mxu1 %v6168_v41 }
0x42c7   : > { %11980 = vmatmul.mubr.bf16.vlgmr.msra.gmra.mrb[188].mxu1 %v6169_v47 }
0x42c8   : > { %12012 = vmatpush3.bf16.msra.mxu1 %v14936_v8  ;;  %12027 = vmatprep.mubr.msk.bf16.mxu1 %vm13072_vm0, %v13071_v0 }
0x42c9   : > { %12013 = vmatprep.subr.bf16.mxu1 %v13071_v0 }
0x42cc   : > { %12014 = vmatpush3.bf16.msra.mxu1 %v14945_v35 }
0x42cd   : > { %12015 = vmatprep.subr.bf16.mxu1 %v13071_v0 }
0x42d0   : > { %12016 = vmatpush3.bf16.msra.mxu1 %v14952_v45 }
0x42d1   : > { %12017 = vmatprep.subr.bf16.mxu1 %v13071_v0 }
0x42d4   : > { %12018 = vmatpush3.bf16.msra.mxu1 %v14959_v20 }
0x42d5   : > { %12019 = vmatprep.subr.bf16.mxu1 %v13071_v0 }
0x42d8   : > { %12020 = vmatpush3.bf16.msra.mxu1 %v14966_v12 }
0x42d9   : > { %12021 = vmatprep.subr.bf16.mxu1 %v13071_v0 }
0x42dc   : > { %12022 = vmatpush3.bf16.msra.mxu1 %v14973_v15 }
0x42dd   : > { %12023 = vmatprep.subr.bf16.mxu1 %v13071_v0 }
0x42e0   : > { %12024 = vmatpush3.bf16.msra.mxu1 %v14980_v30 }
0x42e1   : > { %12025 = vmatprep.subr.bf16.mxu1 %v13071_v0 }
0x42e4   : > { %12026 = vmatpush3.bf16.msra.mxu1 %v14987_v2 }
0x439a   : > { %v11981_v31 = vpop.f32.mrb[188].mxu1 }
0x439b   : > { %v6213_v48 = vadd.f32 %v11981_v31, %v13401_v59  ;;  %v6204_v11 = vpop.f32.mrb[189].mxu1 }
0x439c   : > { %v6205_v19 = vadd.f32 %v6204_v11, %v13397_v57  ;;  %v11982_v21 = vpop.f32.mrb[190].mxu1 }
0x439d   : > { %v6225_v22 = vmul.f32 0.1, %v6213_v48  ;;  %v6216_v14 = vadd.f32 %v11982_v21, %v13404_v63  ;;  %v6207_v17 = vpop.f32.mrb[191].mxu1  ;;  %vm6221_vm10 = vcmp.gt.f32.partialorder %v6213_v48, 0.0 }
0x439e   : > { %v6223_v46 = vmul.f32 0.1, %v6205_v19  ;;  %v6208_v7 = vadd.f32 %v6207_v17, %v13399_v58  ;;  %vm6219_vm11 = vcmp.gt.f32.partialorder %v6205_v19, 0.0 }
0x439f   : > { %vm6222_vm12 = vcmp.gt.f32.partialorder %v6216_v14, 0.0  ;;  %v6226_v25 = vmul.f32 0.1, %v6216_v14  ;;  %v6229_v54 = vsel %vm6221_vm10, %v6213_v48, %v6225_v22 }
0x43a0   : > { %vm6220_vm13 = vcmp.gt.f32.partialorder %v6208_v7, 0.0  ;;  %v6224_v4 = vmul.f32 0.1, %v6208_v7  ;;  %v6227_v39 = vsel %vm6219_vm11, %v6205_v19, %v6223_v46 }
0x43a1   : > { %v6230_v27 = vsel %vm6222_vm12, %v6216_v14, %v6226_v25 }
0x43a2   : > { %v6232_v10 = vpack.c.bf16 %v6230_v27, %v6229_v54  ;;  %v6228_v1 = vsel %vm6220_vm13, %v6208_v7, %v6224_v4 }
0x43a3   : > { %v6231_v34 = vpack.c.bf16 %v6228_v1, %v6227_v39 }
0x43a5   : > { %11984 = vmatpush3.bf16.msra.mxu0 %v6231_v34 }
0x43a6   : > { %11985 = vmatprep.subr.bf16.mxu0 %v13071_v0 }
0x43a9   : > { %11986 = vmatpush3.bf16.msra.mxu0 %v6232_v10 }
0x43aa   : > { %11991 = vmatprep.subr.bf16.mxu0 %v13071_v0 }
0x43ac   : > { %11988 = vmatmul.mubr.msk.bf16.vlgmr.msra.gmra.mrb[192].mxu0 %vm630_vm3, %v14999_v5 }
0x43ad   : > { %11992 = vmatpush3.bf16.msra.mxu0 %v15022_v44  ;;  %12007 = vmatprep.mubr.msk.bf16.mxu0 %vm13072_vm0, %v13071_v0 }
0x43ae   : > { %11993 = vmatprep.subr.bf16.mxu0 %v13071_v0 }
0x43b1   : > { %11994 = vmatpush3.bf16.msra.mxu0 %v15026_v42  ;;  %v15167_v42 = vld [vmem:[%s13251_s30 + $0x2c0] sm:$0xff]  }
0x43b2   : > { %11995 = vmatprep.subr.bf16.mxu0 %v13071_v0 }
0x43b5   : > { %11996 = vmatpush3.bf16.msra.mxu0 %v15033_v55 }
0x43b6   : > { %11997 = vmatprep.subr.bf16.mxu0 %v13071_v0 }
0x43b9   : > { %11998 = vmatpush3.bf16.msra.mxu0 %v15038_v60 }
0x43ba   : > { %11999 = vmatprep.subr.bf16.mxu0 %v13071_v0 }
0x43bd   : > { %12000 = vmatpush3.bf16.msra.mxu0 %v15043_v13 }
0x43be   : > { %12001 = vmatprep.subr.bf16.mxu0 %v13071_v0 }
0x43c1   : > { %12002 = vmatpush3.bf16.msra.mxu0 %v15048_v6 }
0x43c2   : > { %12003 = vmatprep.subr.bf16.mxu0 %v13071_v0 }
0x43c5   : > { %12004 = vmatpush3.bf16.msra.mxu0 %v15053_v43  ;;  %v15171_v43 = vld [vmem:[%s13251_s30 + $0x2c8] sm:$0xff]  }
0x43c6   : > { %12005 = vmatprep.subr.bf16.mxu0 %v13071_v0 }
0x43c9   : > { %12006 = vmatpush3.bf16.msra.mxu0 %v15058_v32  ;;  %v15178_v32 = vld [vmem:[%s13251_s30 + $0x2d0] sm:$0xff]  }
0x43ca   : > { %12031 = vmatprep.subr.bf16.mxu0 %v13071_v0 }
0x447f   : > { %v6267_v44 = vpop.f32.mrb[192].mxu0 }
0x4480   : > { %v6273_v55 = vpack.c.bf16 %v6267_v44, %v6267_v44  ;;  %v11989_v60 = vpop.f32.mrb[193].mxu0 }
0x4481   : > { %v6270_v13 = vpop.f32.mrb[194].mxu0 }
0x4482   : > { %v11990_v6 = vpop.f32.mrb[195].mxu0  ;;  %12008 = vmatmul.mubr.bf16.vlgmr.msra.gmra.mrb[196].mxu0 %v6273_v55  ;;  %v15227_v13 = vld [vmem:[%s16038_s4 + $0x8] sm:$0xff]  }
0x4483   : > { %12032 = vmatpush3.bf16.msra.mxu0 %v15167_v42  ;;  %12047 = vmatprep.mubr.msk.bf16.mxu0 %vm13072_vm0, %v13071_v0 }
0x4484   : > { %12033 = vmatprep.subr.bf16.mxu0 %v13071_v0 }
0x4487   : > { %12034 = vmatpush3.bf16.msra.mxu0 %v15171_v43 }
0x4488   : > { %12035 = vmatprep.subr.bf16.mxu0 %v13071_v0 }
0x448b   : > { %12036 = vmatpush3.bf16.msra.mxu0 %v15178_v32 }
0x448c   : > { %12037 = vmatprep.subr.bf16.mxu0 %v13071_v0 }
0x448f   : > { %12038 = vmatpush3.bf16.msra.mxu0 %v15183_v50 }
0x4490   : > { %12039 = vmatprep.subr.bf16.mxu0 %v13071_v0 }
0x4493   : > { %12040 = vmatpush3.bf16.msra.mxu0 %v15188_v37 }
0x4494   : > { %12041 = vmatprep.subr.bf16.mxu0 %v13071_v0 }
0x4497   : > { %12042 = vmatpush3.bf16.msra.mxu0 %v15193_v18 }
0x4498   : > { %12043 = vmatprep.subr.bf16.mxu0 %v13071_v0 }
0x449b   : > { %12044 = vmatpush3.bf16.msra.mxu0 %v15198_v61 }
0x449c   : > { %12045 = vmatprep.subr.bf16.mxu0 %v13071_v0 }
0x449f   : > { %12046 = vmatpush3.bf16.msra.mxu0 %v15203_v23 }
0x44a2   : > { %12048 = vmatmul.mubr.bf16.vlgmr.msra.gmra.mrb[200].mxu0 %v9476_v26 }
0x44a3   : > { %12089 = vmatprep.mubr.msk.bf16.mxu0 %vm630_vm3, %v14861_v9 }
0x4555   : > { %v6308_v62 = vpop.f32.mrb[196].mxu0 }
0x4556   : > { %v6314_v16 = vpack.c.bf16 %v6308_v62, %v6308_v62  ;;  %v12009_v40 = vpop.f32.mrb[197].mxu0 }
0x4557   : > { %v6311_v51 = vpop.f32.mrb[198].mxu0 }
0x4558   : > { %v12010_v3 = vpop.f32.mrb[199].mxu0  ;;  %12028 = vmatmul.mubr.bf16.vlgmr.msra.gmra.mrb[192].mxu1 %v6314_v16 }
0x4559   : > { %12053 = vmatprep.mubr.msk.bf16.mxu1 %vm546_vm1, %v14868_v49 }
0x4575   : > { %v6462_v52 = vpop.f32.mrb[200].mxu0 }
0x4576   : > { %v6468_v24 = vpack.c.bf16 %v6462_v52, %v6462_v52  ;;  %v12049_v47 = vpop.f32.mrb[201].mxu0 }
0x4577   : > { %v6465_v53 = vpop.f32.mrb[202].mxu0 }
0x4578   : > { %v6470_v41 = vsel %vm553_vm2, %v6468_v24, 0  ;;  %v12050_v31 = vpop.f32.mrb[203].mxu0  ;;  %12692 = vmatprep.subr.msk.bf16.mxu1 %vm553_vm2, %v6468_v24 }
0x4579   : > { %12052 = vmatpush3.bf16.msra.mxu1 %v6470_v41 }
0x457c   : > { %12054 = vmatmul.mubr.msk.bf16.vlgmr.msra.gmra.mrb[196].mxu1 %vm546_vm1, %v14877_v56 }
0x457d   : > { %12061 = vmatprep.mubr.msk.bf16.mxu1 %vm630_vm3, %v14861_v9 }
0x462b   : > { %v6349_v48 = vpop.f32.mrb[192].mxu1 }
0x462c   : > { %v6350_v11 = vadd.f32 %v6349_v48, %v13583_v38  ;;  %v12029_v49 = vpop.f32.mrb[193].mxu1 }
0x462d   : > { %v6352_v19 = vpop.f32.mrb[194].mxu1 }
0x462e   : > { %6356 = vrot.lane.b32.xlu1 %v6350_v11, %s13083_s25  ;;  %v12030_v21 = vpop.f32.mrb[195].mxu1  ;;  %s13084_s25 = smov 88  }
0x464f   : > { %v12055_v22 = vpop.f32.mrb[196].mxu1 }
0x4650   : > { %v6515_v14 = vadd.f32 %v12055_v22, %v13359_v28  ;;  %v6506_v17 = vpop.f32.mrb[197].mxu1 }
0x4651   : > { %v6507_v46 = vadd.f32 %v6506_v17, %v13361_v29  ;;  %v12056_v7 = vpop.f32.mrb[198].mxu1 }
0x4652   : > { %v6527_v25 = vmul.f32 0.1, %v6515_v14  ;;  %v6518_v56 = vadd.f32 %v12056_v7, %v13364_v33  ;;  %v6509_v4 = vpop.f32.mrb[199].mxu1  ;;  %vm6523_vm14 = vcmp.gt.f32.partialorder %v6515_v14, 0.0 }
0x4653   : > { %v6525_v9 = vmul.f32 0.1, %v6507_v46  ;;  %v6510_v54 = vadd.f32 %v6509_v4, %v13367_v36  ;;  %vm6521_vm15 = vcmp.gt.f32.partialorder %v6507_v46, 0.0 }
0x4654   : > { %vm6524_vm4 = vcmp.gt.f32.partialorder %v6518_v56, 0.0  ;;  %v6528_v27 = vmul.f32 0.1, %v6518_v56  ;;  %v6531_v10 = vsel %vm6523_vm14, %v6515_v14, %v6527_v25 }
0x4655   : > { %vm6522_vm5 = vcmp.gt.f32.partialorder %v6510_v54, 0.0  ;;  %v6526_v39 = vmul.f32 0.1, %v6510_v54  ;;  %v6529_v34 = vsel %vm6521_vm15, %v6507_v46, %v6525_v9 }
0x4656   : > { %v6532_v1 = vsel %vm6524_vm4, %v6518_v56, %v6528_v27 }
0x4657   : > { %v6530_v44 = vsel %vm6522_vm5, %v6510_v54, %v6526_v39  ;;  %v6534_v55 = vpack.c.bf16 %v6532_v1, %v6531_v10 }
0x4658   : > { %v6533_v60 = vpack.c.bf16 %v6530_v44, %v6529_v34 }
0x465a   : > { %12057 = vmatprep.subr.bf16.mxu1 %v6533_v60 }
0x465b   : > { %12058 = vmatpush3.bf16.msra.mxu1 %v6533_v60 }
0x465c   : > { %12059 = vmatprep.subr.bf16.mxu1 %v6534_v55 }
0x465f   : > { %12060 = vmatpush3.bf16.msra.mxu1 %v6534_v55 }
0x4660   : > { %12065 = vmatprep.subr.bf16.mxu1 %v15167_v42 }
0x4662   : > { %12062 = vmatmul.mubr.msk.bf16.vlgmr.msra.gmra.mrb[200].mxu1 %vm630_vm3, %v15227_v13 }
0x4663   : > { %12066 = vmatpush3.bf16.msra.mxu1 %v15167_v42 }
0x4664   : > { %12067 = vmatprep.subr.bf16.mxu1 %v15171_v43 }
0x4667   : > { %12068 = vmatpush3.bf16.msra.mxu1 %v15171_v43 }
0x4668   : > { %12069 = vmatprep.subr.bf16.mxu1 %v15178_v32 }
0x466b   : > { %12070 = vmatpush3.bf16.msra.mxu1 %v15178_v32 }
0x466c   : > { %12071 = vmatprep.subr.bf16.mxu1 %v15183_v50 }
0x466f   : > { %12072 = vmatpush3.bf16.msra.mxu1 %v15183_v50 }
0x4670   : > { %12073 = vmatprep.subr.bf16.mxu1 %v15188_v37 }
0x4673   : > { %12074 = vmatpush3.bf16.msra.mxu1 %v15188_v37 }
0x4674   : > { %12075 = vmatprep.subr.bf16.mxu1 %v15193_v18 }
0x4677   : > { %12076 = vmatpush3.bf16.msra.mxu1 %v15193_v18 }
0x4678   : > { %12077 = vmatprep.subr.bf16.mxu1 %v15198_v61 }
0x467b   : > { %12078 = vmatpush3.bf16.msra.mxu1 %v15198_v61 }
0x467c   : > { %12079 = vmatprep.subr.bf16.mxu1 %v15203_v23 }
0x467f   : > { %12080 = vmatpush3.bf16.msra.mxu1 %v15203_v23 }
0x4680   : > { %12113 = vmatprep.subr.bf16.mxu1 %v13071_v0 }
0x46a0   : > { %v6357_v6 = vpop.permute.xlu1 %6356 }
0x46a1   : > { %6360 = vst.msk [vmem:[%s13587_s26] sm:$0x1] %vm6359_vm6, %v6357_v6 }
0x4735   : > { %v12063_v26 = vpop.f32.mrb[200].mxu1 }
0x4736   : > { %v6569_v62 = vpop.f32.mrb[201].mxu1 }
0x4737   : > { %v12064_v16 = vpop.f32.mrb[202].mxu1 }
0x4738   : > { %v6585_v40 = vpack.c.bf16 %v12064_v16, %v12063_v26  ;;  %v6572_v51 = vpop.f32.mrb[203].mxu1 }
0x4739   : > { %v6584_v3 = vpack.c.bf16 %v6572_v51, %v6569_v62  ;;  %v15338_v51 = vld [vmem:[%s13251_s30 + $0x320] sm:$0xff]  }
0x473b   : > { %12081 = vmatprep.mubr.bf16.mxu1 %v6584_v3  ;;  %v15343_v3 = vld [vmem:[%s13251_s30 + $0x328] sm:$0xff]  }
0x473c   : > { %12082 = vmatmul.mubr.bf16.vlgmr.msra.gmra.mrb[204].mxu1 %v6585_v40 }
0x473d   : > { %12117 = vmatprep.mubr.msk.bf16.mxu1 %vm13072_vm0, %v13071_v0 }
0x480f   : > { %v12083_v52 = vpop.f32.mrb[204].mxu1 }
0x4810   : > { %v6629_v24 = vadd.f32 %v12083_v52, %v13401_v59  ;;  %v6620_v47 = vpop.f32.mrb[205].mxu1  ;;  %v15348_v52 = vld [vmem:[%s13251_s30 + $0x330] sm:$0xff]  }
0x4811   : > { %v6621_v53 = vadd.f32 %v6620_v47, %v13397_v57  ;;  %v12084_v41 = vpop.f32.mrb[206].mxu1  ;;  %v9508_v47 = vld [vmem:[%s13304_s17 + $0x30] sm:$0xf] }
0x4812   : > { %v6641_v31 = vmul.f32 0.1, %v6629_v24  ;;  %v6632_v48 = vadd.f32 %v12084_v41, %v13404_v63  ;;  %v6623_v11 = vpop.f32.mrb[207].mxu1  ;;  %vm6637_vm7 = vcmp.gt.f32.partialorder %v6629_v24, 0.0 }
0x4813   : > { %v6639_v49 = vmul.f32 0.1, %v6621_v53  ;;  %v6624_v19 = vadd.f32 %v6623_v11, %v13399_v58  ;;  %vm6635_vm8 = vcmp.gt.f32.partialorder %v6621_v53, 0.0 }
0x4814   : > { %vm6638_vm9 = vcmp.gt.f32.partialorder %v6632_v48, 0.0  ;;  %v6642_v21 = vmul.f32 0.1, %v6632_v48  ;;  %v6645_v14 = vsel %vm6637_vm7, %v6629_v24, %v6641_v31  ;;  %v15353_v24 = vld [vmem:[%s13251_s30 + $0x338] sm:$0xff]   ;;  %vm6889_vm7 = vcmask 778944  }
0x4815   : > { %vm6636_vm10 = vcmp.gt.f32.partialorder %v6624_v19, 0.0  ;;  %v6640_v22 = vmul.f32 0.1, %v6624_v19  ;;  %v6643_v46 = vsel %vm6635_vm8, %v6621_v53, %v6639_v49  ;;  %v15361_v53 = vld [vmem:[%s16038_s4] sm:$0xff]  }
0x4816   : > { %v6646_v17 = vsel %vm6638_vm9, %v6632_v48, %v6642_v21 }
0x4817   : > { %v6644_v7 = vsel %vm6636_vm10, %v6624_v19, %v6640_v22  ;;  %v6648_v25 = vpack.c.bf16 %v6646_v17, %v6645_v14  ;;  %v15368_v19 = vld [vmem:[%s16036_s2] sm:$0xff]  }
0x4818   : > { %v6647_v56 = vpack.c.bf16 %v6644_v7, %v6643_v46 }
0x481a   : > { %12085 = vmatprep.subr.bf16.mxu0 %v6647_v56 }
0x481b   : > { %12086 = vmatpush3.bf16.msra.mxu0 %v6647_v56 }
0x481c   : > { %12087 = vmatprep.subr.bf16.mxu0 %v6648_v25 }
0x481f   : > { %12088 = vmatpush3.bf16.msra.mxu0 %v6648_v25  ;;  %v15377_v25 = vld [vmem:[%s16036_s2 + $0x8] sm:$0xff]  }
0x4820   : > { %12093 = vmatprep.subr.bf16.mxu0 %v15167_v42 }
0x4822   : > { %12090 = vmatmul.mubr.msk.bf16.vlgmr.msra.gmra.mrb[204].mxu0 %vm630_vm3, %v15227_v13 }
0x4823   : > { %12094 = vmatpush3.bf16.msra.mxu0 %v15167_v42 }
0x4824   : > { %12095 = vmatprep.subr.bf16.mxu0 %v15171_v43 }
0x4827   : > { %12096 = vmatpush3.bf16.msra.mxu0 %v15171_v43 }
0x4828   : > { %12097 = vmatprep.subr.bf16.mxu0 %v15178_v32 }
0x482b   : > { %12098 = vmatpush3.bf16.msra.mxu0 %v15178_v32 }
0x482c   : > { %12099 = vmatprep.subr.bf16.mxu0 %v15183_v50 }
0x482f   : > { %12100 = vmatpush3.bf16.msra.mxu0 %v15183_v50 }
0x4830   : > { %12101 = vmatprep.subr.bf16.mxu0 %v15188_v37 }
0x4833   : > { %12102 = vmatpush3.bf16.msra.mxu0 %v15188_v37 }
0x4834   : > { %12103 = vmatprep.subr.bf16.mxu0 %v15193_v18 }
0x4837   : > { %12104 = vmatpush3.bf16.msra.mxu0 %v15193_v18 }
0x4838   : > { %12105 = vmatprep.subr.bf16.mxu0 %v15198_v61 }
0x483b   : > { %12106 = vmatpush3.bf16.msra.mxu0 %v15198_v61 }
0x483c   : > { %12107 = vmatprep.subr.bf16.mxu0 %v15203_v23 }
0x483f   : > { %12108 = vmatpush3.bf16.msra.mxu0 %v15203_v23 }
0x4840   : > { %12141 = vmatprep.subr.bf16.mxu0 %v13071_v0 }
0x48f5   : > { %v12091_v4 = vpop.f32.mrb[204].mxu0 }
0x48f6   : > { %v6683_v9 = vpop.f32.mrb[205].mxu0 }
0x48f7   : > { %v12092_v54 = vpop.f32.mrb[206].mxu0 }
0x48f8   : > { %v6699_v27 = vpack.c.bf16 %v12092_v54, %v12091_v4  ;;  %v6686_v39 = vpop.f32.mrb[207].mxu0 }
0x48f9   : > { %v6698_v10 = vpack.c.bf16 %v6686_v39, %v6683_v9 }
0x48fb   : > { %12109 = vmatprep.mubr.bf16.mxu0 %v6698_v10 }
0x48fc   : > { %12110 = vmatmul.mubr.bf16.vlgmr.msra.gmra.mrb[208].mxu0 %v6699_v27 }
0x48fd   : > { %12142 = vmatpush3.bf16.msra.mxu0 %v14936_v8  ;;  %12157 = vmatprep.mubr.msk.bf16.mxu0 %vm13072_vm0, %v13071_v0 }
0x48fe   : > { %12143 = vmatprep.subr.bf16.mxu0 %v13071_v0 }
0x4901   : > { %12144 = vmatpush3.bf16.msra.mxu0 %v14945_v35 }
0x4902   : > { %12145 = vmatprep.subr.bf16.mxu0 %v13071_v0 }
0x4905   : > { %12146 = vmatpush3.bf16.msra.mxu0 %v14952_v45 }
0x4906   : > { %12147 = vmatprep.subr.bf16.mxu0 %v13071_v0 }
0x4909   : > { %12148 = vmatpush3.bf16.msra.mxu0 %v14959_v20 }
0x490a   : > { %12149 = vmatprep.subr.bf16.mxu0 %v13071_v0 }
0x490d   : > { %12150 = vmatpush3.bf16.msra.mxu0 %v14966_v12 }
0x490e   : > { %12151 = vmatprep.subr.bf16.mxu0 %v13071_v0 }
0x4911   : > { %12152 = vmatpush3.bf16.msra.mxu0 %v14973_v15 }
0x4912   : > { %12153 = vmatprep.subr.bf16.mxu0 %v13071_v0 }
0x4915   : > { %12154 = vmatpush3.bf16.msra.mxu0 %v14980_v30 }
0x4916   : > { %12155 = vmatprep.subr.bf16.mxu0 %v13071_v0 }
0x4919   : > { %12156 = vmatpush3.bf16.msra.mxu0 %v14987_v2 }
0x49cf   : > { %v12111_v8 = vpop.f32.mrb[208].mxu0 }
0x49d0   : > { %v6743_v35 = vadd.f32 %v12111_v8, %v13401_v59  ;;  %v6734_v45 = vpop.f32.mrb[209].mxu0 }
0x49d1   : > { %v6735_v20 = vadd.f32 %v6734_v45, %v13397_v57  ;;  %v12112_v1 = vpop.f32.mrb[210].mxu0 }
0x49d2   : > { %v6755_v12 = vmul.f32 0.1, %v6743_v35  ;;  %v6746_v34 = vadd.f32 %v12112_v1, %v13404_v63  ;;  %v6737_v44 = vpop.f32.mrb[211].mxu0  ;;  %vm6751_vm11 = vcmp.gt.f32.partialorder %v6743_v35, 0.0 }
0x49d3   : > { %v6753_v15 = vmul.f32 0.1, %v6735_v20  ;;  %v6738_v55 = vadd.f32 %v6737_v44, %v13399_v58  ;;  %vm6749_vm12 = vcmp.gt.f32.partialorder %v6735_v20, 0.0 }
0x49d4   : > { %vm6752_vm13 = vcmp.gt.f32.partialorder %v6746_v34, 0.0  ;;  %v6756_v30 = vmul.f32 0.1, %v6746_v34  ;;  %v6759_v60 = vsel %vm6751_vm11, %v6743_v35, %v6755_v12 }
0x49d5   : > { %vm6750_vm14 = vcmp.gt.f32.partialorder %v6738_v55, 0.0  ;;  %v6754_v2 = vmul.f32 0.1, %v6738_v55  ;;  %v6757_v26 = vsel %vm6749_vm12, %v6735_v20, %v6753_v15 }
0x49d6   : > { %v6760_v6 = vsel %vm6752_vm13, %v6746_v34, %v6756_v30 }
0x49d7   : > { %v6762_v62 = vpack.c.bf16 %v6760_v6, %v6759_v60  ;;  %v6758_v16 = vsel %vm6750_vm14, %v6738_v55, %v6754_v2 }
0x49d8   : > { %v6761_v40 = vpack.c.bf16 %v6758_v16, %v6757_v26 }
0x49da   : > { %12114 = vmatpush3.bf16.msra.mxu1 %v6761_v40 }
0x49db   : > { %12115 = vmatprep.subr.bf16.mxu1 %v13071_v0 }
0x49de   : > { %12116 = vmatpush3.bf16.msra.mxu1 %v6762_v62 }
0x49df   : > { %12121 = vmatprep.subr.bf16.mxu1 %v13071_v0 }
0x49e1   : > { %12118 = vmatmul.mubr.msk.bf16.vlgmr.msra.gmra.mrb[208].mxu1 %vm630_vm3, %v14999_v5 }
0x49e2   : > { %12122 = vmatpush3.bf16.msra.mxu1 %v15167_v42  ;;  %12137 = vmatprep.mubr.msk.bf16.mxu1 %vm13072_vm0, %v13071_v0  ;;  %v15317_v42 = vld [vmem:[%s13251_s30 + $0x300] sm:$0xff]  }
0x49e3   : > { %12123 = vmatprep.subr.bf16.mxu1 %v13071_v0 }
0x49e6   : > { %12124 = vmatpush3.bf16.msra.mxu1 %v15171_v43 }
0x49e7   : > { %12125 = vmatprep.subr.bf16.mxu1 %v13071_v0 }
0x49ea   : > { %12126 = vmatpush3.bf16.msra.mxu1 %v15178_v32 }
0x49eb   : > { %12127 = vmatprep.subr.bf16.mxu1 %v13071_v0 }
0x49ee   : > { %12128 = vmatpush3.bf16.msra.mxu1 %v15183_v50 }
0x49ef   : > { %12129 = vmatprep.subr.bf16.mxu1 %v13071_v0 }
0x49f2   : > { %12130 = vmatpush3.bf16.msra.mxu1 %v15188_v37 }
0x49f3   : > { %12131 = vmatprep.subr.bf16.mxu1 %v13071_v0 }
0x49f6   : > { %12132 = vmatpush3.bf16.msra.mxu1 %v15193_v18  ;;  %v15321_v18 = vld [vmem:[%s13251_s30 + $0x308] sm:$0xff]  }
0x49f7   : > { %12133 = vmatprep.subr.bf16.mxu1 %v13071_v0 }
0x49fa   : > { %12134 = vmatpush3.bf16.msra.mxu1 %v15198_v61  ;;  %v15328_v61 = vld [vmem:[%s13251_s30 + $0x310] sm:$0xff]  }
0x49fb   : > { %12135 = vmatprep.subr.bf16.mxu1 %v13071_v0 }
0x49fe   : > { %12136 = vmatpush3.bf16.msra.mxu1 %v15203_v23  ;;  %v15333_v23 = vld [vmem:[%s13251_s30 + $0x318] sm:$0xff]  }
0x49ff   : > { %12161 = vmatprep.subr.bf16.mxu1 %v13071_v0 }
0x4ab4   : > { %v6797_v5 = vpop.f32.mrb[208].mxu1 }
0x4ab5   : > { %v6803_v43 = vpack.c.bf16 %v6797_v5, %v6797_v5  ;;  %v12119_v32 = vpop.f32.mrb[209].mxu1 }
0x4ab6   : > { %v6800_v50 = vpop.f32.mrb[210].mxu1 }
0x4ab7   : > { %v12120_v37 = vpop.f32.mrb[211].mxu1  ;;  %12138 = vmatmul.mubr.bf16.vlgmr.msra.gmra.mrb[212].mxu1 %v6803_v43 }
0x4ab8   : > { %12162 = vmatpush3.bf16.msra.mxu1 %v15317_v42  ;;  %12177 = vmatprep.mubr.msk.bf16.mxu1 %vm13072_vm0, %v13071_v0 }
0x4ab9   : > { %12163 = vmatprep.subr.bf16.mxu1 %v13071_v0 }
0x4abc   : > { %12164 = vmatpush3.bf16.msra.mxu1 %v15321_v18 }
0x4abd   : > { %12165 = vmatprep.subr.bf16.mxu1 %v13071_v0 }
0x4ac0   : > { %12166 = vmatpush3.bf16.msra.mxu1 %v15328_v61 }
0x4ac1   : > { %12167 = vmatprep.subr.bf16.mxu1 %v13071_v0 }
0x4ac4   : > { %12168 = vmatpush3.bf16.msra.mxu1 %v15333_v23 }
0x4ac5   : > { %12169 = vmatprep.subr.bf16.mxu1 %v13071_v0 }
0x4ac8   : > { %12170 = vmatpush3.bf16.msra.mxu1 %v15338_v51 }
0x4ac9   : > { %12171 = vmatprep.subr.bf16.mxu1 %v13071_v0 }
0x4acc   : > { %12172 = vmatpush3.bf16.msra.mxu1 %v15343_v3 }
0x4acd   : > { %12173 = vmatprep.subr.bf16.mxu1 %v13071_v0 }
0x4ad0   : > { %12174 = vmatpush3.bf16.msra.mxu1 %v15348_v52 }
0x4ad1   : > { %12175 = vmatprep.subr.bf16.mxu1 %v13071_v0 }
0x4ad4   : > { %12176 = vmatpush3.bf16.msra.mxu1 %v15353_v24 }
0x4ad7   : > { %12178 = vmatmul.mubr.bf16.vlgmr.msra.gmra.mrb[216].mxu1 %v9508_v47 }
0x4ad8   : > { %12219 = vmatprep.mubr.msk.bf16.mxu1 %vm630_vm3, %v15361_v53 }
0x4b8a   : > { %v6838_v41 = vpop.f32.mrb[212].mxu1 }
0x4b8b   : > { %v6844_v31 = vpack.c.bf16 %v6838_v41, %v6838_v41  ;;  %v12139_v48 = vpop.f32.mrb[213].mxu1 }
0x4b8c   : > { %v6841_v11 = vpop.f32.mrb[214].mxu1 }
0x4b8d   : > { %v12140_v49 = vpop.f32.mrb[215].mxu1  ;;  %12158 = vmatmul.mubr.bf16.vlgmr.msra.gmra.mrb[212].mxu0 %v6844_v31 }
0x4b8e   : > { %12183 = vmatprep.mubr.msk.bf16.mxu0 %vm546_vm1, %v15368_v19 }
0x4baa   : > { %v6992_v21 = vpop.f32.mrb[216].mxu1 }
0x4bab   : > { %v6998_v22 = vpack.c.bf16 %v6992_v21, %v6992_v21  ;;  %v12179_v14 = vpop.f32.mrb[217].mxu1 }
0x4bac   : > { %v6995_v17 = vpop.f32.mrb[218].mxu1 }
0x4bad   : > { %v7000_v46 = vsel %vm553_vm2, %v6998_v22, 0  ;;  %v12180_v7 = vpop.f32.mrb[219].mxu1  ;;  %12693 = vmatprep.subr.msk.bf16.mxu0 %vm553_vm2, %v6998_v22 }
0x4bae   : > { %12182 = vmatpush3.bf16.msra.mxu0 %v7000_v46 }
0x4bb1   : > { %12184 = vmatmul.mubr.msk.bf16.vlgmr.msra.gmra.mrb[216].mxu0 %vm546_vm1, %v15377_v25 }
0x4bb2   : > { %12191 = vmatprep.mubr.msk.bf16.mxu0 %vm630_vm3, %v15361_v53 }
0x4c60   : > { %v6879_v56 = vpop.f32.mrb[212].mxu0 }
0x4c61   : > { %v6880_v4 = vadd.f32 %v6879_v56, %v13583_v38  ;;  %v12159_v9 = vpop.f32.mrb[213].mxu0 }
0x4c62   : > { %v6882_v54 = vpop.f32.mrb[214].mxu0 }
0x4c63   : > { %6886 = vrot.lane.b32.xlu0 %v6880_v4, %s13084_s25  ;;  %v12160_v27 = vpop.f32.mrb[215].mxu0  ;;  %s13087_s25 = smov 112  }
0x4c84   : > { %v12185_v39 = vpop.f32.mrb[216].mxu0 }
0x4c85   : > { %v7045_v10 = vadd.f32 %v12185_v39, %v13359_v28  ;;  %v7036_v8 = vpop.f32.mrb[217].mxu0 }
0x4c86   : > { %v7037_v35 = vadd.f32 %v7036_v8, %v13361_v29  ;;  %v12186_v45 = vpop.f32.mrb[218].mxu0 }
0x4c87   : > { %v7057_v20 = vmul.f32 0.1, %v7045_v10  ;;  %v7048_v1 = vadd.f32 %v12186_v45, %v13364_v33  ;;  %v7039_v12 = vpop.f32.mrb[219].mxu0  ;;  %vm7053_vm15 = vcmp.gt.f32.partialorder %v7045_v10, 0.0 }
0x4c88   : > { %v7055_v34 = vmul.f32 0.1, %v7037_v35  ;;  %v7040_v44 = vadd.f32 %v7039_v12, %v13367_v36  ;;  %vm7051_vm4 = vcmp.gt.f32.partialorder %v7037_v35, 0.0  ;;  %v15436_v12 = vld [vmem:[%s16041_s7] sm:$0xff]  }
0x4c89   : > { %vm7054_vm5 = vcmp.gt.f32.partialorder %v7048_v1, 0.0  ;;  %v7058_v15 = vmul.f32 0.1, %v7048_v1  ;;  %v7061_v30 = vsel %vm7053_vm15, %v7045_v10, %v7057_v20 }
0x4c8a   : > { %vm7052_vm6 = vcmp.gt.f32.partialorder %v7040_v44, 0.0  ;;  %v7056_v55 = vmul.f32 0.1, %v7040_v44  ;;  %v7059_v60 = vsel %vm7051_vm4, %v7037_v35, %v7055_v34  ;;  %v15445_v34 = vld [vmem:[%s16041_s7 + $0x8] sm:$0xff]  }
0x4c8b   : > { %v7062_v2 = vsel %vm7054_vm5, %v7048_v1, %v7058_v15  ;;  %v15459_v15 = vld [vmem:[%s16041_s7 + $0x18] sm:$0xff]  }
0x4c8c   : > { %v7060_v6 = vsel %vm7052_vm6, %v7040_v44, %v7056_v55  ;;  %v7064_v26 = vpack.c.bf16 %v7062_v2, %v7061_v30  ;;  %v15452_v44 = vld [vmem:[%s16041_s7 + $0x10] sm:$0xff]   ;;  %v15466_v55 = vld [vmem:[%s16041_s7 + $0x20] sm:$0xff]   ;;  %v15473_v30 = vld [vmem:[%s16041_s7 + $0x28] sm:$0xff]  }
0x4c8d   : > { %v7063_v62 = vpack.c.bf16 %v7060_v6, %v7059_v60  ;;  %v15480_v2 = vld [vmem:[%s16041_s7 + $0x30] sm:$0xff]   ;;  %v15487_v60 = vld [vmem:[%s16041_s7 + $0x38] sm:$0xff]  }
0x4c8f   : > { %12187 = vmatprep.subr.bf16.mxu0 %v7063_v62 }
0x4c90   : > { %12188 = vmatpush3.bf16.msra.mxu0 %v7063_v62 }
0x4c91   : > { %12189 = vmatprep.subr.bf16.mxu0 %v7064_v26 }
0x4c94   : > { %12190 = vmatpush3.bf16.msra.mxu0 %v7064_v26 }
0x4c95   : > { %12195 = vmatprep.subr.bf16.mxu0 %v15317_v42 }
0x4c97   : > { %12192 = vmatmul.mubr.msk.bf16.vlgmr.msra.gmra.mrb[220].mxu0 %vm630_vm3, %v15227_v13 }
0x4c98   : > { %12196 = vmatpush3.bf16.msra.mxu0 %v15317_v42 }
0x4c99   : > { %12197 = vmatprep.subr.bf16.mxu0 %v15321_v18 }
0x4c9c   : > { %12198 = vmatpush3.bf16.msra.mxu0 %v15321_v18 }
0x4c9d   : > { %12199 = vmatprep.subr.bf16.mxu0 %v15328_v61 }
0x4ca0   : > { %12200 = vmatpush3.bf16.msra.mxu0 %v15328_v61 }
0x4ca1   : > { %12201 = vmatprep.subr.bf16.mxu0 %v15333_v23 }
0x4ca4   : > { %12202 = vmatpush3.bf16.msra.mxu0 %v15333_v23 }
0x4ca5   : > { %12203 = vmatprep.subr.bf16.mxu0 %v15338_v51 }
0x4ca8   : > { %12204 = vmatpush3.bf16.msra.mxu0 %v15338_v51 }
0x4ca9   : > { %12205 = vmatprep.subr.bf16.mxu0 %v15343_v3 }
0x4cac   : > { %12206 = vmatpush3.bf16.msra.mxu0 %v15343_v3 }
0x4cad   : > { %12207 = vmatprep.subr.bf16.mxu0 %v15348_v52 }
0x4cb0   : > { %12208 = vmatpush3.bf16.msra.mxu0 %v15348_v52 }
0x4cb1   : > { %12209 = vmatprep.subr.bf16.mxu0 %v15353_v24 }
0x4cb4   : > { %12210 = vmatpush3.bf16.msra.mxu0 %v15353_v24 }
0x4cb5   : > { %12243 = vmatprep.subr.bf16.mxu0 %v13071_v0 }
0x4cd5   : > { %v6887_v16 = vpop.permute.xlu0 %6886 }
0x4cd6   : > { %6890 = vst.msk [vmem:[%s13587_s26] sm:$0x1] %vm6889_vm7, %v6887_v16 }
0x4d6a   : > { %v12193_v40 = vpop.f32.mrb[220].mxu0 }
0x4d6b   : > { %v7099_v5 = vpop.f32.mrb[221].mxu0 }
0x4d6c   : > { %v12194_v43 = vpop.f32.mrb[222].mxu0 }
0x4d6d   : > { %v7115_v32 = vpack.c.bf16 %v12194_v43, %v12193_v40  ;;  %v7102_v50 = vpop.f32.mrb[223].mxu0 }
0x4d6e   : > { %v7114_v37 = vpack.c.bf16 %v7102_v50, %v7099_v5 }
0x4d70   : > { %12211 = vmatprep.mubr.bf16.mxu0 %v7114_v37 }
0x4d71   : > { %12212 = vmatmul.mubr.bf16.vlgmr.msra.gmra.mrb[224].mxu0 %v7115_v32 }
0x4d72   : > { %12247 = vmatprep.mubr.msk.bf16.mxu0 %vm13072_vm0, %v13071_v0 }
0x4e44   : > { %v12213_v47 = vpop.f32.mrb[224].mxu0 }
0x4e45   : > { %v7159_v41 = vadd.f32 %v12213_v47, %v13401_v59  ;;  %v7150_v31 = vpop.f32.mrb[225].mxu0 }
0x4e46   : > { %v7151_v48 = vadd.f32 %v7150_v31, %v13397_v57  ;;  %v12214_v11 = vpop.f32.mrb[226].mxu0 }
0x4e47   : > { %v7171_v49 = vmul.f32 0.1, %v7159_v41  ;;  %v7162_v21 = vadd.f32 %v12214_v11, %v13404_v63  ;;  %v7153_v22 = vpop.f32.mrb[227].mxu0  ;;  %vm7167_vm8 = vcmp.gt.f32.partialorder %v7159_v41, 0.0 }
0x4e48   : > { %v7169_v14 = vmul.f32 0.1, %v7151_v48  ;;  %v7154_v17 = vadd.f32 %v7153_v22, %v13399_v58  ;;  %vm7165_vm9 = vcmp.gt.f32.partialorder %v7151_v48, 0.0 }
0x4e49   : > { %vm7168_vm10 = vcmp.gt.f32.partialorder %v7162_v21, 0.0  ;;  %v7172_v46 = vmul.f32 0.1, %v7162_v21  ;;  %v7175_v56 = vsel %vm7167_vm8, %v7159_v41, %v7171_v49  ;;  %vm7419_vm8 = vcmask 844544  }
0x4e4a   : > { %vm7166_vm11 = vcmp.gt.f32.partialorder %v7154_v17, 0.0  ;;  %v7170_v7 = vmul.f32 0.1, %v7154_v17  ;;  %v7173_v9 = vsel %vm7165_vm9, %v7151_v48, %v7169_v14  ;;  %v15499_v14 = vld [vmem:[%s16040_s6] sm:$0x1] }
0x4e4b   : > { %v7176_v4 = vsel %vm7168_vm10, %v7162_v21, %v7172_v46  ;;  %v15543_v46 = vld [vmem:[%s13251_s30 + $0x360] sm:$0xff]  }
0x4e4c   : > { %v7174_v54 = vsel %vm7166_vm11, %v7154_v17, %v7170_v7  ;;  %v7178_v27 = vpack.c.bf16 %v7176_v4, %v7175_v56  ;;  %v15538_v17 = vld [vmem:[%s13251_s30 + $0x358] sm:$0xff]   ;;  %v15548_v7 = vld [vmem:[%s13251_s30 + $0x368] sm:$0xff]   ;;  %v15553_v56 = vld [vmem:[%s13251_s30 + $0x370] sm:$0xff]  }
0x4e4d   : > { %v7177_v39 = vpack.c.bf16 %v7174_v54, %v7173_v9  ;;  %v15558_v4 = vld [vmem:[%s13251_s30 + $0x378] sm:$0xff]   ;;  %v9540_v9 = vld [vmem:[%s13304_s17 + $0x34] sm:$0xf] }
0x4e4f   : > { %12215 = vmatprep.subr.bf16.mxu1 %v7177_v39 }
0x4e50   : > { %12216 = vmatpush3.bf16.msra.mxu1 %v7177_v39 }
0x4e51   : > { %12217 = vmatprep.subr.bf16.mxu1 %v7178_v27 }
0x4e54   : > { %12218 = vmatpush3.bf16.msra.mxu1 %v7178_v27 }
0x4e55   : > { %12223 = vmatprep.subr.bf16.mxu1 %v15317_v42 }
0x4e57   : > { %12220 = vmatmul.mubr.msk.bf16.vlgmr.msra.gmra.mrb[220].mxu1 %vm630_vm3, %v15227_v13 }
0x4e58   : > { %12224 = vmatpush3.bf16.msra.mxu1 %v15317_v42 }
0x4e59   : > { %12225 = vmatprep.subr.bf16.mxu1 %v15321_v18 }
0x4e5c   : > { %12226 = vmatpush3.bf16.msra.mxu1 %v15321_v18 }
0x4e5d   : > { %12227 = vmatprep.subr.bf16.mxu1 %v15328_v61 }
0x4e60   : > { %12228 = vmatpush3.bf16.msra.mxu1 %v15328_v61 }
0x4e61   : > { %12229 = vmatprep.subr.bf16.mxu1 %v15333_v23 }
0x4e64   : > { %12230 = vmatpush3.bf16.msra.mxu1 %v15333_v23 }
0x4e65   : > { %12231 = vmatprep.subr.bf16.mxu1 %v15338_v51 }
0x4e68   : > { %12232 = vmatpush3.bf16.msra.mxu1 %v15338_v51 }
0x4e69   : > { %12233 = vmatprep.subr.bf16.mxu1 %v15343_v3 }
0x4e6c   : > { %12234 = vmatpush3.bf16.msra.mxu1 %v15343_v3 }
0x4e6d   : > { %12235 = vmatprep.subr.bf16.mxu1 %v15348_v52 }
0x4e70   : > { %12236 = vmatpush3.bf16.msra.mxu1 %v15348_v52 }
0x4e71   : > { %12237 = vmatprep.subr.bf16.mxu1 %v15353_v24 }
0x4e74   : > { %12238 = vmatpush3.bf16.msra.mxu1 %v15353_v24 }
0x4e75   : > { %12271 = vmatprep.subr.bf16.mxu1 %v13071_v0 }
0x4f2a   : > { %v12221_v10 = vpop.f32.mrb[220].mxu1 }
0x4f2b   : > { %v7213_v8 = vpop.f32.mrb[221].mxu1 }
0x4f2c   : > { %v12222_v35 = vpop.f32.mrb[222].mxu1 }
0x4f2d   : > { %v7229_v45 = vpack.c.bf16 %v12222_v35, %v12221_v10  ;;  %v7216_v20 = vpop.f32.mrb[223].mxu1 }
0x4f2e   : > { %v7228_v1 = vpack.c.bf16 %v7216_v20, %v7213_v8 }
0x4f30   : > { %12239 = vmatprep.mubr.bf16.mxu1 %v7228_v1 }
0x4f31   : > { %12240 = vmatmul.mubr.bf16.vlgmr.msra.gmra.mrb[224].mxu1 %v7229_v45 }
0x4f32   : > { %12272 = vmatpush3.bf16.msra.mxu1 %v15436_v12  ;;  %12287 = vmatprep.mubr.msk.bf16.mxu1 %vm13072_vm0, %v13071_v0 }
0x4f33   : > { %12273 = vmatprep.subr.bf16.mxu1 %v13071_v0 }
0x4f36   : > { %12274 = vmatpush3.bf16.msra.mxu1 %v15445_v34 }
0x4f37   : > { %12275 = vmatprep.subr.bf16.mxu1 %v13071_v0 }
0x4f3a   : > { %12276 = vmatpush3.bf16.msra.mxu1 %v15452_v44 }
0x4f3b   : > { %12277 = vmatprep.subr.bf16.mxu1 %v13071_v0 }
0x4f3e   : > { %12278 = vmatpush3.bf16.msra.mxu1 %v15459_v15 }
0x4f3f   : > { %12279 = vmatprep.subr.bf16.mxu1 %v13071_v0 }
0x4f42   : > { %12280 = vmatpush3.bf16.msra.mxu1 %v15466_v55 }
0x4f43   : > { %12281 = vmatprep.subr.bf16.mxu1 %v13071_v0 }
0x4f46   : > { %12282 = vmatpush3.bf16.msra.mxu1 %v15473_v30 }
0x4f47   : > { %12283 = vmatprep.subr.bf16.mxu1 %v13071_v0 }
0x4f4a   : > { %12284 = vmatpush3.bf16.msra.mxu1 %v15480_v2 }
0x4f4b   : > { %12285 = vmatprep.subr.bf16.mxu1 %v13071_v0 }
0x4f4e   : > { %12286 = vmatpush3.bf16.msra.mxu1 %v15487_v60 }
0x5004   : > { %v12241_v6 = vpop.f32.mrb[224].mxu1 }
0x5005   : > { %v7273_v26 = vadd.f32 %v12241_v6, %v13401_v59  ;;  %v7264_v62 = vpop.f32.mrb[225].mxu1 }
0x5006   : > { %v7265_v16 = vadd.f32 %v7264_v62, %v13397_v57  ;;  %v12242_v40 = vpop.f32.mrb[226].mxu1 }
0x5007   : > { %v7285_v5 = vmul.f32 0.1, %v7273_v26  ;;  %v7276_v43 = vadd.f32 %v12242_v40, %v13404_v63  ;;  %v7267_v32 = vpop.f32.mrb[227].mxu1  ;;  %vm7281_vm12 = vcmp.gt.f32.partialorder %v7273_v26, 0.0 }
0x5008   : > { %v7283_v50 = vmul.f32 0.1, %v7265_v16  ;;  %v7268_v37 = vadd.f32 %v7267_v32, %v13399_v58  ;;  %vm7279_vm13 = vcmp.gt.f32.partialorder %v7265_v16, 0.0 }
0x5009   : > { %vm7282_vm14 = vcmp.gt.f32.partialorder %v7276_v43, 0.0  ;;  %v7286_v47 = vmul.f32 0.1, %v7276_v43  ;;  %v7289_v31 = vsel %vm7281_vm12, %v7273_v26, %v7285_v5 }
0x500a   : > { %vm7280_vm15 = vcmp.gt.f32.partialorder %v7268_v37, 0.0  ;;  %v7284_v41 = vmul.f32 0.1, %v7268_v37  ;;  %v7287_v11 = vsel %vm7279_vm13, %v7265_v16, %v7283_v50 }
0x500b   : > { %v7290_v48 = vsel %vm7282_vm14, %v7276_v43, %v7286_v47 }
0x500c   : > { %v7292_v49 = vpack.c.bf16 %v7290_v48, %v7289_v31  ;;  %v7288_v21 = vsel %vm7280_vm15, %v7268_v37, %v7284_v41 }
0x500d   : > { %v7291_v22 = vpack.c.bf16 %v7288_v21, %v7287_v11 }
0x500f   : > { %12244 = vmatpush3.bf16.msra.mxu0 %v7291_v22 }
0x5010   : > { %12245 = vmatprep.subr.bf16.mxu0 %v13071_v0 }
0x5013   : > { %12246 = vmatpush3.bf16.msra.mxu0 %v7292_v49 }
0x5014   : > { %12251 = vmatprep.subr.bf16.mxu0 %v13071_v0 }
0x5016   : > { %12248 = vmatmul.mubr.msk.bf16.vlgmr.msra.gmra.mrb[228].mxu0 %vm630_vm3, %v15499_v14 }
0x5017   : > { %12252 = vmatpush3.bf16.msra.mxu0 %v15317_v42  ;;  %12267 = vmatprep.mubr.msk.bf16.mxu0 %vm13072_vm0, %v13071_v0 }
0x5018   : > { %12253 = vmatprep.subr.bf16.mxu0 %v13071_v0 }
0x501b   : > { %12254 = vmatpush3.bf16.msra.mxu0 %v15321_v18  ;;  %v15522_v18 = vld [vmem:[%s13251_s30 + $0x340] sm:$0xff]  }
0x501c   : > { %12255 = vmatprep.subr.bf16.mxu0 %v13071_v0 }
0x501f   : > { %12256 = vmatpush3.bf16.msra.mxu0 %v15328_v61 }
0x5020   : > { %12257 = vmatprep.subr.bf16.mxu0 %v13071_v0 }
0x5023   : > { %12258 = vmatpush3.bf16.msra.mxu0 %v15333_v23 }
0x5024   : > { %12259 = vmatprep.subr.bf16.mxu0 %v13071_v0 }
0x5027   : > { %12260 = vmatpush3.bf16.msra.mxu0 %v15338_v51 }
0x5028   : > { %12261 = vmatprep.subr.bf16.mxu0 %v13071_v0 }
0x502b   : > { %12262 = vmatpush3.bf16.msra.mxu0 %v15343_v3 }
0x502c   : > { %12263 = vmatprep.subr.bf16.mxu0 %v13071_v0 }
0x502f   : > { %12264 = vmatpush3.bf16.msra.mxu0 %v15348_v52  ;;  %v15526_v52 = vld [vmem:[%s13251_s30 + $0x348] sm:$0xff]  }
0x5030   : > { %12265 = vmatprep.subr.bf16.mxu0 %v13071_v0 }
0x5033   : > { %12266 = vmatpush3.bf16.msra.mxu0 %v15353_v24  ;;  %v15533_v24 = vld [vmem:[%s13251_s30 + $0x350] sm:$0xff]  }
0x5034   : > { %12291 = vmatprep.subr.bf16.mxu0 %v13071_v0 }
0x50e9   : > { %v7327_v42 = vpop.f32.mrb[228].mxu0 }
0x50ea   : > { %v7333_v61 = vpack.c.bf16 %v7327_v42, %v7327_v42  ;;  %v12249_v23 = vpop.f32.mrb[229].mxu0 }
0x50eb   : > { %v7330_v51 = vpop.f32.mrb[230].mxu0 }
0x50ec   : > { %v12250_v3 = vpop.f32.mrb[231].mxu0  ;;  %12268 = vmatmul.mubr.bf16.vlgmr.msra.gmra.mrb[232].mxu0 %v7333_v61 }
0x50ed   : > { %12292 = vmatpush3.bf16.msra.mxu0 %v15522_v18  ;;  %12307 = vmatprep.mubr.msk.bf16.mxu0 %vm13072_vm0, %v13071_v0 }
0x50ee   : > { %12293 = vmatprep.subr.bf16.mxu0 %v13071_v0 }
0x50f1   : > { %12294 = vmatpush3.bf16.msra.mxu0 %v15526_v52 }
0x50f2   : > { %12295 = vmatprep.subr.bf16.mxu0 %v13071_v0 }
0x50f5   : > { %12296 = vmatpush3.bf16.msra.mxu0 %v15533_v24 }
0x50f6   : > { %12297 = vmatprep.subr.bf16.mxu0 %v13071_v0 }
0x50f9   : > { %12298 = vmatpush3.bf16.msra.mxu0 %v15538_v17 }
0x50fa   : > { %12299 = vmatprep.subr.bf16.mxu0 %v13071_v0 }
0x50fd   : > { %12300 = vmatpush3.bf16.msra.mxu0 %v15543_v46 }
0x50fe   : > { %12301 = vmatprep.subr.bf16.mxu0 %v13071_v0 }
0x5101   : > { %12302 = vmatpush3.bf16.msra.mxu0 %v15548_v7 }
0x5102   : > { %12303 = vmatprep.subr.bf16.mxu0 %v13071_v0 }
0x5105   : > { %12304 = vmatpush3.bf16.msra.mxu0 %v15553_v56 }
0x5106   : > { %12305 = vmatprep.subr.bf16.mxu0 %v13071_v0 }
0x5109   : > { %12306 = vmatpush3.bf16.msra.mxu0 %v15558_v4 }
0x510c   : > { %12308 = vmatmul.mubr.bf16.vlgmr.msra.gmra.mrb[236].mxu0 %v9540_v9 }
0x510d   : > { %12349 = vmatprep.mubr.msk.bf16.mxu0 %vm630_vm3, %v15361_v53 }
0x51bf   : > { %v7368_v54 = vpop.f32.mrb[232].mxu0 }
0x51c0   : > { %v7374_v27 = vpack.c.bf16 %v7368_v54, %v7368_v54  ;;  %v12269_v39 = vpop.f32.mrb[233].mxu0 }
0x51c1   : > { %v7371_v10 = vpop.f32.mrb[234].mxu0 }
0x51c2   : > { %v12270_v8 = vpop.f32.mrb[235].mxu0  ;;  %12288 = vmatmul.mubr.bf16.vlgmr.msra.gmra.mrb[228].mxu1 %v7374_v27 }
0x51c3   : > { %12313 = vmatprep.mubr.msk.bf16.mxu1 %vm546_vm1, %v15368_v19 }
0x51df   : > { %v7522_v35 = vpop.f32.mrb[236].mxu0 }
0x51e0   : > { %v7528_v45 = vpack.c.bf16 %v7522_v35, %v7522_v35  ;;  %v12309_v20 = vpop.f32.mrb[237].mxu0 }
0x51e1   : > { %v7525_v1 = vpop.f32.mrb[238].mxu0 }
0x51e2   : > { %v7530_v6 = vsel %vm553_vm2, %v7528_v45, 0  ;;  %v12310_v26 = vpop.f32.mrb[239].mxu0  ;;  %12694 = vmatprep.subr.msk.bf16.mxu1 %vm553_vm2, %v7528_v45 }
0x51e3   : > { %12312 = vmatpush3.bf16.msra.mxu1 %v7530_v6 }
0x51e6   : > { %12314 = vmatmul.mubr.msk.bf16.vlgmr.msra.gmra.mrb[232].mxu1 %vm546_vm1, %v15377_v25 }
0x51e7   : > { %12321 = vmatprep.mubr.msk.bf16.mxu1 %vm630_vm3, %v15361_v53 }
0x5295   : > { %v7409_v62 = vpop.f32.mrb[228].mxu1 }
0x5296   : > { %v7410_v16 = vadd.f32 %v7409_v62, %v13583_v38  ;;  %v12289_v40 = vpop.f32.mrb[229].mxu1 }
0x5297   : > { %v7412_v5 = vpop.f32.mrb[230].mxu1 }
0x5298   : > { %7416 = vrot.lane.b32.xlu1 %v7410_v16, %s13085_s20  ;;  %v12290_v43 = vpop.f32.mrb[231].mxu1  ;;  %s15989_s20 = scalar_lea.hbm %s16043_s9, %s13261_s29 }
0x52b9   : > { %v12315_v32 = vpop.f32.mrb[232].mxu1 }
0x52ba   : > { %v7575_v50 = vadd.f32 %v12315_v32, %v13359_v28  ;;  %v7566_v37 = vpop.f32.mrb[233].mxu1 }
0x52bb   : > { %v7567_v47 = vadd.f32 %v7566_v37, %v13361_v29  ;;  %v12316_v41 = vpop.f32.mrb[234].mxu1 }
0x52bc   : > { %v7587_v31 = vmul.f32 0.1, %v7575_v50  ;;  %v7578_v48 = vadd.f32 %v12316_v41, %v13364_v33  ;;  %v7569_v11 = vpop.f32.mrb[235].mxu1  ;;  %vm7583_vm4 = vcmp.gt.f32.partialorder %v7575_v50, 0.0 }
0x52bd   : > { %v7585_v49 = vmul.f32 0.1, %v7567_v47  ;;  %v7570_v21 = vadd.f32 %v7569_v11, %v13367_v36  ;;  %vm7581_vm5 = vcmp.gt.f32.partialorder %v7567_v47, 0.0 }
0x52be   : > { %vm7584_vm6 = vcmp.gt.f32.partialorder %v7578_v48, 0.0  ;;  %v7588_v22 = vmul.f32 0.1, %v7578_v48  ;;  %v7591_v61 = vsel %vm7583_vm4, %v7575_v50, %v7587_v31 }
0x52bf   : > { %vm7582_vm7 = vcmp.gt.f32.partialorder %v7570_v21, 0.0  ;;  %v7586_v42 = vmul.f32 0.1, %v7570_v21  ;;  %v7589_v51 = vsel %vm7581_vm5, %v7567_v47, %v7585_v49 }
0x52c0   : > { %v7592_v23 = vsel %vm7584_vm6, %v7578_v48, %v7588_v22 }
0x52c1   : > { %v7590_v3 = vsel %vm7582_vm7, %v7570_v21, %v7586_v42  ;;  %v7594_v9 = vpack.c.bf16 %v7592_v23, %v7591_v61 }
0x52c2   : > { %v7593_v54 = vpack.c.bf16 %v7590_v3, %v7589_v51 }
0x52c4   : > { %12317 = vmatprep.subr.bf16.mxu1 %v7593_v54 }
0x52c5   : > { %12318 = vmatpush3.bf16.msra.mxu1 %v7593_v54 }
0x52c6   : > { %12319 = vmatprep.subr.bf16.mxu1 %v7594_v9 }
0x52c9   : > { %12320 = vmatpush3.bf16.msra.mxu1 %v7594_v9 }
0x52ca   : > { %12325 = vmatprep.subr.bf16.mxu1 %v15522_v18 }
0x52cc   : > { %12322 = vmatmul.mubr.msk.bf16.vlgmr.msra.gmra.mrb[236].mxu1 %vm630_vm3, %v15227_v13 }
0x52cd   : > { %12326 = vmatpush3.bf16.msra.mxu1 %v15522_v18 }
0x52ce   : > { %12327 = vmatprep.subr.bf16.mxu1 %v15526_v52 }
0x52d1   : > { %12328 = vmatpush3.bf16.msra.mxu1 %v15526_v52 }
0x52d2   : > { %12329 = vmatprep.subr.bf16.mxu1 %v15533_v24 }
0x52d5   : > { %12330 = vmatpush3.bf16.msra.mxu1 %v15533_v24 }
0x52d6   : > { %12331 = vmatprep.subr.bf16.mxu1 %v15538_v17 }
0x52d9   : > { %12332 = vmatpush3.bf16.msra.mxu1 %v15538_v17 }
0x52da   : > { %12333 = vmatprep.subr.bf16.mxu1 %v15543_v46 }
0x52dd   : > { %12334 = vmatpush3.bf16.msra.mxu1 %v15543_v46 }
0x52de   : > { %12335 = vmatprep.subr.bf16.mxu1 %v15548_v7 }
0x52e1   : > { %12336 = vmatpush3.bf16.msra.mxu1 %v15548_v7 }
0x52e2   : > { %12337 = vmatprep.subr.bf16.mxu1 %v15553_v56 }
0x52e5   : > { %12338 = vmatpush3.bf16.msra.mxu1 %v15553_v56 }
0x52e6   : > { %12339 = vmatprep.subr.bf16.mxu1 %v15558_v4 }
0x52e9   : > { %12340 = vmatpush3.bf16.msra.mxu1 %v15558_v4 }
0x52ea   : > { %12373 = vmatprep.subr.bf16.mxu1 %v13071_v0 }
0x530a   : > { %v7417_v27 = vpop.permute.xlu1 %7416 }
0x530b   : > { %7420 = vst.msk [vmem:[%s13587_s26] sm:$0x1] %vm7419_vm8, %v7417_v27 }
0x539f   : > { %v12323_v39 = vpop.f32.mrb[236].mxu1 }
0x53a0   : > { %v7629_v10 = vpop.f32.mrb[237].mxu1 }
0x53a1   : > { %v12324_v8 = vpop.f32.mrb[238].mxu1 }
0x53a2   : > { %v7645_v35 = vpack.c.bf16 %v12324_v8, %v12323_v39  ;;  %v7632_v45 = vpop.f32.mrb[239].mxu1 }
0x53a3   : > { %v7644_v20 = vpack.c.bf16 %v7632_v45, %v7629_v10 }
0x53a5   : > { %12341 = vmatprep.mubr.bf16.mxu1 %v7644_v20 }
0x53a6   : > { %12342 = vmatmul.mubr.bf16.vlgmr.msra.gmra.mrb[240].mxu1 %v7645_v35 }
0x53a7   : > { %12377 = vmatprep.mubr.msk.bf16.mxu1 %vm13072_vm0, %v13071_v0 }
0x5479   : > { %v12343_v1 = vpop.f32.mrb[240].mxu1 }
0x547a   : > { %v7689_v6 = vadd.f32 %v12343_v1, %v13401_v59  ;;  %v7680_v26 = vpop.f32.mrb[241].mxu1 }
0x547b   : > { %v7681_v62 = vadd.f32 %v7680_v26, %v13397_v57  ;;  %v12344_v16 = vpop.f32.mrb[242].mxu1 }
0x547c   : > { %v7701_v40 = vmul.f32 0.1, %v7689_v6  ;;  %v7692_v5 = vadd.f32 %v12344_v16, %v13404_v63  ;;  %v7683_v43 = vpop.f32.mrb[243].mxu1  ;;  %vm7697_vm9 = vcmp.gt.f32.partialorder %v7689_v6, 0.0 }
0x547d   : > { %v7699_v32 = vmul.f32 0.1, %v7681_v62  ;;  %v7684_v50 = vadd.f32 %v7683_v43, %v13399_v58  ;;  %vm7695_vm10 = vcmp.gt.f32.partialorder %v7681_v62, 0.0 }
0x547e   : > { %vm7698_vm11 = vcmp.gt.f32.partialorder %v7692_v5, 0.0  ;;  %v7702_v37 = vmul.f32 0.1, %v7692_v5  ;;  %v7705_v41 = vsel %vm7697_vm9, %v7689_v6, %v7701_v40  ;;  %vm7949_vm9 = vcmask 910144  }
0x547f   : > { %vm7696_vm12 = vcmp.gt.f32.partialorder %v7684_v50, 0.0  ;;  %v7700_v47 = vmul.f32 0.1, %v7684_v50  ;;  %v7703_v48 = vsel %vm7695_vm10, %v7681_v62, %v7699_v32  ;;  %v15683_v32 = vld [vmem:[%s13251_s30 + $0x398] sm:$0xff]  }
0x5480   : > { %v7706_v31 = vsel %vm7698_vm11, %v7692_v5, %v7702_v37  ;;  %v15693_v37 = vld [vmem:[%s13251_s30 + $0x3a8] sm:$0xff]  }
0x5481   : > { %v7704_v11 = vsel %vm7696_vm12, %v7684_v50, %v7700_v47  ;;  %v7708_v49 = vpack.c.bf16 %v7706_v31, %v7705_v41  ;;  %v15688_v50 = vld [vmem:[%s13251_s30 + $0x3a0] sm:$0xff]   ;;  %v15698_v47 = vld [vmem:[%s13251_s30 + $0x3b0] sm:$0xff]   ;;  %v15703_v41 = vld [vmem:[%s13251_s30 + $0x3b8] sm:$0xff]  }
0x5482   : > { %v7707_v21 = vpack.c.bf16 %v7704_v11, %v7703_v48  ;;  %v9572_v31 = vld [vmem:[%s13304_s17 + $0x38] sm:$0xf] }
0x5484   : > { %12345 = vmatprep.subr.bf16.mxu0 %v7707_v21 }
0x5485   : > { %12346 = vmatpush3.bf16.msra.mxu0 %v7707_v21 }
0x5486   : > { %12347 = vmatprep.subr.bf16.mxu0 %v7708_v49 }
0x5489   : > { %12348 = vmatpush3.bf16.msra.mxu0 %v7708_v49 }
0x548a   : > { %12353 = vmatprep.subr.bf16.mxu0 %v15522_v18 }
0x548c   : > { %12350 = vmatmul.mubr.msk.bf16.vlgmr.msra.gmra.mrb[240].mxu0 %vm630_vm3, %v15227_v13 }
0x548d   : > { %12354 = vmatpush3.bf16.msra.mxu0 %v15522_v18 }
0x548e   : > { %12355 = vmatprep.subr.bf16.mxu0 %v15526_v52 }
0x5491   : > { %12356 = vmatpush3.bf16.msra.mxu0 %v15526_v52 }
0x5492   : > { %12357 = vmatprep.subr.bf16.mxu0 %v15533_v24 }
0x5495   : > { %12358 = vmatpush3.bf16.msra.mxu0 %v15533_v24 }
0x5496   : > { %12359 = vmatprep.subr.bf16.mxu0 %v15538_v17 }
0x5499   : > { %12360 = vmatpush3.bf16.msra.mxu0 %v15538_v17 }
0x549a   : > { %12361 = vmatprep.subr.bf16.mxu0 %v15543_v46 }
0x549d   : > { %12362 = vmatpush3.bf16.msra.mxu0 %v15543_v46 }
0x549e   : > { %12363 = vmatprep.subr.bf16.mxu0 %v15548_v7 }
0x54a1   : > { %12364 = vmatpush3.bf16.msra.mxu0 %v15548_v7 }
0x54a2   : > { %12365 = vmatprep.subr.bf16.mxu0 %v15553_v56 }
0x54a5   : > { %12366 = vmatpush3.bf16.msra.mxu0 %v15553_v56 }
0x54a6   : > { %12367 = vmatprep.subr.bf16.mxu0 %v15558_v4 }
0x54a9   : > { %12368 = vmatpush3.bf16.msra.mxu0 %v15558_v4 }
0x54aa   : > { %12401 = vmatprep.subr.bf16.mxu0 %v13071_v0 }
0x555f   : > { %v12351_v13 = vpop.f32.mrb[240].mxu0 }
0x5560   : > { %v7743_v22 = vpop.f32.mrb[241].mxu0 }
0x5561   : > { %v12352_v42 = vpop.f32.mrb[242].mxu0 }
0x5562   : > { %v7759_v61 = vpack.c.bf16 %v12352_v42, %v12351_v13  ;;  %v7746_v23 = vpop.f32.mrb[243].mxu0 }
0x5563   : > { %v7758_v51 = vpack.c.bf16 %v7746_v23, %v7743_v22 }
0x5565   : > { %12369 = vmatprep.mubr.bf16.mxu0 %v7758_v51 }
0x5566   : > { %12370 = vmatmul.mubr.bf16.vlgmr.msra.gmra.mrb[244].mxu0 %v7759_v61 }
0x5567   : > { %12402 = vmatpush3.bf16.msra.mxu0 %v15436_v12  ;;  %12417 = vmatprep.mubr.msk.bf16.mxu0 %vm13072_vm0, %v13071_v0 }
0x5568   : > { %12403 = vmatprep.subr.bf16.mxu0 %v13071_v0 }
0x556b   : > { %12404 = vmatpush3.bf16.msra.mxu0 %v15445_v34 }
0x556c   : > { %12405 = vmatprep.subr.bf16.mxu0 %v13071_v0 }
0x556f   : > { %12406 = vmatpush3.bf16.msra.mxu0 %v15452_v44 }
0x5570   : > { %12407 = vmatprep.subr.bf16.mxu0 %v13071_v0 }
0x5573   : > { %12408 = vmatpush3.bf16.msra.mxu0 %v15459_v15 }
0x5574   : > { %12409 = vmatprep.subr.bf16.mxu0 %v13071_v0 }
0x5577   : > { %12410 = vmatpush3.bf16.msra.mxu0 %v15466_v55 }
0x5578   : > { %12411 = vmatprep.subr.bf16.mxu0 %v13071_v0 }
0x557b   : > { %12412 = vmatpush3.bf16.msra.mxu0 %v15473_v30 }
0x557c   : > { %12413 = vmatprep.subr.bf16.mxu0 %v13071_v0 }
0x557f   : > { %12414 = vmatpush3.bf16.msra.mxu0 %v15480_v2 }
0x5580   : > { %12415 = vmatprep.subr.bf16.mxu0 %v13071_v0 }
0x5583   : > { %12416 = vmatpush3.bf16.msra.mxu0 %v15487_v60 }
0x5639   : > { %v12371_v3 = vpop.f32.mrb[244].mxu0 }
0x563a   : > { %v7803_v9 = vadd.f32 %v12371_v3, %v13401_v59  ;;  %v7794_v54 = vpop.f32.mrb[245].mxu0 }
0x563b   : > { %v7795_v27 = vadd.f32 %v7794_v54, %v13397_v57  ;;  %v12372_v39 = vpop.f32.mrb[246].mxu0 }
0x563c   : > { %v7815_v10 = vmul.f32 0.1, %v7803_v9  ;;  %v7806_v8 = vadd.f32 %v12372_v39, %v13404_v63  ;;  %v7797_v35 = vpop.f32.mrb[247].mxu0  ;;  %vm7811_vm13 = vcmp.gt.f32.partialorder %v7803_v9, 0.0 }
0x563d   : > { %v7813_v45 = vmul.f32 0.1, %v7795_v27  ;;  %v7798_v20 = vadd.f32 %v7797_v35, %v13399_v58  ;;  %vm7809_vm14 = vcmp.gt.f32.partialorder %v7795_v27, 0.0 }
0x563e   : > { %vm7812_vm15 = vcmp.gt.f32.partialorder %v7806_v8, 0.0  ;;  %v7816_v1 = vmul.f32 0.1, %v7806_v8  ;;  %v7819_v26 = vsel %vm7811_vm13, %v7803_v9, %v7815_v10 }
0x563f   : > { %vm7810_vm4 = vcmp.gt.f32.partialorder %v7798_v20, 0.0  ;;  %v7814_v6 = vmul.f32 0.1, %v7798_v20  ;;  %v7817_v16 = vsel %vm7809_vm14, %v7795_v27, %v7813_v45 }
0x5640   : > { %v7820_v62 = vsel %vm7812_vm15, %v7806_v8, %v7816_v1 }
0x5641   : > { %v7822_v40 = vpack.c.bf16 %v7820_v62, %v7819_v26  ;;  %v7818_v5 = vsel %vm7810_vm4, %v7798_v20, %v7814_v6 }
0x5642   : > { %v7821_v43 = vpack.c.bf16 %v7818_v5, %v7817_v16 }
0x5644   : > { %12374 = vmatpush3.bf16.msra.mxu1 %v7821_v43 }
0x5645   : > { %12375 = vmatprep.subr.bf16.mxu1 %v13071_v0 }
0x5648   : > { %12376 = vmatpush3.bf16.msra.mxu1 %v7822_v40 }
0x5649   : > { %12381 = vmatprep.subr.bf16.mxu1 %v13071_v0 }
0x564b   : > { %12378 = vmatmul.mubr.msk.bf16.vlgmr.msra.gmra.mrb[244].mxu1 %vm630_vm3, %v15499_v14 }
0x564c   : > { %12382 = vmatpush3.bf16.msra.mxu1 %v15522_v18  ;;  %12397 = vmatprep.mubr.msk.bf16.mxu1 %vm13072_vm0, %v13071_v0 }
0x564d   : > { %12383 = vmatprep.subr.bf16.mxu1 %v13071_v0 }
0x5650   : > { %12384 = vmatpush3.bf16.msra.mxu1 %v15526_v52  ;;  %v15667_v52 = vld [vmem:[%s13251_s30 + $0x380] sm:$0xff]  }
0x5651   : > { %12385 = vmatprep.subr.bf16.mxu1 %v13071_v0 }
0x5654   : > { %12386 = vmatpush3.bf16.msra.mxu1 %v15533_v24 }
0x5655   : > { %12387 = vmatprep.subr.bf16.mxu1 %v13071_v0 }
0x5658   : > { %12388 = vmatpush3.bf16.msra.mxu1 %v15538_v17 }
0x5659   : > { %12389 = vmatprep.subr.bf16.mxu1 %v13071_v0 }
0x565c   : > { %12390 = vmatpush3.bf16.msra.mxu1 %v15543_v46 }
0x565d   : > { %12391 = vmatprep.subr.bf16.mxu1 %v13071_v0 }
0x5660   : > { %12392 = vmatpush3.bf16.msra.mxu1 %v15548_v7 }
0x5661   : > { %12393 = vmatprep.subr.bf16.mxu1 %v13071_v0 }
0x5664   : > { %12394 = vmatpush3.bf16.msra.mxu1 %v15553_v56  ;;  %v15671_v56 = vld [vmem:[%s13251_s30 + $0x388] sm:$0xff]  }
0x5665   : > { %12395 = vmatprep.subr.bf16.mxu1 %v13071_v0 }
0x5668   : > { %12396 = vmatpush3.bf16.msra.mxu1 %v15558_v4  ;;  %v15678_v4 = vld [vmem:[%s13251_s30 + $0x390] sm:$0xff]  }
0x5669   : > { %12421 = vmatprep.subr.bf16.mxu1 %v13071_v0 }
0x571e   : > { %v7857_v18 = vpop.f32.mrb[244].mxu1 }
0x571f   : > { %v7863_v24 = vpack.c.bf16 %v7857_v18, %v7857_v18  ;;  %v12379_v17 = vpop.f32.mrb[245].mxu1 }
0x5720   : > { %v7860_v46 = vpop.f32.mrb[246].mxu1 }
0x5721   : > { %v12380_v7 = vpop.f32.mrb[247].mxu1  ;;  %12398 = vmatmul.mubr.bf16.vlgmr.msra.gmra.mrb[248].mxu1 %v7863_v24  ;;  %v15727_v46 = vld [vmem:[%s16038_s4 + $0x8] sm:$0xff]  }
0x5722   : > { %12422 = vmatpush3.bf16.msra.mxu1 %v15667_v52  ;;  %12437 = vmatprep.mubr.msk.bf16.mxu1 %vm13072_vm0, %v13071_v0 }
0x5723   : > { %12423 = vmatprep.subr.bf16.mxu1 %v13071_v0 }
0x5726   : > { %12424 = vmatpush3.bf16.msra.mxu1 %v15671_v56 }
0x5727   : > { %12425 = vmatprep.subr.bf16.mxu1 %v13071_v0 }
0x572a   : > { %12426 = vmatpush3.bf16.msra.mxu1 %v15678_v4 }
0x572b   : > { %12427 = vmatprep.subr.bf16.mxu1 %v13071_v0 }
0x572e   : > { %12428 = vmatpush3.bf16.msra.mxu1 %v15683_v32 }
0x572f   : > { %12429 = vmatprep.subr.bf16.mxu1 %v13071_v0 }
0x5732   : > { %12430 = vmatpush3.bf16.msra.mxu1 %v15688_v50 }
0x5733   : > { %12431 = vmatprep.subr.bf16.mxu1 %v13071_v0 }
0x5736   : > { %12432 = vmatpush3.bf16.msra.mxu1 %v15693_v37 }
0x5737   : > { %12433 = vmatprep.subr.bf16.mxu1 %v13071_v0 }
0x573a   : > { %12434 = vmatpush3.bf16.msra.mxu1 %v15698_v47 }
0x573b   : > { %12435 = vmatprep.subr.bf16.mxu1 %v13071_v0 }
0x573e   : > { %12436 = vmatpush3.bf16.msra.mxu1 %v15703_v41 }
0x5741   : > { %12438 = vmatmul.mubr.bf16.vlgmr.msra.gmra.mrb[252].mxu1 %v9572_v31 }
0x5742   : > { %12479 = vmatprep.mubr.msk.bf16.mxu1 %vm630_vm3, %v15361_v53 }
0x57f4   : > { %v7898_v48 = vpop.f32.mrb[248].mxu1 }
0x57f5   : > { %v7904_v11 = vpack.c.bf16 %v7898_v48, %v7898_v48  ;;  %v12399_v49 = vpop.f32.mrb[249].mxu1 }
0x57f6   : > { %v7901_v21 = vpop.f32.mrb[250].mxu1 }
0x57f7   : > { %v12400_v13 = vpop.f32.mrb[251].mxu1  ;;  %12418 = vmatmul.mubr.bf16.vlgmr.msra.gmra.mrb[248].mxu0 %v7904_v11 }
0x57f8   : > { %12443 = vmatprep.mubr.msk.bf16.mxu0 %vm546_vm1, %v15368_v19 }
0x5814   : > { %v8052_v22 = vpop.f32.mrb[252].mxu1 }
0x5815   : > { %v8058_v42 = vpack.c.bf16 %v8052_v22, %v8052_v22  ;;  %v12439_v61 = vpop.f32.mrb[253].mxu1 }
0x5816   : > { %v8055_v23 = vpop.f32.mrb[254].mxu1 }
0x5817   : > { %v8060_v51 = vsel %vm553_vm2, %v8058_v42, 0  ;;  %v12440_v3 = vpop.f32.mrb[255].mxu1  ;;  %12695 = vmatprep.subr.msk.bf16.mxu0 %vm553_vm2, %v8058_v42 }
0x5818   : > { %12442 = vmatpush3.bf16.msra.mxu0 %v8060_v51 }
0x581b   : > { %12444 = vmatmul.mubr.msk.bf16.vlgmr.msra.gmra.mrb[252].mxu0 %vm546_vm1, %v15377_v25 }
0x581c   : > { %12451 = vmatprep.mubr.msk.bf16.mxu0 %vm630_vm3, %v15361_v53 }
0x58ca   : > { %v7939_v9 = vpop.f32.mrb[248].mxu0 }
0x58cb   : > { %v7940_v54 = vadd.f32 %v7939_v9, %v13583_v38  ;;  %v12419_v19 = vpop.f32.mrb[249].mxu0 }
0x58cc   : > { %v7942_v27 = vpop.f32.mrb[250].mxu0 }
0x58cd   : > { %7946 = vrot.lane.b32.xlu0 %v7940_v54, %s13086_s18  ;;  %v12420_v39 = vpop.f32.mrb[251].mxu0  ;;  %s9012_s18 = scalar_lea.sflag [#allocation5], %s13247_s27 }
0x58ee   : > { %v12445_v10 = vpop.f32.mrb[252].mxu0 }
0x58ef   : > { %v8105_v8 = vadd.f32 %v12445_v10, %v13359_v28  ;;  %v8096_v35 = vpop.f32.mrb[253].mxu0 }
0x58f0   : > { %v8097_v45 = vadd.f32 %v8096_v35, %v13361_v29  ;;  %v12446_v20 = vpop.f32.mrb[254].mxu0 }
0x58f1   : > { %v8117_v1 = vmul.f32 0.1, %v8105_v8  ;;  %v8108_v25 = vadd.f32 %v12446_v20, %v13364_v33  ;;  %v8099_v6 = vpop.f32.mrb[255].mxu0  ;;  %vm8113_vm5 = vcmp.gt.f32.partialorder %v8105_v8, 0.0 }
0x58f2   : > { %v8115_v53 = vmul.f32 0.1, %v8097_v45  ;;  %v8100_v26 = vadd.f32 %v8099_v6, %v13367_v36  ;;  %vm8111_vm6 = vcmp.gt.f32.partialorder %v8097_v45, 0.0 }
0x58f3   : > { %vm8114_vm7 = vcmp.gt.f32.partialorder %v8108_v25, 0.0  ;;  %v8118_v62 = vmul.f32 0.1, %v8108_v25  ;;  %v8121_v40 = vsel %vm8113_vm5, %v8105_v8, %v8117_v1 }
0x58f4   : > { %vm8112_vm8 = vcmp.gt.f32.partialorder %v8100_v26, 0.0  ;;  %v8116_v16 = vmul.f32 0.1, %v8100_v26  ;;  %v8119_v43 = vsel %vm8111_vm6, %v8097_v45, %v8115_v53 }
0x58f5   : > { %v8122_v5 = vsel %vm8114_vm7, %v8108_v25, %v8118_v62 }
0x58f6   : > { %v8120_v18 = vsel %vm8112_vm8, %v8100_v26, %v8116_v16  ;;  %v8124_v24 = vpack.c.bf16 %v8122_v5, %v8121_v40  ;;  %vm8479_vm8 = vcmask 975744  }
0x58f7   : > { %v8123_v17 = vpack.c.bf16 %v8120_v18, %v8119_v43 }
0x58f9   : > { %12447 = vmatprep.subr.bf16.mxu0 %v8123_v17 }
0x58fa   : > { %12448 = vmatpush3.bf16.msra.mxu0 %v8123_v17 }
0x58fb   : > { %12449 = vmatprep.subr.bf16.mxu0 %v8124_v24 }
0x58fe   : > { %12450 = vmatpush3.bf16.msra.mxu0 %v8124_v24 }
0x58ff   : > { %12455 = vmatprep.subr.bf16.mxu0 %v15667_v52 }
0x5901   : > { %12452 = vmatmul.mubr.msk.bf16.vlgmr.msra.gmra.mrb[0].mxu0 %vm630_vm3, %v15727_v46 }
0x5902   : > { %12456 = vmatpush3.bf16.msra.mxu0 %v15667_v52 }
0x5903   : > { %12457 = vmatprep.subr.bf16.mxu0 %v15671_v56 }
0x5906   : > { %12458 = vmatpush3.bf16.msra.mxu0 %v15671_v56 }
0x5907   : > { %12459 = vmatprep.subr.bf16.mxu0 %v15678_v4 }
0x590a   : > { %12460 = vmatpush3.bf16.msra.mxu0 %v15678_v4 }
0x590b   : > { %12461 = vmatprep.subr.bf16.mxu0 %v15683_v32 }
0x590e   : > { %12462 = vmatpush3.bf16.msra.mxu0 %v15683_v32 }
0x590f   : > { %12463 = vmatprep.subr.bf16.mxu0 %v15688_v50 }
0x5912   : > { %12464 = vmatpush3.bf16.msra.mxu0 %v15688_v50 }
0x5913   : > { %12465 = vmatprep.subr.bf16.mxu0 %v15693_v37 }
0x5916   : > { %12466 = vmatpush3.bf16.msra.mxu0 %v15693_v37 }
0x5917   : > { %12467 = vmatprep.subr.bf16.mxu0 %v15698_v47 }
0x591a   : > { %12468 = vmatpush3.bf16.msra.mxu0 %v15698_v47 }
0x591b   : > { %12469 = vmatprep.subr.bf16.mxu0 %v15703_v41 }
0x591e   : > { %12470 = vmatpush3.bf16.msra.mxu0 %v15703_v41 }
0x591f   : > { %12503 = vmatprep.subr.bf16.mxu0 %v13071_v0 }
0x593f   : > { %v7947_v7 = vpop.permute.xlu0 %7946 }
0x5940   : > { %7950 = vst.msk [vmem:[%s13587_s26] sm:$0x1] %vm7949_vm9, %v7947_v7 }
0x59d4   : > { %v12453_v31 = vpop.f32.mrb[0].mxu0 }
0x59d5   : > { %v8159_v48 = vpop.f32.mrb[1].mxu0 }
0x59d6   : > { %v12454_v11 = vpop.f32.mrb[2].mxu0 }
0x59d7   : > { %v8175_v49 = vpack.c.bf16 %v12454_v11, %v12453_v31  ;;  %v8162_v21 = vpop.f32.mrb[3].mxu0 }
0x59d8   : > { %v8174_v13 = vpack.c.bf16 %v8162_v21, %v8159_v48  ;;  %v15838_v21 = vld [vmem:[%s13251_s30 + $0x3e0] sm:$0xff]  }
0x59da   : > { %12471 = vmatprep.mubr.bf16.mxu0 %v8174_v13  ;;  %v15843_v13 = vld [vmem:[%s13251_s30 + $0x3e8] sm:$0xff]  }
0x59db   : > { %12472 = vmatmul.mubr.bf16.vlgmr.msra.gmra.mrb[4].mxu0 %v8175_v49 }
0x59dc   : > { %12507 = vmatprep.mubr.msk.bf16.mxu0 %vm13072_vm0, %v13071_v0 }
0x5aae   : > { %v12473_v22 = vpop.f32.mrb[4].mxu0 }
0x5aaf   : > { %v8219_v42 = vadd.f32 %v12473_v22, %v13401_v59  ;;  %v8210_v61 = vpop.f32.mrb[5].mxu0  ;;  %v15848_v22 = vld [vmem:[%s13251_s30 + $0x3f0] sm:$0xff]  }
0x5ab0   : > { %v8211_v23 = vadd.f32 %v8210_v61, %v13397_v57  ;;  %v12474_v51 = vpop.f32.mrb[6].mxu0  ;;  %v9604_v61 = vld [vmem:[%s13304_s17 + $0x3c] sm:$0xf]  ;;  %s9024_s17 = sshll.u32 %s13587_s26, 4  ;;  %s15991_s17 = int_to_ptr.vmem [resolvable:$true] %s9024_s17 }
0x5ab1   : > { %v8231_v3 = vmul.f32 0.1, %v8219_v42  ;;  %v8222_v9 = vadd.f32 %v12474_v51, %v13404_v63  ;;  %v8213_v54 = vpop.f32.mrb[7].mxu0  ;;  %vm8227_vm10 = vcmp.gt.f32.partialorder %v8219_v42, 0.0  ;;  %s13000_s28 = scalar_lea.vmem %s15991_s17, 16  ;;  %p13007_p10 = scmp.lt.s32.totalorder %s15991_s17, %s13005_s21 }
0x5ab2   : > { %v8229_v19 = vmul.f32 0.1, %v8211_v23  ;;  %v8214_v27 = vadd.f32 %v8213_v54, %v13399_v58  ;;  %vm8225_vm11 = vcmp.gt.f32.partialorder %v8211_v23, 0.0  ;;  %p13001_p11 = scmp.ne.s32.totalorder %s15991_s17, %s13000_s28  ;;  %p13008_p0 = scmp.lt.s32.totalorder %s13006_s8, %s13000_s28 }
0x5ab3   : > { %vm8228_vm12 = vcmp.gt.f32.partialorder %v8222_v9, 0.0  ;;  %v8232_v39 = vmul.f32 0.1, %v8222_v9  ;;  %v8235_v8 = vsel %vm8227_vm10, %v8219_v42, %v8231_v3  ;;  %v15853_v42 = vld [vmem:[%s13251_s30 + $0x3f8] sm:$0xff]  }
0x5ab4   : > { %vm8226_vm13 = vcmp.gt.f32.partialorder %v8214_v27, 0.0  ;;  %v8230_v10 = vmul.f32 0.1, %v8214_v27  ;;  %v8233_v45 = vsel %vm8225_vm11, %v8211_v23, %v8229_v19  ;;  %v12958_v23 = vld [vmem:[%s16038_s4] sm:$0xff]   ;;  %p13002_p13 = pnand %p13001_p11, %p16050_p12  ;;  %p13009_p2 = por %p13008_p0, %p13007_p10 }
0x5ab5   : > { %v8236_v35 = vsel %vm8228_vm12, %v8222_v9, %v8232_v39 }
0x5ab6   : > { %v8234_v20 = vsel %vm8226_vm13, %v8214_v27, %v8230_v10  ;;  %v8238_v1 = vpack.c.bf16 %v8236_v35, %v8235_v8  ;;  %v12959_v27 = vld [vmem:[%s16036_s2] sm:$0xff]   ;;  %p13003_p8 = pneg %p13002_p13 }
0x5ab7   : > { %v8237_v25 = vpack.c.bf16 %v8234_v20, %v8233_v45 }
0x5ab8   : > { %p13010_p4 = pnand %p13009_p2, %p13003_p8 }
0x5ab9   : > { %12475 = vmatprep.subr.bf16.mxu1 %v8237_v25 }
0x5aba   : > { %12476 = vmatpush3.bf16.msra.mxu1 %v8237_v25 }
0x5abb   : > { %12477 = vmatprep.subr.bf16.mxu1 %v8238_v1 }
0x5abe   : > { %12478 = vmatpush3.bf16.msra.mxu1 %v8238_v1  ;;  %v12960_v1 = vld [vmem:[%s16036_s2 + $0x8] sm:$0xff]  }
0x5abf   : > { %12483 = vmatprep.subr.bf16.mxu1 %v15667_v52 }
0x5ac1   : > { %12480 = vmatmul.mubr.msk.bf16.vlgmr.msra.gmra.mrb[0].mxu1 %vm630_vm3, %v15727_v46 }
0x5ac2   : > { %12484 = vmatpush3.bf16.msra.mxu1 %v15667_v52 }
0x5ac3   : > { %12485 = vmatprep.subr.bf16.mxu1 %v15671_v56 }
0x5ac6   : > { %12486 = vmatpush3.bf16.msra.mxu1 %v15671_v56 }
0x5ac7   : > { %12487 = vmatprep.subr.bf16.mxu1 %v15678_v4 }
0x5aca   : > { %12488 = vmatpush3.bf16.msra.mxu1 %v15678_v4 }
0x5acb   : > { %12489 = vmatprep.subr.bf16.mxu1 %v15683_v32 }
0x5ace   : > { %12490 = vmatpush3.bf16.msra.mxu1 %v15683_v32 }
0x5acf   : > { %12491 = vmatprep.subr.bf16.mxu1 %v15688_v50 }
0x5ad2   : > { %12492 = vmatpush3.bf16.msra.mxu1 %v15688_v50 }
0x5ad3   : > { %12493 = vmatprep.subr.bf16.mxu1 %v15693_v37 }
0x5ad6   : > { %12494 = vmatpush3.bf16.msra.mxu1 %v15693_v37 }
0x5ad7   : > { %12495 = vmatprep.subr.bf16.mxu1 %v15698_v47 }
0x5ada   : > { %12496 = vmatpush3.bf16.msra.mxu1 %v15698_v47 }
0x5adb   : > { %12497 = vmatprep.subr.bf16.mxu1 %v15703_v41 }
0x5ade   : > { %12498 = vmatpush3.bf16.msra.mxu1 %v15703_v41 }
0x5adf   : > { %12531 = vmatprep.subr.bf16.mxu1 %v13071_v0 }
0x5b94   : > { %v12481_v6 = vpop.f32.mrb[0].mxu1 }
0x5b95   : > { %v8273_v53 = vpop.f32.mrb[1].mxu1 }
0x5b96   : > { %v12482_v26 = vpop.f32.mrb[2].mxu1 }
0x5b97   : > { %v8289_v62 = vpack.c.bf16 %v12482_v26, %v12481_v6  ;;  %v8276_v16 = vpop.f32.mrb[3].mxu1 }
0x5b98   : > { %v8288_v40 = vpack.c.bf16 %v8276_v16, %v8273_v53 }
0x5b9a   : > { %12499 = vmatprep.mubr.bf16.mxu1 %v8288_v40 }
0x5b9b   : > { %12500 = vmatmul.mubr.bf16.vlgmr.msra.gmra.mrb[4].mxu1 %v8289_v62 }
0x5b9c   : > { %12532 = vmatpush3.bf16.msra.mxu1 %v15436_v12  ;;  %12547 = vmatprep.mubr.msk.bf16.mxu1 %vm13072_vm0, %v13071_v0 }
0x5b9d   : > { %12533 = vmatprep.subr.bf16.mxu1 %v13071_v0 }
0x5ba0   : > { %12534 = vmatpush3.bf16.msra.mxu1 %v15445_v34 }
0x5ba1   : > { %12535 = vmatprep.subr.bf16.mxu1 %v13071_v0 }
0x5ba4   : > { %12536 = vmatpush3.bf16.msra.mxu1 %v15452_v44 }
0x5ba5   : > { %12537 = vmatprep.subr.bf16.mxu1 %v13071_v0 }
0x5ba8   : > { %12538 = vmatpush3.bf16.msra.mxu1 %v15459_v15 }
0x5ba9   : > { %12539 = vmatprep.subr.bf16.mxu1 %v13071_v0 }
0x5bac   : > { %12540 = vmatpush3.bf16.msra.mxu1 %v15466_v55 }
0x5bad   : > { %12541 = vmatprep.subr.bf16.mxu1 %v13071_v0 }
0x5bb0   : > { %12542 = vmatpush3.bf16.msra.mxu1 %v15473_v30 }
0x5bb1   : > { %12543 = vmatprep.subr.bf16.mxu1 %v13071_v0 }
0x5bb4   : > { %12544 = vmatpush3.bf16.msra.mxu1 %v15480_v2 }
0x5bb5   : > { %12545 = vmatprep.subr.bf16.mxu1 %v13071_v0 }
0x5bb8   : > { %12546 = vmatpush3.bf16.msra.mxu1 %v15487_v60 }
0x5c6e   : > { %v12501_v12 = vpop.f32.mrb[4].mxu1 }
0x5c6f   : > { %v8333_v34 = vadd.f32 %v12501_v12, %v13401_v59  ;;  %v8324_v44 = vpop.f32.mrb[5].mxu1 }
0x5c70   : > { %v8325_v15 = vadd.f32 %v8324_v44, %v13397_v57  ;;  %v12502_v5 = vpop.f32.mrb[6].mxu1 }
0x5c71   : > { %v8345_v55 = vmul.f32 0.1, %v8333_v34  ;;  %v8336_v43 = vadd.f32 %v12502_v5, %v13404_v63  ;;  %v8327_v18 = vpop.f32.mrb[7].mxu1  ;;  %vm8341_vm14 = vcmp.gt.f32.partialorder %v8333_v34, 0.0 }
0x5c72   : > { %v8343_v30 = vmul.f32 0.1, %v8325_v15  ;;  %v8328_v24 = vadd.f32 %v8327_v18, %v13399_v58  ;;  %vm8339_vm15 = vcmp.gt.f32.partialorder %v8325_v15, 0.0 }
0x5c73   : > { %vm8342_vm4 = vcmp.gt.f32.partialorder %v8336_v43, 0.0  ;;  %v8346_v2 = vmul.f32 0.1, %v8336_v43  ;;  %v8349_v17 = vsel %vm8341_vm14, %v8333_v34, %v8345_v55 }
0x5c74   : > { %vm8340_vm5 = vcmp.gt.f32.partialorder %v8328_v24, 0.0  ;;  %v8344_v60 = vmul.f32 0.1, %v8328_v24  ;;  %v8347_v31 = vsel %vm8339_vm15, %v8325_v15, %v8343_v30 }
0x5c75   : > { %v8350_v7 = vsel %vm8342_vm4, %v8336_v43, %v8346_v2 }
0x5c76   : > { %v8352_v48 = vpack.c.bf16 %v8350_v7, %v8349_v17  ;;  %v8348_v11 = vsel %vm8340_vm5, %v8328_v24, %v8344_v60 }
0x5c77   : > { %v8351_v49 = vpack.c.bf16 %v8348_v11, %v8347_v31 }
0x5c79   : > { %12504 = vmatpush3.bf16.msra.mxu0 %v8351_v49 }
0x5c7a   : > { %12505 = vmatprep.subr.bf16.mxu0 %v13071_v0 }
0x5c7d   : > { %12506 = vmatpush3.bf16.msra.mxu0 %v8352_v48 }
0x5c7e   : > { %12511 = vmatprep.subr.bf16.mxu0 %v13071_v0 }
0x5c80   : > { %12508 = vmatmul.mubr.msk.bf16.vlgmr.msra.gmra.mrb[8].mxu0 %vm630_vm3, %v15499_v14 }
0x5c81   : > { %12512 = vmatpush3.bf16.msra.mxu0 %v15667_v52  ;;  %12527 = vmatprep.mubr.msk.bf16.mxu0 %vm13072_vm0, %v13071_v0  ;;  %v15817_v52 = vld [vmem:[%s13251_s30 + $0x3c0] sm:$0xff]  }
0x5c82   : > { %12513 = vmatprep.subr.bf16.mxu0 %v13071_v0 }
0x5c85   : > { %12514 = vmatpush3.bf16.msra.mxu0 %v15671_v56 }
0x5c86   : > { %12515 = vmatprep.subr.bf16.mxu0 %v13071_v0 }
0x5c89   : > { %12516 = vmatpush3.bf16.msra.mxu0 %v15678_v4 }
0x5c8a   : > { %12517 = vmatprep.subr.bf16.mxu0 %v13071_v0 }
0x5c8d   : > { %12518 = vmatpush3.bf16.msra.mxu0 %v15683_v32 }
0x5c8e   : > { %12519 = vmatprep.subr.bf16.mxu0 %v13071_v0 }
0x5c91   : > { %12520 = vmatpush3.bf16.msra.mxu0 %v15688_v50 }
0x5c92   : > { %12521 = vmatprep.subr.bf16.mxu0 %v13071_v0 }
0x5c95   : > { %12522 = vmatpush3.bf16.msra.mxu0 %v15693_v37  ;;  %v15821_v37 = vld [vmem:[%s13251_s30 + $0x3c8] sm:$0xff]  }
0x5c96   : > { %12523 = vmatprep.subr.bf16.mxu0 %v13071_v0 }
0x5c99   : > { %12524 = vmatpush3.bf16.msra.mxu0 %v15698_v47  ;;  %v15828_v47 = vld [vmem:[%s13251_s30 + $0x3d0] sm:$0xff]  }
0x5c9a   : > { %12525 = vmatprep.subr.bf16.mxu0 %v13071_v0 }
0x5c9d   : > { %12526 = vmatpush3.bf16.msra.mxu0 %v15703_v41  ;;  %v15833_v41 = vld [vmem:[%s13251_s30 + $0x3d8] sm:$0xff]  }
0x5c9e   : > { %12551 = vmatprep.subr.bf16.mxu0 %v13071_v0 }
0x5d53   : > { %v8387_v14 = vpop.f32.mrb[8].mxu0 }
0x5d54   : > { %v8393_v56 = vpack.c.bf16 %v8387_v14, %v8387_v14  ;;  %v12509_v4 = vpop.f32.mrb[9].mxu0 }
0x5d55   : > { %v8390_v32 = vpop.f32.mrb[10].mxu0 }
0x5d56   : > { %v12510_v50 = vpop.f32.mrb[11].mxu0  ;;  %12528 = vmatmul.mubr.bf16.vlgmr.msra.gmra.mrb[12].mxu0 %v8393_v56 }
0x5d57   : > { %12552 = vmatpush3.bf16.msra.mxu0 %v15817_v52  ;;  %12567 = vmatprep.mubr.msk.bf16.mxu0 %vm13072_vm0, %v13071_v0 }
0x5d58   : > { %12553 = vmatprep.subr.bf16.mxu0 %v13071_v0 }
0x5d5b   : > { %12554 = vmatpush3.bf16.msra.mxu0 %v15821_v37 }
0x5d5c   : > { %12555 = vmatprep.subr.bf16.mxu0 %v13071_v0 }
0x5d5f   : > { %12556 = vmatpush3.bf16.msra.mxu0 %v15828_v47 }
0x5d60   : > { %12557 = vmatprep.subr.bf16.mxu0 %v13071_v0 }
0x5d63   : > { %12558 = vmatpush3.bf16.msra.mxu0 %v15833_v41 }
0x5d64   : > { %12559 = vmatprep.subr.bf16.mxu0 %v13071_v0 }
0x5d67   : > { %12560 = vmatpush3.bf16.msra.mxu0 %v15838_v21 }
0x5d68   : > { %12561 = vmatprep.subr.bf16.mxu0 %v13071_v0 }
0x5d6b   : > { %12562 = vmatpush3.bf16.msra.mxu0 %v15843_v13 }
0x5d6c   : > { %12563 = vmatprep.subr.bf16.mxu0 %v13071_v0 }
0x5d6f   : > { %12564 = vmatpush3.bf16.msra.mxu0 %v15848_v22 }
0x5d70   : > { %12565 = vmatprep.subr.bf16.mxu0 %v13071_v0 }
0x5d73   : > { %12566 = vmatpush3.bf16.msra.mxu0 %v15853_v42 }
0x5d76   : > { %12568 = vmatmul.mubr.bf16.vlgmr.msra.gmra.mrb[16].mxu0 %v9604_v61 }
0x5d77   : > { %12609 = vmatprep.mubr.msk.bf16.mxu0 %vm630_vm3, %v12958_v23 }
0x5e29   : > { %v8428_v51 = vpop.f32.mrb[12].mxu0 }
0x5e2a   : > { %v8434_v3 = vpack.c.bf16 %v8428_v51, %v8428_v51  ;;  %v12529_v9 = vpop.f32.mrb[13].mxu0 }
0x5e2b   : > { %v8431_v54 = vpop.f32.mrb[14].mxu0 }
0x5e2c   : > { %v12530_v19 = vpop.f32.mrb[15].mxu0  ;;  %12548 = vmatmul.mubr.bf16.vlgmr.msra.gmra.mrb[8].mxu1 %v8434_v3 }
0x5e2d   : > { %12573 = vmatprep.mubr.msk.bf16.mxu1 %vm546_vm1, %v12959_v27 }
0x5e49   : > { %v8582_v39 = vpop.f32.mrb[16].mxu0 }
0x5e4a   : > { %v8588_v10 = vpack.c.bf16 %v8582_v39, %v8582_v39  ;;  %v12569_v8 = vpop.f32.mrb[17].mxu0 }
0x5e4b   : > { %v8585_v35 = vpop.f32.mrb[18].mxu0 }
0x5e4c   : > { %v8590_v45 = vsel %vm553_vm2, %v8588_v10, 0  ;;  %v12570_v20 = vpop.f32.mrb[19].mxu0  ;;  %12696 = vmatprep.subr.msk.bf16.mxu1 %vm553_vm2, %v8588_v10 }
0x5e4d   : > { %12572 = vmatpush3.bf16.msra.mxu1 %v8590_v45 }
0x5e50   : > { %12574 = vmatmul.mubr.msk.bf16.vlgmr.msra.gmra.mrb[12].mxu1 %vm546_vm1, %v12960_v1 }
0x5e51   : > { %12581 = vmatprep.mubr.msk.bf16.mxu1 %vm630_vm3, %v12958_v23 }
0x5eff   : > { %v8469_v25 = vpop.f32.mrb[8].mxu1 }
0x5f00   : > { %v8470_v6 = vadd.f32 %v8469_v25, %v13583_v38  ;;  %v12549_v53 = vpop.f32.mrb[9].mxu1 }
0x5f01   : > { %v8472_v26 = vpop.f32.mrb[10].mxu1 }
0x5f02   : > { %8476 = vrot.lane.b32.xlu1 %v8470_v6, %s13087_s25  ;;  %v12550_v62 = vpop.f32.mrb[11].mxu1 }
0x5f03   : > { %v12961_v62 = vld [vmem:[%s16041_s7] sm:$0xff]  }
0x5f23   : > { %v12575_v16 = vpop.f32.mrb[12].mxu1 }
0x5f24   : > { %v8635_v40 = vadd.f32 %v12575_v16, %v13359_v28  ;;  %v8626_v12 = vpop.f32.mrb[13].mxu1  ;;  %v12962_v16 = vld [vmem:[%s16041_s7 + $0x8] sm:$0xff]  }
0x5f25   : > { %v8627_v34 = vadd.f32 %v8626_v12, %v13361_v29  ;;  %v12576_v44 = vpop.f32.mrb[14].mxu1  ;;  %v12964_v12 = vld [vmem:[%s16041_s7 + $0x18] sm:$0xff]  }
0x5f26   : > { %v8647_v15 = vmul.f32 0.1, %v8635_v40  ;;  %v8638_v5 = vadd.f32 %v12576_v44, %v13364_v33  ;;  %v8629_v55 = vpop.f32.mrb[15].mxu1  ;;  %vm8643_vm1 = vcmp.gt.f32.partialorder %v8635_v40, 0.0  ;;  %v12966_v44 = vld [vmem:[%s16041_s7 + $0x28] sm:$0xff]  }
0x5f27   : > { %v8645_v43 = vmul.f32 0.1, %v8627_v34  ;;  %v8630_v18 = vadd.f32 %v8629_v55, %v13367_v36  ;;  %vm8641_vm2 = vcmp.gt.f32.partialorder %v8627_v34, 0.0 }
0x5f28   : > { %vm8644_vm6 = vcmp.gt.f32.partialorder %v8638_v5, 0.0  ;;  %v8648_v30 = vmul.f32 0.1, %v8638_v5  ;;  %v8651_v2 = vsel %vm8643_vm1, %v8635_v40, %v8647_v15  ;;  %v12963_v40 = vld [vmem:[%s16041_s7 + $0x10] sm:$0xff]  }
0x5f29   : > { %vm8642_vm7 = vcmp.gt.f32.partialorder %v8630_v18, 0.0  ;;  %v8646_v24 = vmul.f32 0.1, %v8630_v18  ;;  %v8649_v28 = vsel %vm8641_vm2, %v8627_v34, %v8645_v43  ;;  %v12965_v34 = vld [vmem:[%s16041_s7 + $0x20] sm:$0xff]   ;;  %v12967_v15 = vld [vmem:[%s16041_s7 + $0x30] sm:$0xff]  }
0x5f2a   : > { %v8652_v60 = vsel %vm8644_vm6, %v8638_v5, %v8648_v30  ;;  %v12968_v5 = vld [vmem:[%s16041_s7 + $0x38] sm:$0xff]  }
0x5f2b   : > { %v8650_v17 = vsel %vm8642_vm7, %v8630_v18, %v8646_v24  ;;  %v8654_v7 = vpack.c.bf16 %v8652_v60, %v8651_v2 }
0x5f2c   : > { %v8653_v29 = vpack.c.bf16 %v8650_v17, %v8649_v28 }
0x5f2e   : > { %12577 = vmatprep.subr.bf16.mxu1 %v8653_v29 }
0x5f2f   : > { %12578 = vmatpush3.bf16.msra.mxu1 %v8653_v29 }
0x5f30   : > { %12579 = vmatprep.subr.bf16.mxu1 %v8654_v7 }
0x5f33   : > { %12580 = vmatpush3.bf16.msra.mxu1 %v8654_v7 }
0x5f34   : > { %12585 = vmatprep.subr.bf16.mxu1 %v15817_v52 }
0x5f36   : > { %12582 = vmatmul.mubr.msk.bf16.vlgmr.msra.gmra.mrb[16].mxu1 %vm630_vm3, %v15727_v46 }
0x5f37   : > { %12586 = vmatpush3.bf16.msra.mxu1 %v15817_v52 }
0x5f38   : > { %12587 = vmatprep.subr.bf16.mxu1 %v15821_v37 }
0x5f3b   : > { %12588 = vmatpush3.bf16.msra.mxu1 %v15821_v37 }
0x5f3c   : > { %12589 = vmatprep.subr.bf16.mxu1 %v15828_v47 }
0x5f3f   : > { %12590 = vmatpush3.bf16.msra.mxu1 %v15828_v47 }
0x5f40   : > { %12591 = vmatprep.subr.bf16.mxu1 %v15833_v41 }
0x5f43   : > { %12592 = vmatpush3.bf16.msra.mxu1 %v15833_v41 }
0x5f44   : > { %12593 = vmatprep.subr.bf16.mxu1 %v15838_v21 }
0x5f47   : > { %12594 = vmatpush3.bf16.msra.mxu1 %v15838_v21 }
0x5f48   : > { %12595 = vmatprep.subr.bf16.mxu1 %v15843_v13 }
0x5f4b   : > { %12596 = vmatpush3.bf16.msra.mxu1 %v15843_v13 }
0x5f4c   : > { %12597 = vmatprep.subr.bf16.mxu1 %v15848_v22 }
0x5f4f   : > { %12598 = vmatpush3.bf16.msra.mxu1 %v15848_v22 }
0x5f50   : > { %12599 = vmatprep.subr.bf16.mxu1 %v15853_v42 }
0x5f53   : > { %12600 = vmatpush3.bf16.msra.mxu1 %v15853_v42 }
0x5f54   : > { %12633 = vmatprep.subr.bf16.mxu1 %v13071_v0 }
0x5f74   : > { %v8477_v33 = vpop.permute.xlu1 %8476 }
0x5f75   : > { %8480 = vst.msk [vmem:[%s13587_s26] sm:$0x1] %vm8479_vm8, %v8477_v33 }
0x6009   : > { %v12583_v36 = vpop.f32.mrb[16].mxu1 }
0x600a   : > { %v8689_v31 = vpop.f32.mrb[17].mxu1 }
0x600b   : > { %v12584_v48 = vpop.f32.mrb[18].mxu1 }
0x600c   : > { %v8705_v11 = vpack.c.bf16 %v12584_v48, %v12583_v36  ;;  %v8692_v49 = vpop.f32.mrb[19].mxu1 }
0x600d   : > { %v8704_v14 = vpack.c.bf16 %v8692_v49, %v8689_v31 }
0x600f   : > { %12601 = vmatprep.mubr.bf16.mxu1 %v8704_v14 }
0x6010   : > { %12602 = vmatmul.mubr.bf16.vlgmr.msra.gmra.mrb[20].mxu1 %v8705_v11 }
0x6011   : > { %12637 = vmatprep.mubr.msk.bf16.mxu1 %vm13072_vm0, %v13071_v0 }
0x60e3   : > { %v12603_v56 = vpop.f32.mrb[20].mxu1 }
0x60e4   : > { %v8749_v4 = vadd.f32 %v12603_v56, %v13401_v59  ;;  %v8740_v32 = vpop.f32.mrb[21].mxu1 }
0x60e5   : > { %v8741_v50 = vadd.f32 %v8740_v32, %v13397_v57  ;;  %v12604_v61 = vpop.f32.mrb[22].mxu1 }
0x60e6   : > { %v8761_v23 = vmul.f32 0.1, %v8749_v4  ;;  %v8752_v51 = vadd.f32 %v12604_v61, %v13404_v63  ;;  %v8743_v3 = vpop.f32.mrb[23].mxu1  ;;  %vm8757_vm9 = vcmp.gt.f32.partialorder %v8749_v4, 0.0 }
0x60e7   : > { %v8759_v9 = vmul.f32 0.1, %v8741_v50  ;;  %v8744_v54 = vadd.f32 %v8743_v3, %v13399_v58  ;;  %vm8755_vm10 = vcmp.gt.f32.partialorder %v8741_v50, 0.0 }
0x60e8   : > { %vm8758_vm11 = vcmp.gt.f32.partialorder %v8752_v51, 0.0  ;;  %v8762_v19 = vmul.f32 0.1, %v8752_v51  ;;  %v8765_v39 = vsel %vm8757_vm9, %v8749_v4, %v8761_v23 }
0x60e9   : > { %vm8756_vm12 = vcmp.gt.f32.partialorder %v8744_v54, 0.0  ;;  %v8760_v27 = vmul.f32 0.1, %v8744_v54  ;;  %v8763_v8 = vsel %vm8755_vm10, %v8741_v50, %v8759_v9 }
0x60ea   : > { %v8766_v10 = vsel %vm8758_vm11, %v8752_v51, %v8762_v19 }
0x60eb   : > { %v8764_v35 = vsel %vm8756_vm12, %v8744_v54, %v8760_v27  ;;  %v8768_v45 = vpack.c.bf16 %v8766_v10, %v8765_v39 }
0x60ec   : > { %v8767_v20 = vpack.c.bf16 %v8764_v35, %v8763_v8 }
0x60ee   : > { %12605 = vmatprep.subr.bf16.mxu0 %v8767_v20 }
0x60ef   : > { %12606 = vmatpush3.bf16.msra.mxu0 %v8767_v20 }
0x60f0   : > { %12607 = vmatprep.subr.bf16.mxu0 %v8768_v45 }
0x60f3   : > { %12608 = vmatpush3.bf16.msra.mxu0 %v8768_v45 }
0x60f4   : > { %12613 = vmatprep.subr.bf16.mxu0 %v15817_v52 }
0x60f6   : > { %12610 = vmatmul.mubr.msk.bf16.vlgmr.msra.gmra.mrb[20].mxu0 %vm630_vm3, %v15727_v46 }
0x60f7   : > { %12614 = vmatpush3.bf16.msra.mxu0 %v15817_v52 }
0x60f8   : > { %12615 = vmatprep.subr.bf16.mxu0 %v15821_v37 }
0x60fb   : > { %12616 = vmatpush3.bf16.msra.mxu0 %v15821_v37 }
0x60fc   : > { %12617 = vmatprep.subr.bf16.mxu0 %v15828_v47 }
0x60ff   : > { %12618 = vmatpush3.bf16.msra.mxu0 %v15828_v47 }
0x6100   : > { %12619 = vmatprep.subr.bf16.mxu0 %v15833_v41 }
0x6103   : > { %12620 = vmatpush3.bf16.msra.mxu0 %v15833_v41 }
0x6104   : > { %12621 = vmatprep.subr.bf16.mxu0 %v15838_v21 }
0x6107   : > { %12622 = vmatpush3.bf16.msra.mxu0 %v15838_v21 }
0x6108   : > { %12623 = vmatprep.subr.bf16.mxu0 %v15843_v13 }
0x610b   : > { %12624 = vmatpush3.bf16.msra.mxu0 %v15843_v13 }
0x610c   : > { %12625 = vmatprep.subr.bf16.mxu0 %v15848_v22 }
0x610f   : > { %12626 = vmatpush3.bf16.msra.mxu0 %v15848_v22 }
0x6110   : > { %12627 = vmatprep.subr.bf16.mxu0 %v15853_v42 }
0x6113   : > { %12628 = vmatpush3.bf16.msra.mxu0 %v15853_v42 }
0x6114   : > { %12661 = vmatprep.subr.bf16.mxu0 %v13071_v0 }
0x61c9   : > { %v12611_v46 = vpop.f32.mrb[20].mxu0 }
0x61ca   : > { %v8803_v1 = vpop.f32.mrb[21].mxu0 }
0x61cb   : > { %v12612_v25 = vpop.f32.mrb[22].mxu0 }
0x61cc   : > { %v8819_v6 = vpack.c.bf16 %v12612_v25, %v12611_v46  ;;  %v8806_v53 = vpop.f32.mrb[23].mxu0 }
0x61cd   : > { %v8818_v26 = vpack.c.bf16 %v8806_v53, %v8803_v1 }
0x61cf   : > { %12629 = vmatprep.mubr.bf16.mxu0 %v8818_v26 }
0x61d0   : > { %12630 = vmatmul.mubr.bf16.vlgmr.msra.gmra.mrb[24].mxu0 %v8819_v6 }
0x61d1   : > { %12662 = vmatpush3.bf16.msra.mxu0 %v12961_v62  ;;  %12677 = vmatprep.mubr.msk.bf16.mxu0 %vm13072_vm0, %v13071_v0 }
0x61d2   : > { %12663 = vmatprep.subr.bf16.mxu0 %v13071_v0 }
0x61d5   : > { %12664 = vmatpush3.bf16.msra.mxu0 %v12962_v16 }
0x61d6   : > { %12665 = vmatprep.subr.bf16.mxu0 %v13071_v0 }
0x61d9   : > { %12666 = vmatpush3.bf16.msra.mxu0 %v12963_v40 }
0x61da   : > { %12667 = vmatprep.subr.bf16.mxu0 %v13071_v0 }
0x61dd   : > { %12668 = vmatpush3.bf16.msra.mxu0 %v12964_v12 }
0x61de   : > { %12669 = vmatprep.subr.bf16.mxu0 %v13071_v0 }
0x61e1   : > { %12670 = vmatpush3.bf16.msra.mxu0 %v12965_v34 }
0x61e2   : > { %12671 = vmatprep.subr.bf16.mxu0 %v13071_v0 }
0x61e5   : > { %12672 = vmatpush3.bf16.msra.mxu0 %v12966_v44 }
0x61e6   : > { %12673 = vmatprep.subr.bf16.mxu0 %v13071_v0 }
0x61e9   : > { %12674 = vmatpush3.bf16.msra.mxu0 %v12967_v15 }
0x61ea   : > { %12675 = vmatprep.subr.bf16.mxu0 %v13071_v0 }
0x61ed   : > { %12676 = vmatpush3.bf16.msra.mxu0 %v12968_v5 }
0x62a3   : > { %v12631_v55 = vpop.f32.mrb[24].mxu0 }
0x62a4   : > { %v8863_v43 = vadd.f32 %v12631_v55, %v13401_v59  ;;  %v8854_v18 = vpop.f32.mrb[25].mxu0 }
0x62a5   : > { %v8855_v30 = vadd.f32 %v8854_v18, %v13397_v57  ;;  %v12632_v24 = vpop.f32.mrb[26].mxu0 }
0x62a6   : > { %v8875_v2 = vmul.f32 0.1, %v8863_v43  ;;  %v8866_v60 = vadd.f32 %v12632_v24, %v13404_v63  ;;  %v8857_v28 = vpop.f32.mrb[27].mxu0  ;;  %vm8871_vm13 = vcmp.gt.f32.partialorder %v8863_v43, 0.0 }
0x62a7   : > { %v8873_v17 = vmul.f32 0.1, %v8855_v30  ;;  %v8858_v7 = vadd.f32 %v8857_v28, %v13399_v58  ;;  %vm8869_vm14 = vcmp.gt.f32.partialorder %v8855_v30, 0.0  ;;  %v12969_v58 = vld [vmem:[%s16040_s6] sm:$0x1] }
0x62a8   : > { %vm8872_vm15 = vcmp.gt.f32.partialorder %v8866_v60, 0.0  ;;  %v8876_v29 = vmul.f32 0.1, %v8866_v60  ;;  %v8879_v36 = vsel %vm8871_vm13, %v8863_v43, %v8875_v2 }
0x62a9   : > { %vm8870_vm4 = vcmp.gt.f32.partialorder %v8858_v7, 0.0  ;;  %v8874_v33 = vmul.f32 0.1, %v8858_v7  ;;  %v8877_v59 = vsel %vm8869_vm14, %v8855_v30, %v8873_v17 }
0x62aa   : > { %v8880_v31 = vsel %vm8872_vm15, %v8866_v60, %v8876_v29 }
0x62ab   : > { %v8882_v48 = vpack.c.bf16 %v8880_v31, %v8879_v36  ;;  %v8878_v11 = vsel %vm8870_vm4, %v8858_v7, %v8874_v33 }
0x62ac   : > { %v8881_v57 = vpack.c.bf16 %v8878_v11, %v8877_v59 }
0x62ae   : > { %12634 = vmatpush3.bf16.msra.mxu1 %v8881_v57 }
0x62af   : > { %12635 = vmatprep.subr.bf16.mxu1 %v13071_v0 }
0x62b2   : > { %12636 = vmatpush3.bf16.msra.mxu1 %v8882_v48 }
0x62b3   : > { %12641 = vmatprep.subr.bf16.mxu1 %v13071_v0 }
0x62b5   : > { %12638 = vmatmul.mubr.msk.bf16.vlgmr.msra.gmra.mrb[24].mxu1 %vm630_vm3, %v12969_v58 }
0x62b6   : > { %12642 = vmatpush3.bf16.msra.mxu1 %v15817_v52  ;;  %12657 = vmatprep.mubr.msk.bf16.mxu1 %vm13072_vm0, %v13071_v0  ;;  %vm9009_vm0 = vcmask 1041344  }
0x62b7   : > { %12643 = vmatprep.subr.bf16.mxu1 %v13071_v0 }
0x62ba   : > { %12644 = vmatpush3.bf16.msra.mxu1 %v15821_v37 }
0x62bb   : > { %12645 = vmatprep.subr.bf16.mxu1 %v13071_v0 }
0x62be   : > { %12646 = vmatpush3.bf16.msra.mxu1 %v15828_v47 }
0x62bf   : > { %12647 = vmatprep.subr.bf16.mxu1 %v13071_v0 }
0x62c2   : > { %12648 = vmatpush3.bf16.msra.mxu1 %v15833_v41 }
0x62c3   : > { %12649 = vmatprep.subr.bf16.mxu1 %v13071_v0 }
0x62c6   : > { %12650 = vmatpush3.bf16.msra.mxu1 %v15838_v21 }
0x62c7   : > { %12651 = vmatprep.subr.bf16.mxu1 %v13071_v0 }
0x62ca   : > { %12652 = vmatpush3.bf16.msra.mxu1 %v15843_v13 }
0x62cb   : > { %12653 = vmatprep.subr.bf16.mxu1 %v13071_v0 }
0x62ce   : > { %12654 = vmatpush3.bf16.msra.mxu1 %v15848_v22 }
0x62cf   : > { %12655 = vmatprep.subr.bf16.mxu1 %v13071_v0 }
0x62d2   : > { %12656 = vmatpush3.bf16.msra.mxu1 %v15853_v42 }
0x6388   : > { %v8917_v63 = vpop.f32.mrb[24].mxu1 }
0x6389   : > { %v8923_v52 = vpack.c.bf16 %v8917_v63, %v8917_v63  ;;  %v12639_v37 = vpop.f32.mrb[25].mxu1 }
0x638a   : > { %v8920_v47 = vpop.f32.mrb[26].mxu1 }
0x638b   : > { %v12640_v41 = vpop.f32.mrb[27].mxu1  ;;  %12658 = vmatmul.mubr.bf16.vlgmr.msra.gmra.mrb[28].mxu1 %v8923_v52 }
0x645e   : > { %v8958_v21 = vpop.f32.mrb[28].mxu1 }
0x645f   : > { %v8964_v49 = vpack.c.bf16 %v8958_v21, %v8958_v21  ;;  %v12659_v14 = vpop.f32.mrb[29].mxu1 }
0x6460   : > { %v8961_v13 = vpop.f32.mrb[30].mxu1 }
0x6461   : > { %v12660_v56 = vpop.f32.mrb[31].mxu1  ;;  %12678 = vmatmul.mubr.bf16.vlgmr.msra.gmra.mrb[28].mxu0 %v8964_v49 }
0x6534   : > { %v8999_v22 = vpop.f32.mrb[28].mxu0 }
0x6535   : > { %v9000_v0 = vadd.f32 %v8999_v22, %v13583_v38  ;;  %v12679_v42 = vpop.f32.mrb[29].mxu0 }
0x6536   : > { %v9002_v4 = vpop.f32.mrb[30].mxu0 }
0x6537   : > { %v12680_v32 = vpop.f32.mrb[31].mxu0  ;;  %9006 = vrot.lane.b32.xlu0 %v9000_v0, %s13088_s10 }
0x65a9   : > { %v9007_v50 = vpop.permute.xlu0 %9006 }
0x65aa   : > { %9010 = vst.msk [vmem:[%s13587_s26] sm:$0x1] %vm9009_vm0, %v9007_v50 }
0x65ab   : > { %13013 = shalt.err (!%p13010_p4)
}
0x65ac   : > { %s13014_s27 = scalar_lea.hbm %s15989_s20, 16  ;;  %s13018_s30 = scalar_lea.hbm %s16043_s9, 32 }
0x65ad   : > { %p13015_p5 = scmp.ne.s32.totalorder %s15989_s20, %s13014_s27  ;;  %p13019_p1 = scmp.lt.u32.totalorder %s15989_s20, %s16043_s9 }
0x65ae   : > { %p13020_p3 = scmp.lt.u32.totalorder %s13018_s30, %s13014_s27  ;;  %p13022_p11 = scmp.lt.u32.totalorder %s13014_s27, %s15989_s20 }
0x65af   : > { %p13016_p7 = pnand %p13015_p5, %p16050_p12 }
0x65b0   : > { %p13021_p6 = por %p13020_p3, %p13019_p1 }
0x65b1   : > { %p13017_p9 = pneg %p13016_p7 }
0x65b2   : > { %p13023_p13 = por %p13022_p11, %p13021_p6 }
0x65b4   : > { %p13024_p8 = pnand %p13023_p13, %p13017_p9 }
0x65b6   : > { %13027 = shalt.err (!%p13024_p8)
}
0x65b7   : > { %12699 = dma.vmem_to_hbm [thread:$0]  (%p16050_p12), %s15991_s17, 16, %s15989_s20, %s9012_s18  }
0x65b8 PF: > { %s9036_s25 = sand.u32 1, %s13054_s11   ;;  %p16051_p10 = scmp.ne.s32.totalorder %s16048_s23, 0 }
0x65b9   : > { %p16052_p0 = scmp.ge.s32.totalorder %s13066_s14, 2  ;;  %s9037_s28 = scalar_lea.sflag [#allocation5], %s9036_s25 }
0x65bb   : > { %p12706_p2 = pnand %p16052_p0, %p16051_p10 }
0x65bd   : > { %13049 = dma.done.wait (!%p12706_p2), %s9037_s28, 16  }
0x65be   : > { %13051 = vsyncadd (!%p12706_p2), %s9037_s28, 4294967280  ;;  %p23_p4 = scmp.ge.s32.totalorder %s13168_s16, 4   ;;  %s16053_s11 = smov %s13058_s12 }
0x65bf   : > { %s16054_s12 = smov %s13062_s13  ;;  %s16055_s13 = smov %s13180_s19 }
0x65c0   : > { %s16056_s14 = smov %s13168_s16  ;;  %25 = sbr.rel (!%p23_p4) target bundleno = 7 (0x7), region = 134 }
0x65c7   :  { %9041 = vsyncpa [#allocation4], 1 }
0x65c8   :  { %9043 = vsyncpa [#allocation4 + $0x1], 1 }
0x65c9   :  { %9044 = vsyncpa [#allocation5], 1 }
0x65ca   :  { %9046 = vsyncpa [#allocation5 + $0x1], 1 }

</bundles_post_ra>
